<compile_context>
chip_gen: v7x
topology: tpu7x:2x2x1
jax: 0.10.0
libtpu: 0.0.40
codegen_flags: <defaults>
</compile_context>

<pallas_src>
import jax
import jax.numpy as jnp
from jax import lax
from jax.experimental import pallas as pl
from jax.experimental.pallas import tpu as pltpu

K = 3     # CCTLayer kernel_size
PAD = 1   # CCTLayer picks padding=1 for kernel_size==3 (stride=1 => "same")


# ---------------------------------------------------------------------------
# BlockSpec helpers
# ---------------------------------------------------------------------------

def _full_spec(shape):
    nd = len(shape)
    return pl.BlockSpec(shape, lambda i, _nd=nd: (0,) * _nd)


# ---------------------------------------------------------------------------
# Fused DenseCCTBlock conv-path kernel
#   base CCTLayer -> act -> [1x1 conv -> CCTLayer -> act] * num_blocks -> final 1x1 conv
# ---------------------------------------------------------------------------

def _make_dense_cct_block_kernel(num_blocks):
    n_in = 3 + 4 * num_blocks + 2   # x, (wcat,bcat)_base, [w1,b1,wcat,bcat]*nb, wf, bf

    def kernel(*args):
        in_refs = args[:n_in]
        o_ref = args[n_in]
        pad_refs = args[n_in + 1:]
        x_ref = in_refs[0]

        def matmul_cat(feats, w_ref, b_ref):
            # concat(feats, axis=-1) @ W + b, with W row-sliced per feature chunk
            off = 0
            acc = b_ref[...]
            for f in feats:
                c = f.shape[-1]
                acc = acc + jnp.dot(f, w_ref[off:off + c, :],
                                    preferred_element_type=jnp.float32)
                off += c
            return acc

        def cct_relu(y2, pad_ref, wcat_ref, bcat_ref):
            # y2: (H*W, C) -> CCTLayer(conv3x3 + convT3x3 concat) + bias, then ReLU
            C = pad_ref.shape[-1]
            H = pad_ref.shape[0] - 2 * PAD
            W = pad_ref.shape[1] - 2 * PAD
            pad_ref[...] = jnp.zeros(pad_ref.shape, pad_ref.dtype)
            pad_ref[PAD:PAD + H, PAD:PAD + W, :] = y2.reshape(H, W, C)
            acc = bcat_ref[...]                             # (1, 2*ch), broadcasts
            for tap in range(K * K):                        # static unrolled 9 taps
                dh, dw = tap // K, tap % K
                ys = pad_ref[dh:dh + H, dw:dw + W, :].reshape(H * W, C)
                acc = acc + jnp.dot(ys, wcat_ref[tap],
                                    preferred_element_type=jnp.float32)
            return jnp.maximum(acc, 0.0)

        # base CCTLayer on the raw input (+ identity Interpolate + act)
        feats = [cct_relu(x_ref[0], pad_refs[0], in_refs[1], in_refs[2])]

        # DenseCCTMiddle: each CCTBlock = 1x1 conv over the running concat, CCTLayer, act
        for b in range(num_blocks):
            w1, b1 = in_refs[3 + 4 * b], in_refs[4 + 4 * b]
            wc, bc = in_refs[5 + 4 * b], in_refs[6 + 4 * b]
            y = matmul_cat(feats, w1, b1)
            feats.append(cct_relu(y, pad_refs[1 + b], wc, bc))

        # final 1x1 conv over the dense concat (no activation)
        out = matmul_cat(feats, in_refs[n_in - 2], in_refs[n_in - 1])
        o_ref[0] = out.astype(o_ref.dtype)

    return kernel


def dense_cct_block_pallas(x_nchw, P):
    """Whole DenseCCTBlock conv path in one pallas_call. Returns NCHW-flat (N, C*H*W)."""
    n, cin, h, w = x_nchw.shape
    hw = h * w
    x = jnp.transpose(x_nchw, (0, 2, 3, 1)).astype(jnp.float32).reshape(n, hw, cin)

    def fuse(layer):
        # HWIO conv / conv_T(as-conv) weights -> (K*K, IC, 2*ch) + fused bias row
        wcat = jnp.concatenate([layer['wc'], layer['wt']], axis=-1)
        ic, oc = wcat.shape[2], wcat.shape[3]
        bcat = jnp.concatenate([layer['bc'], layer['bt']]).reshape(1, oc)
        return wcat.reshape(K * K, ic, oc), bcat

    num_blocks = len(P['blocks'])
    args = [x]
    wcat0, bcat0 = fuse(P['base'])
    args += [wcat0, bcat0]
    pad_shapes = [(h + 2 * PAD, w + 2 * PAD, cin)]
    for blk in P['blocks']:
        wcat, bcat = fuse(blk)
        args += [blk['w1'], blk['b1'].reshape(1, -1), wcat, bcat]
        pad_shapes.append((h + 2 * PAD, w + 2 * PAD, blk['w1'].shape[1]))
    args += [P['wf'], P['bf'].reshape(1, -1)]
    cf = P['wf'].shape[1]

    in_specs = [pl.BlockSpec((1, hw, cin), lambda i: (i, 0, 0))]
    in_specs += [_full_spec(a.shape) for a in args[1:]]

    out = pl.pallas_call(
        _make_dense_cct_block_kernel(num_blocks),
        out_shape=jax.ShapeDtypeStruct((n, hw, cf), jnp.float32),
        grid_spec=pltpu.PrefetchScalarGridSpec(
            num_scalar_prefetch=0,
            grid=(n,),
            in_specs=in_specs,
            out_specs=pl.BlockSpec((1, hw, cf), lambda i: (i, 0, 0)),
            scratch_shapes=[pltpu.VMEM(s, jnp.float32) for s in pad_shapes],
        ),
        compiler_params=pltpu.CompilerParams(dimension_semantics=("parallel",)),
    )(*args)

    # match torch `.view(N, -1)` on an NCHW tensor (channel-major flatten)
    return out.reshape(n, h, w, cf).transpose(0, 3, 1, 2).reshape(n, cf * hw)


# ---------------------------------------------------------------------------
# Fused FC2 MLP kernel
# ---------------------------------------------------------------------------

def _make_fc_kernel(n_lin):
    n_in = 1 + 2 * n_lin

    def kernel(*args):
        x_ref = args[0]
        o_ref = args[n_in]
        ws = args[1:n_in:2]
        bs = args[2:n_in:2]
        h = x_ref[...]
        for li in range(n_lin - 1):     # act after every linear except fc_end
            h = jnp.maximum(
                jnp.dot(h, ws[li][...], preferred_element_type=jnp.float32) + bs[li][...],
                0.0)
        out = jnp.dot(h, ws[n_lin - 1][...],
                      preferred_element_type=jnp.float32) + bs[n_lin - 1][...]
        o_ref[...] = out.astype(o_ref.dtype)

    return kernel


def fc2_pallas(x_flat, P):
    n, _ = x_flat.shape
    ws, bs = P['ws'], P['bs']
    args = [x_flat.astype(jnp.float32)]
    for w_, b_ in zip(ws, bs):
        args += [w_, b_.reshape(1, -1)]
    dout = ws[-1].shape[1]
    return pl.pallas_call(
        _make_fc_kernel(len(ws)),
        out_shape=jax.ShapeDtypeStruct((n, dout), jnp.float32),
        grid_spec=pltpu.PrefetchScalarGridSpec(
            num_scalar_prefetch=0,
            grid=(1,),
            in_specs=[_full_spec(a.shape) for a in args],
            out_specs=_full_spec((n, dout)),
        ),
        compiler_params=pltpu.CompilerParams(dimension_semantics=("arbitrary",)),
    )(*args)


# ---------------------------------------------------------------------------
# Final quadratic * cubic * state combination (lane-dense elementwise kernel)
# ---------------------------------------------------------------------------

def _combine_kernel(qd_c_ref, qd_f_ref, cu_c_ref, cu_f_ref, state_ref, full_ref, pre_ref):
    pre = (qd_c_ref[...] + qd_f_ref[...]) * (cu_c_ref[...] + cu_f_ref[...])
    pre_ref[...] = pre
    full_ref[...] = 0.5 * pre * state_ref[...]


def combine_pallas(qd_c, qd_f, cu_c, cu_f, state_flat):
    n, d = state_flat.shape
    full, pre = pl.pallas_call(
        _combine_kernel,
        out_shape=(jax.ShapeDtypeStruct((n, d), jnp.float32),
                   jax.ShapeDtypeStruct((n, d), jnp.float32)),
        grid_spec=pltpu.PrefetchScalarGridSpec(
            num_scalar_prefetch=0,
            grid=(1,),
            in_specs=[_full_spec((n, d)) for _ in range(5)],
            out_specs=[_full_spec((n, d)), _full_spec((n, d))],
        ),
        compiler_params=pltpu.CompilerParams(dimension_semantics=("arbitrary",)),
    )(qd_c, qd_f, cu_c, cu_f, state_flat)
    return full, pre


# ---------------------------------------------------------------------------
# Container forward (glue + kernels)
# ---------------------------------------------------------------------------

def container_forward(state, qd_conv_inp, qd_fc_inp, cubic_conv_inp, cubic_fc_inp, params):
    n = state.shape[0]
    qd_c = dense_cct_block_pallas(qd_conv_inp, params['qd_conv'])
    qd_f = fc2_pallas(qd_fc_inp.reshape(n, -1).astype(jnp.float32), params['qd_fc'])
    cu_c = dense_cct_block_pallas(cubic_conv_inp, params['cu_conv'])
    cu_f = fc2_pallas(cubic_fc_inp.reshape(n, -1).astype(jnp.float32), params['cu_fc'])
    full_flat, pre_flat = combine_pallas(
        qd_c, qd_f, cu_c, cu_f, state.reshape(n, -1).astype(jnp.float32))
    return full_flat.reshape(state.shape), pre_flat.reshape(state.shape)


# ---------------------------------------------------------------------------
# Deterministic parameter init (PyTorch layouts, converted to channels-last/HWIO)
# ---------------------------------------------------------------------------

def _init_cct_layer(key, cin, cout):
    # Conv2d(cin, cout//2, 3, pad=1) + ConvTranspose2d(cin, cout//2, 3, pad=1)
    ch = cout // 2
    k1, k2, k3, k4 = jax.random.split(key, 4)
    wc_oihw = jax.random.normal(k1, (ch, cin, K, K), jnp.float32) * 0.1
    bc = jax.random.normal(k2, (ch,), jnp.float32) * 0.1
    wt_iohw = jax.random.normal(k3, (cin, ch, K, K), jnp.float32) * 0.1
    bt = jax.random.normal(k4, (ch,), jnp.float32) * 0.1
    wc = jnp.transpose(wc_oihw, (2, 3, 1, 0))                           # HWIO (3,3,cin,ch)
    # ConvTranspose2d(stride=1, pad=1) == Conv2d with spatially flipped, io-swapped weight
    wt = jnp.transpose(jnp.flip(wt_iohw, axis=(2, 3)), (2, 3, 0, 1))    # HWIO (3,3,cin,ch)
    return dict(wc=wc, bc=bc, wt=wt, bt=bt)


def _init_conv1x1(key, cin, cout):
    k1, k2 = jax.random.split(key)
    w_oihw = jax.random.normal(k1, (cout, cin, 1, 1), jnp.float32) * 0.1
    b = jax.random.normal(k2, (cout,), jnp.float32) * 0.1
    return jnp.transpose(w_oihw[:, :, 0, 0], (1, 0)), b                 # (cin, cout)


def _init_dense_path(key, cin, base_ch, growth, nlayers, cout_final):
    keys = jax.random.split(key, 2 * nlayers + 2)
    base = _init_cct_layer(keys[0], cin, base_ch)
    blocks = []
    in_ch = base_ch
    for i in range(nlayers):
        w1, b1 = _init_conv1x1(keys[1 + 2 * i], in_ch, growth)
        cct = _init_cct_layer(keys[2 + 2 * i], growth, growth)
        blocks.append(dict(w1=w1, b1=b1, **cct))
        in_ch += growth
    wf, bf = _init_conv1x1(keys[-1], in_ch, cout_final)
    return dict(base=base, blocks=blocks, wf=wf, bf=bf)


def _init_fc(key, in_size, hidden, nlayers, out_size):
    # nn.Linear stored directly as (in, out); random init so the transpose is immaterial
    dims = [in_size] + [hidden] * (nlayers + 1) + [out_size]
    keys = jax.random.split(key, 2 * (len(dims) - 1))
    ws, bs = [], []
    for i in range(len(dims) - 1):
        ws.append(jax.random.normal(keys[2 * i], (dims[i], dims[i + 1]), jnp.float32) * 0.05)
        bs.append(jax.random.normal(keys[2 * i + 1], (dims[i + 1],), jnp.float32) * 0.05)
    return dict(ws=ws, bs=bs)


def init_params(key, n_ch, h, w, base_ch=8, growth=8, nlayers=2, fc_hidden=64):
    kq1, kq2, kc1, kc2 = jax.random.split(key, 4)
    flat = n_ch * h * w
    return {
        'qd_conv': _init_dense_path(kq1, n_ch, base_ch, growth, nlayers, n_ch),
        'qd_fc':   _init_fc(kq2, flat, fc_hidden, nlayers, flat),
        'cu_conv': _init_dense_path(kc1, n_ch, base_ch, growth, nlayers, n_ch),
        'cu_fc':   _init_fc(kc2, flat, fc_hidden, nlayers, flat),
    }


# ---------------------------------------------------------------------------
# Plain-JAX reference (mirrors the PyTorch forward semantics)
# ---------------------------------------------------------------------------

_DN = ('NHWC', 'HWIO', 'NHWC')
_HP = lax.Precision.HIGHEST


def _ref_cct(y, layer):
    pads = ((PAD, PAD), (PAD, PAD))
    oc = lax.conv_general_dilated(y, layer['wc'], (1, 1), pads,
                                  dimension_numbers=_DN, precision=_HP) + layer['bc']
    ot = lax.conv_general_dilated(y, layer['wt'], (1, 1), pads,
                                  dimension_numbers=_DN, precision=_HP) + layer['bt']
    return jnp.concatenate([oc, ot], axis=-1)


def _ref_conv1x1(y, w, b):
    return lax.conv_general_dilated(y, w[None, None], (1, 1), 'VALID',
                                    dimension_numbers=_DN, precision=_HP) + b


def reference_dense_path(x_nchw, P):
    x = jnp.transpose(x_nchw, (0, 2, 3, 1)).astype(jnp.float32)
    feats = [jnp.maximum(_ref_cct(x, P['base']), 0.0)]
    for blk in P['blocks']:
        inp = jnp.concatenate(feats, axis=-1)
        y = _ref_conv1x1(inp, blk['w1'], blk['b1'])
        feats.append(jnp.maximum(_ref_cct(y, blk), 0.0))
    dense = jnp.concatenate(feats, axis=-1)
    out = _ref_conv1x1(dense, P['wf'], P['bf'])
    out = jnp.transpose(out, (0, 3, 1, 2))
    return out.reshape(out.shape[0], -1)


def reference_fc(x_flat, P):
    h = x_flat.astype(jnp.float32)
    for w_, b_ in zip(P['ws'][:-1], P['bs'][:-1]):
        h = jnp.maximum(jnp.dot(h, w_, precision=_HP) + b_, 0.0)
    return jnp.dot(h, P['ws'][-1], precision=_HP) + P['bs'][-1]


def reference_forward(state, qd_conv_inp, qd_fc_inp, cu_conv_inp, cu_fc_inp, params):
    n = state.shape[0]
    pre_quad = (reference_dense_path(qd_conv_inp, params['qd_conv'])
                + reference_fc(qd_fc_inp.reshape(n, -1), params['qd_fc']))
    pre_cubic = (reference_dense_path(cu_conv_inp, params['cu_conv'])
                 + reference_fc(cu_fc_inp.reshape(n, -1), params['cu_fc']))
    pre = pre_quad * pre_cubic
    full = 0.5 * pre * state.reshape(n, -1)
    return full.reshape(state.shape), pre.reshape(state.shape)


# ---------------------------------------------------------------------------

if __name__ == "__main__":
    key = jax.random.PRNGKey(0)
    ks, kq1, kq2, kc1, kc2, kp = jax.random.split(key, 6)
    N, C, H, W = 2, 4, 16, 16

    state = jax.random.normal(ks, (N, C, H, W), jnp.float32)
    qd_conv_inp = jax.random.normal(kq1, (N, C, H, W), jnp.float32)     # cct_status != 3
    qd_fc_inp = jax.random.normal(kq2, (N, C, H, W), jnp.float32)       # cct_status == 3
    cubic_conv_inp = jax.random.normal(kc1, (N, C, H, W), jnp.float32)
    cubic_fc_inp = jax.random.normal(kc2, (N, C, H, W), jnp.float32)
    params = init_params(kp, C, H, W)

    fwd = jax.jit(container_forward)
    full, pre = jax.block_until_ready(
        fwd(state, qd_conv_inp, qd_fc_inp, cubic_conv_inp, cubic_fc_inp, params))
    rfull, rpre = jax.block_until_ready(
        reference_forward(state, qd_conv_inp, qd_fc_inp, cubic_conv_inp, cubic_fc_inp, params))

    assert full.shape == state.shape and pre.shape == state.shape, (full.shape, pre.shape)
    assert jnp.allclose(pre, rpre, atol=1e-3, rtol=1e-3), float(jnp.max(jnp.abs(pre - rpre)))
    assert jnp.allclose(full, rfull, atol=1e-3, rtol=1e-3), float(jnp.max(jnp.abs(full - rfull)))
    print("KERNEL_OK")
</pallas_src>

<mosaic_0001>
module attributes {stable_mosaic.version = 11 : i64} {
  func.func @kernel(%arg0: i32, %arg1: memref<1x256x4xf32, #tpu.memory_space<vmem>>, %arg2: memref<9x4x8xf32, #tpu.memory_space<vmem>>, %arg3: memref<1x8xf32, #tpu.memory_space<vmem>>, %arg4: memref<8x8xf32, #tpu.memory_space<vmem>>, %arg5: memref<1x8xf32, #tpu.memory_space<vmem>>, %arg6: memref<9x8x8xf32, #tpu.memory_space<vmem>>, %arg7: memref<1x8xf32, #tpu.memory_space<vmem>>, %arg8: memref<16x8xf32, #tpu.memory_space<vmem>>, %arg9: memref<1x8xf32, #tpu.memory_space<vmem>>, %arg10: memref<9x8x8xf32, #tpu.memory_space<vmem>>, %arg11: memref<1x8xf32, #tpu.memory_space<vmem>>, %arg12: memref<24x4xf32, #tpu.memory_space<vmem>>, %arg13: memref<1x4xf32, #tpu.memory_space<vmem>>, %arg14: memref<1x256x4xf32, #tpu.memory_space<vmem>>, %arg15: memref<18x18x4xf32, #tpu.memory_space<vmem>>, %arg16: memref<18x18x8xf32, #tpu.memory_space<vmem>>, %arg17: memref<18x18x8xf32, #tpu.memory_space<vmem>>) attributes {dimension_semantics = [#tpu.dimension_semantics<parallel>], iteration_bounds = array<i64: 2>, scalar_prefetch = 0 : i64, scratch_operands = 3 : i64, tpu.core_type = #tpu.core_type<tc>, window_params = [{transform_indices = @transform_0, window_bounds = array<i64: 1, 256, 4>}, {pipeline_mode = #tpu.pipeline_mode<synchronous>, transform_indices = @transform_1, window_bounds = array<i64: 9, 4, 8>}, {pipeline_mode = #tpu.pipeline_mode<synchronous>, transform_indices = @transform_2, window_bounds = array<i64: 1, 8>}, {pipeline_mode = #tpu.pipeline_mode<synchronous>, transform_indices = @transform_3, window_bounds = array<i64: 8, 8>}, {pipeline_mode = #tpu.pipeline_mode<synchronous>, transform_indices = @transform_4, window_bounds = array<i64: 1, 8>}, {pipeline_mode = #tpu.pipeline_mode<synchronous>, transform_indices = @transform_5, window_bounds = array<i64: 9, 8, 8>}, {pipeline_mode = #tpu.pipeline_mode<synchronous>, transform_indices = @transform_6, window_bounds = array<i64: 1, 8>}, {pipeline_mode = #tpu.pipeline_mode<synchronous>, transform_indices = @transform_7, window_bounds = array<i64: 16, 8>}, {pipeline_mode = #tpu.pipeline_mode<synchronous>, transform_indices = @transform_8, window_bounds = array<i64: 1, 8>}, {pipeline_mode = #tpu.pipeline_mode<synchronous>, transform_indices = @transform_9, window_bounds = array<i64: 9, 8, 8>}, {pipeline_mode = #tpu.pipeline_mode<synchronous>, transform_indices = @transform_10, window_bounds = array<i64: 1, 8>}, {pipeline_mode = #tpu.pipeline_mode<synchronous>, transform_indices = @transform_11, window_bounds = array<i64: 24, 4>}, {pipeline_mode = #tpu.pipeline_mode<synchronous>, transform_indices = @transform_12, window_bounds = array<i64: 1, 4>}, {transform_indices = @transform_13, window_bounds = array<i64: 1, 256, 4>}]} {
    %c0 = arith.constant 0 : index
    %c0_0 = arith.constant 0 : index
    %c0_1 = arith.constant 0 : index
    %0 = vector.load %arg1[%c0, %c0_0, %c0_1] : memref<1x256x4xf32, #tpu.memory_space<vmem>>, vector<1x256x4xf32>
    %1 = vector.shape_cast %0 : vector<1x256x4xf32> to vector<256x4xf32>
    %cst = arith.constant 0.000000e+00 : f32
    %2 = vector.broadcast %cst : f32 to vector<18x18x4xf32>
    %c0_2 = arith.constant 0 : index
    %c0_3 = arith.constant 0 : index
    %c0_4 = arith.constant 0 : index
    %3 = vector.load %arg15[%c0_2, %c0_3, %c0_4] : memref<18x18x4xf32, #tpu.memory_space<vmem>>, vector<18x18x4xf32>
    tpu.vector_store %arg15[%c0_2, %c0_3, %c0_4], %2 {strides = array<i32>} : memref<18x18x4xf32, #tpu.memory_space<vmem>>, vector<18x18x4xf32>,
    %4 = vector.shape_cast %1 : vector<256x4xf32> to vector<16x16x4xf32>
    %c1 = arith.constant 1 : index
    %c1_5 = arith.constant 1 : index
    %c0_6 = arith.constant 0 : index
    %5 = vector.load %arg15[%c1, %c1_5, %c0_6] : memref<18x18x4xf32, #tpu.memory_space<vmem>>, vector<16x16x4xf32>
    tpu.vector_store %arg15[%c1, %c1_5, %c0_6], %4 {strides = array<i32>} : memref<18x18x4xf32, #tpu.memory_space<vmem>>, vector<16x16x4xf32>,
    %c0_7 = arith.constant 0 : index
    %c0_8 = arith.constant 0 : index
    %6 = vector.load %arg3[%c0_7, %c0_8] : memref<1x8xf32, #tpu.memory_space<vmem>>, vector<1x8xf32>
    %c0_9 = arith.constant 0 : index
    %c0_10 = arith.constant 0 : index
    %c0_11 = arith.constant 0 : index
    %7 = vector.load %arg15[%c0_9, %c0_10, %c0_11] : memref<18x18x4xf32, #tpu.memory_space<vmem>>, vector<16x16x4xf32>
    %8 = vector.shape_cast %7 : vector<16x16x4xf32> to vector<256x4xf32>
    %c0_12 = arith.constant 0 : index
    %c0_13 = arith.constant 0 : index
    %c0_14 = arith.constant 0 : index
    %9 = vector.load %arg2[%c0_12, %c0_13, %c0_14] : memref<9x4x8xf32, #tpu.memory_space<vmem>>, vector<1x4x8xf32>
    %10 = vector.shape_cast %9 : vector<1x4x8xf32> to vector<4x8xf32>
    %cst_15 = arith.constant dense<0.000000e+00> : vector<256x8xf32>
    %11 = tpu.matmul %8, %10, %cst_15 {dimension_numbers = #tpu.dot_dimension_numbers<[1], [0], [0], [1], [0, 0, 1, 1], [], []>} : vector<256x4xf32>, vector<4x8xf32>, vector<256x8xf32> -> vector<256x8xf32>
    %12 = vector.broadcast %6 : vector<1x8xf32> to vector<256x8xf32>
    %13 = arith.addf %12, %11 : vector<256x8xf32>
    %c0_16 = arith.constant 0 : index
    %c1_17 = arith.constant 1 : index
    %c0_18 = arith.constant 0 : index
    %14 = vector.load %arg15[%c0_16, %c1_17, %c0_18] : memref<18x18x4xf32, #tpu.memory_space<vmem>>, vector<16x16x4xf32>
    %15 = vector.shape_cast %14 : vector<16x16x4xf32> to vector<256x4xf32>
    %c1_19 = arith.constant 1 : index
    %c0_20 = arith.constant 0 : index
    %c0_21 = arith.constant 0 : index
    %16 = vector.load %arg2[%c1_19, %c0_20, %c0_21] : memref<9x4x8xf32, #tpu.memory_space<vmem>>, vector<1x4x8xf32>
    %17 = vector.shape_cast %16 : vector<1x4x8xf32> to vector<4x8xf32>
    %cst_22 = arith.constant dense<0.000000e+00> : vector<256x8xf32>
    %18 = tpu.matmul %15, %17, %cst_22 {dimension_numbers = #tpu.dot_dimension_numbers<[1], [0], [0], [1], [0, 0, 1, 1], [], []>} : vector<256x4xf32>, vector<4x8xf32>, vector<256x8xf32> -> vector<256x8xf32>
    %19 = arith.addf %13, %18 : vector<256x8xf32>
    %c0_23 = arith.constant 0 : index
    %c2 = arith.constant 2 : index
    %c0_24 = arith.constant 0 : index
    %20 = vector.load %arg15[%c0_23, %c2, %c0_24] : memref<18x18x4xf32, #tpu.memory_space<vmem>>, vector<16x16x4xf32>
    %21 = vector.shape_cast %20 : vector<16x16x4xf32> to vector<256x4xf32>
    %c2_25 = arith.constant 2 : index
    %c0_26 = arith.constant 0 : index
    %c0_27 = arith.constant 0 : index
    %22 = vector.load %arg2[%c2_25, %c0_26, %c0_27] : memref<9x4x8xf32, #tpu.memory_space<vmem>>, vector<1x4x8xf32>
    %23 = vector.shape_cast %22 : vector<1x4x8xf32> to vector<4x8xf32>
    %cst_28 = arith.constant dense<0.000000e+00> : vector<256x8xf32>
    %24 = tpu.matmul %21, %23, %cst_28 {dimension_numbers = #tpu.dot_dimension_numbers<[1], [0], [0], [1], [0, 0, 1, 1], [], []>} : vector<256x4xf32>, vector<4x8xf32>, vector<256x8xf32> -> vector<256x8xf32>
    %25 = arith.addf %19, %24 : vector<256x8xf32>
    %c1_29 = arith.constant 1 : index
    %c0_30 = arith.constant 0 : index
    %c0_31 = arith.constant 0 : index
    %26 = vector.load %arg15[%c1_29, %c0_30, %c0_31] : memref<18x18x4xf32, #tpu.memory_space<vmem>>, vector<16x16x4xf32>
    %27 = vector.shape_cast %26 : vector<16x16x4xf32> to vector<256x4xf32>
    %c3 = arith.constant 3 : index
    %c0_32 = arith.constant 0 : index
    %c0_33 = arith.constant 0 : index
    %28 = vector.load %arg2[%c3, %c0_32, %c0_33] : memref<9x4x8xf32, #tpu.memory_space<vmem>>, vector<1x4x8xf32>
    %29 = vector.shape_cast %28 : vector<1x4x8xf32> to vector<4x8xf32>
    %cst_34 = arith.constant dense<0.000000e+00> : vector<256x8xf32>
    %30 = tpu.matmul %27, %29, %cst_34 {dimension_numbers = #tpu.dot_dimension_numbers<[1], [0], [0], [1], [0, 0, 1, 1], [], []>} : vector<256x4xf32>, vector<4x8xf32>, vector<256x8xf32> -> vector<256x8xf32>
    %31 = arith.addf %25, %30 : vector<256x8xf32>
    %c1_35 = arith.constant 1 : index
    %c1_36 = arith.constant 1 : index
    %c0_37 = arith.constant 0 : index
    %32 = vector.load %arg15[%c1_35, %c1_36, %c0_37] : memref<18x18x4xf32, #tpu.memory_space<vmem>>, vector<16x16x4xf32>
    %33 = vector.shape_cast %32 : vector<16x16x4xf32> to vector<256x4xf32>
    %c4 = arith.constant 4 : index
    %c0_38 = arith.constant 0 : index
    %c0_39 = arith.constant 0 : index
    %34 = vector.load %arg2[%c4, %c0_38, %c0_39] : memref<9x4x8xf32, #tpu.memory_space<vmem>>, vector<1x4x8xf32>
    %35 = vector.shape_cast %34 : vector<1x4x8xf32> to vector<4x8xf32>
    %cst_40 = arith.constant dense<0.000000e+00> : vector<256x8xf32>
    %36 = tpu.matmul %33, %35, %cst_40 {dimension_numbers = #tpu.dot_dimension_numbers<[1], [0], [0], [1], [0, 0, 1, 1], [], []>} : vector<256x4xf32>, vector<4x8xf32>, vector<256x8xf32> -> vector<256x8xf32>
    %37 = arith.addf %31, %36 : vector<256x8xf32>
    %c1_41 = arith.constant 1 : index
    %c2_42 = arith.constant 2 : index
    %c0_43 = arith.constant 0 : index
    %38 = vector.load %arg15[%c1_41, %c2_42, %c0_43] : memref<18x18x4xf32, #tpu.memory_space<vmem>>, vector<16x16x4xf32>
    %39 = vector.shape_cast %38 : vector<16x16x4xf32> to vector<256x4xf32>
    %c5 = arith.constant 5 : index
    %c0_44 = arith.constant 0 : index
    %c0_45 = arith.constant 0 : index
    %40 = vector.load %arg2[%c5, %c0_44, %c0_45] : memref<9x4x8xf32, #tpu.memory_space<vmem>>, vector<1x4x8xf32>
    %41 = vector.shape_cast %40 : vector<1x4x8xf32> to vector<4x8xf32>
    %cst_46 = arith.constant dense<0.000000e+00> : vector<256x8xf32>
    %42 = tpu.matmul %39, %41, %cst_46 {dimension_numbers = #tpu.dot_dimension_numbers<[1], [0], [0], [1], [0, 0, 1, 1], [], []>} : vector<256x4xf32>, vector<4x8xf32>, vector<256x8xf32> -> vector<256x8xf32>
    %43 = arith.addf %37, %42 : vector<256x8xf32>
    %c2_47 = arith.constant 2 : index
    %c0_48 = arith.constant 0 : index
    %c0_49 = arith.constant 0 : index
    %44 = vector.load %arg15[%c2_47, %c0_48, %c0_49] : memref<18x18x4xf32, #tpu.memory_space<vmem>>, vector<16x16x4xf32>
    %45 = vector.shape_cast %44 : vector<16x16x4xf32> to vector<256x4xf32>
    %c6 = arith.constant 6 : index
    %c0_50 = arith.constant 0 : index
    %c0_51 = arith.constant 0 : index
    %46 = vector.load %arg2[%c6, %c0_50, %c0_51] : memref<9x4x8xf32, #tpu.memory_space<vmem>>, vector<1x4x8xf32>
    %47 = vector.shape_cast %46 : vector<1x4x8xf32> to vector<4x8xf32>
    %cst_52 = arith.constant dense<0.000000e+00> : vector<256x8xf32>
    %48 = tpu.matmul %45, %47, %cst_52 {dimension_numbers = #tpu.dot_dimension_numbers<[1], [0], [0], [1], [0, 0, 1, 1], [], []>} : vector<256x4xf32>, vector<4x8xf32>, vector<256x8xf32> -> vector<256x8xf32>
    %49 = arith.addf %43, %48 : vector<256x8xf32>
    %c2_53 = arith.constant 2 : index
    %c1_54 = arith.constant 1 : index
    %c0_55 = arith.constant 0 : index
    %50 = vector.load %arg15[%c2_53, %c1_54, %c0_55] : memref<18x18x4xf32, #tpu.memory_space<vmem>>, vector<16x16x4xf32>
    %51 = vector.shape_cast %50 : vector<16x16x4xf32> to vector<256x4xf32>
    %c7 = arith.constant 7 : index
    %c0_56 = arith.constant 0 : index
    %c0_57 = arith.constant 0 : index
    %52 = vector.load %arg2[%c7, %c0_56, %c0_57] : memref<9x4x8xf32, #tpu.memory_space<vmem>>, vector<1x4x8xf32>
    %53 = vector.shape_cast %52 : vector<1x4x8xf32> to vector<4x8xf32>
    %cst_58 = arith.constant dense<0.000000e+00> : vector<256x8xf32>
    %54 = tpu.matmul %51, %53, %cst_58 {dimension_numbers = #tpu.dot_dimension_numbers<[1], [0], [0], [1], [0, 0, 1, 1], [], []>} : vector<256x4xf32>, vector<4x8xf32>, vector<256x8xf32> -> vector<256x8xf32>
    %55 = arith.addf %49, %54 : vector<256x8xf32>
    %c2_59 = arith.constant 2 : index
    %c2_60 = arith.constant 2 : index
    %c0_61 = arith.constant 0 : index
    %56 = vector.load %arg15[%c2_59, %c2_60, %c0_61] : memref<18x18x4xf32, #tpu.memory_space<vmem>>, vector<16x16x4xf32>
    %57 = vector.shape_cast %56 : vector<16x16x4xf32> to vector<256x4xf32>
    %c8 = arith.constant 8 : index
    %c0_62 = arith.constant 0 : index
    %c0_63 = arith.constant 0 : index
    %58 = vector.load %arg2[%c8, %c0_62, %c0_63] : memref<9x4x8xf32, #tpu.memory_space<vmem>>, vector<1x4x8xf32>
    %59 = vector.shape_cast %58 : vector<1x4x8xf32> to vector<4x8xf32>
    %cst_64 = arith.constant dense<0.000000e+00> : vector<256x8xf32>
    %60 = tpu.matmul %57, %59, %cst_64 {dimension_numbers = #tpu.dot_dimension_numbers<[1], [0], [0], [1], [0, 0, 1, 1], [], []>} : vector<256x4xf32>, vector<4x8xf32>, vector<256x8xf32> -> vector<256x8xf32>
    %61 = arith.addf %55, %60 : vector<256x8xf32>
    %cst_65 = arith.constant 0.000000e+00 : f32
    %62 = vector.broadcast %cst_65 : f32 to vector<256x8xf32>
    %63 = arith.maximumf %61, %62 : vector<256x8xf32>
    %c0_66 = arith.constant 0 : index
    %c0_67 = arith.constant 0 : index
    %64 = vector.load %arg5[%c0_66, %c0_67] : memref<1x8xf32, #tpu.memory_space<vmem>>, vector<1x8xf32>
    %c0_68 = arith.constant 0 : index
    %c0_69 = arith.constant 0 : index
    %65 = vector.load %arg4[%c0_68, %c0_69] : memref<8x8xf32, #tpu.memory_space<vmem>>, vector<8x8xf32>
    %cst_70 = arith.constant dense<0.000000e+00> : vector<256x8xf32>
    %66 = tpu.matmul %63, %65, %cst_70 {dimension_numbers = #tpu.dot_dimension_numbers<[1], [0], [0], [1], [0, 0, 1, 1], [], []>} : vector<256x8xf32>, vector<8x8xf32>, vector<256x8xf32> -> vector<256x8xf32>
    %67 = vector.broadcast %64 : vector<1x8xf32> to vector<256x8xf32>
    %68 = arith.addf %67, %66 : vector<256x8xf32>
    %cst_71 = arith.constant 0.000000e+00 : f32
    %69 = vector.broadcast %cst_71 : f32 to vector<18x18x8xf32>
    %c0_72 = arith.constant 0 : index
    %c0_73 = arith.constant 0 : index
    %c0_74 = arith.constant 0 : index
    %70 = vector.load %arg16[%c0_72, %c0_73, %c0_74] : memref<18x18x8xf32, #tpu.memory_space<vmem>>, vector<18x18x8xf32>
    tpu.vector_store %arg16[%c0_72, %c0_73, %c0_74], %69 {strides = array<i32>} : memref<18x18x8xf32, #tpu.memory_space<vmem>>, vector<18x18x8xf32>,
    %71 = vector.shape_cast %68 : vector<256x8xf32> to vector<16x16x8xf32>
    %c1_75 = arith.constant 1 : index
    %c1_76 = arith.constant 1 : index
    %c0_77 = arith.constant 0 : index
    %72 = vector.load %arg16[%c1_75, %c1_76, %c0_77] : memref<18x18x8xf32, #tpu.memory_space<vmem>>, vector<16x16x8xf32>
    tpu.vector_store %arg16[%c1_75, %c1_76, %c0_77], %71 {strides = array<i32>} : memref<18x18x8xf32, #tpu.memory_space<vmem>>, vector<16x16x8xf32>,
    %c0_78 = arith.constant 0 : index
    %c0_79 = arith.constant 0 : index
    %73 = vector.load %arg7[%c0_78, %c0_79] : memref<1x8xf32, #tpu.memory_space<vmem>>, vector<1x8xf32>
    %c0_80 = arith.constant 0 : index
    %c0_81 = arith.constant 0 : index
    %c0_82 = arith.constant 0 : index
    %74 = vector.load %arg16[%c0_80, %c0_81, %c0_82] : memref<18x18x8xf32, #tpu.memory_space<vmem>>, vector<16x16x8xf32>
    %75 = vector.shape_cast %74 : vector<16x16x8xf32> to vector<256x8xf32>
    %c0_83 = arith.constant 0 : index
    %c0_84 = arith.constant 0 : index
    %c0_85 = arith.constant 0 : index
    %76 = vector.load %arg6[%c0_83, %c0_84, %c0_85] : memref<9x8x8xf32, #tpu.memory_space<vmem>>, vector<1x8x8xf32>
    %77 = vector.shape_cast %76 : vector<1x8x8xf32> to vector<8x8xf32>
    %cst_86 = arith.constant dense<0.000000e+00> : vector<256x8xf32>
    %78 = tpu.matmul %75, %77, %cst_86 {dimension_numbers = #tpu.dot_dimension_numbers<[1], [0], [0], [1], [0, 0, 1, 1], [], []>} : vector<256x8xf32>, vector<8x8xf32>, vector<256x8xf32> -> vector<256x8xf32>
    %79 = vector.broadcast %73 : vector<1x8xf32> to vector<256x8xf32>
    %80 = arith.addf %79, %78 : vector<256x8xf32>
    %c0_87 = arith.constant 0 : index
    %c1_88 = arith.constant 1 : index
    %c0_89 = arith.constant 0 : index
    %81 = vector.load %arg16[%c0_87, %c1_88, %c0_89] : memref<18x18x8xf32, #tpu.memory_space<vmem>>, vector<16x16x8xf32>
    %82 = vector.shape_cast %81 : vector<16x16x8xf32> to vector<256x8xf32>
    %c1_90 = arith.constant 1 : index
    %c0_91 = arith.constant 0 : index
    %c0_92 = arith.constant 0 : index
    %83 = vector.load %arg6[%c1_90, %c0_91, %c0_92] : memref<9x8x8xf32, #tpu.memory_space<vmem>>, vector<1x8x8xf32>
    %84 = vector.shape_cast %83 : vector<1x8x8xf32> to vector<8x8xf32>
    %cst_93 = arith.constant dense<0.000000e+00> : vector<256x8xf32>
    %85 = tpu.matmul %82, %84, %cst_93 {dimension_numbers = #tpu.dot_dimension_numbers<[1], [0], [0], [1], [0, 0, 1, 1], [], []>} : vector<256x8xf32>, vector<8x8xf32>, vector<256x8xf32> -> vector<256x8xf32>
    %86 = arith.addf %80, %85 : vector<256x8xf32>
    %c0_94 = arith.constant 0 : index
    %c2_95 = arith.constant 2 : index
    %c0_96 = arith.constant 0 : index
    %87 = vector.load %arg16[%c0_94, %c2_95, %c0_96] : memref<18x18x8xf32, #tpu.memory_space<vmem>>, vector<16x16x8xf32>
    %88 = vector.shape_cast %87 : vector<16x16x8xf32> to vector<256x8xf32>
    %c2_97 = arith.constant 2 : index
    %c0_98 = arith.constant 0 : index
    %c0_99 = arith.constant 0 : index
    %89 = vector.load %arg6[%c2_97, %c0_98, %c0_99] : memref<9x8x8xf32, #tpu.memory_space<vmem>>, vector<1x8x8xf32>
    %90 = vector.shape_cast %89 : vector<1x8x8xf32> to vector<8x8xf32>
    %cst_100 = arith.constant dense<0.000000e+00> : vector<256x8xf32>
    %91 = tpu.matmul %88, %90, %cst_100 {dimension_numbers = #tpu.dot_dimension_numbers<[1], [0], [0], [1], [0, 0, 1, 1], [], []>} : vector<256x8xf32>, vector<8x8xf32>, vector<256x8xf32> -> vector<256x8xf32>
    %92 = arith.addf %86, %91 : vector<256x8xf32>
    %c1_101 = arith.constant 1 : index
    %c0_102 = arith.constant 0 : index
    %c0_103 = arith.constant 0 : index
    %93 = vector.load %arg16[%c1_101, %c0_102, %c0_103] : memref<18x18x8xf32, #tpu.memory_space<vmem>>, vector<16x16x8xf32>
    %94 = vector.shape_cast %93 : vector<16x16x8xf32> to vector<256x8xf32>
    %c3_104 = arith.constant 3 : index
    %c0_105 = arith.constant 0 : index
    %c0_106 = arith.constant 0 : index
    %95 = vector.load %arg6[%c3_104, %c0_105, %c0_106] : memref<9x8x8xf32, #tpu.memory_space<vmem>>, vector<1x8x8xf32>
    %96 = vector.shape_cast %95 : vector<1x8x8xf32> to vector<8x8xf32>
    %cst_107 = arith.constant dense<0.000000e+00> : vector<256x8xf32>
    %97 = tpu.matmul %94, %96, %cst_107 {dimension_numbers = #tpu.dot_dimension_numbers<[1], [0], [0], [1], [0, 0, 1, 1], [], []>} : vector<256x8xf32>, vector<8x8xf32>, vector<256x8xf32> -> vector<256x8xf32>
    %98 = arith.addf %92, %97 : vector<256x8xf32>
    %c1_108 = arith.constant 1 : index
    %c1_109 = arith.constant 1 : index
    %c0_110 = arith.constant 0 : index
    %99 = vector.load %arg16[%c1_108, %c1_109, %c0_110] : memref<18x18x8xf32, #tpu.memory_space<vmem>>, vector<16x16x8xf32>
    %100 = vector.shape_cast %99 : vector<16x16x8xf32> to vector<256x8xf32>
    %c4_111 = arith.constant 4 : index
    %c0_112 = arith.constant 0 : index
    %c0_113 = arith.constant 0 : index
    %101 = vector.load %arg6[%c4_111, %c0_112, %c0_113] : memref<9x8x8xf32, #tpu.memory_space<vmem>>, vector<1x8x8xf32>
    %102 = vector.shape_cast %101 : vector<1x8x8xf32> to vector<8x8xf32>
    %cst_114 = arith.constant dense<0.000000e+00> : vector<256x8xf32>
    %103 = tpu.matmul %100, %102, %cst_114 {dimension_numbers = #tpu.dot_dimension_numbers<[1], [0], [0], [1], [0, 0, 1, 1], [], []>} : vector<256x8xf32>, vector<8x8xf32>, vector<256x8xf32> -> vector<256x8xf32>
    %104 = arith.addf %98, %103 : vector<256x8xf32>
    %c1_115 = arith.constant 1 : index
    %c2_116 = arith.constant 2 : index
    %c0_117 = arith.constant 0 : index
    %105 = vector.load %arg16[%c1_115, %c2_116, %c0_117] : memref<18x18x8xf32, #tpu.memory_space<vmem>>, vector<16x16x8xf32>
    %106 = vector.shape_cast %105 : vector<16x16x8xf32> to vector<256x8xf32>
    %c5_118 = arith.constant 5 : index
    %c0_119 = arith.constant 0 : index
    %c0_120 = arith.constant 0 : index
    %107 = vector.load %arg6[%c5_118, %c0_119, %c0_120] : memref<9x8x8xf32, #tpu.memory_space<vmem>>, vector<1x8x8xf32>
    %108 = vector.shape_cast %107 : vector<1x8x8xf32> to vector<8x8xf32>
    %cst_121 = arith.constant dense<0.000000e+00> : vector<256x8xf32>
    %109 = tpu.matmul %106, %108, %cst_121 {dimension_numbers = #tpu.dot_dimension_numbers<[1], [0], [0], [1], [0, 0, 1, 1], [], []>} : vector<256x8xf32>, vector<8x8xf32>, vector<256x8xf32> -> vector<256x8xf32>
    %110 = arith.addf %104, %109 : vector<256x8xf32>
    %c2_122 = arith.constant 2 : index
    %c0_123 = arith.constant 0 : index
    %c0_124 = arith.constant 0 : index
    %111 = vector.load %arg16[%c2_122, %c0_123, %c0_124] : memref<18x18x8xf32, #tpu.memory_space<vmem>>, vector<16x16x8xf32>
    %112 = vector.shape_cast %111 : vector<16x16x8xf32> to vector<256x8xf32>
    %c6_125 = arith.constant 6 : index
    %c0_126 = arith.constant 0 : index
    %c0_127 = arith.constant 0 : index
    %113 = vector.load %arg6[%c6_125, %c0_126, %c0_127] : memref<9x8x8xf32, #tpu.memory_space<vmem>>, vector<1x8x8xf32>
    %114 = vector.shape_cast %113 : vector<1x8x8xf32> to vector<8x8xf32>
    %cst_128 = arith.constant dense<0.000000e+00> : vector<256x8xf32>
    %115 = tpu.matmul %112, %114, %cst_128 {dimension_numbers = #tpu.dot_dimension_numbers<[1], [0], [0], [1], [0, 0, 1, 1], [], []>} : vector<256x8xf32>, vector<8x8xf32>, vector<256x8xf32> -> vector<256x8xf32>
    %116 = arith.addf %110, %115 : vector<256x8xf32>
    %c2_129 = arith.constant 2 : index
    %c1_130 = arith.constant 1 : index
    %c0_131 = arith.constant 0 : index
    %117 = vector.load %arg16[%c2_129, %c1_130, %c0_131] : memref<18x18x8xf32, #tpu.memory_space<vmem>>, vector<16x16x8xf32>
    %118 = vector.shape_cast %117 : vector<16x16x8xf32> to vector<256x8xf32>
    %c7_132 = arith.constant 7 : index
    %c0_133 = arith.constant 0 : index
    %c0_134 = arith.constant 0 : index
    %119 = vector.load %arg6[%c7_132, %c0_133, %c0_134] : memref<9x8x8xf32, #tpu.memory_space<vmem>>, vector<1x8x8xf32>
    %120 = vector.shape_cast %119 : vector<1x8x8xf32> to vector<8x8xf32>
    %cst_135 = arith.constant dense<0.000000e+00> : vector<256x8xf32>
    %121 = tpu.matmul %118, %120, %cst_135 {dimension_numbers = #tpu.dot_dimension_numbers<[1], [0], [0], [1], [0, 0, 1, 1], [], []>} : vector<256x8xf32>, vector<8x8xf32>, vector<256x8xf32> -> vector<256x8xf32>
    %122 = arith.addf %116, %121 : vector<256x8xf32>
    %c2_136 = arith.constant 2 : index
    %c2_137 = arith.constant 2 : index
    %c0_138 = arith.constant 0 : index
    %123 = vector.load %arg16[%c2_136, %c2_137, %c0_138] : memref<18x18x8xf32, #tpu.memory_space<vmem>>, vector<16x16x8xf32>
    %124 = vector.shape_cast %123 : vector<16x16x8xf32> to vector<256x8xf32>
    %c8_139 = arith.constant 8 : index
    %c0_140 = arith.constant 0 : index
    %c0_141 = arith.constant 0 : index
    %125 = vector.load %arg6[%c8_139, %c0_140, %c0_141] : memref<9x8x8xf32, #tpu.memory_space<vmem>>, vector<1x8x8xf32>
    %126 = vector.shape_cast %125 : vector<1x8x8xf32> to vector<8x8xf32>
    %cst_142 = arith.constant dense<0.000000e+00> : vector<256x8xf32>
    %127 = tpu.matmul %124, %126, %cst_142 {dimension_numbers = #tpu.dot_dimension_numbers<[1], [0], [0], [1], [0, 0, 1, 1], [], []>} : vector<256x8xf32>, vector<8x8xf32>, vector<256x8xf32> -> vector<256x8xf32>
    %128 = arith.addf %122, %127 : vector<256x8xf32>
    %cst_143 = arith.constant 0.000000e+00 : f32
    %129 = vector.broadcast %cst_143 : f32 to vector<256x8xf32>
    %130 = arith.maximumf %128, %129 : vector<256x8xf32>
    %c0_144 = arith.constant 0 : index
    %c0_145 = arith.constant 0 : index
    %131 = vector.load %arg9[%c0_144, %c0_145] : memref<1x8xf32, #tpu.memory_space<vmem>>, vector<1x8xf32>
    %c0_146 = arith.constant 0 : index
    %c0_147 = arith.constant 0 : index
    %132 = vector.load %arg8[%c0_146, %c0_147] : memref<16x8xf32, #tpu.memory_space<vmem>>, vector<8x8xf32>
    %cst_148 = arith.constant dense<0.000000e+00> : vector<256x8xf32>
    %133 = tpu.matmul %63, %132, %cst_148 {dimension_numbers = #tpu.dot_dimension_numbers<[1], [0], [0], [1], [0, 0, 1, 1], [], []>} : vector<256x8xf32>, vector<8x8xf32>, vector<256x8xf32> -> vector<256x8xf32>
    %134 = vector.broadcast %131 : vector<1x8xf32> to vector<256x8xf32>
    %135 = arith.addf %134, %133 : vector<256x8xf32>
    %c8_149 = arith.constant 8 : index
    %c0_150 = arith.constant 0 : index
    %136 = vector.load %arg8[%c8_149, %c0_150] : memref<16x8xf32, #tpu.memory_space<vmem>>, vector<8x8xf32>
    %cst_151 = arith.constant dense<0.000000e+00> : vector<256x8xf32>
    %137 = tpu.matmul %130, %136, %cst_151 {dimension_numbers = #tpu.dot_dimension_numbers<[1], [0], [0], [1], [0, 0, 1, 1], [], []>} : vector<256x8xf32>, vector<8x8xf32>, vector<256x8xf32> -> vector<256x8xf32>
    %138 = arith.addf %135, %137 : vector<256x8xf32>
    %cst_152 = arith.constant 0.000000e+00 : f32
    %139 = vector.broadcast %cst_152 : f32 to vector<18x18x8xf32>
    %c0_153 = arith.constant 0 : index
    %c0_154 = arith.constant 0 : index
    %c0_155 = arith.constant 0 : index
    %140 = vector.load %arg17[%c0_153, %c0_154, %c0_155] : memref<18x18x8xf32, #tpu.memory_space<vmem>>, vector<18x18x8xf32>
    tpu.vector_store %arg17[%c0_153, %c0_154, %c0_155], %139 {strides = array<i32>} : memref<18x18x8xf32, #tpu.memory_space<vmem>>, vector<18x18x8xf32>,
    %141 = vector.shape_cast %138 : vector<256x8xf32> to vector<16x16x8xf32>
    %c1_156 = arith.constant 1 : index
    %c1_157 = arith.constant 1 : index
    %c0_158 = arith.constant 0 : index
    %142 = vector.load %arg17[%c1_156, %c1_157, %c0_158] : memref<18x18x8xf32, #tpu.memory_space<vmem>>, vector<16x16x8xf32>
    tpu.vector_store %arg17[%c1_156, %c1_157, %c0_158], %141 {strides = array<i32>} : memref<18x18x8xf32, #tpu.memory_space<vmem>>, vector<16x16x8xf32>,
    %c0_159 = arith.constant 0 : index
    %c0_160 = arith.constant 0 : index
    %143 = vector.load %arg11[%c0_159, %c0_160] : memref<1x8xf32, #tpu.memory_space<vmem>>, vector<1x8xf32>
    %c0_161 = arith.constant 0 : index
    %c0_162 = arith.constant 0 : index
    %c0_163 = arith.constant 0 : index
    %144 = vector.load %arg17[%c0_161, %c0_162, %c0_163] : memref<18x18x8xf32, #tpu.memory_space<vmem>>, vector<16x16x8xf32>
    %145 = vector.shape_cast %144 : vector<16x16x8xf32> to vector<256x8xf32>
    %c0_164 = arith.constant 0 : index
    %c0_165 = arith.constant 0 : index
    %c0_166 = arith.constant 0 : index
    %146 = vector.load %arg10[%c0_164, %c0_165, %c0_166] : memref<9x8x8xf32, #tpu.memory_space<vmem>>, vector<1x8x8xf32>
    %147 = vector.shape_cast %146 : vector<1x8x8xf32> to vector<8x8xf32>
    %cst_167 = arith.constant dense<0.000000e+00> : vector<256x8xf32>
    %148 = tpu.matmul %145, %147, %cst_167 {dimension_numbers = #tpu.dot_dimension_numbers<[1], [0], [0], [1], [0, 0, 1, 1], [], []>} : vector<256x8xf32>, vector<8x8xf32>, vector<256x8xf32> -> vector<256x8xf32>
    %149 = vector.broadcast %143 : vector<1x8xf32> to vector<256x8xf32>
    %150 = arith.addf %149, %148 : vector<256x8xf32>
    %c0_168 = arith.constant 0 : index
    %c1_169 = arith.constant 1 : index
    %c0_170 = arith.constant 0 : index
    %151 = vector.load %arg17[%c0_168, %c1_169, %c0_170] : memref<18x18x8xf32, #tpu.memory_space<vmem>>, vector<16x16x8xf32>
    %152 = vector.shape_cast %151 : vector<16x16x8xf32> to vector<256x8xf32>
    %c1_171 = arith.constant 1 : index
    %c0_172 = arith.constant 0 : index
    %c0_173 = arith.constant 0 : index
    %153 = vector.load %arg10[%c1_171, %c0_172, %c0_173] : memref<9x8x8xf32, #tpu.memory_space<vmem>>, vector<1x8x8xf32>
    %154 = vector.shape_cast %153 : vector<1x8x8xf32> to vector<8x8xf32>
    %cst_174 = arith.constant dense<0.000000e+00> : vector<256x8xf32>
    %155 = tpu.matmul %152, %154, %cst_174 {dimension_numbers = #tpu.dot_dimension_numbers<[1], [0], [0], [1], [0, 0, 1, 1], [], []>} : vector<256x8xf32>, vector<8x8xf32>, vector<256x8xf32> -> vector<256x8xf32>
    %156 = arith.addf %150, %155 : vector<256x8xf32>
    %c0_175 = arith.constant 0 : index
    %c2_176 = arith.constant 2 : index
    %c0_177 = arith.constant 0 : index
    %157 = vector.load %arg17[%c0_175, %c2_176, %c0_177] : memref<18x18x8xf32, #tpu.memory_space<vmem>>, vector<16x16x8xf32>
    %158 = vector.shape_cast %157 : vector<16x16x8xf32> to vector<256x8xf32>
    %c2_178 = arith.constant 2 : index
    %c0_179 = arith.constant 0 : index
    %c0_180 = arith.constant 0 : index
    %159 = vector.load %arg10[%c2_178, %c0_179, %c0_180] : memref<9x8x8xf32, #tpu.memory_space<vmem>>, vector<1x8x8xf32>
    %160 = vector.shape_cast %159 : vector<1x8x8xf32> to vector<8x8xf32>
    %cst_181 = arith.constant dense<0.000000e+00> : vector<256x8xf32>
    %161 = tpu.matmul %158, %160, %cst_181 {dimension_numbers = #tpu.dot_dimension_numbers<[1], [0], [0], [1], [0, 0, 1, 1], [], []>} : vector<256x8xf32>, vector<8x8xf32>, vector<256x8xf32> -> vector<256x8xf32>
    %162 = arith.addf %156, %161 : vector<256x8xf32>
    %c1_182 = arith.constant 1 : index
    %c0_183 = arith.constant 0 : index
    %c0_184 = arith.constant 0 : index
    %163 = vector.load %arg17[%c1_182, %c0_183, %c0_184] : memref<18x18x8xf32, #tpu.memory_space<vmem>>, vector<16x16x8xf32>
    %164 = vector.shape_cast %163 : vector<16x16x8xf32> to vector<256x8xf32>
    %c3_185 = arith.constant 3 : index
    %c0_186 = arith.constant 0 : index
    %c0_187 = arith.constant 0 : index
    %165 = vector.load %arg10[%c3_185, %c0_186, %c0_187] : memref<9x8x8xf32, #tpu.memory_space<vmem>>, vector<1x8x8xf32>
    %166 = vector.shape_cast %165 : vector<1x8x8xf32> to vector<8x8xf32>
    %cst_188 = arith.constant dense<0.000000e+00> : vector<256x8xf32>
    %167 = tpu.matmul %164, %166, %cst_188 {dimension_numbers = #tpu.dot_dimension_numbers<[1], [0], [0], [1], [0, 0, 1, 1], [], []>} : vector<256x8xf32>, vector<8x8xf32>, vector<256x8xf32> -> vector<256x8xf32>
    %168 = arith.addf %162, %167 : vector<256x8xf32>
    %c1_189 = arith.constant 1 : index
    %c1_190 = arith.constant 1 : index
    %c0_191 = arith.constant 0 : index
    %169 = vector.load %arg17[%c1_189, %c1_190, %c0_191] : memref<18x18x8xf32, #tpu.memory_space<vmem>>, vector<16x16x8xf32>
    %170 = vector.shape_cast %169 : vector<16x16x8xf32> to vector<256x8xf32>
    %c4_192 = arith.constant 4 : index
    %c0_193 = arith.constant 0 : index
    %c0_194 = arith.constant 0 : index
    %171 = vector.load %arg10[%c4_192, %c0_193, %c0_194] : memref<9x8x8xf32, #tpu.memory_space<vmem>>, vector<1x8x8xf32>
    %172 = vector.shape_cast %171 : vector<1x8x8xf32> to vector<8x8xf32>
    %cst_195 = arith.constant dense<0.000000e+00> : vector<256x8xf32>
    %173 = tpu.matmul %170, %172, %cst_195 {dimension_numbers = #tpu.dot_dimension_numbers<[1], [0], [0], [1], [0, 0, 1, 1], [], []>} : vector<256x8xf32>, vector<8x8xf32>, vector<256x8xf32> -> vector<256x8xf32>
    %174 = arith.addf %168, %173 : vector<256x8xf32>
    %c1_196 = arith.constant 1 : index
    %c2_197 = arith.constant 2 : index
    %c0_198 = arith.constant 0 : index
    %175 = vector.load %arg17[%c1_196, %c2_197, %c0_198] : memref<18x18x8xf32, #tpu.memory_space<vmem>>, vector<16x16x8xf32>
    %176 = vector.shape_cast %175 : vector<16x16x8xf32> to vector<256x8xf32>
    %c5_199 = arith.constant 5 : index
    %c0_200 = arith.constant 0 : index
    %c0_201 = arith.constant 0 : index
    %177 = vector.load %arg10[%c5_199, %c0_200, %c0_201] : memref<9x8x8xf32, #tpu.memory_space<vmem>>, vector<1x8x8xf32>
    %178 = vector.shape_cast %177 : vector<1x8x8xf32> to vector<8x8xf32>
    %cst_202 = arith.constant dense<0.000000e+00> : vector<256x8xf32>
    %179 = tpu.matmul %176, %178, %cst_202 {dimension_numbers = #tpu.dot_dimension_numbers<[1], [0], [0], [1], [0, 0, 1, 1], [], []>} : vector<256x8xf32>, vector<8x8xf32>, vector<256x8xf32> -> vector<256x8xf32>
    %180 = arith.addf %174, %179 : vector<256x8xf32>
    %c2_203 = arith.constant 2 : index
    %c0_204 = arith.constant 0 : index
    %c0_205 = arith.constant 0 : index
    %181 = vector.load %arg17[%c2_203, %c0_204, %c0_205] : memref<18x18x8xf32, #tpu.memory_space<vmem>>, vector<16x16x8xf32>
    %182 = vector.shape_cast %181 : vector<16x16x8xf32> to vector<256x8xf32>
    %c6_206 = arith.constant 6 : index
    %c0_207 = arith.constant 0 : index
    %c0_208 = arith.constant 0 : index
    %183 = vector.load %arg10[%c6_206, %c0_207, %c0_208] : memref<9x8x8xf32, #tpu.memory_space<vmem>>, vector<1x8x8xf32>
    %184 = vector.shape_cast %183 : vector<1x8x8xf32> to vector<8x8xf32>
    %cst_209 = arith.constant dense<0.000000e+00> : vector<256x8xf32>
    %185 = tpu.matmul %182, %184, %cst_209 {dimension_numbers = #tpu.dot_dimension_numbers<[1], [0], [0], [1], [0, 0, 1, 1], [], []>} : vector<256x8xf32>, vector<8x8xf32>, vector<256x8xf32> -> vector<256x8xf32>
    %186 = arith.addf %180, %185 : vector<256x8xf32>
    %c2_210 = arith.constant 2 : index
    %c1_211 = arith.constant 1 : index
    %c0_212 = arith.constant 0 : index
    %187 = vector.load %arg17[%c2_210, %c1_211, %c0_212] : memref<18x18x8xf32, #tpu.memory_space<vmem>>, vector<16x16x8xf32>
    %188 = vector.shape_cast %187 : vector<16x16x8xf32> to vector<256x8xf32>
    %c7_213 = arith.constant 7 : index
    %c0_214 = arith.constant 0 : index
    %c0_215 = arith.constant 0 : index
    %189 = vector.load %arg10[%c7_213, %c0_214, %c0_215] : memref<9x8x8xf32, #tpu.memory_space<vmem>>, vector<1x8x8xf32>
    %190 = vector.shape_cast %189 : vector<1x8x8xf32> to vector<8x8xf32>
    %cst_216 = arith.constant dense<0.000000e+00> : vector<256x8xf32>
    %191 = tpu.matmul %188, %190, %cst_216 {dimension_numbers = #tpu.dot_dimension_numbers<[1], [0], [0], [1], [0, 0, 1, 1], [], []>} : vector<256x8xf32>, vector<8x8xf32>, vector<256x8xf32> -> vector<256x8xf32>
    %192 = arith.addf %186, %191 : vector<256x8xf32>
    %c2_217 = arith.constant 2 : index
    %c2_218 = arith.constant 2 : index
    %c0_219 = arith.constant 0 : index
    %193 = vector.load %arg17[%c2_217, %c2_218, %c0_219] : memref<18x18x8xf32, #tpu.memory_space<vmem>>, vector<16x16x8xf32>
    %194 = vector.shape_cast %193 : vector<16x16x8xf32> to vector<256x8xf32>
    %c8_220 = arith.constant 8 : index
    %c0_221 = arith.constant 0 : index
    %c0_222 = arith.constant 0 : index
    %195 = vector.load %arg10[%c8_220, %c0_221, %c0_222] : memref<9x8x8xf32, #tpu.memory_space<vmem>>, vector<1x8x8xf32>
    %196 = vector.shape_cast %195 : vector<1x8x8xf32> to vector<8x8xf32>
    %cst_223 = arith.constant dense<0.000000e+00> : vector<256x8xf32>
    %197 = tpu.matmul %194, %196, %cst_223 {dimension_numbers = #tpu.dot_dimension_numbers<[1], [0], [0], [1], [0, 0, 1, 1], [], []>} : vector<256x8xf32>, vector<8x8xf32>, vector<256x8xf32> -> vector<256x8xf32>
    %198 = arith.addf %192, %197 : vector<256x8xf32>
    %cst_224 = arith.constant 0.000000e+00 : f32
    %199 = vector.broadcast %cst_224 : f32 to vector<256x8xf32>
    %200 = arith.maximumf %198, %199 : vector<256x8xf32>
    %c0_225 = arith.constant 0 : index
    %c0_226 = arith.constant 0 : index
    %201 = vector.load %arg13[%c0_225, %c0_226] : memref<1x4xf32, #tpu.memory_space<vmem>>, vector<1x4xf32>
    %c0_227 = arith.constant 0 : index
    %c0_228 = arith.constant 0 : index
    %202 = vector.load %arg12[%c0_227, %c0_228] : memref<24x4xf32, #tpu.memory_space<vmem>>, vector<8x4xf32>
    %cst_229 = arith.constant dense<0.000000e+00> : vector<256x4xf32>
    %203 = tpu.matmul %63, %202, %cst_229 {dimension_numbers = #tpu.dot_dimension_numbers<[1], [0], [0], [1], [0, 0, 1, 1], [], []>} : vector<256x8xf32>, vector<8x4xf32>, vector<256x4xf32> -> vector<256x4xf32>
    %204 = vector.broadcast %201 : vector<1x4xf32> to vector<256x4xf32>
    %205 = arith.addf %204, %203 : vector<256x4xf32>
    %c8_230 = arith.constant 8 : index
    %c0_231 = arith.constant 0 : index
    %206 = vector.load %arg12[%c8_230, %c0_231] : memref<24x4xf32, #tpu.memory_space<vmem>>, vector<8x4xf32>
    %cst_232 = arith.constant dense<0.000000e+00> : vector<256x4xf32>
    %207 = tpu.matmul %130, %206, %cst_232 {dimension_numbers = #tpu.dot_dimension_numbers<[1], [0], [0], [1], [0, 0, 1, 1], [], []>} : vector<256x8xf32>, vector<8x4xf32>, vector<256x4xf32> -> vector<256x4xf32>
    %208 = arith.addf %205, %207 : vector<256x4xf32>
    %c16 = arith.constant 16 : index
    %c0_233 = arith.constant 0 : index
    %209 = vector.load %arg12[%c16, %c0_233] : memref<24x4xf32, #tpu.memory_space<vmem>>, vector<8x4xf32>
    %cst_234 = arith.constant dense<0.000000e+00> : vector<256x4xf32>
    %210 = tpu.matmul %200, %209, %cst_234 {dimension_numbers = #tpu.dot_dimension_numbers<[1], [0], [0], [1], [0, 0, 1, 1], [], []>} : vector<256x8xf32>, vector<8x4xf32>, vector<256x4xf32> -> vector<256x4xf32>
    %211 = arith.addf %208, %210 : vector<256x4xf32>
    %c0_235 = arith.constant 0 : index
    %c0_236 = arith.constant 0 : index
    %c0_237 = arith.constant 0 : index
    %212 = vector.load %arg14[%c0_235, %c0_236, %c0_237] : memref<1x256x4xf32, #tpu.memory_space<vmem>>, vector<1x256x4xf32>
    %213 = vector.shape_cast %212 : vector<1x256x4xf32> to vector<256x4xf32>
    %214 = vector.shape_cast %211 : vector<256x4xf32> to vector<1x256x4xf32>
    tpu.vector_store %arg14[%c0_235, %c0_236, %c0_237], %214 {strides = array<i32>} : memref<1x256x4xf32, #tpu.memory_space<vmem>>, vector<1x256x4xf32>,
    return
  }
  func.func @transform_0(%arg0: i32) -> (i32, i32, i32) {
    %c0_i32 = arith.constant 0 : i32
    %c0_i32_0 = arith.constant 0 : i32
    %c0_i32_1 = arith.constant 0 : i32
    return %arg0, %c0_i32, %c0_i32_0 : i32, i32, i32
  }
  func.func @transform_1(%arg0: i32) -> (i32, i32, i32) {
    %c0_i32 = arith.constant 0 : i32
    %c0_i32_0 = arith.constant 0 : i32
    %c0_i32_1 = arith.constant 0 : i32
    %c0_i32_2 = arith.constant 0 : i32
    return %c0_i32, %c0_i32_0, %c0_i32_1 : i32, i32, i32
  }
  func.func @transform_2(%arg0: i32) -> (i32, i32) {
    %c0_i32 = arith.constant 0 : i32
    %c0_i32_0 = arith.constant 0 : i32
    %c0_i32_1 = arith.constant 0 : i32
    return %c0_i32, %c0_i32_0 : i32, i32
  }
  func.func @transform_3(%arg0: i32) -> (i32, i32) {
    %c0_i32 = arith.constant 0 : i32
    %c0_i32_0 = arith.constant 0 : i32
    %c0_i32_1 = arith.constant 0 : i32
    return %c0_i32, %c0_i32_0 : i32, i32
  }
  func.func @transform_4(%arg0: i32) -> (i32, i32) {
    %c0_i32 = arith.constant 0 : i32
    %c0_i32_0 = arith.constant 0 : i32
    %c0_i32_1 = arith.constant 0 : i32
    return %c0_i32, %c0_i32_0 : i32, i32
  }
  func.func @transform_5(%arg0: i32) -> (i32, i32, i32) {
    %c0_i32 = arith.constant 0 : i32
    %c0_i32_0 = arith.constant 0 : i32
    %c0_i32_1 = arith.constant 0 : i32
    %c0_i32_2 = arith.constant 0 : i32
    return %c0_i32, %c0_i32_0, %c0_i32_1 : i32, i32, i32
  }
  func.func @transform_6(%arg0: i32) -> (i32, i32) {
    %c0_i32 = arith.constant 0 : i32
    %c0_i32_0 = arith.constant 0 : i32
    %c0_i32_1 = arith.constant 0 : i32
    return %c0_i32, %c0_i32_0 : i32, i32
  }
  func.func @transform_7(%arg0: i32) -> (i32, i32) {
    %c0_i32 = arith.constant 0 : i32
    %c0_i32_0 = arith.constant 0 : i32
    %c0_i32_1 = arith.constant 0 : i32
    return %c0_i32, %c0_i32_0 : i32, i32
  }
  func.func @transform_8(%arg0: i32) -> (i32, i32) {
    %c0_i32 = arith.constant 0 : i32
    %c0_i32_0 = arith.constant 0 : i32
    %c0_i32_1 = arith.constant 0 : i32
    return %c0_i32, %c0_i32_0 : i32, i32
  }
  func.func @transform_9(%arg0: i32) -> (i32, i32, i32) {
    %c0_i32 = arith.constant 0 : i32
    %c0_i32_0 = arith.constant 0 : i32
    %c0_i32_1 = arith.constant 0 : i32
    %c0_i32_2 = arith.constant 0 : i32
    return %c0_i32, %c0_i32_0, %c0_i32_1 : i32, i32, i32
  }
  func.func @transform_10(%arg0: i32) -> (i32, i32) {
    %c0_i32 = arith.constant 0 : i32
    %c0_i32_0 = arith.constant 0 : i32
    %c0_i32_1 = arith.constant 0 : i32
    return %c0_i32, %c0_i32_0 : i32, i32
  }
  func.func @transform_11(%arg0: i32) -> (i32, i32) {
    %c0_i32 = arith.constant 0 : i32
    %c0_i32_0 = arith.constant 0 : i32
    %c0_i32_1 = arith.constant 0 : i32
    return %c0_i32, %c0_i32_0 : i32, i32
  }
  func.func @transform_12(%arg0: i32) -> (i32, i32) {
    %c0_i32 = arith.constant 0 : i32
    %c0_i32_0 = arith.constant 0 : i32
    %c0_i32_1 = arith.constant 0 : i32
    return %c0_i32, %c0_i32_0 : i32, i32
  }
  func.func @transform_13(%arg0: i32) -> (i32, i32, i32) {
    %c0_i32 = arith.constant 0 : i32
    %c0_i32_0 = arith.constant 0 : i32
    %c0_i32_1 = arith.constant 0 : i32
    return %arg0, %c0_i32, %c0_i32_0 : i32, i32, i32
  }
}

module attributes {stable_mosaic.version = 11 : i64} {
  func.func @kernel(%arg0: i32, %arg1: memref<2x1024xf32, #tpu.memory_space<vmem>>, %arg2: memref<1024x64xf32, #tpu.memory_space<vmem>>, %arg3: memref<1x64xf32, #tpu.memory_space<vmem>>, %arg4: memref<64x64xf32, #tpu.memory_space<vmem>>, %arg5: memref<1x64xf32, #tpu.memory_space<vmem>>, %arg6: memref<64x64xf32, #tpu.memory_space<vmem>>, %arg7: memref<1x64xf32, #tpu.memory_space<vmem>>, %arg8: memref<64x1024xf32, #tpu.memory_space<vmem>>, %arg9: memref<1x1024xf32, #tpu.memory_space<vmem>>, %arg10: memref<2x1024xf32, #tpu.memory_space<vmem>>) attributes {dimension_semantics = [#tpu.dimension_semantics<arbitrary>], iteration_bounds = array<i64: 1>, scalar_prefetch = 0 : i64, scratch_operands = 0 : i64, tpu.core_type = #tpu.core_type<tc>, window_params = [{pipeline_mode = #tpu.pipeline_mode<synchronous>, transform_indices = @transform_0, window_bounds = array<i64: 2, 1024>}, {pipeline_mode = #tpu.pipeline_mode<synchronous>, transform_indices = @transform_1, window_bounds = array<i64: 1024, 64>}, {pipeline_mode = #tpu.pipeline_mode<synchronous>, transform_indices = @transform_2, window_bounds = array<i64: 1, 64>}, {pipeline_mode = #tpu.pipeline_mode<synchronous>, transform_indices = @transform_3, window_bounds = array<i64: 64, 64>}, {pipeline_mode = #tpu.pipeline_mode<synchronous>, transform_indices = @transform_4, window_bounds = array<i64: 1, 64>}, {pipeline_mode = #tpu.pipeline_mode<synchronous>, transform_indices = @transform_5, window_bounds = array<i64: 64, 64>}, {pipeline_mode = #tpu.pipeline_mode<synchronous>, transform_indices = @transform_6, window_bounds = array<i64: 1, 64>}, {pipeline_mode = #tpu.pipeline_mode<synchronous>, transform_indices = @transform_7, window_bounds = array<i64: 64, 1024>}, {pipeline_mode = #tpu.pipeline_mode<synchronous>, transform_indices = @transform_8, window_bounds = array<i64: 1, 1024>}, {pipeline_mode = #tpu.pipeline_mode<synchronous>, transform_indices = @transform_9, window_bounds = array<i64: 2, 1024>}]} {
    %c0 = arith.constant 0 : index
    %c0_0 = arith.constant 0 : index
    %0 = vector.load %arg1[%c0, %c0_0] : memref<2x1024xf32, #tpu.memory_space<vmem>>, vector<2x1024xf32>
    %c0_1 = arith.constant 0 : index
    %c0_2 = arith.constant 0 : index
    %1 = vector.load %arg2[%c0_1, %c0_2] : memref<1024x64xf32, #tpu.memory_space<vmem>>, vector<1024x64xf32>
    %cst = arith.constant dense<0.000000e+00> : vector<2x64xf32>
    %2 = tpu.matmul %0, %1, %cst {dimension_numbers = #tpu.dot_dimension_numbers<[1], [0], [0], [1], [0, 0, 1, 1], [], []>} : vector<2x1024xf32>, vector<1024x64xf32>, vector<2x64xf32> -> vector<2x64xf32>
    %c0_3 = arith.constant 0 : index
    %c0_4 = arith.constant 0 : index
    %3 = vector.load %arg3[%c0_3, %c0_4] : memref<1x64xf32, #tpu.memory_space<vmem>>, vector<1x64xf32>
    %4 = vector.broadcast %3 : vector<1x64xf32> to vector<2x64xf32>
    %5 = arith.addf %2, %4 : vector<2x64xf32>
    %cst_5 = arith.constant 0.000000e+00 : f32
    %6 = vector.broadcast %cst_5 : f32 to vector<2x64xf32>
    %7 = arith.maximumf %5, %6 : vector<2x64xf32>
    %c0_6 = arith.constant 0 : index
    %c0_7 = arith.constant 0 : index
    %8 = vector.load %arg4[%c0_6, %c0_7] : memref<64x64xf32, #tpu.memory_space<vmem>>, vector<64x64xf32>
    %cst_8 = arith.constant dense<0.000000e+00> : vector<2x64xf32>
    %9 = tpu.matmul %7, %8, %cst_8 {dimension_numbers = #tpu.dot_dimension_numbers<[1], [0], [0], [1], [0, 0, 1, 1], [], []>} : vector<2x64xf32>, vector<64x64xf32>, vector<2x64xf32> -> vector<2x64xf32>
    %c0_9 = arith.constant 0 : index
    %c0_10 = arith.constant 0 : index
    %10 = vector.load %arg5[%c0_9, %c0_10] : memref<1x64xf32, #tpu.memory_space<vmem>>, vector<1x64xf32>
    %11 = vector.broadcast %10 : vector<1x64xf32> to vector<2x64xf32>
    %12 = arith.addf %9, %11 : vector<2x64xf32>
    %cst_11 = arith.constant 0.000000e+00 : f32
    %13 = vector.broadcast %cst_11 : f32 to vector<2x64xf32>
    %14 = arith.maximumf %12, %13 : vector<2x64xf32>
    %c0_12 = arith.constant 0 : index
    %c0_13 = arith.constant 0 : index
    %15 = vector.load %arg6[%c0_12, %c0_13] : memref<64x64xf32, #tpu.memory_space<vmem>>, vector<64x64xf32>
    %cst_14 = arith.constant dense<0.000000e+00> : vector<2x64xf32>
    %16 = tpu.matmul %14, %15, %cst_14 {dimension_numbers = #tpu.dot_dimension_numbers<[1], [0], [0], [1], [0, 0, 1, 1], [], []>} : vector<2x64xf32>, vector<64x64xf32>, vector<2x64xf32> -> vector<2x64xf32>
    %c0_15 = arith.constant 0 : index
    %c0_16 = arith.constant 0 : index
    %17 = vector.load %arg7[%c0_15, %c0_16] : memref<1x64xf32, #tpu.memory_space<vmem>>, vector<1x64xf32>
    %18 = vector.broadcast %17 : vector<1x64xf32> to vector<2x64xf32>
    %19 = arith.addf %16, %18 : vector<2x64xf32>
    %cst_17 = arith.constant 0.000000e+00 : f32
    %20 = vector.broadcast %cst_17 : f32 to vector<2x64xf32>
    %21 = arith.maximumf %19, %20 : vector<2x64xf32>
    %c0_18 = arith.constant 0 : index
    %c0_19 = arith.constant 0 : index
    %22 = vector.load %arg8[%c0_18, %c0_19] : memref<64x1024xf32, #tpu.memory_space<vmem>>, vector<64x1024xf32>
    %cst_20 = arith.constant dense<0.000000e+00> : vector<2x1024xf32>
    %23 = tpu.matmul %21, %22, %cst_20 {dimension_numbers = #tpu.dot_dimension_numbers<[1], [0], [0], [1], [0, 0, 1, 1], [], []>} : vector<2x64xf32>, vector<64x1024xf32>, vector<2x1024xf32> -> vector<2x1024xf32>
    %c0_21 = arith.constant 0 : index
    %c0_22 = arith.constant 0 : index
    %24 = vector.load %arg9[%c0_21, %c0_22] : memref<1x1024xf32, #tpu.memory_space<vmem>>, vector<1x1024xf32>
    %25 = vector.broadcast %24 : vector<1x1024xf32> to vector<2x1024xf32>
    %26 = arith.addf %23, %25 : vector<2x1024xf32>
    %c0_23 = arith.constant 0 : index
    %c0_24 = arith.constant 0 : index
    %27 = vector.load %arg10[%c0_23, %c0_24] : memref<2x1024xf32, #tpu.memory_space<vmem>>, vector<2x1024xf32>
    tpu.vector_store %arg10[%c0_23, %c0_24], %26 {strides = array<i32>} : memref<2x1024xf32, #tpu.memory_space<vmem>>, vector<2x1024xf32>,
    return
  }
  func.func @transform_0(%arg0: i32) -> (i32, i32) {
    %c0_i32 = arith.constant 0 : i32
    %c0_i32_0 = arith.constant 0 : i32
    %c0_i32_1 = arith.constant 0 : i32
    return %c0_i32, %c0_i32_0 : i32, i32
  }
  func.func @transform_1(%arg0: i32) -> (i32, i32) {
    %c0_i32 = arith.constant 0 : i32
    %c0_i32_0 = arith.constant 0 : i32
    %c0_i32_1 = arith.constant 0 : i32
    return %c0_i32, %c0_i32_0 : i32, i32
  }
  func.func @transform_2(%arg0: i32) -> (i32, i32) {
    %c0_i32 = arith.constant 0 : i32
    %c0_i32_0 = arith.constant 0 : i32
    %c0_i32_1 = arith.constant 0 : i32
    return %c0_i32, %c0_i32_0 : i32, i32
  }
  func.func @transform_3(%arg0: i32) -> (i32, i32) {
    %c0_i32 = arith.constant 0 : i32
    %c0_i32_0 = arith.constant 0 : i32
    %c0_i32_1 = arith.constant 0 : i32
    return %c0_i32, %c0_i32_0 : i32, i32
  }
  func.func @transform_4(%arg0: i32) -> (i32, i32) {
    %c0_i32 = arith.constant 0 : i32
    %c0_i32_0 = arith.constant 0 : i32
    %c0_i32_1 = arith.constant 0 : i32
    return %c0_i32, %c0_i32_0 : i32, i32
  }
  func.func @transform_5(%arg0: i32) -> (i32, i32) {
    %c0_i32 = arith.constant 0 : i32
    %c0_i32_0 = arith.constant 0 : i32
    %c0_i32_1 = arith.constant 0 : i32
    return %c0_i32, %c0_i32_0 : i32, i32
  }
  func.func @transform_6(%arg0: i32) -> (i32, i32) {
    %c0_i32 = arith.constant 0 : i32
    %c0_i32_0 = arith.constant 0 : i32
    %c0_i32_1 = arith.constant 0 : i32
    return %c0_i32, %c0_i32_0 : i32, i32
  }
  func.func @transform_7(%arg0: i32) -> (i32, i32) {
    %c0_i32 = arith.constant 0 : i32
    %c0_i32_0 = arith.constant 0 : i32
    %c0_i32_1 = arith.constant 0 : i32
    return %c0_i32, %c0_i32_0 : i32, i32
  }
  func.func @transform_8(%arg0: i32) -> (i32, i32) {
    %c0_i32 = arith.constant 0 : i32
    %c0_i32_0 = arith.constant 0 : i32
    %c0_i32_1 = arith.constant 0 : i32
    return %c0_i32, %c0_i32_0 : i32, i32
  }
  func.func @transform_9(%arg0: i32) -> (i32, i32) {
    %c0_i32 = arith.constant 0 : i32
    %c0_i32_0 = arith.constant 0 : i32
    %c0_i32_1 = arith.constant 0 : i32
    return %c0_i32, %c0_i32_0 : i32, i32
  }
}

module attributes {stable_mosaic.version = 11 : i64} {
  func.func @_combine_kernel(%arg0: i32, %arg1: memref<2x1024xf32, #tpu.memory_space<vmem>>, %arg2: memref<2x1024xf32, #tpu.memory_space<vmem>>, %arg3: memref<2x1024xf32, #tpu.memory_space<vmem>>, %arg4: memref<2x1024xf32, #tpu.memory_space<vmem>>, %arg5: memref<2x1024xf32, #tpu.memory_space<vmem>>, %arg6: memref<2x1024xf32, #tpu.memory_space<vmem>>, %arg7: memref<2x1024xf32, #tpu.memory_space<vmem>>) attributes {dimension_semantics = [#tpu.dimension_semantics<arbitrary>], iteration_bounds = array<i64: 1>, scalar_prefetch = 0 : i64, scratch_operands = 0 : i64, tpu.core_type = #tpu.core_type<tc>, window_params = [{pipeline_mode = #tpu.pipeline_mode<synchronous>, transform_indices = @transform_0, window_bounds = array<i64: 2, 1024>}, {pipeline_mode = #tpu.pipeline_mode<synchronous>, transform_indices = @transform_1, window_bounds = array<i64: 2, 1024>}, {pipeline_mode = #tpu.pipeline_mode<synchronous>, transform_indices = @transform_2, window_bounds = array<i64: 2, 1024>}, {pipeline_mode = #tpu.pipeline_mode<synchronous>, transform_indices = @transform_3, window_bounds = array<i64: 2, 1024>}, {pipeline_mode = #tpu.pipeline_mode<synchronous>, transform_indices = @transform_4, window_bounds = array<i64: 2, 1024>}, {pipeline_mode = #tpu.pipeline_mode<synchronous>, transform_indices = @transform_5, window_bounds = array<i64: 2, 1024>}, {pipeline_mode = #tpu.pipeline_mode<synchronous>, transform_indices = @transform_6, window_bounds = array<i64: 2, 1024>}]} {
    %c0 = arith.constant 0 : index
    %c0_0 = arith.constant 0 : index
    %0 = vector.load %arg1[%c0, %c0_0] : memref<2x1024xf32, #tpu.memory_space<vmem>>, vector<2x1024xf32>
    %c0_1 = arith.constant 0 : index
    %c0_2 = arith.constant 0 : index
    %1 = vector.load %arg2[%c0_1, %c0_2] : memref<2x1024xf32, #tpu.memory_space<vmem>>, vector<2x1024xf32>
    %2 = arith.addf %0, %1 : vector<2x1024xf32>
    %c0_3 = arith.constant 0 : index
    %c0_4 = arith.constant 0 : index
    %3 = vector.load %arg3[%c0_3, %c0_4] : memref<2x1024xf32, #tpu.memory_space<vmem>>, vector<2x1024xf32>
    %c0_5 = arith.constant 0 : index
    %c0_6 = arith.constant 0 : index
    %4 = vector.load %arg4[%c0_5, %c0_6] : memref<2x1024xf32, #tpu.memory_space<vmem>>, vector<2x1024xf32>
    %5 = arith.addf %3, %4 : vector<2x1024xf32>
    %6 = arith.mulf %2, %5 : vector<2x1024xf32>
    %c0_7 = arith.constant 0 : index
    %c0_8 = arith.constant 0 : index
    %7 = vector.load %arg7[%c0_7, %c0_8] : memref<2x1024xf32, #tpu.memory_space<vmem>>, vector<2x1024xf32>
    tpu.vector_store %arg7[%c0_7, %c0_8], %6 {strides = array<i32>} : memref<2x1024xf32, #tpu.memory_space<vmem>>, vector<2x1024xf32>,
    %cst = arith.constant 5.000000e-01 : f32
    %8 = vector.broadcast %cst : f32 to vector<2x1024xf32>
    %9 = arith.mulf %8, %6 : vector<2x1024xf32>
    %c0_9 = arith.constant 0 : index
    %c0_10 = arith.constant 0 : index
    %10 = vector.load %arg5[%c0_9, %c0_10] : memref<2x1024xf32, #tpu.memory_space<vmem>>, vector<2x1024xf32>
    %11 = arith.mulf %9, %10 : vector<2x1024xf32>
    %c0_11 = arith.constant 0 : index
    %c0_12 = arith.constant 0 : index
    %12 = vector.load %arg6[%c0_11, %c0_12] : memref<2x1024xf32, #tpu.memory_space<vmem>>, vector<2x1024xf32>
    tpu.vector_store %arg6[%c0_11, %c0_12], %11 {strides = array<i32>} : memref<2x1024xf32, #tpu.memory_space<vmem>>, vector<2x1024xf32>,
    return
  }
  func.func @transform_0(%arg0: i32) -> (i32, i32) {
    %c0_i32 = arith.constant 0 : i32
    %c0_i32_0 = arith.constant 0 : i32
    %c0_i32_1 = arith.constant 0 : i32
    return %c0_i32, %c0_i32_0 : i32, i32
  }
  func.func @transform_1(%arg0: i32) -> (i32, i32) {
    %c0_i32 = arith.constant 0 : i32
    %c0_i32_0 = arith.constant 0 : i32
    %c0_i32_1 = arith.constant 0 : i32
    return %c0_i32, %c0_i32_0 : i32, i32
  }
  func.func @transform_2(%arg0: i32) -> (i32, i32) {
    %c0_i32 = arith.constant 0 : i32
    %c0_i32_0 = arith.constant 0 : i32
    %c0_i32_1 = arith.constant 0 : i32
    return %c0_i32, %c0_i32_0 : i32, i32
  }
  func.func @transform_3(%arg0: i32) -> (i32, i32) {
    %c0_i32 = arith.constant 0 : i32
    %c0_i32_0 = arith.constant 0 : i32
    %c0_i32_1 = arith.constant 0 : i32
    return %c0_i32, %c0_i32_0 : i32, i32
  }
  func.func @transform_4(%arg0: i32) -> (i32, i32) {
    %c0_i32 = arith.constant 0 : i32
    %c0_i32_0 = arith.constant 0 : i32
    %c0_i32_1 = arith.constant 0 : i32
    return %c0_i32, %c0_i32_0 : i32, i32
  }
  func.func @transform_5(%arg0: i32) -> (i32, i32) {
    %c0_i32 = arith.constant 0 : i32
    %c0_i32_0 = arith.constant 0 : i32
    %c0_i32_1 = arith.constant 0 : i32
    return %c0_i32, %c0_i32_0 : i32, i32
  }
  func.func @transform_6(%arg0: i32) -> (i32, i32) {
    %c0_i32 = arith.constant 0 : i32
    %c0_i32_0 = arith.constant 0 : i32
    %c0_i32_1 = arith.constant 0 : i32
    return %c0_i32, %c0_i32_0 : i32, i32
  }
}

</mosaic_0001>

<bundles_post_ra>
// kernel: container_forward.9
= control target key start
LH: loop header
LB: loop body
LE: loop exit
PB: predicated region body
PF: predicated region fallthrough
CT: control target
= control target key end

     0   :  { %s131_s0 = inlined_call_operand.vmem [shape: f32[2,1024], index: 0, kind: input, shape index: {}]   ;;  %s132_s1 = inlined_call_operand.vmem [shape: f32[2,1024], index: 1, kind: input, shape index: {}]   ;;  %s133_s2 = inlined_call_operand.vmem [shape: f32[2,1024], index: 2, kind: input, shape index: {}]   ;;  %s134_s3 = inlined_call_operand.vmem [shape: f32[2,1024], index: 3, kind: input, shape index: {}]   ;;  %s135_s4 = inlined_call_operand.vmem [shape: f32[2,1024], index: 4, kind: input, shape index: {}]   ;;  %s136_s6 = inlined_call_operand.vmem [shape: f32[2,1024], index: 6, kind: output, shape index: {1}]   ;;  %s137_s5 = inlined_call_operand.vmem [shape: f32[2,1024], index: 5, kind: output, shape index: {0}]  }
   0x1   :  { %v22_v0 = vld [vmem:[%s131_s0] sm:$0xff]  ;;  %v23_v5 = vld [vmem:[%s131_s0 + $0x8] sm:$0xff] }
   0x2   :  { %v24_v1 = vld [vmem:[%s132_s1] sm:$0xff]  ;;  %v25_v6 = vld [vmem:[%s132_s1 + $0x8] sm:$0xff] }
   0x3   :  { %v28_v2 = vld [vmem:[%s133_s2] sm:$0xff]  ;;  %v26_v3 = vadd.f32 %v24_v1, %v22_v0  ;;  %v27_v8 = vadd.f32 %v25_v6, %v23_v5  ;;  %v29_v9 = vld [vmem:[%s133_s2 + $0x8] sm:$0xff] }
   0x4   :  { %v30_v4 = vld [vmem:[%s134_s3] sm:$0xff]  ;;  %v31_v10 = vld [vmem:[%s134_s3 + $0x8] sm:$0xff] }
   0x5   :  { %v32_v7 = vadd.f32 %v30_v4, %v28_v2  ;;  %v33_v11 = vadd.f32 %v31_v10, %v29_v9  ;;  %v40_v14 = vld [vmem:[%s135_s4] sm:$0xff]  ;;  %v41_v16 = vld [vmem:[%s135_s4 + $0x8] sm:$0xff] }
   0x7   :  { %v34_v12 = vmul.f32 %v32_v7, %v26_v3  ;;  %v35_v13 = vmul.f32 %v33_v11, %v27_v8 }
   0x9   :  { %36 = vst [vmem:[%s136_s6] sm:$0xff] %v34_v12  ;;  %v38_v15 = vmul.f32 0.5, %v34_v12  ;;  %37 = vst [vmem:[%s136_s6 + $0x8] sm:$0xff] %v35_v13  ;;  %v39_v17 = vmul.f32 0.5, %v35_v13 }
   0xb   :  { %v42_v18 = vmul.f32 %v40_v14, %v38_v15  ;;  %v43_v19 = vmul.f32 %v41_v16, %v39_v17 }
   0xd   :  { %44 = vst [vmem:[%s137_s5] sm:$0xff] %v42_v18  ;;  %45 = vst [vmem:[%s137_s5 + $0x8] sm:$0xff] %v43_v19 }

// kernel: container_forward.6
= control target key start
LH: loop header
LB: loop body
LE: loop exit
PB: predicated region body
PF: predicated region fallthrough
CT: control target
= control target key end

     0   :  { %v1543_v47 = vmov 1983009808   ;;  %v175_v49 = vlaneseq  ;;  %vm1545_vm0 = vmmov 0   ;;  %vm509_vm1 = vcmask 523264   ;;  %s2288_s1 = inlined_call_operand.vmem [shape: f32[1024,64], index: 1, kind: input, shape index: {}]   ;;  %s2289_s0 = inlined_call_operand.vmem [shape: f32[2,1024], index: 0, kind: input, shape index: {}]   ;;  %s2290_s3 = inlined_call_operand.vmem [shape: f32[64,64], index: 3, kind: input, shape index: {}]   ;;  %s2291_s5 = inlined_call_operand.vmem [shape: f32[64,64], index: 5, kind: input, shape index: {}]   ;;  %s2292_s2 = inlined_call_operand.vmem [shape: f32[1,64], index: 2, kind: input, shape index: {}]   ;;  %s2293_s7 = inlined_call_operand.vmem [shape: f32[64,1024], index: 7, kind: input, shape index: {}]   ;;  %s2294_s4 = inlined_call_operand.vmem [shape: f32[1,64], index: 4, kind: input, shape index: {}]   ;;  %s2295_s6 = inlined_call_operand.vmem [shape: f32[1,64], index: 6, kind: input, shape index: {}]   ;;  %s2296_s8 = inlined_call_operand.vmem [shape: f32[1,1024], index: 8, kind: input, shape index: {}]   ;;  %s2297_s9 = inlined_call_operand.vmem [shape: f32[2,1024], index: 9, kind: output, shape index: {}]  }
   0x1   :  { %v50_v0 = vld [vmem:[%s2288_s1 + $0x80] sm:$0xff]  ;;  %v51_v1 = vld [vmem:[%s2288_s1 + $0x88] sm:$0xff]  ;;  %v52_v11 = vld [vmem:[%s2288_s1 + $0x90] sm:$0xff]  ;;  %v173_v48 = vunpack.c.l.s4 %v1543_v47 }
   0x2   :  { %v34_v2 = vld [vmem:[%s2288_s1] sm:$0xff]  ;;  %v1321_v3 = vpack.c.bf16 %v51_v1, %v50_v0  ;;  %v35_v4 = vld [vmem:[%s2288_s1 + $0x8] sm:$0xff]  ;;  %v53_v13 = vld [vmem:[%s2288_s1 + $0x98] sm:$0xff]  ;;  %v1723_v0 = vshrl.u32 %v175_v49, 7 }
   0x3   :  { %v82_v5 = vld [vmem:[%s2288_s1 + $0x180] sm:$0xff]  ;;  %v83_v6 = vld [vmem:[%s2288_s1 + $0x188] sm:$0xff]  ;;  %v1323_v7 = vpack.c.bf16 %v35_v4, %v34_v2  ;;  %v36_v14 = vld [vmem:[%s2288_s1 + $0x10] sm:$0xff]  ;;  %v1325_v16 = vpack.c.bf16 %v53_v13, %v52_v11  ;;  %v174_v63 = vunpack.c.0.s8 %v173_v48 }
   0x4   :  { %v1353_v8 = vpack.c.bf16 %v83_v6, %v82_v5  ;;  %v66_v9 = vld [vmem:[%s2288_s1 + $0x100] sm:$0xff]  ;;  %v67_v10 = vld [vmem:[%s2288_s1 + $0x108] sm:$0xff]  ;;  %1322 = vmatprep.subr.bf16.mxu0 %v1321_v3  ;;  %v37_v15 = vld [vmem:[%s2288_s1 + $0x18] sm:$0xff] }
   0x5   :  { %v1355_v12 = vpack.c.bf16 %v67_v10, %v66_v9  ;;  %1324 = vmatpush3.bf16.msra.mxu0 %v1323_v7  ;;  %v1327_v17 = vpack.c.bf16 %v37_v15, %v36_v14  ;;  %v84_v18 = vld [vmem:[%s2288_s1 + $0x190] sm:$0xff]  ;;  %v85_v19 = vld [vmem:[%s2288_s1 + $0x198] sm:$0xff]  ;;  %v54_v23 = vld [vmem:[%s2288_s1 + $0xa0] sm:$0xff]  ;;  %v1750_v13 = vsub.s32 %v174_v63, %v1723_v0 }
   0x6   :  { %1354 = vmatprep.subr.bf16.mxu1 %v1353_v8  ;;  %v68_v20 = vld [vmem:[%s2288_s1 + $0x110] sm:$0xff]  ;;  %v1357_v21 = vpack.c.bf16 %v85_v19, %v84_v18  ;;  %v69_v22 = vld [vmem:[%s2288_s1 + $0x118] sm:$0xff]  ;;  %v55_v24 = vld [vmem:[%s2288_s1 + $0xa8] sm:$0xff]  ;;  %1326 = vmatprep.subr.bf16.mxu0 %v1325_v16 }
   0x7   :  { %1356 = vmatpush3.bf16.msra.mxu1 %v1355_v12  ;;  %v1359_v25 = vpack.c.bf16 %v69_v22, %v68_v20  ;;  %v1329_v26 = vpack.c.bf16 %v55_v24, %v54_v23  ;;  %v38_v27 = vld [vmem:[%s2288_s1 + $0x20] sm:$0xff]  ;;  %v39_v28 = vld [vmem:[%s2288_s1 + $0x28] sm:$0xff]  ;;  %v56_v35 = vld [vmem:[%s2288_s1 + $0xb0] sm:$0xff] }
   0x8   :  { %v86_v29 = vld [vmem:[%s2288_s1 + $0x1a0] sm:$0xff]  ;;  %1358 = vmatprep.subr.bf16.mxu1 %v1357_v21  ;;  %v87_v30 = vld [vmem:[%s2288_s1 + $0x1a8] sm:$0xff]  ;;  %v1331_v33 = vpack.c.bf16 %v39_v28, %v38_v27  ;;  %v57_v36 = vld [vmem:[%s2288_s1 + $0xb8] sm:$0xff] }
   0x9   :  { %v70_v31 = vld [vmem:[%s2288_s1 + $0x120] sm:$0xff]  ;;  %v71_v32 = vld [vmem:[%s2288_s1 + $0x128] sm:$0xff]  ;;  %1328 = vmatpush3.bf16.msra.mxu0 %v1327_v17  ;;  %v1361_v34 = vpack.c.bf16 %v87_v30, %v86_v29  ;;  %v40_v37 = vld [vmem:[%s2288_s1 + $0x30] sm:$0xff]  ;;  %v1333_v39 = vpack.c.bf16 %v57_v36, %v56_v35 }
   0xa   :  { %1330 = vmatprep.subr.bf16.mxu0 %v1329_v26  ;;  %v1363_v38 = vpack.c.bf16 %v71_v32, %v70_v31  ;;  %v41_v40 = vld [vmem:[%s2288_s1 + $0x38] sm:$0xff]  ;;  %v88_v41 = vld [vmem:[%s2288_s1 + $0x1b0] sm:$0xff]  ;;  %v58_v46 = vld [vmem:[%s2288_s1 + $0xc0] sm:$0xff] }
   0xb   :  { %1360 = vmatpush3.bf16.msra.mxu1 %v1359_v25  ;;  %v89_v42 = vld [vmem:[%s2288_s1 + $0x1b8] sm:$0xff]  ;;  %v72_v44 = vld [vmem:[%s2288_s1 + $0x130] sm:$0xff]  ;;  %v59_v50 = vld [vmem:[%s2288_s1 + $0xc8] sm:$0xff]  ;;  %v1335_v51 = vpack.c.bf16 %v41_v40, %v40_v37 }
   0xc   :  { %1362 = vmatprep.subr.bf16.mxu1 %v1361_v34  ;;  %v1365_v43 = vpack.c.bf16 %v89_v42, %v88_v41  ;;  %v73_v45 = vld [vmem:[%s2288_s1 + $0x138] sm:$0xff]  ;;  %v90_v52 = vld [vmem:[%s2288_s1 + $0x1c0] sm:$0xff]  ;;  %v91_v53 = vld [vmem:[%s2288_s1 + $0x1c8] sm:$0xff]  ;;  %v1337_v55 = vpack.c.bf16 %v59_v50, %v58_v46 }
   0xd   :  { %1332 = vmatpush3.bf16.msra.mxu0 %v1331_v33  ;;  %v1367_v54 = vpack.c.bf16 %v73_v45, %v72_v44  ;;  %v42_v56 = vld [vmem:[%s2288_s1 + $0x40] sm:$0xff]  ;;  %v43_v57 = vld [vmem:[%s2288_s1 + $0x48] sm:$0xff]  ;;  %v1369_v59 = vpack.c.bf16 %v91_v53, %v90_v52  ;;  %v60_v61 = vld [vmem:[%s2288_s1 + $0xd0] sm:$0xff] }
   0xe   :  { %1334 = vmatprep.subr.bf16.mxu0 %v1333_v39  ;;  %v74_v58 = vld [vmem:[%s2288_s1 + $0x140] sm:$0xff]  ;;  %v75_v60 = vld [vmem:[%s2288_s1 + $0x148] sm:$0xff]  ;;  %v61_v62 = vld [vmem:[%s2288_s1 + $0xd8] sm:$0xff]  ;;  %v1339_v3 = vpack.c.bf16 %v43_v57, %v42_v56 }
   0xf   :  { %1364 = vmatpush3.bf16.msra.mxu1 %v1363_v38  ;;  %v92_v1 = vld [vmem:[%s2288_s1 + $0x1d0] sm:$0xff]  ;;  %v93_v2 = vld [vmem:[%s2288_s1 + $0x1d8] sm:$0xff]  ;;  %v1371_v4 = vpack.c.bf16 %v75_v60, %v74_v58  ;;  %v1341_v5 = vpack.c.bf16 %v61_v62, %v60_v61  ;;  %v62_v11 = vld [vmem:[%s2288_s1 + $0xe0] sm:$0xff] }
  0x10   :  { %1366 = vmatprep.subr.bf16.mxu1 %v1365_v43  ;;  %v44_v6 = vld [vmem:[%s2288_s1 + $0x50] sm:$0xff]  ;;  %v45_v7 = vld [vmem:[%s2288_s1 + $0x58] sm:$0xff]  ;;  %v1373_v9 = vpack.c.bf16 %v93_v2, %v92_v1  ;;  %v63_v12 = vld [vmem:[%s2288_s1 + $0xe8] sm:$0xff] }
  0x11   :  { %1336 = vmatpush3.bf16.msra.mxu0 %v1335_v51  ;;  %v76_v8 = vld [vmem:[%s2288_s1 + $0x150] sm:$0xff]  ;;  %v77_v10 = vld [vmem:[%s2288_s1 + $0x158] sm:$0xff]  ;;  %v94_v14 = vld [vmem:[%s2288_s1 + $0x1e0] sm:$0xff]  ;;  %v1343_v16 = vpack.c.bf16 %v45_v7, %v44_v6  ;;  %v1345_v19 = vpack.c.bf16 %v63_v12, %v62_v11 }
  0x12   :  { %1338 = vmatprep.subr.bf16.mxu0 %v1337_v55  ;;  %v95_v15 = vld [vmem:[%s2288_s1 + $0x1e8] sm:$0xff]  ;;  %v46_v17 = vld [vmem:[%s2288_s1 + $0x60] sm:$0xff]  ;;  %v1375_v18 = vpack.c.bf16 %v77_v10, %v76_v8  ;;  %v64_v25 = vld [vmem:[%s2288_s1 + $0xf0] sm:$0xff] }
  0x13   :  { %1368 = vmatpush3.bf16.msra.mxu1 %v1367_v54  ;;  %v47_v20 = vld [vmem:[%s2288_s1 + $0x68] sm:$0xff]  ;;  %v78_v21 = vld [vmem:[%s2288_s1 + $0x160] sm:$0xff]  ;;  %v1377_v23 = vpack.c.bf16 %v95_v15, %v94_v14  ;;  %v65_v26 = vld [vmem:[%s2288_s1 + $0xf8] sm:$0xff] }
  0x14   :  { %1370 = vmatprep.subr.bf16.mxu1 %v1369_v59  ;;  %v32_v22 = vld [vmem:[%s2289_s0] sm:$0xff]  ;;  %v79_v24 = vld [vmem:[%s2288_s1 + $0x168] sm:$0xff]  ;;  %v96_v29 = vld [vmem:[%s2288_s1 + $0x1f0] sm:$0xff]  ;;  %v1347_v31 = vpack.c.bf16 %v47_v20, %v46_v17  ;;  %v1349_v36 = vpack.c.bf16 %v65_v26, %v64_v25 }
  0x15   :  { %1340 = vmatpush3.bf16.msra.mxu0 %v1339_v3  ;;  %v178_v27 = vrot.slane %v32_v22, %v1750_v13  ;;  %v171_v28 = vcombine.high %v32_v22, %v32_v22  ;;  %v97_v30 = vld [vmem:[%s2288_s1 + $0x1f8] sm:$0xff]  ;;  %v33_v32 = vld [vmem:[%s2289_s0 + $0x8] sm:$0xff]  ;;  %v1379_v35 = vpack.c.bf16 %v79_v24, %v78_v21  ;;  %v48_v37 = vld [vmem:[%s2288_s1 + $0x70] sm:$0xff] }
  0x16   :  { %1342 = vmatprep.subr.bf16.mxu0 %v1341_v5  ;;  %v49_v38 = vld [vmem:[%s2288_s1 + $0x78] sm:$0xff]  ;;  %v80_v39 = vld [vmem:[%s2288_s1 + $0x170] sm:$0xff]  ;;  %v1381_v40 = vpack.c.bf16 %v97_v30, %v96_v29  ;;  %v114_v42 = vld [vmem:[%s2288_s1 + $0x280] sm:$0xff]  ;;  %v188_v45 = vcombine.high %v33_v32, %v33_v32  ;;  %v1833_v58 = vrot.slane %v33_v32, %v1750_v13 }
  0x17   :  { %1372 = vmatpush3.bf16.msra.mxu1 %v1371_v4  ;;  %v186_v33 = vcombine.high %v178_v27, %v178_v27  ;;  %v185_v34 = vrot.slane %v171_v28, %v1750_v13  ;;  %v81_v41 = vld [vmem:[%s2288_s1 + $0x178] sm:$0xff]  ;;  %v115_v43 = vld [vmem:[%s2288_s1 + $0x288] sm:$0xff]  ;;  %v146_v46 = vld [vmem:[%s2288_s1 + $0x380] sm:$0xff]  ;;  %v1351_v48 = vpack.c.bf16 %v49_v38, %v48_v37 }
  0x18   :  { %1374 = vmatprep.subr.bf16.mxu1 %v1373_v9  ;;  %v147_v47 = vld [vmem:[%s2288_s1 + $0x388] sm:$0xff]  ;;  %v1383_v49 = vpack.c.bf16 %v81_v41, %v80_v39  ;;  %v1385_v50 = vpack.c.bf16 %v115_v43, %v114_v42  ;;  %v98_v51 = vld [vmem:[%s2288_s1 + $0x200] sm:$0xff]  ;;  %v116_v56 = vld [vmem:[%s2288_s1 + $0x290] sm:$0xff]  ;;  %v1842_v61 = vrot.slane %v188_v45, %v1750_v13  ;;  %v203_v9 = vcombine.high %v1833_v58, %v1833_v58 }
  0x19   :  { %1344 = vmatpush3.bf16.msra.mxu0 %v1343_v16  ;;  %277 = vmatprep.mubr.f32.mxu0 %v186_v33  ;;  %v187_v44 = vcombine.high %v185_v34, %v185_v34  ;;  %v99_v52 = vld [vmem:[%s2288_s1 + $0x208] sm:$0xff]  ;;  %v130_v53 = vld [vmem:[%s2288_s1 + $0x300] sm:$0xff]  ;;  %v1417_v54 = vpack.c.bf16 %v147_v47, %v146_v46  ;;  %v117_v57 = vld [vmem:[%s2288_s1 + $0x298] sm:$0xff] }
  0x1a   :  { %1346 = vmatprep.subr.bf16.mxu0 %v1345_v19  ;;  %v131_v55 = vld [vmem:[%s2288_s1 + $0x308] sm:$0xff]  ;;  %v148_v59 = vld [vmem:[%s2288_s1 + $0x390] sm:$0xff]  ;;  %v149_v60 = vld [vmem:[%s2288_s1 + $0x398] sm:$0xff]  ;;  %v1387_v62 = vpack.c.bf16 %v99_v52, %v98_v51  ;;  %v1389_v1 = vpack.c.bf16 %v117_v57, %v116_v56  ;;  %v204_v12 = vcombine.high %v1842_v61, %v1842_v61 }
  0x1b   :  { %1376 = vmatpush3.bf16.msra.mxu1 %v1375_v18  ;;  %347 = vmatprep.mubr.f32.mxu1 %v187_v44  ;;  %v1419_v63 = vpack.c.bf16 %v131_v55, %v130_v53  ;;  %v100_v2 = vld [vmem:[%s2288_s1 + $0x210] sm:$0xff]  ;;  %v101_v3 = vld [vmem:[%s2288_s1 + $0x218] sm:$0xff]  ;;  %v1421_v5 = vpack.c.bf16 %v149_v60, %v148_v59  ;;  %v118_v7 = vld [vmem:[%s2288_s1 + $0x2a0] sm:$0xff] }
  0x1c   :  { %1378 = vmatprep.subr.bf16.mxu1 %v1377_v23  ;;  %v132_v4 = vld [vmem:[%s2288_s1 + $0x310] sm:$0xff]  ;;  %v133_v6 = vld [vmem:[%s2288_s1 + $0x318] sm:$0xff]  ;;  %v119_v8 = vld [vmem:[%s2288_s1 + $0x2a8] sm:$0xff]  ;;  %v1391_v14 = vpack.c.bf16 %v101_v3, %v100_v2 }
  0x1d   :  { %1348 = vmatpush3.bf16.msra.mxu0 %v1347_v31  ;;  %v150_v10 = vld [vmem:[%s2288_s1 + $0x3a0] sm:$0xff]  ;;  %v151_v11 = vld [vmem:[%s2288_s1 + $0x3a8] sm:$0xff]  ;;  %v1423_v15 = vpack.c.bf16 %v133_v6, %v132_v4  ;;  %v1393_v16 = vpack.c.bf16 %v119_v8, %v118_v7  ;;  %v120_v22 = vld [vmem:[%s2288_s1 + $0x2b0] sm:$0xff] }
  0x1e   :  { %1350 = vmatprep.subr.bf16.mxu0 %v1349_v36  ;;  %v102_v17 = vld [vmem:[%s2288_s1 + $0x220] sm:$0xff]  ;;  %v103_v18 = vld [vmem:[%s2288_s1 + $0x228] sm:$0xff]  ;;  %v1425_v20 = vpack.c.bf16 %v151_v11, %v150_v10  ;;  %v121_v23 = vld [vmem:[%s2288_s1 + $0x2b8] sm:$0xff] }
  0x1f   :  { %1380 = vmatpush3.bf16.msra.mxu1 %v1379_v35  ;;  %v134_v19 = vld [vmem:[%s2288_s1 + $0x320] sm:$0xff]  ;;  %v135_v21 = vld [vmem:[%s2288_s1 + $0x328] sm:$0xff]  ;;  %v152_v24 = vld [vmem:[%s2288_s1 + $0x3b0] sm:$0xff]  ;;  %v1395_v26 = vpack.c.bf16 %v103_v18, %v102_v17  ;;  %v1397_v28 = vpack.c.bf16 %v121_v23, %v120_v22 }
  0x20   :  { %1382 = vmatprep.subr.bf16.mxu1 %v1381_v40  ;;  %v153_v25 = vld [vmem:[%s2288_s1 + $0x3b8] sm:$0xff]  ;;  %v104_v29 = vld [vmem:[%s2288_s1 + $0x230] sm:$0xff]  ;;  %v123_v35 = vld [vmem:[%s2288_s1 + $0x2c8] sm:$0xff] }
  0x21   :  { %1352 = vmatpush3.bf16.msra.mxu0 %v1351_v48  ;;  %v105_v30 = vld [vmem:[%s2288_s1 + $0x238] sm:$0xff]  ;;  %v136_v31 = vld [vmem:[%s2288_s1 + $0x330] sm:$0xff]  ;;  %v1429_v32 = vpack.c.bf16 %v153_v25, %v152_v24  ;;  %v154_v36 = vld [vmem:[%s2288_s1 + $0x3c0] sm:$0xff]  ;;  %v1544_v24 = vmov 0.0|0.0  }
  0x22   :  { %1386 = vmatprep.subr.bf16.mxu0 %v1385_v50  ;;  %v137_v33 = vld [vmem:[%s2288_s1 + $0x338] sm:$0xff]  ;;  %v155_v37 = vld [vmem:[%s2288_s1 + $0x3c8] sm:$0xff]  ;;  %v1399_v38 = vpack.c.bf16 %v105_v30, %v104_v29  ;;  %v106_v41 = vld [vmem:[%s2288_s1 + $0x240] sm:$0xff] }
  0x23   :  { %1384 = vmatpush3.bf16.msra.mxu1 %v1383_v49  ;;  %v1431_v39 = vpack.c.bf16 %v137_v33, %v136_v31  ;;  %v107_v42 = vld [vmem:[%s2288_s1 + $0x248] sm:$0xff]  ;;  %v138_v43 = vld [vmem:[%s2288_s1 + $0x340] sm:$0xff]  ;;  %v1433_v44 = vpack.c.bf16 %v155_v37, %v154_v36  ;;  %v124_v46 = vld [vmem:[%s2288_s1 + $0x2d0] sm:$0xff] }
  0x24   :  { %1418 = vmatprep.subr.bf16.mxu1 %v1417_v54  ;;  %278 = vmatmul.mubr.f32.vlgmr.msra.gmra.mrb[0].mxu0 %v178_v27  ;;  %v1427_v27 = vpack.c.bf16 %v135_v21, %v134_v19  ;;  %v139_v45 = vld [vmem:[%s2288_s1 + $0x348] sm:$0xff]  ;;  %v125_v47 = vld [vmem:[%s2288_s1 + $0x2d8] sm:$0xff]  ;;  %v156_v48 = vld [vmem:[%s2288_s1 + $0x3d0] sm:$0xff]  ;;  %v1403_v50 = vpack.c.bf16 %v107_v42, %v106_v41 }
  0x25   :  { %1388 = vmatpush3.bf16.msra.mxu0 %v1387_v62  ;;  %417 = vmatprep.mubr.f32.mxu0 %v203_v9  ;;  %v157_v49 = vld [vmem:[%s2288_s1 + $0x3d8] sm:$0xff]  ;;  %v1435_v51 = vpack.c.bf16 %v139_v45, %v138_v43  ;;  %v1405_v52 = vpack.c.bf16 %v125_v47, %v124_v46  ;;  %v108_v53 = vld [vmem:[%s2288_s1 + $0x250] sm:$0xff]  ;;  %v126_v59 = vld [vmem:[%s2288_s1 + $0x2e0] sm:$0xff] }
  0x26   :  { %348 = vmatmul.mubr.f32.vlgmr.msra.gmra.mrb[0].mxu1 %v185_v34  ;;  %1390 = vmatprep.subr.bf16.mxu0 %v1389_v1  ;;  %v122_v34 = vld [vmem:[%s2288_s1 + $0x2c0] sm:$0xff]  ;;  %v109_v54 = vld [vmem:[%s2288_s1 + $0x258] sm:$0xff]  ;;  %v140_v55 = vld [vmem:[%s2288_s1 + $0x350] sm:$0xff]  ;;  %v1437_v56 = vpack.c.bf16 %v157_v49, %v156_v48 }
  0x27   :  { %1420 = vmatpush3.bf16.msra.mxu1 %v1419_v63  ;;  %487 = vmatprep.mubr.f32.mxu1 %v204_v12  ;;  %v1401_v40 = vpack.c.bf16 %v123_v35, %v122_v34  ;;  %v141_v57 = vld [vmem:[%s2288_s1 + $0x358] sm:$0xff]  ;;  %v127_v60 = vld [vmem:[%s2288_s1 + $0x2e8] sm:$0xff]  ;;  %v158_v62 = vld [vmem:[%s2288_s1 + $0x3e0] sm:$0xff]  ;;  %v1407_v1 = vpack.c.bf16 %v109_v54, %v108_v53  ;;  %v1546_v35 = vmov 0.0  }
  0x28   :  { %1422 = vmatprep.subr.bf16.mxu1 %v1421_v5  ;;  %v159_v63 = vld [vmem:[%s2288_s1 + $0x3e8] sm:$0xff]  ;;  %v1439_v2 = vpack.c.bf16 %v141_v57, %v140_v55  ;;  %v1409_v3 = vpack.c.bf16 %v127_v60, %v126_v59  ;;  %v110_v4 = vld [vmem:[%s2288_s1 + $0x260] sm:$0xff]  ;;  %v128_v9 = vld [vmem:[%s2288_s1 + $0x2f0] sm:$0xff] }
  0x29   :  { %1392 = vmatpush3.bf16.msra.mxu0 %v1391_v14  ;;  %v111_v5 = vld [vmem:[%s2288_s1 + $0x268] sm:$0xff]  ;;  %v142_v6 = vld [vmem:[%s2288_s1 + $0x360] sm:$0xff]  ;;  %v1441_v7 = vpack.c.bf16 %v159_v63, %v158_v62  ;;  %v129_v10 = vld [vmem:[%s2288_s1 + $0x2f8] sm:$0xff] }
  0x2a   :  { %1394 = vmatprep.subr.bf16.mxu0 %v1393_v16  ;;  %v143_v8 = vld [vmem:[%s2288_s1 + $0x368] sm:$0xff]  ;;  %v160_v11 = vld [vmem:[%s2288_s1 + $0x3f0] sm:$0xff]  ;;  %v161_v12 = vld [vmem:[%s2288_s1 + $0x3f8] sm:$0xff]  ;;  %v1411_v14 = vpack.c.bf16 %v111_v5, %v110_v4  ;;  %v1413_v16 = vpack.c.bf16 %v129_v10, %v128_v9 }
  0x2b   :  { %1424 = vmatpush3.bf16.msra.mxu1 %v1423_v15  ;;  %v1443_v15 = vpack.c.bf16 %v143_v8, %v142_v6  ;;  %v112_v17 = vld [vmem:[%s2288_s1 + $0x270] sm:$0xff]  ;;  %v113_v18 = vld [vmem:[%s2288_s1 + $0x278] sm:$0xff]  ;;  %v1445_v19 = vpack.c.bf16 %v161_v12, %v160_v11  ;;  %v494_v25 = vld [vmem:[%s2290_s3] sm:$0xff] }
  0x2c   :  { %1426 = vmatprep.subr.bf16.mxu1 %v1425_v20  ;;  %v144_v20 = vld [vmem:[%s2288_s1 + $0x370] sm:$0xff]  ;;  %v145_v21 = vld [vmem:[%s2288_s1 + $0x378] sm:$0xff]  ;;  %v1415_v22 = vpack.c.bf16 %v113_v18, %v112_v17  ;;  %v498_v29 = vld [vmem:[%s2290_s3 + $0x20] sm:$0xff] }
  0x2d   :  { %1396 = vmatpush3.bf16.msra.mxu0 %v1395_v26  ;;  %v1447_v23 = vpack.c.bf16 %v145_v21, %v144_v20  ;;  %v495_v26 = vld [vmem:[%s2290_s3 + $0x8] sm:$0xff]  ;;  %v501_v33 = vld [vmem:[%s2290_s3 + $0x38] sm:$0xff]  ;;  %v584_v36 = vld [vmem:[%s2291_s5] sm:$0xff] }
  0x2e   :  { %1398 = vmatprep.subr.bf16.mxu0 %v1397_v28  ;;  %v1450_v28 = vpack.c.bf16 %v495_v26, %v494_v25  ;;  %v499_v30 = vld [vmem:[%s2290_s3 + $0x28] sm:$0xff]  ;;  %v588_v42 = vld [vmem:[%s2291_s5 + $0x20] sm:$0xff]  ;;  %v684_v9 = vld [vmem:[%s2293_s7 + $0x58] sm:$0xff] }
  0x2f   :  { %1428 = vmatpush3.bf16.msra.mxu1 %v1427_v27  ;;  %v496_v27 = vld [vmem:[%s2290_s3 + $0x10] sm:$0xff]  ;;  %v1456_v31 = vpack.c.bf16 %v499_v30, %v498_v29  ;;  %v585_v37 = vld [vmem:[%s2291_s5 + $0x8] sm:$0xff]  ;;  %v1116_v46 = vld [vmem:[%s2292_s2] ss:$0 sm:$0xff] }
  0x30   :  { %1430 = vmatprep.subr.bf16.mxu1 %v1429_v32  ;;  %v500_v32 = vld [vmem:[%s2290_s3 + $0x30] sm:$0xff]  ;;  %v589_v43 = vld [vmem:[%s2291_s5 + $0x28] sm:$0xff]  ;;  %v673_v10 = vld [vmem:[%s2293_s7] sm:$0xff] }
  0x31   :  { %1400 = vmatpush3.bf16.msra.mxu0 %v1399_v38  ;;  %v1459_v34 = vpack.c.bf16 %v501_v33, %v500_v32  ;;  %v586_v38 = vld [vmem:[%s2291_s5 + $0x10] sm:$0xff]  ;;  %v674_v5 = vld [vmem:[%s2293_s7 + $0x8] sm:$0xff]  ;;  %v681_v11 = vld [vmem:[%s2293_s7 + $0x40] sm:$0xff] }
  0x32   :  { %1402 = vmatprep.subr.bf16.mxu0 %v1401_v40  ;;  %v587_v40 = vld [vmem:[%s2291_s5 + $0x18] sm:$0xff]  ;;  %v682_v6 = vld [vmem:[%s2293_s7 + $0x48] sm:$0xff]  ;;  %v689_v18 = vld [vmem:[%s2293_s7 + $0x80] sm:$0xff] }
  0x33   :  { %1432 = vmatpush3.bf16.msra.mxu1 %v1431_v39  ;;  %v1462_v39 = vpack.c.bf16 %v585_v37, %v584_v36  ;;  %v1465_v41 = vpack.c.bf16 %v587_v40, %v586_v38  ;;  %v1473_v8 = vpack.c.bf16 %v682_v6, %v674_v5  ;;  %v706_v21 = vld [vmem:[%s2293_s7 + $0x108] sm:$0xff]  ;;  %v713_v25 = vld [vmem:[%s2293_s7 + $0x140] sm:$0xff]  ;;  %v692_v29 = vld [vmem:[%s2293_s7 + $0x98] sm:$0xff] }
  0x34   :  { %1434 = vmatprep.subr.bf16.mxu1 %v1433_v44  ;;  %v1468_v44 = vpack.c.bf16 %v589_v43, %v588_v42  ;;  %v700_v30 = vld [vmem:[%s2293_s7 + $0xd8] sm:$0xff]  ;;  %v691_v37 = vld [vmem:[%s2293_s7 + $0x90] sm:$0xff]  ;;  %v685_v5 = vld [vmem:[%s2293_s7 + $0x60] sm:$0xff] }
  0x35   :  { %1404 = vmatpush3.bf16.msra.mxu0 %v1403_v50  ;;  %v1493_v36 = vpack.c.bf16 %v700_v30, %v692_v29  ;;  %v699_v38 = vld [vmem:[%s2293_s7 + $0xd0] sm:$0xff]  ;;  %v716_v40 = vld [vmem:[%s2293_s7 + $0x158] sm:$0xff]  ;;  %v709_v29 = vld [vmem:[%s2293_s7 + $0x120] sm:$0xff] }
  0x36   :  { %1406 = vmatprep.subr.bf16.mxu0 %v1405_v52  ;;  %v707_v43 = vld [vmem:[%s2293_s7 + $0x110] sm:$0xff]  ;;  %v717_v30 = vld [vmem:[%s2293_s7 + $0x160] sm:$0xff] }
  0x37   :  { %1436 = vmatpush3.bf16.msra.mxu1 %v1435_v51  ;;  %v679_v6 = vld [vmem:[%s2293_s7 + $0x30] sm:$0xff] }
  0x38   :  { %1438 = vmatprep.subr.bf16.mxu1 %v1437_v56 }
  0x39   :  { %1408 = vmatpush3.bf16.msra.mxu0 %v1407_v1 }
  0x3a   :  { %1410 = vmatprep.subr.bf16.mxu0 %v1409_v3  ;;  %v591_v3 = vld [vmem:[%s2291_s5 + $0x38] sm:$0xff] }
  0x3b   :  { %1440 = vmatpush3.bf16.msra.mxu1 %v1439_v2  ;;  %v590_v2 = vld [vmem:[%s2291_s5 + $0x30] sm:$0xff] }
  0x3c   :  { %1442 = vmatprep.subr.bf16.mxu1 %v1441_v7  ;;  %v1471_v4 = vpack.c.bf16 %v591_v3, %v590_v2  ;;  %v676_v7 = vld [vmem:[%s2293_s7 + $0x18] sm:$0xff]  ;;  %v1119_v3 = vld [vmem:[%s2295_s6] ss:$0 sm:$0xff] }
  0x3d   :  { %1412 = vmatpush3.bf16.msra.mxu0 %v1411_v14  ;;  %v1489_v12 = vpack.c.bf16 %v684_v9, %v676_v7  ;;  %v1475_v14 = vpack.c.bf16 %v681_v11, %v673_v10  ;;  %v687_v7 = vld [vmem:[%s2293_s7 + $0x70] sm:$0xff]  ;;  %v702_v10 = vld [vmem:[%s2293_s7 + $0xe8] sm:$0xff]  ;;  %v696_v11 = vld [vmem:[%s2293_s7 + $0xb8] sm:$0xff] }
  0x3e   :  { %1414 = vmatprep.subr.bf16.mxu0 %v1413_v16  ;;  %v698_v16 = vld [vmem:[%s2293_s7 + $0xc8] sm:$0xff] }
  0x3f   :  { %1444 = vmatpush3.bf16.msra.mxu1 %v1443_v15  ;;  %v690_v15 = vld [vmem:[%s2293_s7 + $0x88] sm:$0xff] }
  0x40   :  { %1446 = vmatprep.subr.bf16.mxu1 %v1445_v19  ;;  %v1477_v17 = vpack.c.bf16 %v698_v16, %v690_v15  ;;  %v697_v19 = vld [vmem:[%s2293_s7 + $0xc0] sm:$0xff] }
  0x41   :  { %1416 = vmatpush3.bf16.msra.mxu0 %v1415_v22  ;;  %v1479_v20 = vpack.c.bf16 %v697_v19, %v689_v18  ;;  %v714_v22 = vld [vmem:[%s2293_s7 + $0x148] sm:$0xff]  ;;  %v693_v18 = vld [vmem:[%s2293_s7 + $0xa0] sm:$0xff] }
  0x42   :  { %1449 = vmatprep.subr.bf16.mxu0 %v1544_v24  ;;  %v701_v19 = vld [vmem:[%s2293_s7 + $0xe0] sm:$0xff] }
  0x43   :  { %1448 = vmatpush3.bf16.msra.mxu1 %v1447_v23  ;;  %v1481_v23 = vpack.c.bf16 %v714_v22, %v706_v21 }
  0x44   :  { %418 = vmatmul.mubr.f32.vlgmr.msra.gmra.mrb[2].mxu0 %v1833_v58  ;;  %1461 = vmatprep.subr.bf16.mxu1 %v1544_v24  ;;  %v497_v58 = vld [vmem:[%s2290_s3 + $0x18] sm:$0xff] }
  0x45   :  { %1451 = vmatpush3.bf16.msra.mxu0 %v1450_v28  ;;  %1299 = vmatprep.mubr.msk.f32.mxu0 %vm1545_vm0, %v1546_v35  ;;  %v675_v28 = vld [vmem:[%s2293_s7 + $0x10] sm:$0xff] }
  0x46   :  { %488 = vmatmul.mubr.f32.vlgmr.msra.gmra.mrb[2].mxu1 %v1842_v61  ;;  %v1453_v61 = vpack.c.bf16 %v497_v58, %v496_v27  ;;  %1452 = vmatprep.subr.bf16.mxu0 %v1544_v24  ;;  %v1117_v27 = vld [vmem:[%s2294_s4] ss:$0 sm:$0xff]  ;;  %v683_v58 = vld [vmem:[%s2293_s7 + $0x50] sm:$0xff] }
  0x47   :  { %1318 = vmatprep.mubr.msk.f32.mxu1 %vm1545_vm0, %v1546_v35  ;;  %1463 = vmatpush3.bf16.msra.mxu1 %v1462_v39  ;;  %v1491_v33 = vpack.c.bf16 %v683_v58, %v675_v28  ;;  %v708_v39 = vld [vmem:[%s2293_s7 + $0x118] sm:$0xff]  ;;  %v1511_v58 = vpack.c.bf16 %v701_v19, %v693_v18 }
  0x48   :  { %1464 = vmatprep.subr.bf16.mxu1 %v1544_v24  ;;  %v1497_v42 = vpack.c.bf16 %v716_v40, %v708_v39  ;;  %v720_v28 = vld [vmem:[%s2293_s7 + $0x178] sm:$0xff]  ;;  %v1515_v40 = vpack.c.bf16 %v717_v30, %v709_v29 }
  0x49   :  { %1454 = vmatpush3.bf16.msra.mxu0 %v1453_v61  ;;  %v736_v39 = vld [vmem:[%s2293_s7 + $0x1f8] sm:$0xff] }
  0x4a   :  { %1455 = vmatprep.subr.bf16.mxu0 %v1544_v24 }
  0x4b   :  { %1466 = vmatpush3.bf16.msra.mxu1 %v1465_v41  ;;  %v1495_v41 = vpack.c.bf16 %v699_v38, %v691_v37  ;;  %v734_v37 = vld [vmem:[%s2293_s7 + $0x1e8] sm:$0xff]  ;;  %v728_v38 = vld [vmem:[%s2293_s7 + $0x1b8] sm:$0xff] }
  0x4c   :  { %1467 = vmatprep.subr.bf16.mxu1 %v1544_v24 }
  0x4d   :  { %1457 = vmatpush3.bf16.msra.mxu0 %v1456_v31 }
  0x4e   :  { %1458 = vmatprep.subr.bf16.mxu0 %v1544_v24 }
  0x4f   :  { %1469 = vmatpush3.bf16.msra.mxu1 %v1468_v44  ;;  %v715_v44 = vld [vmem:[%s2293_s7 + $0x150] sm:$0xff] }
  0x50   :  { %1470 = vmatprep.subr.bf16.mxu1 %v1544_v24  ;;  %v705_v24 = vld [vmem:[%s2293_s7 + $0x100] sm:$0xff] }
  0x51   :  { %1460 = vmatpush3.bf16.msra.mxu0 %v1459_v34  ;;  %v1483_v26 = vpack.c.bf16 %v713_v25, %v705_v24  ;;  %v703_v24 = vld [vmem:[%s2293_s7 + $0xf0] sm:$0xff]  ;;  %v710_v25 = vld [vmem:[%s2293_s7 + $0x128] sm:$0xff] }
  0x52   :  { %1474 = vmatprep.subr.bf16.mxu0 %v1473_v8  ;;  %v694_v8 = vld [vmem:[%s2293_s7 + $0xa8] sm:$0xff] }
  0x53   :  { %1472 = vmatpush3.bf16.msra.mxu1 %v1471_v4  ;;  %v677_v4 = vld [vmem:[%s2293_s7 + $0x20] sm:$0xff]  ;;  %v1509_v21 = vpack.c.bf16 %v702_v10, %v694_v8  ;;  %v757_v10 = vsub.s32 4, %v1723_v0 }
  0x54   :  { %1490 = vmatprep.subr.bf16.mxu1 %v1489_v12  ;;  %v704_v12 = vld [vmem:[%s2293_s7 + $0xf8] sm:$0xff]  ;;  %v1507_v16 = vpack.c.bf16 %v685_v5, %v677_v4 }
  0x55   :  { %v1525_v22 = vpack.c.bf16 %v704_v12, %v696_v11  ;;  %v765_v11 = vsub.s32 6, %v1723_v0  ;;  %v761_v12 = vsub.s32 5, %v1723_v0 }
  0xf7   :  { %v1157_v45 = vpop.f32.mrb[0].mxu0 }
  0xf8   :  { %v1158_v47 = vpop.f32.mrb[1].mxu0 }
  0xf9   :  { %v1192_v48 = vpop.f32.mrb[0].mxu1  ;;  %v1159_v49 = vadd.f32 %v1158_v47, %v1157_v45  ;;  %v1499_v45 = vpack.c.bf16 %v715_v44, %v707_v43  ;;  %v730_v47 = vld [vmem:[%s2293_s7 + $0x1c8] sm:$0xff]  ;;  %v1533_v44 = vpack.c.bf16 %v736_v39, %v728_v38 }
  0xfa   :  { %v1193_v50 = vpop.f32.mrb[1].mxu1 }
  0xfb   :  { %v1194_v51 = vadd.f32 %v1193_v50, %v1192_v48  ;;  %v280_v52 = vadd.f32 %v1159_v49, %v1116_v46  ;;  %v722_v46 = vld [vmem:[%s2293_s7 + $0x188] sm:$0xff]  ;;  %v724_v48 = vld [vmem:[%s2293_s7 + $0x198] sm:$0xff] }
  0xfc   :  { %v1485_v49 = vpack.c.bf16 %v730_v47, %v722_v46  ;;  %v732_v50 = vld [vmem:[%s2293_s7 + $0x1d8] sm:$0xff]  ;;  %v735_v46 = vld [vmem:[%s2293_s7 + $0x1f0] sm:$0xff] }
  0xfd   :  { %v350_v53 = vadd.f32 %v1194_v51, %v280_v52  ;;  %v721_v51 = vld [vmem:[%s2293_s7 + $0x180] sm:$0xff] }
  0xfe   :  { %v729_v52 = vld [vmem:[%s2293_s7 + $0x1c0] sm:$0xff] }
 0x117   :  { %v1227_v54 = vpop.f32.mrb[2].mxu0 }
 0x118   :  { %v1228_v55 = vpop.f32.mrb[3].mxu0 }
 0x119   :  { %v1262_v56 = vpop.f32.mrb[2].mxu1  ;;  %v1229_v57 = vadd.f32 %v1228_v55, %v1227_v54  ;;  %v1487_v54 = vpack.c.bf16 %v729_v52, %v721_v51  ;;  %v723_v55 = vld [vmem:[%s2293_s7 + $0x190] sm:$0xff]  ;;  %v737_v51 = vld [vmem:[%s2296_s8] sm:$0xff]  ;;  %v745_v52 = vsub.s32 1, %v1723_v0 }
 0x11a   :  { %v1263_v59 = vpop.f32.mrb[3].mxu1 }
 0x11b   :  { %v1264_v60 = vadd.f32 %v1263_v59, %v1262_v56  ;;  %v420_v62 = vadd.f32 %v1229_v57, %v350_v53  ;;  %v1501_v53 = vpack.c.bf16 %v732_v50, %v724_v48  ;;  %v731_v56 = vld [vmem:[%s2293_s7 + $0x1d0] sm:$0xff]  ;;  %v678_v59 = vld [vmem:[%s2293_s7 + $0x28] sm:$0xff]  ;;  %v749_v50 = vsub.s32 2, %v1723_v0 }
 0x11c   :  { %v1503_v57 = vpack.c.bf16 %v731_v56, %v723_v55  ;;  %v746_v56 = vrot.slane %v737_v51, %v745_v52 }
 0x11d   :  { %v490_v63 = vadd.f32 %v1264_v60, %v420_v62  ;;  %v686_v60 = vld [vmem:[%s2293_s7 + $0x68] sm:$0xff]  ;;  %v680_v62 = vld [vmem:[%s2293_s7 + $0x38] sm:$0xff]  ;;  %v750_v55 = vrot.slane %v737_v51, %v749_v50 }
 0x11f   :  { %v493_v1 = vmax.f32 %v490_v63, 0.0  ;;  %v1505_v63 = vpack.c.bf16 %v686_v60, %v678_v59 }
 0x121   :  { %1300 = vmatmul.mubr.msk.f32.vlgmr.msra.gmra.mrb[4].mxu0 %vm509_vm1, %v493_v1  ;;  %v688_v1 = vld [vmem:[%s2293_s7 + $0x78] sm:$0xff] }
 0x122   :  { %846 = vmatprep.mubr.f32.mxu0 %v1546_v35  ;;  %1476 = vmatpush1.bf16.msra.mxu0 %v1475_v14  ;;  %v1521_v2 = vpack.c.bf16 %v688_v1, %v680_v62 }
 0x123   :  { %1478 = vmatprep.subr.bf16.mxu0 %v1477_v17  ;;  %v1523_v17 = vpack.c.bf16 %v687_v7, %v679_v6 }
 0x126   :  { %1480 = vmatpush1.bf16.msra.mxu0 %v1479_v20 }
 0x127   :  { %1482 = vmatprep.subr.bf16.mxu0 %v1481_v23  ;;  %v695_v23 = vld [vmem:[%s2293_s7 + $0xb0] sm:$0xff] }
 0x12a   :  { %1484 = vmatpush1.bf16.msra.mxu0 %v1483_v26  ;;  %v718_v26 = vld [vmem:[%s2293_s7 + $0x168] sm:$0xff] }
 0x12b   :  { %1486 = vmatprep.subr.bf16.mxu0 %v1485_v49  ;;  %v741_v49 = vsub.s32 0, %v1723_v0 }
 0x12e   :  { %1488 = vmatpush1.bf16.msra.mxu0 %v1487_v54  ;;  %v742_v54 = vrot.slane %v737_v51, %v741_v49 }
 0x12f   :  { %1506 = vmatprep.subr.bf16.mxu0 %v1505_v63 }
 0x1f4   :  { %v579_v61 = vpop.f32.mrb[4].mxu0 }
 0x1f5   :  { %v580_v31 = vadd.f32 %v1117_v27, %v579_v61  ;;  %v1301_v32 = vpop.f32.mrb[5].mxu0  ;;  %v712_v27 = vld [vmem:[%s2293_s7 + $0x138] sm:$0xff]  ;;  %v1527_v61 = vpack.c.bf16 %v703_v24, %v695_v23 }
 0x1f6   :  { %v1529_v32 = vpack.c.bf16 %v720_v28, %v712_v27 }
 0x1f7   :  { %v583_v34 = vmax.f32 %v580_v31, 0.0  ;;  %v1513_v31 = vpack.c.bf16 %v718_v26, %v710_v25 }
 0x1f9   :  { %1319 = vmatmul.mubr.msk.f32.vlgmr.msra.gmra.mrb[4].mxu1 %vm509_vm1, %v583_v34  ;;  %v719_v34 = vld [vmem:[%s2293_s7 + $0x170] sm:$0xff] }
 0x1fa   :  { %1492 = vmatpush1.bf16.msra.mxu1 %v1491_v33  ;;  %917 = vmatprep.mubr.f32.mxu1 %v1546_v35  ;;  %v711_v33 = vld [vmem:[%s2293_s7 + $0x130] sm:$0xff] }
 0x1fb   :  { %1494 = vmatprep.subr.bf16.mxu1 %v1493_v36  ;;  %v726_v36 = vld [vmem:[%s2293_s7 + $0x1a8] sm:$0xff] }
 0x1fc   :  { %v1517_v43 = vpack.c.bf16 %v734_v37, %v726_v36 }
 0x1fe   :  { %1496 = vmatpush1.bf16.msra.mxu1 %v1495_v41  ;;  %v1531_v41 = vpack.c.bf16 %v719_v34, %v711_v33 }
 0x1ff   :  { %1498 = vmatprep.subr.bf16.mxu1 %v1497_v42  ;;  %v725_v42 = vld [vmem:[%s2293_s7 + $0x1a0] sm:$0xff] }
 0x202   :  { %1500 = vmatpush1.bf16.msra.mxu1 %v1499_v45  ;;  %v733_v45 = vld [vmem:[%s2293_s7 + $0x1e0] sm:$0xff] }
 0x203   :  { %1502 = vmatprep.subr.bf16.mxu1 %v1501_v53  ;;  %v1519_v47 = vpack.c.bf16 %v733_v45, %v725_v42  ;;  %v753_v53 = vsub.s32 3, %v1723_v0 }
 0x206   :  { %1504 = vmatpush1.bf16.msra.mxu1 %v1503_v57  ;;  %v754_v57 = vrot.slane %v737_v51, %v753_v53 }
 0x207   :  { %1522 = vmatprep.subr.bf16.mxu1 %v1521_v2 }
 0x2cc   :  { %v668_v9 = vpop.f32.mrb[4].mxu1 }
 0x2cd   :  { %v669_v14 = vadd.f32 %v1119_v3, %v668_v9  ;;  %v1320_v15 = vpop.f32.mrb[5].mxu1 }
 0x2ce   :  { %v758_v15 = vrot.slane %v737_v51, %v757_v10 }
 0x2cf   :  { %v672_v20 = vmax.f32 %v669_v14, 0.0  ;;  %v769_v14 = vsub.s32 7, %v1723_v0 }
 0x2d1   :  { %1121 = vmatmul.mubr.msk.f32.vlgmr.msra.gmra.mrb[6].mxu0 %vm509_vm1, %v672_v20  ;;  %1122 = vmatmul.mubr.msk.f32.vlgmr.msra.gmra.mrb[6].mxu1 %vm509_vm1, %v672_v20  ;;  %v770_v18 = vrot.slane %v737_v51, %v769_v14 }
 0x2d2   :  { %1508 = vmatpush1.bf16.msra.mxu0 %v1507_v16  ;;  %1524 = vmatpush1.bf16.msra.mxu1 %v1523_v17  ;;  %v766_v16 = vrot.slane %v737_v51, %v765_v11  ;;  %v762_v17 = vrot.slane %v737_v51, %v761_v12 }
 0x2d3   :  { %1510 = vmatprep.subr.bf16.mxu0 %v1509_v21  ;;  %1526 = vmatprep.subr.bf16.mxu1 %v1525_v22 }
 0x2d4   :  { %988 = vmatprep.mubr.f32.mxu0 %v1546_v35  ;;  %1059 = vmatprep.mubr.f32.mxu1 %v1546_v35  ;;  %v727_v35 = vld [vmem:[%s2293_s7 + $0x1b0] sm:$0xff] }
 0x2d5   :  { %v1535_v48 = vpack.c.bf16 %v735_v46, %v727_v35 }
 0x2d6   :  { %1512 = vmatpush1.bf16.msra.mxu0 %v1511_v58  ;;  %1528 = vmatpush1.bf16.msra.mxu1 %v1527_v61 }
 0x2d7   :  { %1514 = vmatprep.subr.bf16.mxu0 %v1513_v31  ;;  %1530 = vmatprep.subr.bf16.mxu1 %v1529_v32 }
 0x2da   :  { %1516 = vmatpush1.bf16.msra.mxu0 %v1515_v40  ;;  %1532 = vmatpush1.bf16.msra.mxu1 %v1531_v41 }
 0x2db   :  { %1518 = vmatprep.subr.bf16.mxu0 %v1517_v43  ;;  %1534 = vmatprep.subr.bf16.mxu1 %v1533_v44 }
 0x2de   :  { %1520 = vmatpush1.bf16.msra.mxu0 %v1519_v47  ;;  %1536 = vmatpush1.bf16.msra.mxu1 %v1535_v48 }
 0x2e1   :  { %1123 = vmatmul.mubr.msk.f32.vlgmr.msra.gmra.mrb[8].mxu0 %vm509_vm1, %v672_v20  ;;  %1124 = vmatmul.mubr.msk.f32.vlgmr.msra.gmra.mrb[8].mxu1 %vm509_vm1, %v672_v20 }
 0x3a4   :  { %v848_v59 = vpop.f32.mrb[6].mxu0  ;;  %v919_v60 = vpop.f32.mrb[6].mxu1 }
 0x3a5   :  { %v849_v62 = vadd.f32 %v848_v59, %v742_v54  ;;  %v920_v63 = vadd.f32 %v919_v60, %v750_v55  ;;  %v850_v1 = vpop.f32.mrb[7].mxu0  ;;  %v921_v2 = vpop.f32.mrb[7].mxu1 }
 0x3a6   :  { %v851_v3 = vadd.f32 %v850_v1, %v746_v56  ;;  %v922_v4 = vadd.f32 %v921_v2, %v754_v57 }
 0x3a8   :  { %v1074_v5 = vcombine.low %v849_v62, %v851_v3  ;;  %v1075_v6 = vcombine.low %v920_v63, %v922_v4 }
 0x3aa   :  { %v1082_v7 = vrot.slane %v1074_v5, %v1750_v13  ;;  %v1089_v8 = vrot.slane %v1075_v6, %v1750_v13 }
 0x3ac   :  { %v1090_v9 = vcombine.low %v1082_v7, %v1089_v8 }
 0x3ae   :  { %1110 = vst [vmem:[%s2297_s9] sm:$0xff] %v1090_v9 }
 0x3b4   :  { %v990_v19 = vpop.f32.mrb[8].mxu0  ;;  %v1061_v20 = vpop.f32.mrb[8].mxu1 }
 0x3b5   :  { %v991_v21 = vadd.f32 %v990_v19, %v758_v15  ;;  %v1062_v22 = vadd.f32 %v1061_v20, %v766_v16  ;;  %v992_v23 = vpop.f32.mrb[9].mxu0  ;;  %v1063_v24 = vpop.f32.mrb[9].mxu1 }
 0x3b6   :  { %v993_v25 = vadd.f32 %v992_v23, %v762_v17  ;;  %v1064_v26 = vadd.f32 %v1063_v24, %v770_v18 }
 0x3b8   :  { %v1091_v27 = vcombine.low %v991_v21, %v993_v25  ;;  %v1092_v28 = vcombine.low %v1062_v22, %v1064_v26 }
 0x3ba   :  { %v1099_v58 = vrot.slane %v1091_v27, %v1750_v13  ;;  %v1106_v61 = vrot.slane %v1092_v28, %v1750_v13 }
 0x3bc   :  { %v1107_v29 = vcombine.low %v1099_v58, %v1106_v61 }
 0x3be   :  { %1111 = vst [vmem:[%s2297_s9 + $0x8] sm:$0xff] %v1107_v29 }

// kernel: container_forward.7
= control target key start
LH: loop header
LB: loop body
LE: loop exit
PB: predicated region body
PF: predicated region fallthrough
CT: control target
= control target key end

     0   :  { %s18237_s25 = smov 0   ;;  %s22086_s0 = inlined_call_operand.vmem [shape: f32[2,256,4], index: 0, kind: input, shape index: {}]   ;;  %s22087_s1 = inlined_call_operand.vmem [shape: f32[9,4,8], index: 1, kind: input, shape index: {}]   ;;  %s22088_s2 = inlined_call_operand.vmem [shape: f32[1,8], index: 2, kind: input, shape index: {}]   ;;  %s22089_s3 = inlined_call_operand.vmem [shape: f32[8,8], index: 3, kind: input, shape index: {}]   ;;  %s22090_s4 = inlined_call_operand.vmem [shape: f32[1,8], index: 4, kind: input, shape index: {}]   ;;  %s22091_s5 = inlined_call_operand.vmem [shape: f32[9,8,8], index: 5, kind: input, shape index: {}]   ;;  %s22092_s6 = inlined_call_operand.vmem [shape: f32[1,8], index: 6, kind: input, shape index: {}]   ;;  %s22093_s7 = inlined_call_operand.vmem [shape: f32[16,8], index: 7, kind: input, shape index: {}]   ;;  %s22094_s8 = inlined_call_operand.vmem [shape: f32[1,8], index: 8, kind: input, shape index: {}]   ;;  %s22095_s9 = inlined_call_operand.vmem [shape: f32[9,8,8], index: 9, kind: input, shape index: {}]   ;;  %s22096_s10 = inlined_call_operand.vmem [shape: f32[1,8], index: 10, kind: input, shape index: {}]   ;;  %s22097_s11 = inlined_call_operand.vmem [shape: f32[24,4], index: 11, kind: input, shape index: {}]   ;;  %s22098_s12 = inlined_call_operand.vmem [shape: f32[1,4], index: 12, kind: input, shape index: {}]   ;;  %s22099_s13 = inlined_call_operand.vmem [shape: f32[2,256,4], index: 13, kind: output, shape index: {}]  }
   0x1 LB: > { %s13276_s26 = sadd.s32 4294967295, %s18164_s25   ;;  %p13280_p0 = scmp.ge.s32.totalorder %s18164_s25, 1  ;;  %s18164_s25 = sphi %s18237_s25, %s23_s25  }
   0x2   : > { %p387_p1 = scmp.lt.s32.totalorder %s18164_s25, 3 }
   0x4   : > { %p388_p2 = pnand %p13280_p0, %p387_p1 }
   0x6   : > { %391 = sbr.rel (%p388_p2) target bundleno = 2890 (0xb4a), region = 72 }
   0xd   : > { %v595_v0 = vld [vmem:[%s22087_s1] sm:$0xf]  ;;  %vm692_vm0 = vcmask 1043456   ;;  %vm473_vm1 = vcmask 31744   ;;  %p18250_p3 = scmp.lt.s32.totalorder %s13276_s26, 1  ;;  %v22100_v1 = vmov 0.0  }
   0xe   : > { %15473 = vmatprep.subr.msk.mxu0 %vm692_vm0, %v595_v0  ;;  %474 = vst.msk [vmem:[#allocation2] sm:$0xff] %vm473_vm1, %v22100_v1  ;;  %475 = vst.msk [vmem:[#allocation2 + $0x8] sm:$0xff] %vm473_vm1, %v22100_v1  ;;  %v13319_v2 = vld [vmem:[%s22087_s1 + $0x4] sm:$0xf]  ;;  %vm476_vm2 = vcmask 25600   ;;  %vm4114_vm3 = vcmask 64512  }
   0xf   : > { %478 = vst.msk [vmem:[#allocation2 + $0x18] sm:$0xff] %vm473_vm1, %v22100_v1  ;;  %479 = vst.msk [vmem:[#allocation2 + $0x20] sm:$0xff] %vm473_vm1, %v22100_v1  ;;  %15474 = vmatpush3.msk.msra.mxu0 %vm692_vm0, %v595_v0  ;;  %s22767_s26 = smov (!%p18250_p3, %s13276_s26), 1  ;;  %v18394_v9 = vld [vmem:[%s22087_s1 + $0x8] sm:$0xf]  ;;  %vm4476_vm4 = vcmask 58368  }
  0x10   : > { %481 = vst.msk [vmem:[#allocation2 + $0x30] sm:$0xff] %vm473_vm1, %v22100_v1  ;;  %482 = vst.msk [vmem:[#allocation2 + $0x38] sm:$0xff] %vm473_vm1, %v22100_v1  ;;  %15523 = vmatprep.subr.msk.mxu0 %vm692_vm0, %v13319_v2  ;;  %s14382_s15 = sshll.u32 %s22767_s26, 8 }
  0x11   : > { %484 = vst.msk [vmem:[#allocation2 + $0x48] sm:$0xff] %vm473_vm1, %v22100_v1  ;;  %485 = vst.msk [vmem:[#allocation2 + $0x50] sm:$0xff] %vm473_vm1, %v22100_v1  ;;  %s18380_s18 = scalar_lea.vmem %s22086_s0, %s14382_s15  ;;  %s21985_s27 = scalar_lea.vmem %s22099_s13, %s14382_s15 }
  0x12   : > { %487 = vst.msk [vmem:[#allocation2 + $0x60] sm:$0xff] %vm473_vm1, %v22100_v1  ;;  %488 = vst.msk [vmem:[#allocation2 + $0x68] sm:$0xff] %vm473_vm1, %v22100_v1  ;;  %v441_v3 = vld [vmem:[%s18380_s18] sm:$0xff]  ;;  %v442_v4 = vld [vmem:[%s18380_s18 + $0x8] sm:$0xff] }
  0x13   : > { %490 = vst.msk [vmem:[#allocation2 + $0x78] sm:$0xff] %vm473_vm1, %v22100_v1  ;;  %491 = vst.msk [vmem:[#allocation2 + $0x80] sm:$0xff] %vm473_vm1, %v22100_v1  ;;  %v443_v5 = vld [vmem:[%s18380_s18 + $0x10] sm:$0xff]  ;;  %v444_v6 = vld [vmem:[%s18380_s18 + $0x18] sm:$0xff] }
  0x14   : > { %493 = vst.msk [vmem:[#allocation2 + $0x90] sm:$0xff] %vm473_vm1, %v22100_v1  ;;  %494 = vst.msk [vmem:[#allocation2 + $0x98] sm:$0xff] %vm473_vm1, %v22100_v1  ;;  %v445_v7 = vld [vmem:[%s18380_s18 + $0x20] sm:$0xff]  ;;  %v446_v8 = vld [vmem:[%s18380_s18 + $0x28] sm:$0xff] }
  0x15   : > { %496 = vst.msk [vmem:[#allocation2 + $0xa8] sm:$0xff] %vm473_vm1, %v22100_v1  ;;  %497 = vst.msk [vmem:[#allocation2 + $0xb0] sm:$0xff] %vm473_vm1, %v22100_v1  ;;  %v563_v10 = vld [vmem:[#allocation2] sm:$0xff]  ;;  %v564_v11 = vld [vmem:[#allocation2 + $0x8] sm:$0xff] }
  0x16   : > { %499 = vst.msk [vmem:[#allocation2 + $0xc0] sm:$0xff] %vm473_vm1, %v22100_v1  ;;  %500 = vst.msk [vmem:[#allocation2 + $0xc8] sm:$0xff] %vm473_vm1, %v22100_v1  ;;  %v447_v12 = vld [vmem:[%s18380_s18 + $0x30] sm:$0xff]  ;;  %15475 = vmatprep.mubr.msk.f32.mxu0 %vm473_vm1, %v563_v10  ;;  %v448_v13 = vld [vmem:[%s18380_s18 + $0x38] sm:$0xff] }
  0x17   : > { %502 = vst.msk [vmem:[#allocation2 + $0xd8] sm:$0xff] %vm473_vm1, %v22100_v1  ;;  %503 = vst.msk [vmem:[#allocation2 + $0xe0] sm:$0xff] %vm473_vm1, %v22100_v1  ;;  %v449_v14 = vld [vmem:[%s18380_s18 + $0x40] sm:$0xff]  ;;  %v450_v15 = vld [vmem:[%s18380_s18 + $0x48] sm:$0xff]  ;;  %15476 = vmatmul.mubr.msk.f32.vlgmr.msra.gmra.mrb[0].mxu0 %vm473_vm1, %v564_v11 }
  0x18   : > { %505 = vst.msk [vmem:[#allocation2 + $0xf0] sm:$0xff] %vm473_vm1, %v22100_v1  ;;  %506 = vst.msk [vmem:[#allocation2 + $0xf8] sm:$0xff] %vm473_vm1, %v22100_v1  ;;  %v451_v16 = vld [vmem:[%s18380_s18 + $0x50] sm:$0xff]  ;;  %v452_v17 = vld [vmem:[%s18380_s18 + $0x58] sm:$0xff]  ;;  %15524 = vmatpush3.msk.msra.mxu0 %vm692_vm0, %v13319_v2 }
  0x19   : > { %508 = vst.msk [vmem:[#allocation2 + $0x108] sm:$0xff] %vm473_vm1, %v22100_v1  ;;  %509 = vst.msk [vmem:[#allocation2 + $0x110] sm:$0xff] %vm473_vm1, %v22100_v1  ;;  %v453_v18 = vld [vmem:[%s18380_s18 + $0x60] sm:$0xff]  ;;  %v454_v19 = vld [vmem:[%s18380_s18 + $0x68] sm:$0xff]  ;;  %15573 = vmatprep.subr.msk.mxu0 %vm692_vm0, %v18394_v9 }
  0x1a   : > { %511 = vst.msk [vmem:[#allocation2 + $0x120] sm:$0xff] %vm473_vm1, %v22100_v1  ;;  %512 = vst.msk [vmem:[#allocation2 + $0x128] sm:$0xff] %vm473_vm1, %v22100_v1  ;;  %v455_v20 = vld [vmem:[%s18380_s18 + $0x70] sm:$0xff]  ;;  %v456_v21 = vld [vmem:[%s18380_s18 + $0x78] sm:$0xff] }
  0x1b   : > { %514 = vst.msk [vmem:[#allocation2 + $0x138] sm:$0xff] %vm473_vm1, %v22100_v1  ;;  %515 = vst.msk [vmem:[#allocation2 + $0x140] sm:$0xff] %vm473_vm1, %v22100_v1  ;;  %v457_v22 = vld [vmem:[%s18380_s18 + $0x80] sm:$0xff]  ;;  %v458_v23 = vld [vmem:[%s18380_s18 + $0x88] sm:$0xff] }
  0x1c   : > { %517 = vst.msk [vmem:[#allocation2 + $0x150] sm:$0xff] %vm473_vm1, %v22100_v1  ;;  %518 = vst.msk [vmem:[#allocation2 + $0x158] sm:$0xff] %vm473_vm1, %v22100_v1  ;;  %v459_v24 = vld [vmem:[%s18380_s18 + $0x90] sm:$0xff]  ;;  %v460_v25 = vld [vmem:[%s18380_s18 + $0x98] sm:$0xff] }
  0x1d   : > { %520 = vst.msk [vmem:[#allocation2 + $0x168] sm:$0xff] %vm473_vm1, %v22100_v1  ;;  %521 = vst.msk [vmem:[#allocation2 + $0x170] sm:$0xff] %vm473_vm1, %v22100_v1  ;;  %v461_v26 = vld [vmem:[%s18380_s18 + $0xa0] sm:$0xff]  ;;  %v462_v27 = vld [vmem:[%s18380_s18 + $0xa8] sm:$0xff] }
  0x1e   : > { %523 = vst.msk [vmem:[#allocation2 + $0x180] sm:$0xff] %vm473_vm1, %v22100_v1  ;;  %524 = vst.msk [vmem:[#allocation2 + $0x188] sm:$0xff] %vm473_vm1, %v22100_v1  ;;  %v463_v31 = vld [vmem:[%s18380_s18 + $0xb0] sm:$0xff]  ;;  %v464_v32 = vld [vmem:[%s18380_s18 + $0xb8] sm:$0xff] }
  0x1f   : > { %526 = vst.msk [vmem:[#allocation2 + $0x198] sm:$0xff] %vm473_vm1, %v22100_v1  ;;  %527 = vst.msk [vmem:[#allocation2 + $0x1a0] sm:$0xff] %vm473_vm1, %v22100_v1  ;;  %v465_v37 = vld [vmem:[%s18380_s18 + $0xc0] sm:$0xff]  ;;  %v466_v38 = vld [vmem:[%s18380_s18 + $0xc8] sm:$0xff] }
  0x20   : > { %480 = vst.msk [vmem:[#allocation2 + $0x28] sm:$0x3] %vm476_vm2, %v22100_v1  ;;  %477 = vst.msk [vmem:[#allocation2 + $0x10] sm:$0x3] %vm476_vm2, %v22100_v1  ;;  %v467_v39 = vld [vmem:[%s18380_s18 + $0xd0] sm:$0xff]  ;;  %v468_v40 = vld [vmem:[%s18380_s18 + $0xd8] sm:$0xff] }
  0x21   : > { %483 = vst.msk [vmem:[#allocation2 + $0x40] sm:$0x3] %vm476_vm2, %v22100_v1  ;;  %486 = vst.msk [vmem:[#allocation2 + $0x58] sm:$0x3] %vm476_vm2, %v22100_v1  ;;  %v469_v41 = vld [vmem:[%s18380_s18 + $0xe0] sm:$0xff]  ;;  %v470_v42 = vld [vmem:[%s18380_s18 + $0xe8] sm:$0xff] }
  0x22   : > { %489 = vst.msk [vmem:[#allocation2 + $0x70] sm:$0x3] %vm476_vm2, %v22100_v1  ;;  %492 = vst.msk [vmem:[#allocation2 + $0x88] sm:$0x3] %vm476_vm2, %v22100_v1 }
  0x23   : > { %495 = vst.msk [vmem:[#allocation2 + $0xa0] sm:$0x3] %vm476_vm2, %v22100_v1  ;;  %498 = vst.msk [vmem:[#allocation2 + $0xb8] sm:$0x3] %vm476_vm2, %v22100_v1 }
  0x24   : > { %501 = vst.msk [vmem:[#allocation2 + $0xd0] sm:$0x3] %vm476_vm2, %v22100_v1  ;;  %504 = vst.msk [vmem:[#allocation2 + $0xe8] sm:$0x3] %vm476_vm2, %v22100_v1 }
  0x25   : > { %507 = vst.msk [vmem:[#allocation2 + $0x100] sm:$0x3] %vm476_vm2, %v22100_v1  ;;  %510 = vst.msk [vmem:[#allocation2 + $0x118] sm:$0x3] %vm476_vm2, %v22100_v1 }
  0x26   : > { %513 = vst.msk [vmem:[#allocation2 + $0x130] sm:$0x3] %vm476_vm2, %v22100_v1  ;;  %516 = vst.msk [vmem:[#allocation2 + $0x148] sm:$0x3] %vm476_vm2, %v22100_v1 }
  0x27   : > { %519 = vst.msk [vmem:[#allocation2 + $0x160] sm:$0x3] %vm476_vm2, %v22100_v1  ;;  %522 = vst.msk [vmem:[#allocation2 + $0x178] sm:$0x3] %vm476_vm2, %v22100_v1 }
  0x28   : > { %525 = vst.msk [vmem:[#allocation2 + $0x190] sm:$0x3] %vm476_vm2, %v22100_v1  ;;  %528 = vst.msk [vmem:[#allocation2 + $0x1a8] sm:$0x3] %vm476_vm2, %v22100_v1 }
  0x29   : > { %530 = vst.msk [vmem:[#allocation2 + $0x19] sm:$0xff] %vm473_vm1, %v441_v3  ;;  %531 = vst.msk [vmem:[#allocation2 + $0x21] sm:$0xff] %vm473_vm1, %v442_v4  ;;  %v959_v3 = vld [vmem:[#allocation2 + $0x1] sm:$0xff]  ;;  %v960_v4 = vld [vmem:[#allocation2 + $0x9] sm:$0xff] }
  0x2a   : > { %532 = vst.msk [vmem:[#allocation2 + $0x31] sm:$0xff] %vm473_vm1, %v443_v5  ;;  %533 = vst.msk [vmem:[#allocation2 + $0x39] sm:$0xff] %vm473_vm1, %v444_v6  ;;  %v18578_v6 = vld [vmem:[%s22087_s1 + $0xc] sm:$0xf] }
  0x2b   : > { %534 = vst.msk [vmem:[#allocation2 + $0x49] sm:$0xff] %vm473_vm1, %v445_v7  ;;  %535 = vst.msk [vmem:[#allocation2 + $0x51] sm:$0xff] %vm473_vm1, %v446_v8 }
  0x2c   : > { %536 = vst.msk [vmem:[#allocation2 + $0x61] sm:$0xff] %vm473_vm1, %v447_v12  ;;  %537 = vst.msk [vmem:[#allocation2 + $0x69] sm:$0xff] %vm473_vm1, %v448_v13 }
  0x2d   : > { %538 = vst.msk [vmem:[#allocation2 + $0x79] sm:$0xff] %vm473_vm1, %v449_v14  ;;  %539 = vst.msk [vmem:[#allocation2 + $0x81] sm:$0xff] %vm473_vm1, %v450_v15 }
  0x2e   : > { %540 = vst.msk [vmem:[#allocation2 + $0x91] sm:$0xff] %vm473_vm1, %v451_v16  ;;  %541 = vst.msk [vmem:[#allocation2 + $0x99] sm:$0xff] %vm473_vm1, %v452_v17 }
  0x2f   : > { %542 = vst.msk [vmem:[#allocation2 + $0xa9] sm:$0xff] %vm473_vm1, %v453_v18  ;;  %543 = vst.msk [vmem:[#allocation2 + $0xb1] sm:$0xff] %vm473_vm1, %v454_v19 }
  0x30   : > { %544 = vst.msk [vmem:[#allocation2 + $0xc1] sm:$0xff] %vm473_vm1, %v455_v20  ;;  %545 = vst.msk [vmem:[#allocation2 + $0xc9] sm:$0xff] %vm473_vm1, %v456_v21  ;;  %v18433_v28 = vld [vmem:[#allocation2 + $0x18] sm:$0xff]  ;;  %v18435_v29 = vld [vmem:[#allocation2 + $0x20] sm:$0xff] }
  0x31   : > { %546 = vst.msk [vmem:[#allocation2 + $0xd9] sm:$0xff] %vm473_vm1, %v457_v22  ;;  %547 = vst.msk [vmem:[#allocation2 + $0xe1] sm:$0xff] %vm473_vm1, %v458_v23  ;;  %v18437_v30 = vld [vmem:[#allocation2 + $0x30] sm:$0xff]  ;;  %15478 = vmatprep.mubr.msk.f32.mxu0 %vm473_vm1, %v18433_v28  ;;  %v18450_v33 = vld [vmem:[#allocation2 + $0x38] sm:$0xff] }
  0x32   : > { %548 = vst.msk [vmem:[#allocation2 + $0xf1] sm:$0xff] %vm473_vm1, %v459_v24  ;;  %549 = vst.msk [vmem:[#allocation2 + $0xf9] sm:$0xff] %vm473_vm1, %v460_v25  ;;  %15479 = vmatmul.mubr.msk.f32.gmra.mrb[2].mxu0 %vm473_vm1, %v18435_v29  ;;  %v18454_v34 = vld [vmem:[#allocation2 + $0x48] sm:$0xff]  ;;  %v18460_v35 = vld [vmem:[#allocation2 + $0x50] sm:$0xff] }
  0x33   : > { %550 = vst.msk [vmem:[#allocation2 + $0x109] sm:$0xff] %vm473_vm1, %v461_v26  ;;  %551 = vst.msk [vmem:[#allocation2 + $0x111] sm:$0xff] %vm473_vm1, %v462_v27  ;;  %15481 = vmatprep.mubr.msk.f32.mxu0 %vm473_vm1, %v18437_v30  ;;  %v18462_v36 = vld [vmem:[#allocation2 + $0x60] sm:$0xff]  ;;  %v18480_v43 = vld [vmem:[#allocation2 + $0x68] sm:$0xff] }
  0x34   : > { %552 = vst.msk [vmem:[#allocation2 + $0x121] sm:$0xff] %vm473_vm1, %v463_v31  ;;  %553 = vst.msk [vmem:[#allocation2 + $0x129] sm:$0xff] %vm473_vm1, %v464_v32  ;;  %v18482_v44 = vld [vmem:[#allocation2 + $0x78] sm:$0xff]  ;;  %v18488_v45 = vld [vmem:[#allocation2 + $0x80] sm:$0xff] }
  0x35   : > { %554 = vst.msk [vmem:[#allocation2 + $0x139] sm:$0xff] %vm473_vm1, %v465_v37  ;;  %555 = vst.msk [vmem:[#allocation2 + $0x141] sm:$0xff] %vm473_vm1, %v466_v38  ;;  %v18490_v46 = vld [vmem:[#allocation2 + $0x90] sm:$0xff]  ;;  %v18496_v47 = vld [vmem:[#allocation2 + $0x98] sm:$0xff] }
  0x36   : > { %15482 = vmatmul.mubr.msk.f32.gmra.mrb[4].mxu0 %vm473_vm1, %v18450_v33  ;;  %556 = vst.msk [vmem:[#allocation2 + $0x151] sm:$0xff] %vm473_vm1, %v467_v39  ;;  %557 = vst.msk [vmem:[#allocation2 + $0x159] sm:$0xff] %vm473_vm1, %v468_v40  ;;  %v18498_v48 = vld [vmem:[#allocation2 + $0xa8] sm:$0xff]  ;;  %v18504_v49 = vld [vmem:[#allocation2 + $0xb0] sm:$0xff] }
  0x37   : > { %15484 = vmatprep.mubr.msk.f32.mxu0 %vm473_vm1, %v18454_v34  ;;  %558 = vst.msk [vmem:[#allocation2 + $0x169] sm:$0xff] %vm473_vm1, %v469_v41  ;;  %559 = vst.msk [vmem:[#allocation2 + $0x171] sm:$0xff] %vm473_vm1, %v470_v42  ;;  %v18506_v50 = vld [vmem:[#allocation2 + $0xc0] sm:$0xff]  ;;  %v18512_v51 = vld [vmem:[#allocation2 + $0xc8] sm:$0xff] }
  0x38   : > { %v18514_v52 = vld [vmem:[#allocation2 + $0xd8] sm:$0xff]  ;;  %v18520_v53 = vld [vmem:[#allocation2 + $0xe0] sm:$0xff]  ;;  %v18597_v11 = vld [vmem:[#allocation2 + $0x49] sm:$0xff] }
  0x39   : > { %v18522_v54 = vld [vmem:[#allocation2 + $0xf0] sm:$0xff]  ;;  %v18528_v55 = vld [vmem:[#allocation2 + $0xf8] sm:$0xff]  ;;  %v18585_v7 = vld [vmem:[#allocation2 + $0x21] sm:$0xff] }
  0x3a   : > { %15485 = vmatmul.mubr.msk.f32.gmra.mrb[6].mxu0 %vm473_vm1, %v18460_v35  ;;  %v18530_v56 = vld [vmem:[#allocation2 + $0x108] sm:$0xff]  ;;  %v18536_v57 = vld [vmem:[#allocation2 + $0x110] sm:$0xff]  ;;  %v18573_v5 = vld [vmem:[#allocation2 + $0x19] sm:$0xff] }
  0x3b   : > { %15487 = vmatprep.mubr.msk.f32.mxu0 %vm473_vm1, %v18462_v36  ;;  %v18538_v58 = vld [vmem:[#allocation2 + $0x120] sm:$0xff]  ;;  %v18544_v59 = vld [vmem:[#allocation2 + $0x128] sm:$0xff]  ;;  %v18587_v8 = vld [vmem:[#allocation2 + $0x31] sm:$0xff] }
  0x3c   : > { %v18546_v60 = vld [vmem:[#allocation2 + $0x138] sm:$0xff]  ;;  %v18552_v61 = vld [vmem:[#allocation2 + $0x140] sm:$0xff]  ;;  %v18611_v13 = vld [vmem:[#allocation2 + $0x69] sm:$0xff] }
  0x3d   : > { %v18554_v62 = vld [vmem:[#allocation2 + $0x150] sm:$0xff]  ;;  %v18560_v63 = vld [vmem:[#allocation2 + $0x158] sm:$0xff]  ;;  %v18605_v12 = vld [vmem:[#allocation2 + $0x61] sm:$0xff] }
  0x3e   : > { %15488 = vmatmul.mubr.msk.f32.gmra.mrb[8].mxu0 %vm473_vm1, %v18480_v43  ;;  %v18562_v0 = vld [vmem:[#allocation2 + $0x168] sm:$0xff]  ;;  %v18568_v2 = vld [vmem:[#allocation2 + $0x170] sm:$0xff]  ;;  %v18595_v10 = vld [vmem:[#allocation2 + $0x39] sm:$0xff] }
  0x3f   : > { %15490 = vmatprep.mubr.msk.f32.mxu0 %vm473_vm1, %v18482_v44  ;;  %v18613_v14 = vld [vmem:[#allocation2 + $0x79] sm:$0xff]  ;;  %v18619_v15 = vld [vmem:[#allocation2 + $0x81] sm:$0xff]  ;;  %v18621_v16 = vld [vmem:[#allocation2 + $0x91] sm:$0xff] }
  0x40   : > { %v18627_v17 = vld [vmem:[#allocation2 + $0x99] sm:$0xff]  ;;  %v18629_v18 = vld [vmem:[#allocation2 + $0xa9] sm:$0xff]  ;;  %v18635_v19 = vld [vmem:[#allocation2 + $0xb1] sm:$0xff] }
  0x41   : > { %v18637_v20 = vld [vmem:[#allocation2 + $0xc1] sm:$0xff]  ;;  %v18643_v21 = vld [vmem:[#allocation2 + $0xc9] sm:$0xff]  ;;  %v18645_v22 = vld [vmem:[#allocation2 + $0xd9] sm:$0xff] }
  0x42   : > { %15491 = vmatmul.mubr.msk.f32.gmra.mrb[10].mxu0 %vm473_vm1, %v18488_v45  ;;  %v18651_v23 = vld [vmem:[#allocation2 + $0xe1] sm:$0xff]  ;;  %v18653_v24 = vld [vmem:[#allocation2 + $0xf1] sm:$0xff]  ;;  %v18659_v25 = vld [vmem:[#allocation2 + $0xf9] sm:$0xff] }
  0x43   : > { %15493 = vmatprep.mubr.msk.f32.mxu0 %vm473_vm1, %v18490_v46  ;;  %v18661_v26 = vld [vmem:[#allocation2 + $0x109] sm:$0xff]  ;;  %v18667_v27 = vld [vmem:[#allocation2 + $0x111] sm:$0xff]  ;;  %v18669_v31 = vld [vmem:[#allocation2 + $0x121] sm:$0xff] }
  0x44   : > { %22345 = vst [vmem:[#allocation5_spill] sm:$0xff] %v18669_v31  ;;  %v18675_v32 = vld [vmem:[#allocation2 + $0x129] sm:$0xff]  ;;  %v18677_v37 = vld [vmem:[#allocation2 + $0x139] sm:$0xff]  ;;  %v18683_v38 = vld [vmem:[#allocation2 + $0x141] sm:$0xff] }
  0x45   : > { %22346 = vst [vmem:[#allocation6_spill] sm:$0xff] %v18675_v32  ;;  %22347 = vst [vmem:[#allocation7_spill] sm:$0xff] %v18677_v37  ;;  %v18685_v39 = vld [vmem:[#allocation2 + $0x151] sm:$0xff]  ;;  %v18695_v42 = vld [vmem:[#allocation2 + $0x159] sm:$0xff] }
  0x46   : > { %15494 = vmatmul.mubr.msk.f32.gmra.mrb[12].mxu0 %vm473_vm1, %v18496_v47  ;;  %22348 = vst [vmem:[#allocation8_spill] sm:$0xff] %v18683_v38  ;;  %22349 = vst [vmem:[#allocation9_spill] sm:$0xff] %v18685_v39  ;;  %v471_v40 = vld [vmem:[%s18380_s18 + $0xf0] sm:$0xff]  ;;  %v472_v41 = vld [vmem:[%s18380_s18 + $0xf8] sm:$0xff] }
  0x47   : > { %15496 = vmatprep.mubr.msk.f32.mxu0 %vm473_vm1, %v18498_v48  ;;  %560 = vst.msk [vmem:[#allocation2 + $0x181] sm:$0xff] %vm473_vm1, %v471_v40  ;;  %561 = vst.msk [vmem:[#allocation2 + $0x189] sm:$0xff] %vm473_vm1, %v472_v41  ;;  %v1349_v40 = vld [vmem:[#allocation2 + $0x2] sm:$0xff]  ;;  %v1350_v41 = vld [vmem:[#allocation2 + $0xa] sm:$0xff] }
  0x48   : > { %22350 = vst [vmem:[#allocation10_spill] sm:$0xff] %v18695_v42  ;;  %v18708_v1 = vld [vmem:[#allocation2 + $0x1a] sm:$0xff] }
  0x49   : > { %22353 = vst [vmem:[#allocation13_spill] sm:$0xff] %v18708_v1 }
  0x4a   : > { %15497 = vmatmul.mubr.msk.f32.gmra.mrb[14].mxu0 %vm473_vm1, %v18504_v49 }
  0x4b   : > { %15499 = vmatprep.mubr.msk.f32.mxu0 %vm473_vm1, %v18506_v50 }
  0x4e   : > { %15500 = vmatmul.mubr.msk.f32.gmra.mrb[16].mxu0 %vm473_vm1, %v18512_v51 }
  0x4f   : > { %15502 = vmatprep.mubr.msk.f32.mxu0 %vm473_vm1, %v18514_v52 }
  0x52   : > { %15503 = vmatmul.mubr.msk.f32.gmra.mrb[18].mxu0 %vm473_vm1, %v18520_v53 }
  0x53   : > { %15505 = vmatprep.mubr.msk.f32.mxu0 %vm473_vm1, %v18522_v54 }
  0x56   : > { %15506 = vmatmul.mubr.msk.f32.gmra.mrb[20].mxu0 %vm473_vm1, %v18528_v55 }
  0x57   : > { %15508 = vmatprep.mubr.msk.f32.mxu0 %vm473_vm1, %v18530_v56 }
  0x5a   : > { %15509 = vmatmul.mubr.msk.f32.gmra.mrb[22].mxu0 %vm473_vm1, %v18536_v57 }
  0x5b   : > { %15511 = vmatprep.mubr.msk.f32.mxu0 %vm473_vm1, %v18538_v58 }
  0x5e   : > { %15512 = vmatmul.mubr.msk.f32.gmra.mrb[24].mxu0 %vm473_vm1, %v18544_v59 }
  0x5f   : > { %15514 = vmatprep.mubr.msk.f32.mxu0 %vm473_vm1, %v18546_v60 }
  0x62   : > { %15515 = vmatmul.mubr.msk.f32.gmra.mrb[26].mxu0 %vm473_vm1, %v18552_v61 }
  0x63   : > { %15517 = vmatprep.mubr.msk.f32.mxu0 %vm473_vm1, %v18554_v62 }
  0x66   : > { %15518 = vmatmul.mubr.msk.f32.gmra.mrb[28].mxu0 %vm473_vm1, %v18560_v63 }
  0x67   : > { %15520 = vmatprep.mubr.msk.f32.mxu0 %vm473_vm1, %v18562_v0 }
  0x6a   : > { %15521 = vmatmul.mubr.msk.f32.gmra.mrb[30].mxu0 %vm473_vm1, %v18568_v2 }
  0x6b   : > { %15525 = vmatprep.mubr.msk.f32.mxu0 %vm473_vm1, %v959_v3  ;;  %v18697_v3 = vld [vmem:[#allocation2 + $0x169] sm:$0xff] }
  0x6c   : > { %22351 = vst [vmem:[#allocation11_spill] sm:$0xff] %v18697_v3 }
  0x6e   : > { %15526 = vmatmul.mubr.msk.f32.vlgmr.msra.gmra.mrb[0].mxu0 %vm473_vm1, %v960_v4  ;;  %v18703_v4 = vld [vmem:[#allocation2 + $0x171] sm:$0xff] }
  0x6f   : > { %15574 = vmatpush3.msk.msra.mxu0 %vm692_vm0, %v18394_v9  ;;  %15528 = vmatprep.mubr.msk.f32.mxu0 %vm473_vm1, %v18573_v5  ;;  %v18603_v9 = vld [vmem:[#allocation2 + $0x51] sm:$0xff]  ;;  %22352 = vst [vmem:[#allocation12_spill] sm:$0xff] %v18703_v4 }
  0x70   : > { %15623 = vmatprep.subr.msk.mxu0 %vm692_vm0, %v18578_v6 }
  0x72   : > { %15529 = vmatmul.mubr.msk.f32.gmra.mrb[2].mxu0 %vm473_vm1, %v18585_v7 }
  0x73   : > { %15531 = vmatprep.mubr.msk.f32.mxu0 %vm473_vm1, %v18587_v8 }
  0x76   : > { %15532 = vmatmul.mubr.msk.f32.gmra.mrb[4].mxu0 %vm473_vm1, %v18595_v10 }
  0x77   : > { %15534 = vmatprep.mubr.msk.f32.mxu0 %vm473_vm1, %v18597_v11 }
  0x7a   : > { %15535 = vmatmul.mubr.msk.f32.gmra.mrb[6].mxu0 %vm473_vm1, %v18603_v9 }
  0x7b   : > { %15537 = vmatprep.mubr.msk.f32.mxu0 %vm473_vm1, %v18605_v12 }
  0x7e   : > { %15538 = vmatmul.mubr.msk.f32.gmra.mrb[8].mxu0 %vm473_vm1, %v18611_v13 }
  0x7f   : > { %15540 = vmatprep.mubr.msk.f32.mxu0 %vm473_vm1, %v18613_v14 }
  0x82   : > { %15541 = vmatmul.mubr.msk.f32.gmra.mrb[10].mxu0 %vm473_vm1, %v18619_v15 }
  0x83   : > { %15543 = vmatprep.mubr.msk.f32.mxu0 %vm473_vm1, %v18621_v16 }
  0x86   : > { %15544 = vmatmul.mubr.msk.f32.gmra.mrb[12].mxu0 %vm473_vm1, %v18627_v17 }
  0x87   : > { %15546 = vmatprep.mubr.msk.f32.mxu0 %vm473_vm1, %v18629_v18 }
  0x8a   : > { %15547 = vmatmul.mubr.msk.f32.gmra.mrb[14].mxu0 %vm473_vm1, %v18635_v19 }
  0x8b   : > { %15549 = vmatprep.mubr.msk.f32.mxu0 %vm473_vm1, %v18637_v20 }
  0x8e   : > { %15550 = vmatmul.mubr.msk.f32.gmra.mrb[16].mxu0 %vm473_vm1, %v18643_v21 }
  0x8f   : > { %15552 = vmatprep.mubr.msk.f32.mxu0 %vm473_vm1, %v18645_v22 }
  0x92   : > { %15553 = vmatmul.mubr.msk.f32.gmra.mrb[18].mxu0 %vm473_vm1, %v18651_v23 }
  0x93   : > { %15555 = vmatprep.mubr.msk.f32.mxu0 %vm473_vm1, %v18653_v24 }
  0x96   : > { %15556 = vmatmul.mubr.msk.f32.gmra.mrb[20].mxu0 %vm473_vm1, %v18659_v25 }
  0x97   : > { %15558 = vmatprep.mubr.msk.f32.mxu0 %vm473_vm1, %v18661_v26 }
  0x9a   : > { %15559 = vmatmul.mubr.msk.f32.gmra.mrb[22].mxu0 %vm473_vm1, %v18667_v27 }
  0x9b   : > { %15561 = vmatprep.mubr.msk.f32.mxu0 %vm473_vm1, %v18669_v31 }
  0x9e   : > { %15562 = vmatmul.mubr.msk.f32.gmra.mrb[24].mxu0 %vm473_vm1, %v18675_v32 }
  0x9f   : > { %15564 = vmatprep.mubr.msk.f32.mxu0 %vm473_vm1, %v18677_v37 }
  0xa2   : > { %15565 = vmatmul.mubr.msk.f32.gmra.mrb[26].mxu0 %vm473_vm1, %v18683_v38 }
  0xa3   : > { %15567 = vmatprep.mubr.msk.f32.mxu0 %vm473_vm1, %v18685_v39  ;;  %v18713_v39 = vld [vmem:[%s22087_s1 + $0x10] sm:$0xf] }
  0xa6   : > { %15568 = vmatmul.mubr.msk.f32.gmra.mrb[28].mxu0 %vm473_vm1, %v18695_v42 }
  0xa7   : > { %15570 = vmatprep.mubr.msk.f32.mxu0 %vm473_vm1, %v18697_v3  ;;  %v18720_v3 = vld [vmem:[#allocation2 + $0x22] sm:$0xff] }
  0xa8   : > { %22354 = vst [vmem:[#allocation14_spill] sm:$0xff] %v18720_v3 }
  0xaa   : > { %15571 = vmatmul.mubr.msk.f32.gmra.mrb[30].mxu0 %vm473_vm1, %v18703_v4  ;;  %v18722_v4 = vld [vmem:[#allocation2 + $0x32] sm:$0xff] }
  0xab   : > { %15575 = vmatprep.mubr.msk.f32.mxu0 %vm473_vm1, %v1349_v40  ;;  %22355 = vst [vmem:[#allocation15_spill] sm:$0xff] %v18722_v4  ;;  %v18730_v40 = vld [vmem:[#allocation2 + $0x3a] sm:$0xff] }
  0xac   : > { %22356 = vst [vmem:[#allocation16_spill] sm:$0xff] %v18730_v40 }
  0xae   : > { %15576 = vmatmul.mubr.msk.f32.vlgmr.msra.gmra.mrb[0].mxu0 %vm473_vm1, %v1350_v41  ;;  %v18732_v41 = vld [vmem:[#allocation2 + $0x4a] sm:$0xff] }
  0xaf   : > { %15624 = vmatpush3.msk.msra.mxu0 %vm692_vm0, %v18578_v6  ;;  %15578 = vmatprep.mubr.msk.f32.mxu0 %vm473_vm1, %v18708_v1  ;;  %22357 = vst [vmem:[#allocation17_spill] sm:$0xff] %v18732_v41  ;;  %v18738_v6 = vld [vmem:[#allocation2 + $0x52] sm:$0xff]  ;;  %v18740_v1 = vld [vmem:[#allocation2 + $0x62] sm:$0xff] }
  0xb0   : > { %15673 = vmatprep.subr.msk.mxu0 %vm692_vm0, %v18713_v39  ;;  %22358 = vst [vmem:[#allocation18_spill] sm:$0xff] %v18738_v6  ;;  %22359 = vst [vmem:[#allocation19_spill] sm:$0xff] %v18740_v1 }
  0xb2   : > { %15579 = vmatmul.mubr.msk.f32.gmra.mrb[2].mxu0 %vm473_vm1, %v18720_v3  ;;  %v18748_v3 = vld [vmem:[#allocation2 + $0x7a] sm:$0xff] }
  0xb3   : > { %15581 = vmatprep.mubr.msk.f32.mxu0 %vm473_vm1, %v18722_v4  ;;  %v18746_v4 = vld [vmem:[#allocation2 + $0x6a] sm:$0xff]  ;;  %22361 = vst [vmem:[#allocation21_spill] sm:$0xff] %v18748_v3 }
  0xb4   : > { %22360 = vst [vmem:[#allocation20_spill] sm:$0xff] %v18746_v4 }
  0xb6   : > { %15582 = vmatmul.mubr.msk.f32.gmra.mrb[4].mxu0 %vm473_vm1, %v18730_v40  ;;  %v18756_v40 = vld [vmem:[#allocation2 + $0x92] sm:$0xff] }
  0xb7   : > { %15584 = vmatprep.mubr.msk.f32.mxu0 %vm473_vm1, %v18732_v41  ;;  %v18754_v41 = vld [vmem:[#allocation2 + $0x82] sm:$0xff]  ;;  %22363 = vst [vmem:[#allocation23_spill] sm:$0xff] %v18756_v40 }
  0xb8   : > { %22362 = vst [vmem:[#allocation22_spill] sm:$0xff] %v18754_v41 }
  0xba   : > { %15585 = vmatmul.mubr.msk.f32.gmra.mrb[6].mxu0 %vm473_vm1, %v18738_v6  ;;  %v18764_v6 = vld [vmem:[#allocation2 + $0xaa] sm:$0xff] }
  0xbb   : > { %15587 = vmatprep.mubr.msk.f32.mxu0 %vm473_vm1, %v18740_v1  ;;  %v18762_v1 = vld [vmem:[#allocation2 + $0x9a] sm:$0xff]  ;;  %22365 = vst [vmem:[#allocation25_spill] sm:$0xff] %v18764_v6 }
  0xbc   : > { %22364 = vst [vmem:[#allocation24_spill] sm:$0xff] %v18762_v1 }
  0xbe   : > { %15588 = vmatmul.mubr.msk.f32.gmra.mrb[8].mxu0 %vm473_vm1, %v18746_v4  ;;  %v18772_v4 = vld [vmem:[#allocation2 + $0xc2] sm:$0xff] }
  0xbf   : > { %15590 = vmatprep.mubr.msk.f32.mxu0 %vm473_vm1, %v18748_v3  ;;  %v18770_v3 = vld [vmem:[#allocation2 + $0xb2] sm:$0xff]  ;;  %22367 = vst [vmem:[#allocation27_spill] sm:$0xff] %v18772_v4 }
  0xc0   : > { %22366 = vst [vmem:[#allocation26_spill] sm:$0xff] %v18770_v3 }
  0xc2   : > { %15591 = vmatmul.mubr.msk.f32.gmra.mrb[10].mxu0 %vm473_vm1, %v18754_v41  ;;  %v18780_v41 = vld [vmem:[#allocation2 + $0xda] sm:$0xff] }
  0xc3   : > { %15593 = vmatprep.mubr.msk.f32.mxu0 %vm473_vm1, %v18756_v40  ;;  %v18778_v40 = vld [vmem:[#allocation2 + $0xca] sm:$0xff]  ;;  %22369 = vst [vmem:[#allocation29_spill] sm:$0xff] %v18780_v41 }
  0xc4   : > { %22368 = vst [vmem:[#allocation28_spill] sm:$0xff] %v18778_v40 }
  0xc6   : > { %15594 = vmatmul.mubr.msk.f32.gmra.mrb[12].mxu0 %vm473_vm1, %v18762_v1  ;;  %v18788_v1 = vld [vmem:[#allocation2 + $0xf2] sm:$0xff] }
  0xc7   : > { %15596 = vmatprep.mubr.msk.f32.mxu0 %vm473_vm1, %v18764_v6  ;;  %v18786_v6 = vld [vmem:[#allocation2 + $0xe2] sm:$0xff]  ;;  %22371 = vst [vmem:[#allocation31_spill] sm:$0xff] %v18788_v1 }
  0xc8   : > { %22370 = vst [vmem:[#allocation30_spill] sm:$0xff] %v18786_v6 }
  0xca   : > { %15597 = vmatmul.mubr.msk.f32.gmra.mrb[14].mxu0 %vm473_vm1, %v18770_v3  ;;  %v18796_v3 = vld [vmem:[#allocation2 + $0x10a] sm:$0xff] }
  0xcb   : > { %15599 = vmatprep.mubr.msk.f32.mxu0 %vm473_vm1, %v18772_v4  ;;  %v18794_v4 = vld [vmem:[#allocation2 + $0xfa] sm:$0xff]  ;;  %22373 = vst [vmem:[#allocation33_spill] sm:$0xff] %v18796_v3 }
  0xcc   : > { %22372 = vst [vmem:[#allocation32_spill] sm:$0xff] %v18794_v4 }
  0xce   : > { %15600 = vmatmul.mubr.msk.f32.gmra.mrb[16].mxu0 %vm473_vm1, %v18778_v40  ;;  %v18804_v40 = vld [vmem:[#allocation2 + $0x122] sm:$0xff] }
  0xcf   : > { %15602 = vmatprep.mubr.msk.f32.mxu0 %vm473_vm1, %v18780_v41  ;;  %v18802_v41 = vld [vmem:[#allocation2 + $0x112] sm:$0xff]  ;;  %22375 = vst [vmem:[#allocation35_spill] sm:$0xff] %v18804_v40 }
  0xd0   : > { %22374 = vst [vmem:[#allocation34_spill] sm:$0xff] %v18802_v41 }
  0xd2   : > { %15603 = vmatmul.mubr.msk.f32.gmra.mrb[18].mxu0 %vm473_vm1, %v18786_v6  ;;  %v18812_v6 = vld [vmem:[#allocation2 + $0x13a] sm:$0xff] }
  0xd3   : > { %15605 = vmatprep.mubr.msk.f32.mxu0 %vm473_vm1, %v18788_v1  ;;  %v18810_v1 = vld [vmem:[#allocation2 + $0x12a] sm:$0xff]  ;;  %22376 = vst [vmem:[#allocation36_spill] sm:$0xff] %v18812_v6 }
  0xd6   : > { %15606 = vmatmul.mubr.msk.f32.gmra.mrb[20].mxu0 %vm473_vm1, %v18794_v4  ;;  %v18820_v4 = vld [vmem:[#allocation2 + $0x152] sm:$0xff] }
  0xd7   : > { %15608 = vmatprep.mubr.msk.f32.mxu0 %vm473_vm1, %v18796_v3  ;;  %v18818_v3 = vld [vmem:[#allocation2 + $0x142] sm:$0xff]  ;;  %22377 = vst [vmem:[#allocation37_spill] sm:$0xff] %v18820_v4 }
  0xda   : > { %15609 = vmatmul.mubr.msk.f32.gmra.mrb[22].mxu0 %vm473_vm1, %v18802_v41  ;;  %v18828_v41 = vld [vmem:[#allocation2 + $0x16a] sm:$0xff] }
  0xdb   : > { %15611 = vmatprep.mubr.msk.f32.mxu0 %vm473_vm1, %v18804_v40  ;;  %v18826_v40 = vld [vmem:[#allocation2 + $0x15a] sm:$0xff]  ;;  %22378 = vst [vmem:[#allocation38_spill] sm:$0xff] %v18828_v41 }
  0xde   : > { %15612 = vmatmul.mubr.msk.f32.gmra.mrb[24].mxu0 %vm473_vm1, %v18810_v1 }
  0xdf   : > { %15614 = vmatprep.mubr.msk.f32.mxu0 %vm473_vm1, %v18812_v6  ;;  %v18834_v6 = vld [vmem:[#allocation2 + $0x172] sm:$0xff] }
  0xe2   : > { %15615 = vmatmul.mubr.msk.f32.gmra.mrb[26].mxu0 %vm473_vm1, %v18818_v3 }
  0xe3   : > { %15617 = vmatprep.mubr.msk.f32.mxu0 %vm473_vm1, %v18820_v4  ;;  %v13455_v4 = vld [vmem:[%s22087_s1 + $0x14] sm:$0xf] }
  0xe6   : > { %15618 = vmatmul.mubr.msk.f32.gmra.mrb[28].mxu0 %vm473_vm1, %v18826_v40 }
  0xe7   : > { %15620 = vmatprep.mubr.msk.f32.mxu0 %vm473_vm1, %v18828_v41 }
  0xea   : > { %15621 = vmatmul.mubr.msk.f32.gmra.mrb[30].mxu0 %vm473_vm1, %v18834_v6 }
  0xeb   : > { %15625 = vmatprep.mubr.msk.f32.mxu0 %vm473_vm1, %v18433_v28  ;;  %v18902_v28 = vld [vmem:[#allocation2 + $0x180] sm:$0xff] }
  0xee   : > { %15626 = vmatmul.mubr.msk.f32.vlgmr.msra.gmra.mrb[0].mxu0 %vm473_vm1, %v18435_v29  ;;  %v18908_v29 = vld [vmem:[#allocation2 + $0x188] sm:$0xff] }
  0xef   : > { %15674 = vmatpush3.msk.msra.mxu0 %vm692_vm0, %v18713_v39  ;;  %15628 = vmatprep.mubr.msk.f32.mxu0 %vm473_vm1, %v18437_v30  ;;  %v13489_v39 = vld [vmem:[%s22087_s1 + $0x18] sm:$0xf] }
  0xf0   : > { %15723 = vmatprep.subr.msk.mxu0 %vm692_vm0, %v13455_v4 }
  0xf2   : > { %15629 = vmatmul.mubr.msk.f32.gmra.mrb[2].mxu0 %vm473_vm1, %v18450_v33 }
  0xf3   : > { %15631 = vmatprep.mubr.msk.f32.mxu0 %vm473_vm1, %v18454_v34 }
  0xf6   : > { %15632 = vmatmul.mubr.msk.f32.gmra.mrb[4].mxu0 %vm473_vm1, %v18460_v35 }
  0xf7   : > { %15634 = vmatprep.mubr.msk.f32.mxu0 %vm473_vm1, %v18462_v36 }
  0xfa   : > { %15635 = vmatmul.mubr.msk.f32.gmra.mrb[6].mxu0 %vm473_vm1, %v18480_v43 }
  0xfb   : > { %15637 = vmatprep.mubr.msk.f32.mxu0 %vm473_vm1, %v18482_v44 }
  0xfe   : > { %15638 = vmatmul.mubr.msk.f32.gmra.mrb[8].mxu0 %vm473_vm1, %v18488_v45 }
  0xff   : > { %15640 = vmatprep.mubr.msk.f32.mxu0 %vm473_vm1, %v18490_v46 }
 0x102   : > { %15641 = vmatmul.mubr.msk.f32.gmra.mrb[10].mxu0 %vm473_vm1, %v18496_v47 }
 0x103   : > { %15643 = vmatprep.mubr.msk.f32.mxu0 %vm473_vm1, %v18498_v48 }
 0x106   : > { %15644 = vmatmul.mubr.msk.f32.gmra.mrb[12].mxu0 %vm473_vm1, %v18504_v49 }
 0x107   : > { %15646 = vmatprep.mubr.msk.f32.mxu0 %vm473_vm1, %v18506_v50 }
 0x10a   : > { %15647 = vmatmul.mubr.msk.f32.gmra.mrb[14].mxu0 %vm473_vm1, %v18512_v51 }
 0x10b   : > { %15649 = vmatprep.mubr.msk.f32.mxu0 %vm473_vm1, %v18514_v52 }
 0x10e   : > { %15650 = vmatmul.mubr.msk.f32.gmra.mrb[16].mxu0 %vm473_vm1, %v18520_v53 }
 0x10f   : > { %15652 = vmatprep.mubr.msk.f32.mxu0 %vm473_vm1, %v18522_v54 }
 0x112   : > { %15653 = vmatmul.mubr.msk.f32.gmra.mrb[18].mxu0 %vm473_vm1, %v18528_v55 }
 0x113   : > { %15655 = vmatprep.mubr.msk.f32.mxu0 %vm473_vm1, %v18530_v56 }
 0x116   : > { %15656 = vmatmul.mubr.msk.f32.gmra.mrb[20].mxu0 %vm473_vm1, %v18536_v57 }
 0x117   : > { %15658 = vmatprep.mubr.msk.f32.mxu0 %vm473_vm1, %v18538_v58 }
 0x11a   : > { %15659 = vmatmul.mubr.msk.f32.gmra.mrb[22].mxu0 %vm473_vm1, %v18544_v59 }
 0x11b   : > { %15661 = vmatprep.mubr.msk.f32.mxu0 %vm473_vm1, %v18546_v60 }
 0x11e   : > { %15662 = vmatmul.mubr.msk.f32.gmra.mrb[24].mxu0 %vm473_vm1, %v18552_v61 }
 0x11f   : > { %15664 = vmatprep.mubr.msk.f32.mxu0 %vm473_vm1, %v18554_v62 }
 0x122   : > { %15665 = vmatmul.mubr.msk.f32.gmra.mrb[26].mxu0 %vm473_vm1, %v18560_v63 }
 0x123   : > { %15667 = vmatprep.mubr.msk.f32.mxu0 %vm473_vm1, %v18562_v0 }
 0x126   : > { %15668 = vmatmul.mubr.msk.f32.gmra.mrb[28].mxu0 %vm473_vm1, %v18568_v2 }
 0x127   : > { %15670 = vmatprep.mubr.msk.f32.mxu0 %vm473_vm1, %v18902_v28 }
 0x12a   : > { %15671 = vmatmul.mubr.msk.f32.gmra.mrb[30].mxu0 %vm473_vm1, %v18908_v29 }
 0x12b   : > { %15675 = vmatprep.mubr.msk.f32.mxu0 %vm473_vm1, %v18573_v5  ;;  %v22379_v5 = vld [vmem:[#allocation9_spill] sm:$0xff] }
 0x12e   : > { %15676 = vmatmul.mubr.msk.f32.vlgmr.msra.gmra.mrb[0].mxu0 %vm473_vm1, %v18585_v7  ;;  %v22380_v7 = vld [vmem:[#allocation11_spill] sm:$0xff] }
 0x12f   : > { %15724 = vmatpush3.msk.msra.mxu0 %vm692_vm0, %v13455_v4  ;;  %15678 = vmatprep.mubr.msk.f32.mxu0 %vm473_vm1, %v18587_v8  ;;  %v18975_v4 = vld [vmem:[#allocation2 + $0x181] sm:$0xff] }
 0x130   : > { %15773 = vmatprep.subr.msk.mxu0 %vm692_vm0, %v13489_v39  ;;  %22381 = vst [vmem:[#allocation39_spill] sm:$0xff] %v18975_v4 }
 0x132   : > { %15679 = vmatmul.mubr.msk.f32.gmra.mrb[2].mxu0 %vm473_vm1, %v18595_v10 }
 0x133   : > { %15681 = vmatprep.mubr.msk.f32.mxu0 %vm473_vm1, %v18597_v11 }
 0x136   : > { %15682 = vmatmul.mubr.msk.f32.gmra.mrb[4].mxu0 %vm473_vm1, %v18603_v9 }
 0x137   : > { %15684 = vmatprep.mubr.msk.f32.mxu0 %vm473_vm1, %v18605_v12 }
 0x13a   : > { %15685 = vmatmul.mubr.msk.f32.gmra.mrb[6].mxu0 %vm473_vm1, %v18611_v13 }
 0x13b   : > { %15687 = vmatprep.mubr.msk.f32.mxu0 %vm473_vm1, %v18613_v14 }
 0x13e   : > { %15688 = vmatmul.mubr.msk.f32.gmra.mrb[8].mxu0 %vm473_vm1, %v18619_v15 }
 0x13f   : > { %15690 = vmatprep.mubr.msk.f32.mxu0 %vm473_vm1, %v18621_v16 }
 0x142   : > { %15691 = vmatmul.mubr.msk.f32.gmra.mrb[10].mxu0 %vm473_vm1, %v18627_v17 }
 0x143   : > { %15693 = vmatprep.mubr.msk.f32.mxu0 %vm473_vm1, %v18629_v18 }
 0x146   : > { %15694 = vmatmul.mubr.msk.f32.gmra.mrb[12].mxu0 %vm473_vm1, %v18635_v19 }
 0x147   : > { %15696 = vmatprep.mubr.msk.f32.mxu0 %vm473_vm1, %v18637_v20 }
 0x14a   : > { %15697 = vmatmul.mubr.msk.f32.gmra.mrb[14].mxu0 %vm473_vm1, %v18643_v21 }
 0x14b   : > { %15699 = vmatprep.mubr.msk.f32.mxu0 %vm473_vm1, %v18645_v22 }
 0x14e   : > { %15700 = vmatmul.mubr.msk.f32.gmra.mrb[16].mxu0 %vm473_vm1, %v18651_v23 }
 0x14f   : > { %15702 = vmatprep.mubr.msk.f32.mxu0 %vm473_vm1, %v18653_v24 }
 0x152   : > { %15703 = vmatmul.mubr.msk.f32.gmra.mrb[18].mxu0 %vm473_vm1, %v18659_v25 }
 0x153   : > { %15705 = vmatprep.mubr.msk.f32.mxu0 %vm473_vm1, %v18661_v26 }
 0x156   : > { %15706 = vmatmul.mubr.msk.f32.gmra.mrb[20].mxu0 %vm473_vm1, %v18667_v27 }
 0x157   : > { %15708 = vmatprep.mubr.msk.f32.mxu0 %vm473_vm1, %v18669_v31  ;;  %v22382_v31 = vld [vmem:[#allocation12_spill] sm:$0xff] }
 0x15a   : > { %15709 = vmatmul.mubr.msk.f32.gmra.mrb[22].mxu0 %vm473_vm1, %v18675_v32  ;;  %v22394_v32 = vld [vmem:[#allocation23_spill] sm:$0xff] }
 0x15b   : > { %15711 = vmatprep.mubr.msk.f32.mxu0 %vm473_vm1, %v18677_v37  ;;  %v18981_v37 = vld [vmem:[#allocation2 + $0x189] sm:$0xff] }
 0x15c   : > { %22383 = vst [vmem:[#allocation40_spill] sm:$0xff] %v18981_v37 }
 0x15e   : > { %15712 = vmatmul.mubr.msk.f32.gmra.mrb[24].mxu0 %vm473_vm1, %v18683_v38  ;;  %v22390_v38 = vld [vmem:[#allocation19_spill] sm:$0xff] }
 0x15f   : > { %15714 = vmatprep.mubr.msk.f32.mxu0 %vm473_vm1, %v22379_v5  ;;  %v22384_v5 = vld [vmem:[#allocation13_spill] sm:$0xff] }
 0x162   : > { %15715 = vmatmul.mubr.msk.f32.gmra.mrb[26].mxu0 %vm473_vm1, %v18695_v42  ;;  %v22385_v42 = vld [vmem:[#allocation14_spill] sm:$0xff] }
 0x163   : > { %15717 = vmatprep.mubr.msk.f32.mxu0 %vm473_vm1, %v22380_v7  ;;  %v13523_v7 = vld [vmem:[%s22087_s1 + $0x1c] sm:$0xf] }
 0x166   : > { %15718 = vmatmul.mubr.msk.f32.gmra.mrb[28].mxu0 %vm473_vm1, %v22382_v31  ;;  %v22386_v31 = vld [vmem:[#allocation15_spill] sm:$0xff] }
 0x167   : > { %15720 = vmatprep.mubr.msk.f32.mxu0 %vm473_vm1, %v18975_v4  ;;  %v22387_v4 = vld [vmem:[#allocation16_spill] sm:$0xff] }
 0x16a   : > { %15721 = vmatmul.mubr.msk.f32.gmra.mrb[30].mxu0 %vm473_vm1, %v18981_v37  ;;  %v22388_v37 = vld [vmem:[#allocation17_spill] sm:$0xff] }
 0x16b   : > { %15725 = vmatprep.mubr.msk.f32.mxu0 %vm473_vm1, %v22384_v5  ;;  %v22389_v5 = vld [vmem:[#allocation18_spill] sm:$0xff] }
 0x16e   : > { %15726 = vmatmul.mubr.msk.f32.vlgmr.msra.gmra.mrb[0].mxu0 %vm473_vm1, %v22385_v42  ;;  %v22391_v42 = vld [vmem:[#allocation20_spill] sm:$0xff] }
 0x16f   : > { %15774 = vmatpush3.msk.msra.mxu0 %vm692_vm0, %v13489_v39  ;;  %15728 = vmatprep.mubr.msk.f32.mxu0 %vm473_vm1, %v22386_v31  ;;  %v22392_v39 = vld [vmem:[#allocation21_spill] sm:$0xff]  ;;  %v22393_v31 = vld [vmem:[#allocation22_spill] sm:$0xff] }
 0x170   : > { %15823 = vmatprep.subr.msk.mxu0 %vm692_vm0, %v13523_v7 }
 0x172   : > { %15729 = vmatmul.mubr.msk.f32.gmra.mrb[2].mxu0 %vm473_vm1, %v22387_v4  ;;  %v22395_v4 = vld [vmem:[#allocation24_spill] sm:$0xff] }
 0x173   : > { %15731 = vmatprep.mubr.msk.f32.mxu0 %vm473_vm1, %v22388_v37  ;;  %v22396_v37 = vld [vmem:[#allocation25_spill] sm:$0xff] }
 0x176   : > { %15732 = vmatmul.mubr.msk.f32.gmra.mrb[4].mxu0 %vm473_vm1, %v22389_v5  ;;  %v22397_v5 = vld [vmem:[#allocation26_spill] sm:$0xff] }
 0x177   : > { %15734 = vmatprep.mubr.msk.f32.mxu0 %vm473_vm1, %v22390_v38  ;;  %v22398_v38 = vld [vmem:[#allocation27_spill] sm:$0xff] }
 0x17a   : > { %15735 = vmatmul.mubr.msk.f32.gmra.mrb[6].mxu0 %vm473_vm1, %v22391_v42  ;;  %v22399_v42 = vld [vmem:[#allocation28_spill] sm:$0xff] }
 0x17b   : > { %15737 = vmatprep.mubr.msk.f32.mxu0 %vm473_vm1, %v22392_v39  ;;  %v22400_v39 = vld [vmem:[#allocation29_spill] sm:$0xff] }
 0x17e   : > { %15738 = vmatmul.mubr.msk.f32.gmra.mrb[8].mxu0 %vm473_vm1, %v22393_v31  ;;  %v22401_v31 = vld [vmem:[#allocation30_spill] sm:$0xff] }
 0x17f   : > { %15740 = vmatprep.mubr.msk.f32.mxu0 %vm473_vm1, %v22394_v32  ;;  %v22402_v32 = vld [vmem:[#allocation31_spill] sm:$0xff] }
 0x182   : > { %15741 = vmatmul.mubr.msk.f32.gmra.mrb[10].mxu0 %vm473_vm1, %v22395_v4  ;;  %v22403_v4 = vld [vmem:[#allocation32_spill] sm:$0xff] }
 0x183   : > { %15743 = vmatprep.mubr.msk.f32.mxu0 %vm473_vm1, %v22396_v37  ;;  %v22404_v37 = vld [vmem:[#allocation33_spill] sm:$0xff] }
 0x186   : > { %15744 = vmatmul.mubr.msk.f32.gmra.mrb[12].mxu0 %vm473_vm1, %v22397_v5  ;;  %v22405_v5 = vld [vmem:[#allocation34_spill] sm:$0xff] }
 0x187   : > { %15746 = vmatprep.mubr.msk.f32.mxu0 %vm473_vm1, %v22398_v38  ;;  %v22406_v38 = vld [vmem:[#allocation35_spill] sm:$0xff] }
 0x18a   : > { %15747 = vmatmul.mubr.msk.f32.gmra.mrb[14].mxu0 %vm473_vm1, %v22399_v42 }
 0x18b   : > { %15749 = vmatprep.mubr.msk.f32.mxu0 %vm473_vm1, %v22400_v39  ;;  %v22407_v39 = vld [vmem:[#allocation36_spill] sm:$0xff] }
 0x18e   : > { %15750 = vmatmul.mubr.msk.f32.gmra.mrb[16].mxu0 %vm473_vm1, %v22401_v31 }
 0x18f   : > { %15752 = vmatprep.mubr.msk.f32.mxu0 %vm473_vm1, %v22402_v32  ;;  %v22408_v32 = vld [vmem:[#allocation37_spill] sm:$0xff] }
 0x192   : > { %15753 = vmatmul.mubr.msk.f32.gmra.mrb[18].mxu0 %vm473_vm1, %v22403_v4 }
 0x193   : > { %15755 = vmatprep.mubr.msk.f32.mxu0 %vm473_vm1, %v22404_v37 }
 0x196   : > { %15756 = vmatmul.mubr.msk.f32.gmra.mrb[20].mxu0 %vm473_vm1, %v22405_v5  ;;  %v19048_v5 = vld [vmem:[#allocation2 + $0x182] sm:$0xff] }
 0x197   : > { %15758 = vmatprep.mubr.msk.f32.mxu0 %vm473_vm1, %v22406_v38 }
 0x19a   : > { %15759 = vmatmul.mubr.msk.f32.gmra.mrb[22].mxu0 %vm473_vm1, %v18810_v1 }
 0x19b   : > { %15761 = vmatprep.mubr.msk.f32.mxu0 %vm473_vm1, %v22407_v39  ;;  %v19054_v39 = vld [vmem:[#allocation2 + $0x18a] sm:$0xff] }
 0x19e   : > { %15762 = vmatmul.mubr.msk.f32.gmra.mrb[24].mxu0 %vm473_vm1, %v18818_v3 }
 0x19f   : > { %15764 = vmatprep.mubr.msk.f32.mxu0 %vm473_vm1, %v22408_v32 }
 0x1a2   : > { %15765 = vmatmul.mubr.msk.f32.gmra.mrb[26].mxu0 %vm473_vm1, %v18826_v40 }
 0x1a3   : > { %15767 = vmatprep.mubr.msk.f32.mxu0 %vm473_vm1, %v18828_v41  ;;  %v13557_v41 = vld [vmem:[%s22087_s1 + $0x20] sm:$0xf] }
 0x1a6   : > { %15768 = vmatmul.mubr.msk.f32.gmra.mrb[28].mxu0 %vm473_vm1, %v18834_v6 }
 0x1a7   : > { %15770 = vmatprep.mubr.msk.f32.mxu0 %vm473_vm1, %v19048_v5 }
 0x1aa   : > { %15771 = vmatmul.mubr.msk.f32.gmra.mrb[30].mxu0 %vm473_vm1, %v19054_v39 }
 0x1ab   : > { %15775 = vmatprep.mubr.msk.f32.mxu0 %vm473_vm1, %v18437_v30  ;;  %v2940_v30 = vld [vmem:[#allocation2 + $0x198] sm:$0xff] }
 0x1ae   : > { %15776 = vmatmul.mubr.msk.f32.vlgmr.msra.gmra.mrb[0].mxu0 %vm473_vm1, %v18450_v33  ;;  %v2941_v33 = vld [vmem:[#allocation2 + $0x1a0] sm:$0xff] }
 0x1af   : > { %15824 = vmatpush3.msk.msra.mxu0 %vm692_vm0, %v13523_v7  ;;  %15778 = vmatprep.mubr.msk.f32.mxu0 %vm473_vm1, %v18454_v34  ;;  %v4113_v34 = vld [vmem:[%s22089_s3] sm:$0xff] }
 0x1b0   : > { %15873 = vmatprep.subr.msk.mxu0 %vm692_vm0, %v13557_v41 }
 0x1b2   : > { %15779 = vmatmul.mubr.msk.f32.gmra.mrb[2].mxu0 %vm473_vm1, %v18460_v35  ;;  %v22409_v35 = vld [vmem:[#allocation5_spill] sm:$0xff] }
 0x1b3   : > { %15781 = vmatprep.mubr.msk.f32.mxu0 %vm473_vm1, %v18462_v36  ;;  %v22410_v36 = vld [vmem:[#allocation6_spill] sm:$0xff] }
 0x1b6   : > { %15782 = vmatmul.mubr.msk.f32.gmra.mrb[4].mxu0 %vm473_vm1, %v18480_v43  ;;  %v22411_v43 = vld [vmem:[#allocation7_spill] sm:$0xff] }
 0x1b7   : > { %15784 = vmatprep.mubr.msk.f32.mxu0 %vm473_vm1, %v18482_v44  ;;  %v22412_v44 = vld [vmem:[#allocation8_spill] sm:$0xff] }
 0x1ba   : > { %15785 = vmatmul.mubr.msk.f32.gmra.mrb[6].mxu0 %vm473_vm1, %v18488_v45  ;;  %v22413_v45 = vld [vmem:[#allocation9_spill] sm:$0xff] }
 0x1bb   : > { %15787 = vmatprep.mubr.msk.f32.mxu0 %vm473_vm1, %v18490_v46  ;;  %v22414_v46 = vld [vmem:[#allocation10_spill] sm:$0xff] }
 0x1be   : > { %15788 = vmatmul.mubr.msk.f32.gmra.mrb[8].mxu0 %vm473_vm1, %v18496_v47  ;;  %v22415_v47 = vld [vmem:[#allocation11_spill] sm:$0xff] }
 0x1bf   : > { %15790 = vmatprep.mubr.msk.f32.mxu0 %vm473_vm1, %v18498_v48  ;;  %v22416_v48 = vld [vmem:[#allocation12_spill] sm:$0xff] }
 0x1c2   : > { %15791 = vmatmul.mubr.msk.f32.gmra.mrb[10].mxu0 %vm473_vm1, %v18504_v49  ;;  %v22417_v49 = vld [vmem:[#allocation39_spill] sm:$0xff] }
 0x1c3   : > { %15793 = vmatprep.mubr.msk.f32.mxu0 %vm473_vm1, %v18506_v50  ;;  %v3330_v50 = vld [vmem:[#allocation2 + $0x199] sm:$0xff] }
 0x1c6   : > { %15794 = vmatmul.mubr.msk.f32.gmra.mrb[12].mxu0 %vm473_vm1, %v18512_v51  ;;  %v22418_v51 = vld [vmem:[#allocation40_spill] sm:$0xff] }
 0x1c7   : > { %15796 = vmatprep.mubr.msk.f32.mxu0 %vm473_vm1, %v18514_v52  ;;  %v3331_v52 = vld [vmem:[#allocation2 + $0x1a1] sm:$0xff] }
 0x1ca   : > { %15797 = vmatmul.mubr.msk.f32.gmra.mrb[14].mxu0 %vm473_vm1, %v18520_v53  ;;  %v22419_v53 = vld [vmem:[#allocation15_spill] sm:$0xff] }
 0x1cb   : > { %15799 = vmatprep.mubr.msk.f32.mxu0 %vm473_vm1, %v18522_v54  ;;  %v22420_v54 = vld [vmem:[#allocation16_spill] sm:$0xff] }
 0x1ce   : > { %15800 = vmatmul.mubr.msk.f32.gmra.mrb[16].mxu0 %vm473_vm1, %v18528_v55  ;;  %v22421_v55 = vld [vmem:[#allocation17_spill] sm:$0xff] }
 0x1cf   : > { %15802 = vmatprep.mubr.msk.f32.mxu0 %vm473_vm1, %v18530_v56  ;;  %v22422_v56 = vld [vmem:[#allocation18_spill] sm:$0xff] }
 0x1d2   : > { %15803 = vmatmul.mubr.msk.f32.gmra.mrb[18].mxu0 %vm473_vm1, %v18536_v57  ;;  %v22423_v57 = vld [vmem:[#allocation19_spill] sm:$0xff] }
 0x1d3   : > { %15805 = vmatprep.mubr.msk.f32.mxu0 %vm473_vm1, %v18538_v58  ;;  %v22424_v58 = vld [vmem:[#allocation20_spill] sm:$0xff] }
 0x1d6   : > { %15806 = vmatmul.mubr.msk.f32.gmra.mrb[20].mxu0 %vm473_vm1, %v18544_v59  ;;  %v22425_v59 = vld [vmem:[#allocation21_spill] sm:$0xff] }
 0x1d7   : > { %15808 = vmatprep.mubr.msk.f32.mxu0 %vm473_vm1, %v18546_v60  ;;  %v22426_v60 = vld [vmem:[#allocation22_spill] sm:$0xff] }
 0x1da   : > { %15809 = vmatmul.mubr.msk.f32.gmra.mrb[22].mxu0 %vm473_vm1, %v18552_v61  ;;  %v22427_v61 = vld [vmem:[#allocation23_spill] sm:$0xff] }
 0x1db   : > { %15811 = vmatprep.mubr.msk.f32.mxu0 %vm473_vm1, %v18554_v62  ;;  %v22428_v62 = vld [vmem:[#allocation24_spill] sm:$0xff] }
 0x1de   : > { %15812 = vmatmul.mubr.msk.f32.gmra.mrb[24].mxu0 %vm473_vm1, %v18560_v63  ;;  %v22429_v63 = vld [vmem:[#allocation25_spill] sm:$0xff] }
 0x1df   : > { %15814 = vmatprep.mubr.msk.f32.mxu0 %vm473_vm1, %v18562_v0  ;;  %v22430_v0 = vld [vmem:[#allocation26_spill] sm:$0xff] }
 0x1e2   : > { %15815 = vmatmul.mubr.msk.f32.gmra.mrb[26].mxu0 %vm473_vm1, %v18568_v2  ;;  %v22431_v2 = vld [vmem:[#allocation27_spill] sm:$0xff] }
 0x1e3   : > { %15817 = vmatprep.mubr.msk.f32.mxu0 %vm473_vm1, %v18902_v28 }
 0x1e6   : > { %15818 = vmatmul.mubr.msk.f32.gmra.mrb[28].mxu0 %vm473_vm1, %v18908_v29 }
 0x1e7   : > { %15820 = vmatprep.mubr.msk.f32.mxu0 %vm473_vm1, %v2940_v30 }
 0x1ea   : > { %15821 = vmatmul.mubr.msk.f32.gmra.mrb[30].mxu0 %vm473_vm1, %v2941_v33 }
 0x1eb   : > { %15825 = vmatprep.mubr.msk.f32.mxu0 %vm473_vm1, %v18587_v8  ;;  %v22432_v8 = vld [vmem:[#allocation29_spill] sm:$0xff] }
 0x1ee   : > { %15826 = vmatmul.mubr.msk.f32.vlgmr.msra.gmra.mrb[0].mxu0 %vm473_vm1, %v18595_v10  ;;  %v22433_v10 = vld [vmem:[#allocation31_spill] sm:$0xff] }
 0x1ef   : > { %15874 = vmatpush3.msk.msra.mxu0 %vm692_vm0, %v13557_v41  ;;  %15828 = vmatprep.mubr.msk.f32.mxu0 %vm473_vm1, %v18597_v11  ;;  %v22434_v11 = vld [vmem:[#allocation34_spill] sm:$0xff] }
 0x1f0   : > { %15923 = vmatprep.subr.mxu0 %v4113_v34 }
 0x1f2   : > { %15829 = vmatmul.mubr.msk.f32.gmra.mrb[2].mxu0 %vm473_vm1, %v18603_v9  ;;  %v22435_v9 = vld [vmem:[#allocation36_spill] sm:$0xff] }
 0x1f3   : > { %15831 = vmatprep.mubr.msk.f32.mxu0 %vm473_vm1, %v18605_v12  ;;  %v22436_v12 = vld [vmem:[#allocation38_spill] sm:$0xff] }
 0x1f6   : > { %15832 = vmatmul.mubr.msk.f32.gmra.mrb[4].mxu0 %vm473_vm1, %v18611_v13  ;;  %v3721_v13 = vld [vmem:[#allocation2 + $0x1a2] sm:$0xff] }
 0x1f7   : > { %15834 = vmatprep.mubr.msk.f32.mxu0 %vm473_vm1, %v18613_v14  ;;  %v22437_v14 = vmov 0.0  }
 0x1f8   : > { %4474 = vst.msk [vmem:[#allocation3] sm:$0xff] %vm4114_vm3, %v22437_v14  ;;  %4475 = vst.msk [vmem:[#allocation3 + $0x8] sm:$0xff] %vm4114_vm3, %v22437_v14 }
 0x1f9   : > { %4478 = vst.msk [vmem:[#allocation3 + $0x18] sm:$0xff] %vm4114_vm3, %v22437_v14  ;;  %4479 = vst.msk [vmem:[#allocation3 + $0x20] sm:$0xff] %vm4114_vm3, %v22437_v14 }
 0x1fa   : > { %15835 = vmatmul.mubr.msk.f32.gmra.mrb[6].mxu0 %vm473_vm1, %v18619_v15  ;;  %4481 = vst.msk [vmem:[#allocation3 + $0x30] sm:$0xff] %vm4114_vm3, %v22437_v14  ;;  %4482 = vst.msk [vmem:[#allocation3 + $0x38] sm:$0xff] %vm4114_vm3, %v22437_v14  ;;  %v19400_v15 = vld [vmem:[%s22088_s2] ss:$0 sm:$0xff] }
 0x1fb   : > { %15837 = vmatprep.mubr.msk.f32.mxu0 %vm473_vm1, %v18621_v16  ;;  %4484 = vst.msk [vmem:[#allocation3 + $0x48] sm:$0xff] %vm4114_vm3, %v22437_v14  ;;  %4485 = vst.msk [vmem:[#allocation3 + $0x50] sm:$0xff] %vm4114_vm3, %v22437_v14 }
 0x1fc   : > { %4487 = vst.msk [vmem:[#allocation3 + $0x60] sm:$0xff] %vm4114_vm3, %v22437_v14  ;;  %4488 = vst.msk [vmem:[#allocation3 + $0x68] sm:$0xff] %vm4114_vm3, %v22437_v14 }
 0x1fd   : > { %4490 = vst.msk [vmem:[#allocation3 + $0x78] sm:$0xff] %vm4114_vm3, %v22437_v14  ;;  %4491 = vst.msk [vmem:[#allocation3 + $0x80] sm:$0xff] %vm4114_vm3, %v22437_v14 }
 0x1fe   : > { %15838 = vmatmul.mubr.msk.f32.gmra.mrb[8].mxu0 %vm473_vm1, %v18627_v17  ;;  %4493 = vst.msk [vmem:[#allocation3 + $0x90] sm:$0xff] %vm4114_vm3, %v22437_v14  ;;  %4494 = vst.msk [vmem:[#allocation3 + $0x98] sm:$0xff] %vm4114_vm3, %v22437_v14 }
 0x1ff   : > { %15840 = vmatprep.mubr.msk.f32.mxu0 %vm473_vm1, %v18629_v18  ;;  %4496 = vst.msk [vmem:[#allocation3 + $0xa8] sm:$0xff] %vm4114_vm3, %v22437_v14  ;;  %4497 = vst.msk [vmem:[#allocation3 + $0xb0] sm:$0xff] %vm4114_vm3, %v22437_v14 }
 0x200   : > { %4499 = vst.msk [vmem:[#allocation3 + $0xc0] sm:$0xff] %vm4114_vm3, %v22437_v14  ;;  %4500 = vst.msk [vmem:[#allocation3 + $0xc8] sm:$0xff] %vm4114_vm3, %v22437_v14 }
 0x201   : > { %4502 = vst.msk [vmem:[#allocation3 + $0xd8] sm:$0xff] %vm4114_vm3, %v22437_v14  ;;  %4503 = vst.msk [vmem:[#allocation3 + $0xe0] sm:$0xff] %vm4114_vm3, %v22437_v14 }
 0x202   : > { %15841 = vmatmul.mubr.msk.f32.gmra.mrb[10].mxu0 %vm473_vm1, %v18635_v19  ;;  %4505 = vst.msk [vmem:[#allocation3 + $0xf0] sm:$0xff] %vm4114_vm3, %v22437_v14  ;;  %4506 = vst.msk [vmem:[#allocation3 + $0xf8] sm:$0xff] %vm4114_vm3, %v22437_v14 }
 0x203   : > { %15843 = vmatprep.mubr.msk.f32.mxu0 %vm473_vm1, %v18637_v20  ;;  %4508 = vst.msk [vmem:[#allocation3 + $0x108] sm:$0xff] %vm4114_vm3, %v22437_v14  ;;  %4509 = vst.msk [vmem:[#allocation3 + $0x110] sm:$0xff] %vm4114_vm3, %v22437_v14 }
 0x204   : > { %4511 = vst.msk [vmem:[#allocation3 + $0x120] sm:$0xff] %vm4114_vm3, %v22437_v14  ;;  %4512 = vst.msk [vmem:[#allocation3 + $0x128] sm:$0xff] %vm4114_vm3, %v22437_v14 }
 0x205   : > { %4514 = vst.msk [vmem:[#allocation3 + $0x138] sm:$0xff] %vm4114_vm3, %v22437_v14  ;;  %4515 = vst.msk [vmem:[#allocation3 + $0x140] sm:$0xff] %vm4114_vm3, %v22437_v14 }
 0x206   : > { %15844 = vmatmul.mubr.msk.f32.gmra.mrb[12].mxu0 %vm473_vm1, %v18643_v21  ;;  %4517 = vst.msk [vmem:[#allocation3 + $0x150] sm:$0xff] %vm4114_vm3, %v22437_v14  ;;  %4518 = vst.msk [vmem:[#allocation3 + $0x158] sm:$0xff] %vm4114_vm3, %v22437_v14 }
 0x207   : > { %15846 = vmatprep.mubr.msk.f32.mxu0 %vm473_vm1, %v18645_v22  ;;  %4520 = vst.msk [vmem:[#allocation3 + $0x168] sm:$0xff] %vm4114_vm3, %v22437_v14  ;;  %4521 = vst.msk [vmem:[#allocation3 + $0x170] sm:$0xff] %vm4114_vm3, %v22437_v14 }
 0x208   : > { %4523 = vst.msk [vmem:[#allocation3 + $0x180] sm:$0xff] %vm4114_vm3, %v22437_v14  ;;  %4524 = vst.msk [vmem:[#allocation3 + $0x188] sm:$0xff] %vm4114_vm3, %v22437_v14 }
 0x209   : > { %4526 = vst.msk [vmem:[#allocation3 + $0x198] sm:$0xff] %vm4114_vm3, %v22437_v14  ;;  %4527 = vst.msk [vmem:[#allocation3 + $0x1a0] sm:$0xff] %vm4114_vm3, %v22437_v14 }
 0x20a   : > { %15847 = vmatmul.mubr.msk.f32.gmra.mrb[14].mxu0 %vm473_vm1, %v18651_v23  ;;  %8703 = vst.msk [vmem:[#allocation4] sm:$0xff] %vm4114_vm3, %v22437_v14  ;;  %8704 = vst.msk [vmem:[#allocation4 + $0x8] sm:$0xff] %vm4114_vm3, %v22437_v14 }
 0x20b   : > { %15849 = vmatprep.mubr.msk.f32.mxu0 %vm473_vm1, %v18653_v24  ;;  %8706 = vst.msk [vmem:[#allocation4 + $0x18] sm:$0xff] %vm4114_vm3, %v22437_v14  ;;  %8707 = vst.msk [vmem:[#allocation4 + $0x20] sm:$0xff] %vm4114_vm3, %v22437_v14 }
 0x20c   : > { %8709 = vst.msk [vmem:[#allocation4 + $0x30] sm:$0xff] %vm4114_vm3, %v22437_v14  ;;  %8710 = vst.msk [vmem:[#allocation4 + $0x38] sm:$0xff] %vm4114_vm3, %v22437_v14 }
 0x20d   : > { %8712 = vst.msk [vmem:[#allocation4 + $0x48] sm:$0xff] %vm4114_vm3, %v22437_v14  ;;  %8713 = vst.msk [vmem:[#allocation4 + $0x50] sm:$0xff] %vm4114_vm3, %v22437_v14 }
 0x20e   : > { %15850 = vmatmul.mubr.msk.f32.gmra.mrb[16].mxu0 %vm473_vm1, %v18659_v25  ;;  %8715 = vst.msk [vmem:[#allocation4 + $0x60] sm:$0xff] %vm4114_vm3, %v22437_v14  ;;  %8716 = vst.msk [vmem:[#allocation4 + $0x68] sm:$0xff] %vm4114_vm3, %v22437_v14 }
 0x20f   : > { %15852 = vmatprep.mubr.msk.f32.mxu0 %vm473_vm1, %v18661_v26  ;;  %8718 = vst.msk [vmem:[#allocation4 + $0x78] sm:$0xff] %vm4114_vm3, %v22437_v14  ;;  %8719 = vst.msk [vmem:[#allocation4 + $0x80] sm:$0xff] %vm4114_vm3, %v22437_v14 }
 0x210   : > { %8721 = vst.msk [vmem:[#allocation4 + $0x90] sm:$0xff] %vm4114_vm3, %v22437_v14  ;;  %8722 = vst.msk [vmem:[#allocation4 + $0x98] sm:$0xff] %vm4114_vm3, %v22437_v14 }
 0x211   : > { %8724 = vst.msk [vmem:[#allocation4 + $0xa8] sm:$0xff] %vm4114_vm3, %v22437_v14  ;;  %8725 = vst.msk [vmem:[#allocation4 + $0xb0] sm:$0xff] %vm4114_vm3, %v22437_v14 }
 0x212   : > { %15853 = vmatmul.mubr.msk.f32.gmra.mrb[18].mxu0 %vm473_vm1, %v18667_v27  ;;  %8727 = vst.msk [vmem:[#allocation4 + $0xc0] sm:$0xff] %vm4114_vm3, %v22437_v14  ;;  %8728 = vst.msk [vmem:[#allocation4 + $0xc8] sm:$0xff] %vm4114_vm3, %v22437_v14 }
 0x213   : > { %15855 = vmatprep.mubr.msk.f32.mxu0 %vm473_vm1, %v22409_v35  ;;  %8730 = vst.msk [vmem:[#allocation4 + $0xd8] sm:$0xff] %vm4114_vm3, %v22437_v14  ;;  %8731 = vst.msk [vmem:[#allocation4 + $0xe0] sm:$0xff] %vm4114_vm3, %v22437_v14 }
 0x214   : > { %8733 = vst.msk [vmem:[#allocation4 + $0xf0] sm:$0xff] %vm4114_vm3, %v22437_v14  ;;  %8734 = vst.msk [vmem:[#allocation4 + $0xf8] sm:$0xff] %vm4114_vm3, %v22437_v14 }
 0x215   : > { %8736 = vst.msk [vmem:[#allocation4 + $0x108] sm:$0xff] %vm4114_vm3, %v22437_v14  ;;  %8737 = vst.msk [vmem:[#allocation4 + $0x110] sm:$0xff] %vm4114_vm3, %v22437_v14 }
 0x216   : > { %15856 = vmatmul.mubr.msk.f32.gmra.mrb[20].mxu0 %vm473_vm1, %v22410_v36  ;;  %8739 = vst.msk [vmem:[#allocation4 + $0x120] sm:$0xff] %vm4114_vm3, %v22437_v14  ;;  %8740 = vst.msk [vmem:[#allocation4 + $0x128] sm:$0xff] %vm4114_vm3, %v22437_v14 }
 0x217   : > { %15858 = vmatprep.mubr.msk.f32.mxu0 %vm473_vm1, %v22411_v43  ;;  %8742 = vst.msk [vmem:[#allocation4 + $0x138] sm:$0xff] %vm4114_vm3, %v22437_v14  ;;  %8743 = vst.msk [vmem:[#allocation4 + $0x140] sm:$0xff] %vm4114_vm3, %v22437_v14 }
 0x218   : > { %8745 = vst.msk [vmem:[#allocation4 + $0x150] sm:$0xff] %vm4114_vm3, %v22437_v14  ;;  %8746 = vst.msk [vmem:[#allocation4 + $0x158] sm:$0xff] %vm4114_vm3, %v22437_v14 }
 0x219   : > { %8748 = vst.msk [vmem:[#allocation4 + $0x168] sm:$0xff] %vm4114_vm3, %v22437_v14  ;;  %8749 = vst.msk [vmem:[#allocation4 + $0x170] sm:$0xff] %vm4114_vm3, %v22437_v14 }
 0x21a   : > { %15859 = vmatmul.mubr.msk.f32.gmra.mrb[22].mxu0 %vm473_vm1, %v22412_v44  ;;  %8751 = vst.msk [vmem:[#allocation4 + $0x180] sm:$0xff] %vm4114_vm3, %v22437_v14  ;;  %8752 = vst.msk [vmem:[#allocation4 + $0x188] sm:$0xff] %vm4114_vm3, %v22437_v14 }
 0x21b   : > { %15861 = vmatprep.mubr.msk.f32.mxu0 %vm473_vm1, %v22413_v45  ;;  %8754 = vst.msk [vmem:[#allocation4 + $0x198] sm:$0xff] %vm4114_vm3, %v22437_v14  ;;  %8755 = vst.msk [vmem:[#allocation4 + $0x1a0] sm:$0xff] %vm4114_vm3, %v22437_v14 }
 0x21c   : > { %4480 = vst.msk [vmem:[#allocation3 + $0x28] sm:$0x3] %vm4476_vm4, %v22437_v14  ;;  %4477 = vst.msk [vmem:[#allocation3 + $0x10] sm:$0x3] %vm4476_vm4, %v22437_v14 }
 0x21d   : > { %4483 = vst.msk [vmem:[#allocation3 + $0x40] sm:$0x3] %vm4476_vm4, %v22437_v14  ;;  %4486 = vst.msk [vmem:[#allocation3 + $0x58] sm:$0x3] %vm4476_vm4, %v22437_v14 }
 0x21e   : > { %15862 = vmatmul.mubr.msk.f32.gmra.mrb[24].mxu0 %vm473_vm1, %v22414_v46  ;;  %4489 = vst.msk [vmem:[#allocation3 + $0x70] sm:$0x3] %vm4476_vm4, %v22437_v14  ;;  %4492 = vst.msk [vmem:[#allocation3 + $0x88] sm:$0x3] %vm4476_vm4, %v22437_v14 }
 0x21f   : > { %15864 = vmatprep.mubr.msk.f32.mxu0 %vm473_vm1, %v22415_v47  ;;  %4495 = vst.msk [vmem:[#allocation3 + $0xa0] sm:$0x3] %vm4476_vm4, %v22437_v14  ;;  %4498 = vst.msk [vmem:[#allocation3 + $0xb8] sm:$0x3] %vm4476_vm4, %v22437_v14 }
 0x220   : > { %4501 = vst.msk [vmem:[#allocation3 + $0xd0] sm:$0x3] %vm4476_vm4, %v22437_v14  ;;  %4504 = vst.msk [vmem:[#allocation3 + $0xe8] sm:$0x3] %vm4476_vm4, %v22437_v14 }
 0x221   : > { %4507 = vst.msk [vmem:[#allocation3 + $0x100] sm:$0x3] %vm4476_vm4, %v22437_v14  ;;  %4510 = vst.msk [vmem:[#allocation3 + $0x118] sm:$0x3] %vm4476_vm4, %v22437_v14 }
 0x222   : > { %15865 = vmatmul.mubr.msk.f32.gmra.mrb[26].mxu0 %vm473_vm1, %v22416_v48  ;;  %4513 = vst.msk [vmem:[#allocation3 + $0x130] sm:$0x3] %vm4476_vm4, %v22437_v14  ;;  %4516 = vst.msk [vmem:[#allocation3 + $0x148] sm:$0x3] %vm4476_vm4, %v22437_v14 }
 0x223   : > { %15867 = vmatprep.mubr.msk.f32.mxu0 %vm473_vm1, %v22417_v49  ;;  %4519 = vst.msk [vmem:[#allocation3 + $0x160] sm:$0x3] %vm4476_vm4, %v22437_v14  ;;  %4522 = vst.msk [vmem:[#allocation3 + $0x178] sm:$0x3] %vm4476_vm4, %v22437_v14 }
 0x224   : > { %4525 = vst.msk [vmem:[#allocation3 + $0x190] sm:$0x3] %vm4476_vm4, %v22437_v14  ;;  %4528 = vst.msk [vmem:[#allocation3 + $0x1a8] sm:$0x3] %vm4476_vm4, %v22437_v14 }
 0x225   : > { %8705 = vst.msk [vmem:[#allocation4 + $0x10] sm:$0x3] %vm4476_vm4, %v22437_v14  ;;  %8708 = vst.msk [vmem:[#allocation4 + $0x28] sm:$0x3] %vm4476_vm4, %v22437_v14 }
 0x226   : > { %15868 = vmatmul.mubr.msk.f32.gmra.mrb[28].mxu0 %vm473_vm1, %v22418_v51  ;;  %8711 = vst.msk [vmem:[#allocation4 + $0x40] sm:$0x3] %vm4476_vm4, %v22437_v14  ;;  %8714 = vst.msk [vmem:[#allocation4 + $0x58] sm:$0x3] %vm4476_vm4, %v22437_v14 }
 0x227   : > { %15870 = vmatprep.mubr.msk.f32.mxu0 %vm473_vm1, %v3330_v50  ;;  %8717 = vst.msk [vmem:[#allocation4 + $0x70] sm:$0x3] %vm4476_vm4, %v22437_v14  ;;  %8720 = vst.msk [vmem:[#allocation4 + $0x88] sm:$0x3] %vm4476_vm4, %v22437_v14 }
 0x228   : > { %8723 = vst.msk [vmem:[#allocation4 + $0xa0] sm:$0x3] %vm4476_vm4, %v22437_v14  ;;  %8726 = vst.msk [vmem:[#allocation4 + $0xb8] sm:$0x3] %vm4476_vm4, %v22437_v14 }
 0x229   : > { %8729 = vst.msk [vmem:[#allocation4 + $0xd0] sm:$0x3] %vm4476_vm4, %v22437_v14  ;;  %8732 = vst.msk [vmem:[#allocation4 + $0xe8] sm:$0x3] %vm4476_vm4, %v22437_v14 }
 0x22a   : > { %15871 = vmatmul.mubr.msk.f32.gmra.mrb[30].mxu0 %vm473_vm1, %v3331_v52  ;;  %8735 = vst.msk [vmem:[#allocation4 + $0x100] sm:$0x3] %vm4476_vm4, %v22437_v14  ;;  %8738 = vst.msk [vmem:[#allocation4 + $0x118] sm:$0x3] %vm4476_vm4, %v22437_v14 }
 0x22b   : > { %15875 = vmatprep.mubr.msk.f32.mxu0 %vm473_vm1, %v22419_v53  ;;  %8741 = vst.msk [vmem:[#allocation4 + $0x130] sm:$0x3] %vm4476_vm4, %v22437_v14  ;;  %8744 = vst.msk [vmem:[#allocation4 + $0x148] sm:$0x3] %vm4476_vm4, %v22437_v14 }
 0x22c   : > { %8747 = vst.msk [vmem:[#allocation4 + $0x160] sm:$0x3] %vm4476_vm4, %v22437_v14  ;;  %8750 = vst.msk [vmem:[#allocation4 + $0x178] sm:$0x3] %vm4476_vm4, %v22437_v14 }
 0x22d   : > { %8753 = vst.msk [vmem:[#allocation4 + $0x190] sm:$0x3] %vm4476_vm4, %v22437_v14  ;;  %8756 = vst.msk [vmem:[#allocation4 + $0x1a8] sm:$0x3] %vm4476_vm4, %v22437_v14  ;;  %v19645_v14 = vld [vmem:[%s22091_s5 + $0x10] sm:$0xff] }
 0x22e   : > { %15876 = vmatmul.mubr.msk.f32.vlgmr.msra.gmra.mrb[0].mxu0 %vm473_vm1, %v22420_v54 }
 0x22f   : > { %15878 = vmatprep.mubr.msk.f32.mxu0 %vm473_vm1, %v22421_v55  ;;  %15924 = vmatpush3.msra.mxu0 %v4113_v34 }
 0x232   : > { %15879 = vmatmul.mubr.msk.f32.gmra.mrb[2].mxu0 %vm473_vm1, %v22422_v56 }
 0x233   : > { %15881 = vmatprep.mubr.msk.f32.mxu0 %vm473_vm1, %v22423_v57 }
 0x236   : > { %15882 = vmatmul.mubr.msk.f32.gmra.mrb[4].mxu0 %vm473_vm1, %v22424_v58 }
 0x237   : > { %15884 = vmatprep.mubr.msk.f32.mxu0 %vm473_vm1, %v22425_v59 }
 0x23a   : > { %15885 = vmatmul.mubr.msk.f32.gmra.mrb[6].mxu0 %vm473_vm1, %v22426_v60 }
 0x23b   : > { %15887 = vmatprep.mubr.msk.f32.mxu0 %vm473_vm1, %v22427_v61 }
 0x23e   : > { %15888 = vmatmul.mubr.msk.f32.gmra.mrb[8].mxu0 %vm473_vm1, %v22428_v62 }
 0x23f   : > { %15890 = vmatprep.mubr.msk.f32.mxu0 %vm473_vm1, %v22429_v63 }
 0x242   : > { %15891 = vmatmul.mubr.msk.f32.gmra.mrb[10].mxu0 %vm473_vm1, %v22430_v0 }
 0x243   : > { %15893 = vmatprep.mubr.msk.f32.mxu0 %vm473_vm1, %v22431_v2 }
 0x246   : > { %15894 = vmatmul.mubr.msk.f32.gmra.mrb[12].mxu0 %vm473_vm1, %v22399_v42 }
 0x247   : > { %15896 = vmatprep.mubr.msk.f32.mxu0 %vm473_vm1, %v22432_v8 }
 0x24a   : > { %15897 = vmatmul.mubr.msk.f32.gmra.mrb[14].mxu0 %vm473_vm1, %v22401_v31 }
 0x24b   : > { %15899 = vmatprep.mubr.msk.f32.mxu0 %vm473_vm1, %v22433_v10 }
 0x24e   : > { %15900 = vmatmul.mubr.msk.f32.gmra.mrb[16].mxu0 %vm473_vm1, %v22403_v4 }
 0x24f   : > { %15902 = vmatprep.mubr.msk.f32.mxu0 %vm473_vm1, %v22404_v37 }
 0x252   : > { %15903 = vmatmul.mubr.msk.f32.gmra.mrb[18].mxu0 %vm473_vm1, %v22434_v11 }
 0x253   : > { %15905 = vmatprep.mubr.msk.f32.mxu0 %vm473_vm1, %v22406_v38 }
 0x256   : > { %15906 = vmatmul.mubr.msk.f32.gmra.mrb[20].mxu0 %vm473_vm1, %v18810_v1  ;;  %v3720_v1 = vld [vmem:[#allocation2 + $0x19a] sm:$0xff] }
 0x257   : > { %15908 = vmatprep.mubr.msk.f32.mxu0 %vm473_vm1, %v22435_v9 }
 0x25a   : > { %15909 = vmatmul.mubr.msk.f32.gmra.mrb[22].mxu0 %vm473_vm1, %v18818_v3 }
 0x25b   : > { %15911 = vmatprep.mubr.msk.f32.mxu0 %vm473_vm1, %v22408_v32 }
 0x25e   : > { %15912 = vmatmul.mubr.msk.f32.gmra.mrb[24].mxu0 %vm473_vm1, %v18826_v40 }
 0x25f   : > { %15914 = vmatprep.mubr.msk.f32.mxu0 %vm473_vm1, %v22436_v12 }
 0x262   : > { %15915 = vmatmul.mubr.msk.f32.gmra.mrb[26].mxu0 %vm473_vm1, %v18834_v6 }
 0x263   : > { %15917 = vmatprep.mubr.msk.f32.mxu0 %vm473_vm1, %v19048_v5 }
 0x266   : > { %15918 = vmatmul.mubr.msk.f32.gmra.mrb[28].mxu0 %vm473_vm1, %v19054_v39 }
 0x267   : > { %15920 = vmatprep.mubr.msk.f32.mxu0 %vm473_vm1, %v3720_v1 }
 0x26a   : > { %15921 = vmatmul.mubr.msk.f32.gmra.mrb[30].mxu0 %vm473_vm1, %v3721_v13 }
 0x301   : > { %v15877_v16 = vpop.f32.mrb[0].mxu0 }
 0x302   : > { %v17125_v17 = vadd.f32 %v15877_v16, %v19400_v15  ;;  %v3889_v18 = vpop.f32.mrb[1].mxu0 }
 0x303   : > { %v17126_v19 = vadd.f32 %v19400_v15, %v3889_v18 }
 0x304   : > { %v19406_v22 = vmax.f32 %v17125_v17, 0.0 }
 0x305   : > { %v19404_v20 = vmax.f32 %v17126_v19, 0.0  ;;  %v15880_v21 = vpop.f32.mrb[2].mxu0 }
 0x306   : > { %22439 = vst [vmem:[#allocation14_spill] sm:$0xff] %v19406_v22  ;;  %v17127_v23 = vadd.f32 %v15880_v21, %v19400_v15  ;;  %v3899_v24 = vpop.f32.mrb[3].mxu0 }
 0x307   : > { %22438 = vst [vmem:[#allocation13_spill] sm:$0xff] %v19404_v20  ;;  %v17128_v25 = vadd.f32 %v19400_v15, %v3899_v24  ;;  %15925 = vmatprep.mubr.msk.f32.mxu0 %vm4114_vm3, %v19404_v20 }
 0x308   : > { %15926 = vmatmul.mubr.msk.f32.vlgmr.msra.gmra.mrb[32].mxu0 %vm4114_vm3, %v19406_v22  ;;  %v19416_v31 = vmax.f32 %v17127_v23, 0.0 }
 0x309   : > { %v19414_v26 = vmax.f32 %v17128_v25, 0.0  ;;  %v15883_v27 = vpop.f32.mrb[4].mxu0 }
 0x30a   : > { %22441 = vst [vmem:[#allocation30_spill] sm:$0xff] %v19416_v31  ;;  %v17129_v32 = vadd.f32 %v15883_v27, %v19400_v15  ;;  %v3909_v37 = vpop.f32.mrb[5].mxu0 }
 0x30b   : > { %22440 = vst [vmem:[#allocation28_spill] sm:$0xff] %v19414_v26  ;;  %v17130_v38 = vadd.f32 %v19400_v15, %v3909_v37  ;;  %15928 = vmatprep.mubr.msk.f32.mxu0 %vm4114_vm3, %v19414_v26 }
 0x30c   : > { %15929 = vmatmul.mubr.msk.f32.gmra.mrb[34].mxu0 %vm4114_vm3, %v19416_v31  ;;  %v19426_v41 = vmax.f32 %v17129_v32, 0.0 }
 0x30d   : > { %v19424_v3 = vmax.f32 %v17130_v38, 0.0  ;;  %v15886_v40 = vpop.f32.mrb[6].mxu0 }
 0x30e   : > { %22443 = vst [vmem:[#allocation33_spill] sm:$0xff] %v19426_v41  ;;  %v17131_v6 = vadd.f32 %v15886_v40, %v19400_v15  ;;  %v3919_v28 = vpop.f32.mrb[7].mxu0 }
 0x30f   : > { %22442 = vst [vmem:[#allocation32_spill] sm:$0xff] %v19424_v3  ;;  %v17132_v29 = vadd.f32 %v19400_v15, %v3919_v28  ;;  %15931 = vmatprep.mubr.msk.f32.mxu0 %vm4114_vm3, %v19424_v3 }
 0x310   : > { %15932 = vmatmul.mubr.msk.f32.gmra.mrb[36].mxu0 %vm4114_vm3, %v19426_v41  ;;  %v19436_v5 = vmax.f32 %v17131_v6, 0.0 }
 0x311   : > { %v19434_v7 = vmax.f32 %v17132_v29, 0.0  ;;  %v15889_v4 = vpop.f32.mrb[8].mxu0 }
 0x312   : > { %22445 = vst [vmem:[#allocation37_spill] sm:$0xff] %v19436_v5  ;;  %v17133_v42 = vadd.f32 %v15889_v4, %v19400_v15  ;;  %v3929_v39 = vpop.f32.mrb[9].mxu0 }
 0x313   : > { %22444 = vst [vmem:[#allocation35_spill] sm:$0xff] %v19434_v7  ;;  %v17134_v30 = vadd.f32 %v19400_v15, %v3929_v39  ;;  %15934 = vmatprep.mubr.msk.f32.mxu0 %vm4114_vm3, %v19434_v7 }
 0x314   : > { %15935 = vmatmul.mubr.msk.f32.gmra.mrb[38].mxu0 %vm4114_vm3, %v19436_v5  ;;  %v19446_v35 = vmax.f32 %v17133_v42, 0.0 }
 0x315   : > { %v19444_v33 = vmax.f32 %v17134_v30, 0.0  ;;  %v15892_v34 = vpop.f32.mrb[10].mxu0 }
 0x316   : > { %22447 = vst [vmem:[#allocation6_spill] sm:$0xff] %v19446_v35  ;;  %v17135_v36 = vadd.f32 %v15892_v34, %v19400_v15  ;;  %v3939_v43 = vpop.f32.mrb[11].mxu0 }
 0x317   : > { %22446 = vst [vmem:[#allocation5_spill] sm:$0xff] %v19444_v33  ;;  %v17136_v44 = vadd.f32 %v19400_v15, %v3939_v43  ;;  %15937 = vmatprep.mubr.msk.f32.mxu0 %vm4114_vm3, %v19444_v33 }
 0x318   : > { %15938 = vmatmul.mubr.msk.f32.gmra.mrb[40].mxu0 %vm4114_vm3, %v19446_v35  ;;  %v19456_v47 = vmax.f32 %v17135_v36, 0.0 }
 0x319   : > { %v19454_v45 = vmax.f32 %v17136_v44, 0.0  ;;  %v15895_v46 = vpop.f32.mrb[12].mxu0 }
 0x31a   : > { %22449 = vst [vmem:[#allocation8_spill] sm:$0xff] %v19456_v47  ;;  %v17137_v48 = vadd.f32 %v15895_v46, %v19400_v15  ;;  %v3949_v49 = vpop.f32.mrb[13].mxu0 }
 0x31b   : > { %22448 = vst [vmem:[#allocation7_spill] sm:$0xff] %v19454_v45  ;;  %v17138_v50 = vadd.f32 %v19400_v15, %v3949_v49  ;;  %15940 = vmatprep.mubr.msk.f32.mxu0 %vm4114_vm3, %v19454_v45 }
 0x31c   : > { %15941 = vmatmul.mubr.msk.f32.gmra.mrb[42].mxu0 %vm4114_vm3, %v19456_v47  ;;  %v19466_v53 = vmax.f32 %v17137_v48, 0.0 }
 0x31d   : > { %v19464_v51 = vmax.f32 %v17138_v50, 0.0  ;;  %v15898_v52 = vpop.f32.mrb[14].mxu0 }
 0x31e   : > { %22451 = vst [vmem:[#allocation10_spill] sm:$0xff] %v19466_v53  ;;  %v17139_v54 = vadd.f32 %v15898_v52, %v19400_v15  ;;  %v3959_v55 = vpop.f32.mrb[15].mxu0 }
 0x31f   : > { %22450 = vst [vmem:[#allocation9_spill] sm:$0xff] %v19464_v51  ;;  %v17140_v56 = vadd.f32 %v19400_v15, %v3959_v55  ;;  %15943 = vmatprep.mubr.msk.f32.mxu0 %vm4114_vm3, %v19464_v51 }
 0x320   : > { %15944 = vmatmul.mubr.msk.f32.gmra.mrb[44].mxu0 %vm4114_vm3, %v19466_v53  ;;  %v19476_v59 = vmax.f32 %v17139_v54, 0.0 }
 0x321   : > { %v19474_v57 = vmax.f32 %v17140_v56, 0.0  ;;  %v15901_v58 = vpop.f32.mrb[16].mxu0 }
 0x322   : > { %22453 = vst [vmem:[#allocation12_spill] sm:$0xff] %v19476_v59  ;;  %v17141_v60 = vadd.f32 %v15901_v58, %v19400_v15  ;;  %v3969_v61 = vpop.f32.mrb[17].mxu0 }
 0x323   : > { %22452 = vst [vmem:[#allocation11_spill] sm:$0xff] %v19474_v57  ;;  %v17142_v62 = vadd.f32 %v19400_v15, %v3969_v61  ;;  %15946 = vmatprep.mubr.msk.f32.mxu0 %vm4114_vm3, %v19474_v57  ;;  %v4563_v61 = vld [vmem:[#allocation3] sm:$0xff] }
 0x324   : > { %15947 = vmatmul.mubr.msk.f32.gmra.mrb[46].mxu0 %vm4114_vm3, %v19476_v59  ;;  %v19486_v2 = vmax.f32 %v17141_v60, 0.0 }
 0x325   : > { %v19484_v63 = vmax.f32 %v17142_v62, 0.0  ;;  %v15904_v0 = vpop.f32.mrb[18].mxu0  ;;  %v4564_v62 = vld [vmem:[#allocation3 + $0x8] sm:$0xff] }
 0x326   : > { %22455 = vst [vmem:[#allocation40_spill] sm:$0xff] %v19486_v2  ;;  %v17143_v8 = vadd.f32 %v15904_v0, %v19400_v15  ;;  %v3979_v10 = vpop.f32.mrb[19].mxu0  ;;  %v13657_v0 = vld [vmem:[%s22091_s5 + $0x8] sm:$0xff] }
 0x327   : > { %22454 = vst [vmem:[#allocation39_spill] sm:$0xff] %v19484_v63  ;;  %v17144_v11 = vadd.f32 %v19400_v15, %v3979_v10  ;;  %15949 = vmatprep.mubr.msk.f32.mxu0 %vm4114_vm3, %v19484_v63  ;;  %17123 = vmatprep.subr.mxu1 %v13657_v0  ;;  %v19657_v10 = vld [vmem:[%s22090_s4] ss:$0 sm:$0xff] }
 0x328   : > { %15950 = vmatmul.mubr.msk.f32.gmra.mrb[48].mxu0 %vm4114_vm3, %v19486_v2  ;;  %v19496_v1 = vmax.f32 %v17143_v8, 0.0  ;;  %17124 = vmatpush3.msra.mxu1 %v13657_v0  ;;  %v19651_v8 = vld [vmem:[%s22093_s7] sm:$0xff] }
 0x329   : > { %v19494_v9 = vmax.f32 %v17144_v11, 0.0  ;;  %v15907_v12 = vpop.f32.mrb[20].mxu0  ;;  %16073 = vmatprep.subr.mxu1 %v19645_v14 }
 0x32a   : > { %22457 = vst [vmem:[#allocation16_spill] sm:$0xff] %v19496_v1  ;;  %v17145_v13 = vadd.f32 %v15907_v12, %v19400_v15  ;;  %v3989_v16 = vpop.f32.mrb[21].mxu0 }
 0x32b   : > { %22456 = vst [vmem:[#allocation15_spill] sm:$0xff] %v19494_v9  ;;  %v17146_v17 = vadd.f32 %v19400_v15, %v3989_v16  ;;  %15952 = vmatprep.mubr.msk.f32.mxu0 %vm4114_vm3, %v19494_v9 }
 0x32c   : > { %15953 = vmatmul.mubr.msk.f32.gmra.mrb[50].mxu0 %vm4114_vm3, %v19496_v1  ;;  %v19506_v21 = vmax.f32 %v17145_v13, 0.0 }
 0x32d   : > { %v19504_v18 = vmax.f32 %v17146_v17, 0.0  ;;  %v15910_v19 = vpop.f32.mrb[22].mxu0 }
 0x32e   : > { %22459 = vst [vmem:[#allocation18_spill] sm:$0xff] %v19506_v21  ;;  %v17147_v23 = vadd.f32 %v15910_v19, %v19400_v15  ;;  %v3999_v24 = vpop.f32.mrb[23].mxu0 }
 0x32f   : > { %22458 = vst [vmem:[#allocation17_spill] sm:$0xff] %v19504_v18  ;;  %v17148_v25 = vadd.f32 %v19400_v15, %v3999_v24  ;;  %15955 = vmatprep.mubr.msk.f32.mxu0 %vm4114_vm3, %v19504_v18 }
 0x330   : > { %15956 = vmatmul.mubr.msk.f32.gmra.mrb[52].mxu0 %vm4114_vm3, %v19506_v21  ;;  %v19516_v37 = vmax.f32 %v17147_v23, 0.0 }
 0x331   : > { %v19514_v27 = vmax.f32 %v17148_v25, 0.0  ;;  %v15913_v32 = vpop.f32.mrb[24].mxu0 }
 0x332   : > { %22461 = vst [vmem:[#allocation20_spill] sm:$0xff] %v19516_v37  ;;  %v17149_v38 = vadd.f32 %v15913_v32, %v19400_v15  ;;  %v4009_v40 = vpop.f32.mrb[25].mxu0 }
 0x333   : > { %22460 = vst [vmem:[#allocation19_spill] sm:$0xff] %v19514_v27  ;;  %v17150_v6 = vadd.f32 %v19400_v15, %v4009_v40  ;;  %15958 = vmatprep.mubr.msk.f32.mxu0 %vm4114_vm3, %v19514_v27 }
 0x334   : > { %15959 = vmatmul.mubr.msk.f32.gmra.mrb[54].mxu0 %vm4114_vm3, %v19516_v37  ;;  %v19526_v4 = vmax.f32 %v17149_v38, 0.0 }
 0x335   : > { %v19524_v28 = vmax.f32 %v17150_v6, 0.0  ;;  %v15916_v29 = vpop.f32.mrb[26].mxu0 }
 0x336   : > { %22463 = vst [vmem:[#allocation22_spill] sm:$0xff] %v19526_v4  ;;  %v17151_v42 = vadd.f32 %v15916_v29, %v19400_v15  ;;  %v4019_v39 = vpop.f32.mrb[27].mxu0 }
 0x337   : > { %22462 = vst [vmem:[#allocation21_spill] sm:$0xff] %v19524_v28  ;;  %v17152_v30 = vadd.f32 %v19400_v15, %v4019_v39  ;;  %15961 = vmatprep.mubr.msk.f32.mxu0 %vm4114_vm3, %v19524_v28 }
 0x338   : > { %15962 = vmatmul.mubr.msk.f32.gmra.mrb[56].mxu0 %vm4114_vm3, %v19526_v4  ;;  %v19536_v43 = vmax.f32 %v17151_v42, 0.0 }
 0x339   : > { %v19534_v34 = vmax.f32 %v17152_v30, 0.0  ;;  %v15919_v36 = vpop.f32.mrb[28].mxu0 }
 0x33a   : > { %22465 = vst [vmem:[#allocation24_spill] sm:$0xff] %v19536_v43  ;;  %v17153_v44 = vadd.f32 %v15919_v36, %v19400_v15  ;;  %v4029_v46 = vpop.f32.mrb[29].mxu0 }
 0x33b   : > { %22464 = vst [vmem:[#allocation23_spill] sm:$0xff] %v19534_v34  ;;  %v17154_v48 = vadd.f32 %v19400_v15, %v4029_v46  ;;  %15964 = vmatprep.mubr.msk.f32.mxu0 %vm4114_vm3, %v19534_v34 }
 0x33c   : > { %15965 = vmatmul.mubr.msk.f32.gmra.mrb[58].mxu0 %vm4114_vm3, %v19536_v43  ;;  %v19546_v52 = vmax.f32 %v17153_v44, 0.0 }
 0x33d   : > { %v19544_v49 = vmax.f32 %v17154_v48, 0.0  ;;  %v15922_v50 = vpop.f32.mrb[30].mxu0 }
 0x33e   : > { %22467 = vst [vmem:[#allocation26_spill] sm:$0xff] %v19546_v52  ;;  %v17155_v54 = vadd.f32 %v15922_v50, %v19400_v15  ;;  %v4039_v55 = vpop.f32.mrb[31].mxu0 }
 0x33f   : > { %22466 = vst [vmem:[#allocation25_spill] sm:$0xff] %v19544_v49  ;;  %v17156_v56 = vadd.f32 %v19400_v15, %v4039_v55  ;;  %15967 = vmatprep.mubr.msk.f32.mxu0 %vm4114_vm3, %v19544_v49  ;;  %v4595_v15 = vld [vmem:[%s22091_s5] sm:$0xff] }
 0x340   : > { %15968 = vmatmul.mubr.msk.f32.gmra.mrb[60].mxu0 %vm4114_vm3, %v19546_v52  ;;  %v19556_v60 = vmax.f32 %v17155_v54, 0.0  ;;  %15973 = vmatprep.subr.mxu0 %v4595_v15 }
 0x341   : > { %v19554_v58 = vmax.f32 %v17156_v56, 0.0  ;;  %15974 = vmatpush3.msra.mxu0 %v4595_v15 }
 0x342   : > { %22469 = vst [vmem:[#allocation29_spill] sm:$0xff] %v19556_v60  ;;  %16023 = vmatprep.subr.mxu0 %v13657_v0 }
 0x343   : > { %22468 = vst [vmem:[#allocation27_spill] sm:$0xff] %v19554_v58  ;;  %15970 = vmatprep.mubr.msk.f32.mxu0 %vm4114_vm3, %v19554_v58 }
 0x344   : > { %15971 = vmatmul.mubr.msk.f32.gmra.mrb[62].mxu0 %vm4114_vm3, %v19556_v60 }
 0x345   : > { %15975 = vmatprep.mubr.msk.f32.mxu0 %vm4114_vm3, %v4563_v61 }
 0x348   : > { %15976 = vmatmul.mubr.msk.f32.vlgmr.msra.gmra.mrb[64].mxu0 %vm4114_vm3, %v4564_v62 }
 0x349   : > { %16024 = vmatpush3.msra.mxu0 %v13657_v0 }
 0x34a   : > { %16423 = vmatprep.subr.mxu0 %v19651_v8 }
 0x3db   : > { %v15927_v11 = vpop.f32.mrb[32].mxu0 }
 0x3dc   : > { %v4443_v12 = vadd.f32 %v15927_v11, %v19657_v10  ;;  %v4277_v13 = vpop.f32.mrb[33].mxu0 }
 0x3dd   : > { %v4442_v16 = vadd.f32 %v19657_v10, %v4277_v13 }
 0x3de   : > { %4531 = vst.msk [vmem:[#allocation3 + $0x21] sm:$0xff] %vm4114_vm3, %v4443_v12 }
 0x3df   : > { %4530 = vst.msk [vmem:[#allocation3 + $0x19] sm:$0xff] %vm4114_vm3, %v4442_v16  ;;  %v15930_v17 = vpop.f32.mrb[34].mxu0 }
 0x3e0   : > { %v4445_v19 = vadd.f32 %v15930_v17, %v19657_v10  ;;  %v4287_v23 = vpop.f32.mrb[35].mxu0 }
 0x3e1   : > { %v4444_v24 = vadd.f32 %v19657_v10, %v4287_v23 }
 0x3e2   : > { %4533 = vst.msk [vmem:[#allocation3 + $0x39] sm:$0xff] %vm4114_vm3, %v4445_v19 }
 0x3e3   : > { %4532 = vst.msk [vmem:[#allocation3 + $0x31] sm:$0xff] %vm4114_vm3, %v4444_v24  ;;  %v15933_v25 = vpop.f32.mrb[36].mxu0 }
 0x3e4   : > { %v4447_v32 = vadd.f32 %v15933_v25, %v19657_v10  ;;  %v4297_v38 = vpop.f32.mrb[37].mxu0 }
 0x3e5   : > { %v4446_v40 = vadd.f32 %v19657_v10, %v4297_v38 }
 0x3e6   : > { %4535 = vst.msk [vmem:[#allocation3 + $0x51] sm:$0xff] %vm4114_vm3, %v4447_v32  ;;  %v19670_v6 = vld [vmem:[#allocation3 + $0x18] sm:$0xff]  ;;  %v19672_v29 = vld [vmem:[#allocation3 + $0x20] sm:$0xff] }
 0x3e7   : > { %4534 = vst.msk [vmem:[#allocation3 + $0x49] sm:$0xff] %vm4114_vm3, %v4446_v40  ;;  %v15936_v42 = vpop.f32.mrb[38].mxu0  ;;  %15978 = vmatprep.mubr.msk.f32.mxu0 %vm4114_vm3, %v19670_v6 }
 0x3e8   : > { %v4449_v39 = vadd.f32 %v15936_v42, %v19657_v10  ;;  %v4307_v30 = vpop.f32.mrb[39].mxu0  ;;  %15979 = vmatmul.mubr.msk.f32.gmra.mrb[66].mxu0 %vm4114_vm3, %v19672_v29 }
 0x3e9   : > { %v4448_v36 = vadd.f32 %v19657_v10, %v4307_v30 }
 0x3ea   : > { %4537 = vst.msk [vmem:[#allocation3 + $0x69] sm:$0xff] %vm4114_vm3, %v4449_v39  ;;  %v19682_v44 = vld [vmem:[#allocation3 + $0x30] sm:$0xff]  ;;  %v19684_v46 = vld [vmem:[#allocation3 + $0x38] sm:$0xff] }
 0x3eb   : > { %4536 = vst.msk [vmem:[#allocation3 + $0x61] sm:$0xff] %vm4114_vm3, %v4448_v36  ;;  %v15939_v48 = vpop.f32.mrb[40].mxu0  ;;  %15981 = vmatprep.mubr.msk.f32.mxu0 %vm4114_vm3, %v19682_v44 }
 0x3ec   : > { %v4451_v50 = vadd.f32 %v15939_v48, %v19657_v10  ;;  %v4317_v54 = vpop.f32.mrb[41].mxu0  ;;  %15982 = vmatmul.mubr.msk.f32.gmra.mrb[68].mxu0 %vm4114_vm3, %v19684_v46 }
 0x3ed   : > { %v4450_v55 = vadd.f32 %v19657_v10, %v4317_v54 }
 0x3ee   : > { %4539 = vst.msk [vmem:[#allocation3 + $0x81] sm:$0xff] %vm4114_vm3, %v4451_v50  ;;  %v19694_v56 = vld [vmem:[#allocation3 + $0x48] sm:$0xff]  ;;  %v19696_v15 = vld [vmem:[#allocation3 + $0x50] sm:$0xff] }
 0x3ef   : > { %4538 = vst.msk [vmem:[#allocation3 + $0x79] sm:$0xff] %vm4114_vm3, %v4450_v55  ;;  %v15942_v61 = vpop.f32.mrb[42].mxu0  ;;  %15984 = vmatprep.mubr.msk.f32.mxu0 %vm4114_vm3, %v19694_v56 }
 0x3f0   : > { %v4453_v62 = vadd.f32 %v15942_v61, %v19657_v10  ;;  %v4327_v0 = vpop.f32.mrb[43].mxu0  ;;  %15985 = vmatmul.mubr.msk.f32.gmra.mrb[70].mxu0 %vm4114_vm3, %v19696_v15 }
 0x3f1   : > { %v4452_v11 = vadd.f32 %v19657_v10, %v4327_v0 }
 0x3f2   : > { %4541 = vst.msk [vmem:[#allocation3 + $0x99] sm:$0xff] %vm4114_vm3, %v4453_v62  ;;  %v19706_v12 = vld [vmem:[#allocation3 + $0x60] sm:$0xff]  ;;  %v19708_v13 = vld [vmem:[#allocation3 + $0x68] sm:$0xff] }
 0x3f3   : > { %4540 = vst.msk [vmem:[#allocation3 + $0x91] sm:$0xff] %vm4114_vm3, %v4452_v11  ;;  %v15945_v16 = vpop.f32.mrb[44].mxu0  ;;  %15987 = vmatprep.mubr.msk.f32.mxu0 %vm4114_vm3, %v19706_v12 }
 0x3f4   : > { %v4455_v17 = vadd.f32 %v15945_v16, %v19657_v10  ;;  %v4337_v19 = vpop.f32.mrb[45].mxu0  ;;  %15988 = vmatmul.mubr.msk.f32.gmra.mrb[72].mxu0 %vm4114_vm3, %v19708_v13 }
 0x3f5   : > { %v4454_v23 = vadd.f32 %v19657_v10, %v4337_v19 }
 0x3f6   : > { %4543 = vst.msk [vmem:[#allocation3 + $0xb1] sm:$0xff] %vm4114_vm3, %v4455_v17  ;;  %v19718_v24 = vld [vmem:[#allocation3 + $0x78] sm:$0xff]  ;;  %v19720_v25 = vld [vmem:[#allocation3 + $0x80] sm:$0xff] }
 0x3f7   : > { %4542 = vst.msk [vmem:[#allocation3 + $0xa9] sm:$0xff] %vm4114_vm3, %v4454_v23  ;;  %v15948_v32 = vpop.f32.mrb[46].mxu0  ;;  %15990 = vmatprep.mubr.msk.f32.mxu0 %vm4114_vm3, %v19718_v24 }
 0x3f8   : > { %v4457_v38 = vadd.f32 %v15948_v32, %v19657_v10  ;;  %v4347_v40 = vpop.f32.mrb[47].mxu0  ;;  %15991 = vmatmul.mubr.msk.f32.gmra.mrb[74].mxu0 %vm4114_vm3, %v19720_v25 }
 0x3f9   : > { %v4456_v42 = vadd.f32 %v19657_v10, %v4347_v40  ;;  %v19770_v40 = vld [vmem:[%s22091_s5 + $0x18] sm:$0xff] }
 0x3fa   : > { %4545 = vst.msk [vmem:[#allocation3 + $0xc9] sm:$0xff] %vm4114_vm3, %v4457_v38  ;;  %v19730_v39 = vld [vmem:[#allocation3 + $0x90] sm:$0xff]  ;;  %v19732_v30 = vld [vmem:[#allocation3 + $0x98] sm:$0xff] }
 0x3fb   : > { %4544 = vst.msk [vmem:[#allocation3 + $0xc1] sm:$0xff] %vm4114_vm3, %v4456_v42  ;;  %v15951_v36 = vpop.f32.mrb[48].mxu0  ;;  %15993 = vmatprep.mubr.msk.f32.mxu0 %vm4114_vm3, %v19730_v39 }
 0x3fc   : > { %v4459_v48 = vadd.f32 %v15951_v36, %v19657_v10  ;;  %v4357_v50 = vpop.f32.mrb[49].mxu0  ;;  %15994 = vmatmul.mubr.msk.f32.gmra.mrb[76].mxu0 %vm4114_vm3, %v19732_v30 }
 0x3fd   : > { %v4458_v54 = vadd.f32 %v19657_v10, %v4357_v50 }
 0x3fe   : > { %4547 = vst.msk [vmem:[#allocation3 + $0xe1] sm:$0xff] %vm4114_vm3, %v4459_v48  ;;  %v19742_v55 = vld [vmem:[#allocation3 + $0xa8] sm:$0xff]  ;;  %v19744_v61 = vld [vmem:[#allocation3 + $0xb0] sm:$0xff] }
 0x3ff   : > { %4546 = vst.msk [vmem:[#allocation3 + $0xd9] sm:$0xff] %vm4114_vm3, %v4458_v54  ;;  %v15954_v62 = vpop.f32.mrb[50].mxu0  ;;  %15996 = vmatprep.mubr.msk.f32.mxu0 %vm4114_vm3, %v19742_v55 }
 0x400   : > { %v4461_v0 = vadd.f32 %v15954_v62, %v19657_v10  ;;  %v4367_v11 = vpop.f32.mrb[51].mxu0  ;;  %15997 = vmatmul.mubr.msk.f32.gmra.mrb[78].mxu0 %vm4114_vm3, %v19744_v61 }
 0x401   : > { %v4460_v16 = vadd.f32 %v19657_v10, %v4367_v11  ;;  %v19765_v38 = vld [vmem:[#allocation3 + $0xc9] sm:$0xff] }
 0x402   : > { %4549 = vst.msk [vmem:[#allocation3 + $0xf9] sm:$0xff] %vm4114_vm3, %v4461_v0  ;;  %v19754_v17 = vld [vmem:[#allocation3 + $0xc0] sm:$0xff]  ;;  %v19758_v23 = vld [vmem:[#allocation3 + $0xc8] sm:$0xff]  ;;  %22471 = vst [vmem:[#allocation34_spill] sm:$0xff] %v19765_v38 }
 0x403   : > { %v19756_v19 = vld [vmem:[#allocation3 + $0xc1] sm:$0xff]  ;;  %4548 = vst.msk [vmem:[#allocation3 + $0xf1] sm:$0xff] %vm4114_vm3, %v4460_v16  ;;  %v15957_v32 = vpop.f32.mrb[52].mxu0  ;;  %15999 = vmatprep.mubr.msk.f32.mxu0 %vm4114_vm3, %v19754_v17 }
 0x404   : > { %22470 = vst [vmem:[#allocation31_spill] sm:$0xff] %v19756_v19  ;;  %16049 = vmatprep.mubr.msk.f32.mxu1 %vm4114_vm3, %v19756_v19  ;;  %v4463_v42 = vadd.f32 %v15957_v32, %v19657_v10  ;;  %v4377_v36 = vpop.f32.mrb[53].mxu0  ;;  %16000 = vmatmul.mubr.msk.f32.gmra.mrb[80].mxu0 %vm4114_vm3, %v19758_v23 }
 0x405   : > { %16050 = vmatmul.mubr.msk.f32.vlgmr.msra.gmra.mrb[0].mxu1 %vm4114_vm3, %v19765_v38  ;;  %v4462_v48 = vadd.f32 %v19657_v10, %v4377_v36 }
 0x406   : > { %16074 = vmatpush3.msra.mxu1 %v19645_v14  ;;  %4551 = vst.msk [vmem:[#allocation3 + $0x111] sm:$0xff] %vm4114_vm3, %v4463_v42  ;;  %v19780_v50 = vld [vmem:[#allocation3 + $0xd8] sm:$0xff]  ;;  %v19784_v62 = vld [vmem:[#allocation3 + $0xe0] sm:$0xff] }
 0x407   : > { %v19782_v54 = vld [vmem:[#allocation3 + $0xd9] sm:$0xff]  ;;  %16123 = vmatprep.subr.mxu1 %v19770_v40  ;;  %4550 = vst.msk [vmem:[#allocation3 + $0x109] sm:$0xff] %vm4114_vm3, %v4462_v48  ;;  %v15960_v0 = vpop.f32.mrb[54].mxu0  ;;  %16002 = vmatprep.mubr.msk.f32.mxu0 %vm4114_vm3, %v19780_v50  ;;  %v19792_v14 = vld [vmem:[#allocation3 + $0xe1] sm:$0xff] }
 0x408   : > { %22472 = vst [vmem:[#allocation36_spill] sm:$0xff] %v19782_v54  ;;  %16052 = vmatprep.mubr.msk.f32.mxu1 %vm4114_vm3, %v19782_v54  ;;  %22473 = vst [vmem:[#allocation38_spill] sm:$0xff] %v19792_v14  ;;  %v4465_v11 = vadd.f32 %v15960_v0, %v19657_v10  ;;  %v4387_v16 = vpop.f32.mrb[55].mxu0  ;;  %16003 = vmatmul.mubr.msk.f32.gmra.mrb[82].mxu0 %vm4114_vm3, %v19784_v62 }
 0x409   : > { %16053 = vmatmul.mubr.msk.f32.gmra.mrb[2].mxu1 %vm4114_vm3, %v19792_v14  ;;  %v4464_v32 = vadd.f32 %v19657_v10, %v4387_v16  ;;  %v19812_v14 = vld [vmem:[#allocation3 + $0xf9] sm:$0xff] }
 0x40a   : > { %4553 = vst.msk [vmem:[#allocation3 + $0x129] sm:$0xff] %vm4114_vm3, %v4465_v11  ;;  %v19801_v42 = vld [vmem:[#allocation3 + $0xf0] sm:$0xff]  ;;  %v19805_v48 = vld [vmem:[#allocation3 + $0xf8] sm:$0xff]  ;;  %22475 = vst [vmem:[#allocation42_spill] sm:$0xff] %v19812_v14 }
 0x40b   : > { %v19803_v36 = vld [vmem:[#allocation3 + $0xf1] sm:$0xff]  ;;  %4552 = vst.msk [vmem:[#allocation3 + $0x121] sm:$0xff] %vm4114_vm3, %v4464_v32  ;;  %v15963_v0 = vpop.f32.mrb[56].mxu0  ;;  %16005 = vmatprep.mubr.msk.f32.mxu0 %vm4114_vm3, %v19801_v42 }
 0x40c   : > { %22474 = vst [vmem:[#allocation41_spill] sm:$0xff] %v19803_v36  ;;  %16055 = vmatprep.mubr.msk.f32.mxu1 %vm4114_vm3, %v19803_v36  ;;  %v4467_v16 = vadd.f32 %v15963_v0, %v19657_v10  ;;  %v4397_v11 = vpop.f32.mrb[57].mxu0  ;;  %16006 = vmatmul.mubr.msk.f32.gmra.mrb[84].mxu0 %vm4114_vm3, %v19805_v48 }
 0x40d   : > { %16056 = vmatmul.mubr.msk.f32.gmra.mrb[4].mxu1 %vm4114_vm3, %v19812_v14  ;;  %v4466_v32 = vadd.f32 %v19657_v10, %v4397_v11  ;;  %v19832_v14 = vld [vmem:[#allocation3 + $0x111] sm:$0xff] }
 0x40e   : > { %4555 = vst.msk [vmem:[#allocation3 + $0x141] sm:$0xff] %vm4114_vm3, %v4467_v16  ;;  %v19821_v54 = vld [vmem:[#allocation3 + $0x108] sm:$0xff]  ;;  %v19825_v36 = vld [vmem:[#allocation3 + $0x110] sm:$0xff]  ;;  %22479 = vst [vmem:[#allocation46_spill] sm:$0xff] %v19832_v14 }
 0x40f   : > { %22476 = vst [vmem:[#allocation43_spill] sm:$0xff] %v19821_v54  ;;  %v19823_v38 = vld [vmem:[#allocation3 + $0x109] sm:$0xff]  ;;  %22478 = vst [vmem:[#allocation45_spill] sm:$0xff] %v19825_v36  ;;  %v15966_v0 = vpop.f32.mrb[58].mxu0  ;;  %16008 = vmatprep.mubr.msk.f32.mxu0 %vm4114_vm3, %v19821_v54 }
 0x410   : > { %22477 = vst [vmem:[#allocation44_spill] sm:$0xff] %v19823_v38  ;;  %4554 = vst.msk [vmem:[#allocation3 + $0x139] sm:$0xff] %vm4114_vm3, %v4466_v32  ;;  %16058 = vmatprep.mubr.msk.f32.mxu1 %vm4114_vm3, %v19823_v38  ;;  %v4469_v11 = vadd.f32 %v15966_v0, %v19657_v10  ;;  %v4407_v16 = vpop.f32.mrb[59].mxu0  ;;  %16009 = vmatmul.mubr.msk.f32.gmra.mrb[86].mxu0 %vm4114_vm3, %v19825_v36 }
 0x411   : > { %16059 = vmatmul.mubr.msk.f32.gmra.mrb[6].mxu1 %vm4114_vm3, %v19832_v14  ;;  %v4468_v32 = vadd.f32 %v19657_v10, %v4407_v16  ;;  %v19852_v14 = vld [vmem:[#allocation3 + $0x129] sm:$0xff] }
 0x412   : > { %4557 = vst.msk [vmem:[#allocation3 + $0x159] sm:$0xff] %vm4114_vm3, %v4469_v11  ;;  %v19841_v19 = vld [vmem:[#allocation3 + $0x120] sm:$0xff]  ;;  %v19845_v38 = vld [vmem:[#allocation3 + $0x128] sm:$0xff]  ;;  %22483 = vst [vmem:[#allocation50_spill] sm:$0xff] %v19852_v14 }
 0x413   : > { %22480 = vst [vmem:[#allocation47_spill] sm:$0xff] %v19841_v19  ;;  %v19843_v54 = vld [vmem:[#allocation3 + $0x121] sm:$0xff]  ;;  %22482 = vst [vmem:[#allocation49_spill] sm:$0xff] %v19845_v38  ;;  %v15969_v0 = vpop.f32.mrb[60].mxu0  ;;  %16011 = vmatprep.mubr.msk.f32.mxu0 %vm4114_vm3, %v19841_v19 }
 0x414   : > { %22481 = vst [vmem:[#allocation48_spill] sm:$0xff] %v19843_v54  ;;  %4556 = vst.msk [vmem:[#allocation3 + $0x151] sm:$0xff] %vm4114_vm3, %v4468_v32  ;;  %16061 = vmatprep.mubr.msk.f32.mxu1 %vm4114_vm3, %v19843_v54  ;;  %v4471_v16 = vadd.f32 %v15969_v0, %v19657_v10  ;;  %v4417_v11 = vpop.f32.mrb[61].mxu0  ;;  %16012 = vmatmul.mubr.msk.f32.gmra.mrb[88].mxu0 %vm4114_vm3, %v19845_v38 }
 0x415   : > { %16062 = vmatmul.mubr.msk.f32.gmra.mrb[8].mxu1 %vm4114_vm3, %v19852_v14  ;;  %v4470_v32 = vadd.f32 %v19657_v10, %v4417_v11  ;;  %v19872_v14 = vld [vmem:[#allocation3 + $0x141] sm:$0xff] }
 0x416   : > { %4559 = vst.msk [vmem:[#allocation3 + $0x171] sm:$0xff] %vm4114_vm3, %v4471_v16  ;;  %22486 = vst [vmem:[#allocation53_spill] sm:$0xff] %v19872_v14 }
 0x417   : > { %v19861_v36 = vld [vmem:[#allocation3 + $0x138] sm:$0xff]  ;;  %v19865_v54 = vld [vmem:[#allocation3 + $0x140] sm:$0xff]  ;;  %4558 = vst.msk [vmem:[#allocation3 + $0x169] sm:$0xff] %vm4114_vm3, %v4470_v32  ;;  %v15972_v0 = vpop.f32.mrb[62].mxu0 }
 0x418   : > { %22484 = vst [vmem:[#allocation51_spill] sm:$0xff] %v19861_v36  ;;  %v19863_v19 = vld [vmem:[#allocation3 + $0x139] sm:$0xff]  ;;  %16014 = vmatprep.mubr.msk.f32.mxu0 %vm4114_vm3, %v19861_v36  ;;  %v4473_v11 = vadd.f32 %v15972_v0, %v19657_v10  ;;  %v4427_v16 = vpop.f32.mrb[63].mxu0 }
 0x419   : > { %22485 = vst [vmem:[#allocation52_spill] sm:$0xff] %v19863_v19  ;;  %16064 = vmatprep.mubr.msk.f32.mxu1 %vm4114_vm3, %v19863_v19  ;;  %16015 = vmatmul.mubr.msk.f32.gmra.mrb[90].mxu0 %vm4114_vm3, %v19865_v54  ;;  %v4472_v32 = vadd.f32 %v19657_v10, %v4427_v16  ;;  %v19892_v0 = vld [vmem:[#allocation3 + $0x159] sm:$0xff]  ;;  %v4955_v10 = vld [vmem:[#allocation3 + $0x1] sm:$0xff] }
 0x41a   : > { %16065 = vmatmul.mubr.msk.f32.gmra.mrb[10].mxu1 %vm4114_vm3, %v19872_v14  ;;  %4561 = vst.msk [vmem:[#allocation3 + $0x189] sm:$0xff] %vm4114_vm3, %v4473_v11  ;;  %22489 = vst [vmem:[#allocation56_spill] sm:$0xff] %v19892_v0  ;;  %v5342_v11 = vld [vmem:[#allocation3 + $0x2] sm:$0xff] }
 0x41b   : > { %v19881_v38 = vld [vmem:[#allocation3 + $0x150] sm:$0xff]  ;;  %v19885_v19 = vld [vmem:[#allocation3 + $0x158] sm:$0xff]  ;;  %4560 = vst.msk [vmem:[#allocation3 + $0x181] sm:$0xff] %vm4114_vm3, %v4472_v32 }
 0x41c   : > { %v19883_v36 = vld [vmem:[#allocation3 + $0x151] sm:$0xff]  ;;  %22488 = vst [vmem:[#allocation55_spill] sm:$0xff] %v19885_v19  ;;  %16017 = vmatprep.mubr.msk.f32.mxu0 %vm4114_vm3, %v19881_v38 }
 0x41d   : > { %22487 = vst [vmem:[#allocation54_spill] sm:$0xff] %v19883_v36  ;;  %16067 = vmatprep.mubr.msk.f32.mxu1 %vm4114_vm3, %v19883_v36  ;;  %16018 = vmatmul.mubr.msk.f32.gmra.mrb[92].mxu0 %vm4114_vm3, %v19885_v19  ;;  %v19908_v36 = vld [vmem:[#allocation3 + $0x171] sm:$0xff] }
 0x41e   : > { %16068 = vmatmul.mubr.msk.f32.gmra.mrb[12].mxu1 %vm4114_vm3, %v19892_v0  ;;  %v19898_v16 = vld [vmem:[#allocation3 + $0x168] sm:$0xff]  ;;  %v19902_v32 = vld [vmem:[#allocation3 + $0x170] sm:$0xff]  ;;  %22492 = vst [vmem:[#allocation59_spill] sm:$0xff] %v19908_v36 }
 0x41f   : > { %22490 = vst [vmem:[#allocation57_spill] sm:$0xff] %v19898_v16  ;;  %v19900_v14 = vld [vmem:[#allocation3 + $0x169] sm:$0xff]  ;;  %16020 = vmatprep.mubr.msk.f32.mxu0 %vm4114_vm3, %v19898_v16  ;;  %v19918_v16 = vld [vmem:[#allocation3 + $0x19] sm:$0xff] }
 0x420   : > { %22491 = vst [vmem:[#allocation58_spill] sm:$0xff] %v19900_v14  ;;  %16070 = vmatprep.mubr.msk.f32.mxu1 %vm4114_vm3, %v19900_v14  ;;  %v4956_v0 = vld [vmem:[#allocation3 + $0x9] sm:$0xff] }
 0x421   : > { %16021 = vmatmul.mubr.msk.f32.gmra.mrb[94].mxu0 %vm4114_vm3, %v19902_v32  ;;  %v5343_v19 = vld [vmem:[#allocation3 + $0xa] sm:$0xff] }
 0x422   : > { %16071 = vmatmul.mubr.msk.f32.gmra.mrb[14].mxu1 %vm4114_vm3, %v19908_v36  ;;  %16025 = vmatprep.mubr.msk.f32.mxu0 %vm4114_vm3, %v4955_v10  ;;  %v19923_v14 = vld [vmem:[%s22091_s5 + $0x20] sm:$0xff]  ;;  %v19928_v10 = vld [vmem:[#allocation3 + $0x1a] sm:$0xff] }
 0x423   : > { %16075 = vmatprep.mubr.msk.f32.mxu1 %vm4114_vm3, %v5342_v11  ;;  %22493 = vst [vmem:[#allocation60_spill] sm:$0xff] %v19928_v10  ;;  %v19944_v11 = vld [vmem:[#allocation3 + $0x32] sm:$0xff]  ;;  %v19960_v36 = vld [vmem:[#allocation3 + $0x4a] sm:$0xff] }
 0x424   : > { %22496 = vst [vmem:[#allocation63_spill] sm:$0xff] %v19944_v11  ;;  %22500 = vst [vmem:[#allocation67_spill] sm:$0xff] %v19960_v36 }
 0x425   : > { %16026 = vmatmul.mubr.msk.f32.vlgmr.msra.gmra.mrb[64].mxu0 %vm4114_vm3, %v4956_v0  ;;  %v19935_v0 = vld [vmem:[#allocation3 + $0x22] sm:$0xff] }
 0x426   : > { %16076 = vmatmul.mubr.msk.f32.vlgmr.msra.gmra.mrb[16].mxu1 %vm4114_vm3, %v5343_v19  ;;  %16028 = vmatprep.mubr.msk.f32.mxu0 %vm4114_vm3, %v19918_v16  ;;  %v19933_v19 = vld [vmem:[#allocation3 + $0x21] sm:$0xff]  ;;  %22494 = vst [vmem:[#allocation61_spill] sm:$0xff] %v19935_v0 }
 0x427   : > { %16124 = vmatpush3.msra.mxu1 %v19770_v40  ;;  %16078 = vmatprep.mubr.msk.f32.mxu1 %vm4114_vm3, %v19928_v10  ;;  %v19942_v40 = vld [vmem:[#allocation3 + $0x31] sm:$0xff]  ;;  %v19952_v10 = vld [vmem:[#allocation3 + $0x3a] sm:$0xff] }
 0x428   : > { %16424 = vmatpush3.msra.mxu0 %v19651_v8  ;;  %16173 = vmatprep.subr.mxu1 %v19923_v14  ;;  %22495 = vst [vmem:[#allocation62_spill] sm:$0xff] %v19942_v40  ;;  %v19950_v8 = vld [vmem:[#allocation3 + $0x39] sm:$0xff]  ;;  %22498 = vst [vmem:[#allocation65_spill] sm:$0xff] %v19952_v10 }
 0x429   : > { %16029 = vmatmul.mubr.msk.f32.gmra.mrb[66].mxu0 %vm4114_vm3, %v19933_v19  ;;  %22497 = vst [vmem:[#allocation64_spill] sm:$0xff] %v19950_v8 }
 0x42a   : > { %16079 = vmatmul.mubr.msk.f32.gmra.mrb[18].mxu1 %vm4114_vm3, %v19935_v0  ;;  %16031 = vmatprep.mubr.msk.f32.mxu0 %vm4114_vm3, %v19942_v40  ;;  %v19958_v0 = vld [vmem:[#allocation3 + $0x49] sm:$0xff]  ;;  %v19968_v40 = vld [vmem:[#allocation3 + $0x52] sm:$0xff] }
 0x42b   : > { %16081 = vmatprep.mubr.msk.f32.mxu1 %vm4114_vm3, %v19944_v11  ;;  %22499 = vst [vmem:[#allocation66_spill] sm:$0xff] %v19958_v0  ;;  %v19966_v11 = vld [vmem:[#allocation3 + $0x51] sm:$0xff]  ;;  %22502 = vst [vmem:[#allocation69_spill] sm:$0xff] %v19968_v40 }
 0x42c   : > { %22501 = vst [vmem:[#allocation68_spill] sm:$0xff] %v19966_v11 }
 0x42d   : > { %16032 = vmatmul.mubr.msk.f32.gmra.mrb[68].mxu0 %vm4114_vm3, %v19950_v8  ;;  %v19976_v8 = vld [vmem:[#allocation3 + $0x62] sm:$0xff] }
 0x42e   : > { %16082 = vmatmul.mubr.msk.f32.gmra.mrb[20].mxu1 %vm4114_vm3, %v19952_v10  ;;  %16034 = vmatprep.mubr.msk.f32.mxu0 %vm4114_vm3, %v19958_v0  ;;  %v19974_v10 = vld [vmem:[#allocation3 + $0x61] sm:$0xff]  ;;  %22504 = vst [vmem:[#allocation71_spill] sm:$0xff] %v19976_v8  ;;  %v19984_v0 = vld [vmem:[#allocation3 + $0x6a] sm:$0xff] }
 0x42f   : > { %16084 = vmatprep.mubr.msk.f32.mxu1 %vm4114_vm3, %v19960_v36  ;;  %22503 = vst [vmem:[#allocation70_spill] sm:$0xff] %v19974_v10  ;;  %v19982_v36 = vld [vmem:[#allocation3 + $0x69] sm:$0xff]  ;;  %22506 = vst [vmem:[#allocation73_spill] sm:$0xff] %v19984_v0 }
 0x430   : > { %22505 = vst [vmem:[#allocation72_spill] sm:$0xff] %v19982_v36 }
 0x431   : > { %16035 = vmatmul.mubr.msk.f32.gmra.mrb[70].mxu0 %vm4114_vm3, %v19966_v11  ;;  %v19992_v11 = vld [vmem:[#allocation3 + $0x7a] sm:$0xff] }
 0x432   : > { %16085 = vmatmul.mubr.msk.f32.gmra.mrb[22].mxu1 %vm4114_vm3, %v19968_v40  ;;  %16037 = vmatprep.mubr.msk.f32.mxu0 %vm4114_vm3, %v19974_v10  ;;  %v19990_v40 = vld [vmem:[#allocation3 + $0x79] sm:$0xff]  ;;  %22508 = vst [vmem:[#allocation75_spill] sm:$0xff] %v19992_v11  ;;  %v20000_v10 = vld [vmem:[#allocation3 + $0x82] sm:$0xff] }
 0x433   : > { %16087 = vmatprep.mubr.msk.f32.mxu1 %vm4114_vm3, %v19976_v8  ;;  %22507 = vst [vmem:[#allocation74_spill] sm:$0xff] %v19990_v40  ;;  %v19998_v8 = vld [vmem:[#allocation3 + $0x81] sm:$0xff]  ;;  %22510 = vst [vmem:[#allocation77_spill] sm:$0xff] %v20000_v10 }
 0x434   : > { %22509 = vst [vmem:[#allocation76_spill] sm:$0xff] %v19998_v8 }
 0x435   : > { %16038 = vmatmul.mubr.msk.f32.gmra.mrb[72].mxu0 %vm4114_vm3, %v19982_v36  ;;  %v20008_v36 = vld [vmem:[#allocation3 + $0x92] sm:$0xff] }
 0x436   : > { %16088 = vmatmul.mubr.msk.f32.gmra.mrb[24].mxu1 %vm4114_vm3, %v19984_v0  ;;  %16040 = vmatprep.mubr.msk.f32.mxu0 %vm4114_vm3, %v19990_v40  ;;  %v20006_v0 = vld [vmem:[#allocation3 + $0x91] sm:$0xff]  ;;  %22512 = vst [vmem:[#allocation79_spill] sm:$0xff] %v20008_v36  ;;  %v20016_v40 = vld [vmem:[#allocation3 + $0x9a] sm:$0xff] }
 0x437   : > { %16090 = vmatprep.mubr.msk.f32.mxu1 %vm4114_vm3, %v19992_v11  ;;  %22511 = vst [vmem:[#allocation78_spill] sm:$0xff] %v20006_v0  ;;  %v20014_v11 = vld [vmem:[#allocation3 + $0x99] sm:$0xff]  ;;  %22513 = vst [vmem:[#allocation80_spill] sm:$0xff] %v20016_v40 }
 0x439   : > { %16041 = vmatmul.mubr.msk.f32.gmra.mrb[74].mxu0 %vm4114_vm3, %v19998_v8  ;;  %v20024_v8 = vld [vmem:[#allocation3 + $0xaa] sm:$0xff] }
 0x43a   : > { %16091 = vmatmul.mubr.msk.f32.gmra.mrb[26].mxu1 %vm4114_vm3, %v20000_v10  ;;  %16043 = vmatprep.mubr.msk.f32.mxu0 %vm4114_vm3, %v20006_v0  ;;  %v20022_v10 = vld [vmem:[#allocation3 + $0xa9] sm:$0xff]  ;;  %22515 = vst [vmem:[#allocation82_spill] sm:$0xff] %v20024_v8  ;;  %v20032_v0 = vld [vmem:[#allocation3 + $0xb2] sm:$0xff] }
 0x43b   : > { %16093 = vmatprep.mubr.msk.f32.mxu1 %vm4114_vm3, %v20008_v36  ;;  %22514 = vst [vmem:[#allocation81_spill] sm:$0xff] %v20022_v10  ;;  %v20030_v36 = vld [vmem:[#allocation3 + $0xb1] sm:$0xff] }
 0x43d   : > { %16044 = vmatmul.mubr.msk.f32.gmra.mrb[76].mxu0 %vm4114_vm3, %v20014_v11 }
 0x43e   : > { %16094 = vmatmul.mubr.msk.f32.gmra.mrb[28].mxu1 %vm4114_vm3, %v20016_v40  ;;  %16046 = vmatprep.mubr.msk.f32.mxu0 %vm4114_vm3, %v20022_v10  ;;  %v20038_v40 = vld [vmem:[#allocation3 + $0xc2] sm:$0xff]  ;;  %v20044_v10 = vld [vmem:[#allocation3 + $0xca] sm:$0xff] }
 0x43f   : > { %16096 = vmatprep.mubr.msk.f32.mxu1 %vm4114_vm3, %v20024_v8  ;;  %22516 = vst [vmem:[#allocation83_spill] sm:$0xff] %v20038_v40  ;;  %v20050_v8 = vld [vmem:[#allocation3 + $0xda] sm:$0xff] }
 0x441   : > { %16047 = vmatmul.mubr.msk.f32.gmra.mrb[78].mxu0 %vm4114_vm3, %v20030_v36 }
 0x442   : > { %16097 = vmatmul.mubr.msk.f32.gmra.mrb[30].mxu1 %vm4114_vm3, %v20032_v0  ;;  %16425 = vmatprep.mubr.msk.f32.mxu0 %vm4114_vm3, %v19404_v20  ;;  %v20062_v20 = vld [vmem:[#allocation3 + $0xf2] sm:$0xff] }
 0x443   : > { %16099 = vmatprep.mubr.msk.f32.mxu1 %vm4114_vm3, %v20038_v40  ;;  %v20056_v40 = vld [vmem:[#allocation3 + $0xe2] sm:$0xff] }
 0x445   : > { %16426 = vmatmul.mubr.msk.f32.vlgmr.msra.gmra.mrb[96].mxu0 %vm4114_vm3, %v19406_v22  ;;  %v20068_v22 = vld [vmem:[#allocation3 + $0xfa] sm:$0xff] }
 0x446   : > { %16100 = vmatmul.mubr.msk.f32.gmra.mrb[0].mxu1 %vm4114_vm3, %v20044_v10  ;;  %16428 = vmatprep.mubr.msk.f32.mxu0 %vm4114_vm3, %v19414_v26  ;;  %v20074_v26 = vld [vmem:[#allocation3 + $0x10a] sm:$0xff] }
 0x447   : > { %16102 = vmatprep.mubr.msk.f32.mxu1 %vm4114_vm3, %v20050_v8 }
 0x449   : > { %16429 = vmatmul.mubr.msk.f32.gmra.mrb[98].mxu0 %vm4114_vm3, %v19416_v31  ;;  %v20080_v31 = vld [vmem:[#allocation3 + $0x112] sm:$0xff] }
 0x44a   : > { %16103 = vmatmul.mubr.msk.f32.gmra.mrb[2].mxu1 %vm4114_vm3, %v20056_v40  ;;  %16431 = vmatprep.mubr.msk.f32.mxu0 %vm4114_vm3, %v19424_v3  ;;  %v20086_v3 = vld [vmem:[#allocation3 + $0x122] sm:$0xff] }
 0x44b   : > { %16105 = vmatprep.mubr.msk.f32.mxu1 %vm4114_vm3, %v20062_v20 }
 0x44d   : > { %16432 = vmatmul.mubr.msk.f32.gmra.mrb[100].mxu0 %vm4114_vm3, %v19426_v41  ;;  %v20092_v41 = vld [vmem:[#allocation3 + $0x12a] sm:$0xff] }
 0x44e   : > { %16106 = vmatmul.mubr.msk.f32.gmra.mrb[4].mxu1 %vm4114_vm3, %v20068_v22  ;;  %16434 = vmatprep.mubr.msk.f32.mxu0 %vm4114_vm3, %v19434_v7  ;;  %v20098_v7 = vld [vmem:[#allocation3 + $0x13a] sm:$0xff] }
 0x44f   : > { %16108 = vmatprep.mubr.msk.f32.mxu1 %vm4114_vm3, %v20074_v26 }
 0x451   : > { %16435 = vmatmul.mubr.msk.f32.gmra.mrb[102].mxu0 %vm4114_vm3, %v19436_v5  ;;  %v20104_v5 = vld [vmem:[#allocation3 + $0x142] sm:$0xff] }
 0x452   : > { %16109 = vmatmul.mubr.msk.f32.gmra.mrb[6].mxu1 %vm4114_vm3, %v20080_v31  ;;  %16437 = vmatprep.mubr.msk.f32.mxu0 %vm4114_vm3, %v19444_v33  ;;  %v20110_v33 = vld [vmem:[#allocation3 + $0x152] sm:$0xff] }
 0x453   : > { %16111 = vmatprep.mubr.msk.f32.mxu1 %vm4114_vm3, %v20086_v3 }
 0x455   : > { %16438 = vmatmul.mubr.msk.f32.gmra.mrb[104].mxu0 %vm4114_vm3, %v19446_v35  ;;  %v20116_v35 = vld [vmem:[#allocation3 + $0x15a] sm:$0xff] }
 0x456   : > { %16112 = vmatmul.mubr.msk.f32.gmra.mrb[8].mxu1 %vm4114_vm3, %v20092_v41  ;;  %16440 = vmatprep.mubr.msk.f32.mxu0 %vm4114_vm3, %v19454_v45  ;;  %v20122_v45 = vld [vmem:[#allocation3 + $0x16a] sm:$0xff] }
 0x457   : > { %16114 = vmatprep.mubr.msk.f32.mxu1 %vm4114_vm3, %v20098_v7 }
 0x459   : > { %16441 = vmatmul.mubr.msk.f32.gmra.mrb[106].mxu0 %vm4114_vm3, %v19456_v47  ;;  %v20128_v47 = vld [vmem:[#allocation3 + $0x172] sm:$0xff] }
 0x45a   : > { %16115 = vmatmul.mubr.msk.f32.gmra.mrb[10].mxu1 %vm4114_vm3, %v20104_v5  ;;  %16443 = vmatprep.mubr.msk.f32.mxu0 %vm4114_vm3, %v19464_v51  ;;  %22517 = vst [vmem:[#allocation84_spill] sm:$0xff] %v20128_v47 }
 0x45b   : > { %16117 = vmatprep.mubr.msk.f32.mxu1 %vm4114_vm3, %v20110_v33 }
 0x45d   : > { %16444 = vmatmul.mubr.msk.f32.gmra.mrb[108].mxu0 %vm4114_vm3, %v19466_v53  ;;  %v13789_v53 = vld [vmem:[%s22091_s5 + $0x28] sm:$0xff] }
 0x45e   : > { %16118 = vmatmul.mubr.msk.f32.gmra.mrb[12].mxu1 %vm4114_vm3, %v20116_v35  ;;  %16446 = vmatprep.mubr.msk.f32.mxu0 %vm4114_vm3, %v19474_v57 }
 0x45f   : > { %16120 = vmatprep.mubr.msk.f32.mxu1 %vm4114_vm3, %v20122_v45 }
 0x461   : > { %16447 = vmatmul.mubr.msk.f32.gmra.mrb[110].mxu0 %vm4114_vm3, %v19476_v59 }
 0x462   : > { %16121 = vmatmul.mubr.msk.f32.gmra.mrb[14].mxu1 %vm4114_vm3, %v20128_v47  ;;  %16449 = vmatprep.mubr.msk.f32.mxu0 %vm4114_vm3, %v19484_v63  ;;  %v22565_v63 = vld [vmem:[#allocation67_spill] sm:$0xff] }
 0x463   : > { %16125 = vmatprep.mubr.msk.f32.mxu1 %vm4114_vm3, %v19670_v6  ;;  %v22518_v6 = vld [vmem:[#allocation43_spill] sm:$0xff] }
 0x465   : > { %16450 = vmatmul.mubr.msk.f32.gmra.mrb[112].mxu0 %vm4114_vm3, %v19486_v2  ;;  %v22564_v2 = vld [vmem:[#allocation65_spill] sm:$0xff] }
 0x466   : > { %16126 = vmatmul.mubr.msk.f32.vlgmr.msra.gmra.mrb[16].mxu1 %vm4114_vm3, %v19672_v29  ;;  %16452 = vmatprep.mubr.msk.f32.mxu0 %vm4114_vm3, %v19494_v9  ;;  %v22519_v29 = vld [vmem:[#allocation45_spill] sm:$0xff] }
 0x467   : > { %16174 = vmatpush3.msra.mxu1 %v19923_v14  ;;  %16128 = vmatprep.mubr.msk.f32.mxu1 %vm4114_vm3, %v19682_v44  ;;  %v22520_v44 = vld [vmem:[#allocation47_spill] sm:$0xff]  ;;  %v22533_v14 = vld [vmem:[#allocation78_spill] sm:$0xff] }
 0x468   : > { %16223 = vmatprep.subr.mxu1 %v13789_v53 }
 0x469   : > { %16453 = vmatmul.mubr.msk.f32.gmra.mrb[114].mxu0 %vm4114_vm3, %v19496_v1  ;;  %v22561_v1 = vld [vmem:[#allocation63_spill] sm:$0xff] }
 0x46a   : > { %16129 = vmatmul.mubr.msk.f32.gmra.mrb[18].mxu1 %vm4114_vm3, %v19684_v46  ;;  %16455 = vmatprep.mubr.msk.f32.mxu0 %vm4114_vm3, %v19504_v18  ;;  %v22521_v46 = vld [vmem:[#allocation49_spill] sm:$0xff] }
 0x46b   : > { %16131 = vmatprep.mubr.msk.f32.mxu1 %vm4114_vm3, %v19694_v56  ;;  %v22522_v56 = vld [vmem:[#allocation51_spill] sm:$0xff]  ;;  %v22560_v18 = vld [vmem:[#allocation61_spill] sm:$0xff] }
 0x46d   : > { %16456 = vmatmul.mubr.msk.f32.gmra.mrb[116].mxu0 %vm4114_vm3, %v19506_v21 }
 0x46e   : > { %16132 = vmatmul.mubr.msk.f32.gmra.mrb[20].mxu1 %vm4114_vm3, %v19696_v15  ;;  %16458 = vmatprep.mubr.msk.f32.mxu0 %vm4114_vm3, %v19514_v27  ;;  %v22523_v15 = vld [vmem:[#allocation55_spill] sm:$0xff] }
 0x46f   : > { %16134 = vmatprep.mubr.msk.f32.mxu1 %vm4114_vm3, %v19706_v12  ;;  %v22524_v12 = vld [vmem:[#allocation57_spill] sm:$0xff] }
 0x471   : > { %16459 = vmatmul.mubr.msk.f32.gmra.mrb[118].mxu0 %vm4114_vm3, %v19516_v37  ;;  %v20315_v37 = vld [vmem:[#allocation3 + $0x189] sm:$0xff] }
 0x472   : > { %16135 = vmatmul.mubr.msk.f32.gmra.mrb[22].mxu1 %vm4114_vm3, %v19708_v13  ;;  %16461 = vmatprep.mubr.msk.f32.mxu0 %vm4114_vm3, %v19524_v28  ;;  %v20230_v13 = vld [vmem:[#allocation3 + $0x180] sm:$0xff] }
 0x473   : > { %16137 = vmatprep.mubr.msk.f32.mxu1 %vm4114_vm3, %v19718_v24  ;;  %v20234_v24 = vld [vmem:[#allocation3 + $0x188] sm:$0xff] }
 0x475   : > { %16462 = vmatmul.mubr.msk.f32.gmra.mrb[120].mxu0 %vm4114_vm3, %v19526_v4  ;;  %v22542_v4 = vld [vmem:[#allocation46_spill] sm:$0xff] }
 0x476   : > { %16138 = vmatmul.mubr.msk.f32.gmra.mrb[24].mxu1 %vm4114_vm3, %v19720_v25  ;;  %16464 = vmatprep.mubr.msk.f32.mxu0 %vm4114_vm3, %v19534_v34  ;;  %v13822_v25 = vld [vmem:[%s22091_s5 + $0x30] sm:$0xff]  ;;  %v22541_v34 = vld [vmem:[#allocation44_spill] sm:$0xff] }
 0x477   : > { %16140 = vmatprep.mubr.msk.f32.mxu1 %vm4114_vm3, %v19730_v39  ;;  %v22525_v39 = vld [vmem:[#allocation62_spill] sm:$0xff] }
 0x479   : > { %16465 = vmatmul.mubr.msk.f32.gmra.mrb[122].mxu0 %vm4114_vm3, %v19536_v43  ;;  %v22540_v43 = vld [vmem:[#allocation42_spill] sm:$0xff] }
 0x47a   : > { %16141 = vmatmul.mubr.msk.f32.gmra.mrb[26].mxu1 %vm4114_vm3, %v19732_v30  ;;  %16467 = vmatprep.mubr.msk.f32.mxu0 %vm4114_vm3, %v19544_v49  ;;  %v22526_v30 = vld [vmem:[#allocation64_spill] sm:$0xff]  ;;  %v22539_v49 = vld [vmem:[#allocation41_spill] sm:$0xff] }
 0x47b   : > { %16143 = vmatprep.mubr.msk.f32.mxu1 %vm4114_vm3, %v19742_v55  ;;  %v22527_v55 = vld [vmem:[#allocation66_spill] sm:$0xff] }
 0x47d   : > { %16468 = vmatmul.mubr.msk.f32.gmra.mrb[124].mxu0 %vm4114_vm3, %v19546_v52  ;;  %v22538_v52 = vld [vmem:[#allocation38_spill] sm:$0xff] }
 0x47e   : > { %16144 = vmatmul.mubr.msk.f32.gmra.mrb[28].mxu1 %vm4114_vm3, %v19744_v61  ;;  %16470 = vmatprep.mubr.msk.f32.mxu0 %vm4114_vm3, %v19554_v58  ;;  %v22528_v61 = vld [vmem:[#allocation68_spill] sm:$0xff] }
 0x47f   : > { %16146 = vmatprep.mubr.msk.f32.mxu1 %vm4114_vm3, %v19754_v17  ;;  %v22529_v17 = vld [vmem:[#allocation70_spill] sm:$0xff]  ;;  %v22537_v58 = vld [vmem:[#allocation36_spill] sm:$0xff] }
 0x481   : > { %16471 = vmatmul.mubr.msk.f32.gmra.mrb[126].mxu0 %vm4114_vm3, %v19556_v60  ;;  %v22536_v60 = vld [vmem:[#allocation34_spill] sm:$0xff] }
 0x482   : > { %16147 = vmatmul.mubr.msk.f32.gmra.mrb[30].mxu1 %vm4114_vm3, %v19758_v23  ;;  %v22530_v23 = vld [vmem:[#allocation72_spill] sm:$0xff] }
 0x483   : > { %16149 = vmatprep.mubr.msk.f32.mxu1 %vm4114_vm3, %v19780_v50  ;;  %v22532_v50 = vld [vmem:[#allocation76_spill] sm:$0xff] }
 0x486   : > { %16150 = vmatmul.mubr.msk.f32.gmra.mrb[0].mxu1 %vm4114_vm3, %v19784_v62 }
 0x487   : > { %16152 = vmatprep.mubr.msk.f32.mxu1 %vm4114_vm3, %v19801_v42 }
 0x48a   : > { %16153 = vmatmul.mubr.msk.f32.gmra.mrb[2].mxu1 %vm4114_vm3, %v19805_v48 }
 0x48b   : > { %16155 = vmatprep.mubr.msk.f32.mxu1 %vm4114_vm3, %v22518_v6 }
 0x48e   : > { %16156 = vmatmul.mubr.msk.f32.gmra.mrb[4].mxu1 %vm4114_vm3, %v22519_v29 }
 0x48f   : > { %16158 = vmatprep.mubr.msk.f32.mxu1 %vm4114_vm3, %v22520_v44 }
 0x492   : > { %16159 = vmatmul.mubr.msk.f32.gmra.mrb[6].mxu1 %vm4114_vm3, %v22521_v46 }
 0x493   : > { %16161 = vmatprep.mubr.msk.f32.mxu1 %vm4114_vm3, %v22522_v56 }
 0x496   : > { %16162 = vmatmul.mubr.msk.f32.gmra.mrb[8].mxu1 %vm4114_vm3, %v19865_v54 }
 0x497   : > { %16164 = vmatprep.mubr.msk.f32.mxu1 %vm4114_vm3, %v19881_v38 }
 0x49a   : > { %16165 = vmatmul.mubr.msk.f32.gmra.mrb[10].mxu1 %vm4114_vm3, %v22523_v15 }
 0x49b   : > { %16167 = vmatprep.mubr.msk.f32.mxu1 %vm4114_vm3, %v22524_v12 }
 0x49e   : > { %16168 = vmatmul.mubr.msk.f32.gmra.mrb[12].mxu1 %vm4114_vm3, %v19902_v32 }
 0x49f   : > { %16170 = vmatprep.mubr.msk.f32.mxu1 %vm4114_vm3, %v20230_v13 }
 0x4a2   : > { %16171 = vmatmul.mubr.msk.f32.gmra.mrb[14].mxu1 %vm4114_vm3, %v20234_v24 }
 0x4a3   : > { %16175 = vmatprep.mubr.msk.f32.mxu1 %vm4114_vm3, %v19918_v16  ;;  %v22534_v16 = vld [vmem:[#allocation81_spill] sm:$0xff] }
 0x4a6   : > { %16176 = vmatmul.mubr.msk.f32.vlgmr.msra.gmra.mrb[16].mxu1 %vm4114_vm3, %v19933_v19  ;;  %v22535_v19 = vld [vmem:[#allocation31_spill] sm:$0xff] }
 0x4a7   : > { %16224 = vmatpush3.msra.mxu1 %v13789_v53  ;;  %16178 = vmatprep.mubr.msk.f32.mxu1 %vm4114_vm3, %v22525_v39  ;;  %v22531_v53 = vld [vmem:[#allocation74_spill] sm:$0xff] }
 0x4a8   : > { %16273 = vmatprep.subr.mxu1 %v13822_v25 }
 0x4aa   : > { %16179 = vmatmul.mubr.msk.f32.gmra.mrb[18].mxu1 %vm4114_vm3, %v22526_v30 }
 0x4ab   : > { %16181 = vmatprep.mubr.msk.f32.mxu1 %vm4114_vm3, %v22527_v55 }
 0x4ae   : > { %16182 = vmatmul.mubr.msk.f32.gmra.mrb[20].mxu1 %vm4114_vm3, %v22528_v61 }
 0x4af   : > { %16184 = vmatprep.mubr.msk.f32.mxu1 %vm4114_vm3, %v22529_v17 }
 0x4b2   : > { %16185 = vmatmul.mubr.msk.f32.gmra.mrb[22].mxu1 %vm4114_vm3, %v22530_v23 }
 0x4b3   : > { %16187 = vmatprep.mubr.msk.f32.mxu1 %vm4114_vm3, %v22531_v53 }
 0x4b6   : > { %16188 = vmatmul.mubr.msk.f32.gmra.mrb[24].mxu1 %vm4114_vm3, %v22532_v50 }
 0x4b7   : > { %16190 = vmatprep.mubr.msk.f32.mxu1 %vm4114_vm3, %v22533_v14 }
 0x4ba   : > { %16191 = vmatmul.mubr.msk.f32.gmra.mrb[26].mxu1 %vm4114_vm3, %v20014_v11 }
 0x4bb   : > { %16193 = vmatprep.mubr.msk.f32.mxu1 %vm4114_vm3, %v22534_v16 }
 0x4be   : > { %16194 = vmatmul.mubr.msk.f32.gmra.mrb[28].mxu1 %vm4114_vm3, %v20030_v36 }
 0x4bf   : > { %16196 = vmatprep.mubr.msk.f32.mxu1 %vm4114_vm3, %v22535_v19  ;;  %v22543_v19 = vld [vmem:[#allocation48_spill] sm:$0xff] }
 0x4c2   : > { %16197 = vmatmul.mubr.msk.f32.gmra.mrb[30].mxu1 %vm4114_vm3, %v22536_v60  ;;  %v22544_v60 = vld [vmem:[#allocation50_spill] sm:$0xff] }
 0x4c3   : > { %16199 = vmatprep.mubr.msk.f32.mxu1 %vm4114_vm3, %v22537_v58  ;;  %v22545_v58 = vld [vmem:[#allocation52_spill] sm:$0xff] }
 0x4c6   : > { %16200 = vmatmul.mubr.msk.f32.gmra.mrb[0].mxu1 %vm4114_vm3, %v22538_v52  ;;  %v22546_v52 = vld [vmem:[#allocation53_spill] sm:$0xff] }
 0x4c7   : > { %16202 = vmatprep.mubr.msk.f32.mxu1 %vm4114_vm3, %v22539_v49  ;;  %v22547_v49 = vld [vmem:[#allocation54_spill] sm:$0xff] }
 0x4ca   : > { %16203 = vmatmul.mubr.msk.f32.gmra.mrb[2].mxu1 %vm4114_vm3, %v22540_v43 }
 0x4cb   : > { %16205 = vmatprep.mubr.msk.f32.mxu1 %vm4114_vm3, %v22541_v34 }
 0x4ce   : > { %16206 = vmatmul.mubr.msk.f32.gmra.mrb[4].mxu1 %vm4114_vm3, %v22542_v4  ;;  %v22550_v4 = vld [vmem:[#allocation56_spill] sm:$0xff] }
 0x4cf   : > { %16208 = vmatprep.mubr.msk.f32.mxu1 %vm4114_vm3, %v22543_v19  ;;  %v22551_v19 = vld [vmem:[#allocation58_spill] sm:$0xff] }
 0x4d2   : > { %16209 = vmatmul.mubr.msk.f32.gmra.mrb[6].mxu1 %vm4114_vm3, %v22544_v60 }
 0x4d3   : > { %16211 = vmatprep.mubr.msk.f32.mxu1 %vm4114_vm3, %v22545_v58  ;;  %v22554_v58 = vld [vmem:[#allocation59_spill] sm:$0xff] }
 0x4d6   : > { %16212 = vmatmul.mubr.msk.f32.gmra.mrb[8].mxu1 %vm4114_vm3, %v22546_v52  ;;  %v20309_v52 = vld [vmem:[#allocation3 + $0x181] sm:$0xff] }
 0x4d7   : > { %16214 = vmatprep.mubr.msk.f32.mxu1 %vm4114_vm3, %v22547_v49  ;;  %v20295_v43 = vpop.f32.mrb[80].mxu0 }
 0x4d8   : > { %22548 = vst [vmem:[#allocation43_spill] sm:$0xff] %v20295_v43  ;;  %v20297_v34 = vpop.f32.mrb[81].mxu0 }
 0x4d9   : > { %22549 = vst [vmem:[#allocation45_spill] sm:$0xff] %v20297_v34 }
 0x4da   : > { %16215 = vmatmul.mubr.msk.f32.gmra.mrb[10].mxu1 %vm4114_vm3, %v22550_v4 }
 0x4db   : > { %16217 = vmatprep.mubr.msk.f32.mxu1 %vm4114_vm3, %v22551_v19  ;;  %v20303_v60 = vpop.f32.mrb[82].mxu0  ;;  %v22557_v19 = vld [vmem:[#allocation60_spill] sm:$0xff] }
 0x4dc   : > { %22552 = vst [vmem:[#allocation47_spill] sm:$0xff] %v20303_v60  ;;  %v20305_v28 = vpop.f32.mrb[83].mxu0 }
 0x4dd   : > { %22553 = vst [vmem:[#allocation49_spill] sm:$0xff] %v20305_v28 }
 0x4de   : > { %16218 = vmatmul.mubr.msk.f32.gmra.mrb[12].mxu1 %vm4114_vm3, %v22554_v58  ;;  %v20328_v58 = vld [vmem:[%s22091_s5 + $0x38] sm:$0xff] }
 0x4df   : > { %16220 = vmatprep.mubr.msk.f32.mxu1 %vm4114_vm3, %v20309_v52  ;;  %v20313_v49 = vpop.f32.mrb[84].mxu0 }
 0x4e0   : > { %22555 = vst [vmem:[#allocation51_spill] sm:$0xff] %v20313_v49  ;;  %v20317_v4 = vpop.f32.mrb[85].mxu0  ;;  %v22581_v49 = vld [vmem:[#allocation82_spill] sm:$0xff] }
 0x4e1   : > { %22556 = vst [vmem:[#allocation55_spill] sm:$0xff] %v20317_v4 }
 0x4e2   : > { %16221 = vmatmul.mubr.msk.f32.gmra.mrb[14].mxu1 %vm4114_vm3, %v20315_v37 }
 0x4e3   : > { %16225 = vmatprep.mubr.msk.f32.mxu1 %vm4114_vm3, %v22557_v19  ;;  %v20323_v27 = vpop.f32.mrb[86].mxu0 }
 0x4e4   : > { %22558 = vst [vmem:[#allocation57_spill] sm:$0xff] %v20323_v27  ;;  %v20330_v21 = vpop.f32.mrb[87].mxu0  ;;  %v22577_v27 = vld [vmem:[#allocation79_spill] sm:$0xff] }
 0x4e5   : > { %22559 = vst [vmem:[#allocation62_spill] sm:$0xff] %v20330_v21 }
 0x4e6   : > { %16226 = vmatmul.mubr.msk.f32.vlgmr.msra.gmra.mrb[16].mxu1 %vm4114_vm3, %v22560_v18  ;;  %v22568_v18 = vld [vmem:[#allocation69_spill] sm:$0xff] }
 0x4e7   : > { %16274 = vmatpush3.msra.mxu1 %v13822_v25  ;;  %16228 = vmatprep.mubr.msk.f32.mxu1 %vm4114_vm3, %v22561_v1  ;;  %v20337_v9 = vpop.f32.mrb[88].mxu0  ;;  %v22569_v1 = vld [vmem:[#allocation71_spill] sm:$0xff] }
 0x4e8   : > { %16323 = vmatprep.subr.mxu1 %v20328_v58  ;;  %22562 = vst [vmem:[#allocation64_spill] sm:$0xff] %v20337_v9  ;;  %v20339_v19 = vpop.f32.mrb[89].mxu0  ;;  %v22573_v9 = vld [vmem:[#allocation75_spill] sm:$0xff] }
 0x4e9   : > { %22563 = vst [vmem:[#allocation66_spill] sm:$0xff] %v20339_v19  ;;  %v22572_v19 = vld [vmem:[#allocation73_spill] sm:$0xff] }
 0x4ea   : > { %16229 = vmatmul.mubr.msk.f32.gmra.mrb[18].mxu1 %vm4114_vm3, %v22564_v2 }
 0x4eb   : > { %16231 = vmatprep.mubr.msk.f32.mxu1 %vm4114_vm3, %v22565_v63 }
 0x4ec   : > { %v20345_v59 = vpop.f32.mrb[90].mxu0 }
 0x4ed   : > { %22566 = vst [vmem:[#allocation68_spill] sm:$0xff] %v20345_v59  ;;  %v20347_v57 = vpop.f32.mrb[91].mxu0 }
 0x4ee   : > { %22567 = vst [vmem:[#allocation70_spill] sm:$0xff] %v20347_v57  ;;  %16232 = vmatmul.mubr.msk.f32.gmra.mrb[20].mxu1 %vm4114_vm3, %v22568_v18  ;;  %v22576_v57 = vld [vmem:[#allocation77_spill] sm:$0xff] }
 0x4ef   : > { %16234 = vmatprep.mubr.msk.f32.mxu1 %vm4114_vm3, %v22569_v1 }
 0x4f0   : > { %v20353_v25 = vpop.f32.mrb[92].mxu0 }
 0x4f1   : > { %22570 = vst [vmem:[#allocation72_spill] sm:$0xff] %v20353_v25  ;;  %v20355_v51 = vpop.f32.mrb[93].mxu0  ;;  %v22579_v25 = vld [vmem:[#allocation80_spill] sm:$0xff] }
 0x4f2   : > { %22571 = vst [vmem:[#allocation74_spill] sm:$0xff] %v20355_v51  ;;  %16235 = vmatmul.mubr.msk.f32.gmra.mrb[22].mxu1 %vm4114_vm3, %v22572_v19 }
 0x4f3   : > { %16237 = vmatprep.mubr.msk.f32.mxu1 %vm4114_vm3, %v22573_v9 }
 0x4f4   : > { %v20361_v21 = vpop.f32.mrb[94].mxu0 }
 0x4f5   : > { %22574 = vst [vmem:[#allocation76_spill] sm:$0xff] %v20361_v21  ;;  %v20363_v59 = vpop.f32.mrb[95].mxu0 }
 0x4f6   : > { %22575 = vst [vmem:[#allocation78_spill] sm:$0xff] %v20363_v59  ;;  %16238 = vmatmul.mubr.msk.f32.gmra.mrb[24].mxu1 %vm4114_vm3, %v22576_v57  ;;  %v22584_v59 = vld [vmem:[#allocation83_spill] sm:$0xff] }
 0x4f7   : > { %16240 = vmatprep.mubr.msk.f32.mxu1 %vm4114_vm3, %v22577_v27 }
 0x4f8   : > { %v20369_v4 = vpop.f32.mrb[64].mxu0 }
 0x4f9   : > { %22578 = vst [vmem:[#allocation81_spill] sm:$0xff] %v20369_v4  ;;  %v20373_v51 = vpop.f32.mrb[65].mxu0  ;;  %v6894_v4 = vld [vmem:[#allocation3 + $0x50] sm:$0xff] }
 0x4fa   : > { %16241 = vmatmul.mubr.msk.f32.gmra.mrb[26].mxu1 %vm4114_vm3, %v22579_v25  ;;  %22580 = vst [vmem:[#allocation31_spill] sm:$0xff] %v20373_v51  ;;  %v6893_v51 = vld [vmem:[#allocation3 + $0x48] sm:$0xff] }
 0x4fb   : > { %16243 = vmatprep.mubr.msk.f32.mxu1 %vm4114_vm3, %v22581_v49 }
 0x4fc   : > { %v20377_v28 = vpop.f32.mrb[66].mxu0 }
 0x4fd   : > { %22582 = vst [vmem:[#allocation34_spill] sm:$0xff] %v20377_v28  ;;  %v20379_v21 = vpop.f32.mrb[67].mxu0 }
 0x4fe   : > { %22583 = vst [vmem:[#allocation36_spill] sm:$0xff] %v20379_v21  ;;  %16244 = vmatmul.mubr.msk.f32.gmra.mrb[28].mxu1 %vm4114_vm3, %v20032_v0 }
 0x4ff   : > { %16246 = vmatprep.mubr.msk.f32.mxu1 %vm4114_vm3, %v22584_v59 }
 0x500   : > { %v20385_v60 = vpop.f32.mrb[68].mxu0 }
 0x501   : > { %22585 = vst [vmem:[#allocation38_spill] sm:$0xff] %v20385_v60  ;;  %v20387_v34 = vpop.f32.mrb[69].mxu0 }
 0x502   : > { %22586 = vst [vmem:[#allocation41_spill] sm:$0xff] %v20387_v34  ;;  %16247 = vmatmul.mubr.msk.f32.gmra.mrb[30].mxu1 %vm4114_vm3, %v20044_v10 }
 0x503   : > { %16249 = vmatprep.mubr.msk.f32.mxu1 %vm4114_vm3, %v20050_v8 }
 0x504   : > { %v20393_v43 = vpop.f32.mrb[70].mxu0 }
 0x505   : > { %22587 = vst [vmem:[#allocation42_spill] sm:$0xff] %v20393_v43  ;;  %v20395_v28 = vpop.f32.mrb[71].mxu0 }
 0x506   : > { %22588 = vst [vmem:[#allocation44_spill] sm:$0xff] %v20395_v28  ;;  %16250 = vmatmul.mubr.msk.f32.gmra.mrb[0].mxu1 %vm4114_vm3, %v20056_v40 }
 0x507   : > { %16252 = vmatprep.mubr.msk.f32.mxu1 %vm4114_vm3, %v20062_v20 }
 0x508   : > { %v20401_v21 = vpop.f32.mrb[72].mxu0 }
 0x509   : > { %22589 = vst [vmem:[#allocation46_spill] sm:$0xff] %v20401_v21  ;;  %v20403_v60 = vpop.f32.mrb[73].mxu0 }
 0x50a   : > { %22590 = vst [vmem:[#allocation48_spill] sm:$0xff] %v20403_v60  ;;  %16253 = vmatmul.mubr.msk.f32.gmra.mrb[2].mxu1 %vm4114_vm3, %v20068_v22 }
 0x50b   : > { %16255 = vmatprep.mubr.msk.f32.mxu1 %vm4114_vm3, %v20074_v26 }
 0x50c   : > { %v20409_v34 = vpop.f32.mrb[74].mxu0 }
 0x50d   : > { %22591 = vst [vmem:[#allocation50_spill] sm:$0xff] %v20409_v34  ;;  %v20411_v43 = vpop.f32.mrb[75].mxu0 }
 0x50e   : > { %22592 = vst [vmem:[#allocation52_spill] sm:$0xff] %v20411_v43  ;;  %16256 = vmatmul.mubr.msk.f32.gmra.mrb[4].mxu1 %vm4114_vm3, %v20080_v31  ;;  %v13888_v43 = vld [vmem:[%s22091_s5 + $0x40] sm:$0xff] }
 0x50f   : > { %16258 = vmatprep.mubr.msk.f32.mxu1 %vm4114_vm3, %v20086_v3 }
 0x510   : > { %v20417_v28 = vpop.f32.mrb[76].mxu0 }
 0x511   : > { %22593 = vst [vmem:[#allocation53_spill] sm:$0xff] %v20417_v28  ;;  %v20419_v21 = vpop.f32.mrb[77].mxu0  ;;  %v6892_v28 = vld [vmem:[#allocation3 + $0x38] sm:$0xff] }
 0x512   : > { %22594 = vst [vmem:[#allocation54_spill] sm:$0xff] %v20419_v21  ;;  %16259 = vmatmul.mubr.msk.f32.gmra.mrb[6].mxu1 %vm4114_vm3, %v20092_v41  ;;  %v20439_v21 = vld [vmem:[#allocation3 + $0x182] sm:$0xff] }
 0x513   : > { %16261 = vmatprep.mubr.msk.f32.mxu1 %vm4114_vm3, %v20098_v7  ;;  %22597 = vst [vmem:[#allocation59_spill] sm:$0xff] %v20439_v21 }
 0x514   : > { %v20425_v60 = vpop.f32.mrb[78].mxu0 }
 0x515   : > { %22595 = vst [vmem:[#allocation56_spill] sm:$0xff] %v20425_v60  ;;  %v20427_v34 = vpop.f32.mrb[79].mxu0  ;;  %v6891_v60 = vld [vmem:[#allocation3 + $0x30] sm:$0xff] }
 0x516   : > { %22596 = vst [vmem:[#allocation58_spill] sm:$0xff] %v20427_v34  ;;  %16262 = vmatmul.mubr.msk.f32.gmra.mrb[8].mxu1 %vm4114_vm3, %v20104_v5  ;;  %v20443_v34 = vld [vmem:[#allocation3 + $0x18a] sm:$0xff] }
 0x517   : > { %16264 = vmatprep.mubr.msk.f32.mxu1 %vm4114_vm3, %v20110_v33  ;;  %22598 = vst [vmem:[#allocation60_spill] sm:$0xff] %v20443_v34 }
 0x51a   : > { %16265 = vmatmul.mubr.msk.f32.gmra.mrb[10].mxu1 %vm4114_vm3, %v20116_v35 }
 0x51b   : > { %16267 = vmatprep.mubr.msk.f32.mxu1 %vm4114_vm3, %v20122_v45 }
 0x51e   : > { %16268 = vmatmul.mubr.msk.f32.gmra.mrb[12].mxu1 %vm4114_vm3, %v20128_v47  ;;  %v6898_v47 = vld [vmem:[#allocation3 + $0x80] sm:$0xff] }
 0x51f   : > { %16270 = vmatprep.mubr.msk.f32.mxu1 %vm4114_vm3, %v20439_v21  ;;  %v6897_v21 = vld [vmem:[#allocation3 + $0x78] sm:$0xff] }
 0x522   : > { %16271 = vmatmul.mubr.msk.f32.gmra.mrb[14].mxu1 %vm4114_vm3, %v20443_v34  ;;  %v6895_v34 = vld [vmem:[#allocation3 + $0x60] sm:$0xff] }
 0x523   : > { %16275 = vmatprep.mubr.msk.f32.mxu1 %vm4114_vm3, %v6891_v60  ;;  %v6896_v60 = vld [vmem:[#allocation3 + $0x68] sm:$0xff] }
 0x526   : > { %16276 = vmatmul.mubr.msk.f32.vlgmr.msra.gmra.mrb[16].mxu1 %vm4114_vm3, %v6892_v28  ;;  %v6899_v28 = vld [vmem:[#allocation3 + $0x90] sm:$0xff] }
 0x527   : > { %16324 = vmatpush3.msra.mxu1 %v20328_v58  ;;  %16278 = vmatprep.mubr.msk.f32.mxu1 %vm4114_vm3, %v6893_v51  ;;  %v6900_v51 = vld [vmem:[#allocation3 + $0x98] sm:$0xff]  ;;  %v6901_v58 = vld [vmem:[#allocation3 + $0xa8] sm:$0xff] }
 0x528   : > { %16373 = vmatprep.subr.mxu1 %v13888_v43 }
 0x52a   : > { %16279 = vmatmul.mubr.msk.f32.gmra.mrb[18].mxu1 %vm4114_vm3, %v6894_v4  ;;  %v6902_v4 = vld [vmem:[#allocation3 + $0xb0] sm:$0xff] }
 0x52b   : > { %16281 = vmatprep.mubr.msk.f32.mxu1 %vm4114_vm3, %v6895_v34  ;;  %v6903_v34 = vld [vmem:[#allocation3 + $0xc0] sm:$0xff] }
 0x52e   : > { %16282 = vmatmul.mubr.msk.f32.gmra.mrb[20].mxu1 %vm4114_vm3, %v6896_v60  ;;  %v6904_v60 = vld [vmem:[#allocation3 + $0xc8] sm:$0xff] }
 0x52f   : > { %16284 = vmatprep.mubr.msk.f32.mxu1 %vm4114_vm3, %v6897_v21  ;;  %v6905_v21 = vld [vmem:[#allocation3 + $0xd8] sm:$0xff] }
 0x532   : > { %16285 = vmatmul.mubr.msk.f32.gmra.mrb[22].mxu1 %vm4114_vm3, %v6898_v47  ;;  %v6921_v47 = vld [vmem:[#allocation3 + $0x198] sm:$0xff] }
 0x533   : > { %16287 = vmatprep.mubr.msk.f32.mxu1 %vm4114_vm3, %v6899_v28 }
 0x536   : > { %16288 = vmatmul.mubr.msk.f32.gmra.mrb[24].mxu1 %vm4114_vm3, %v6900_v51  ;;  %v22608_v51 = vld [vmem:[#allocation42_spill] sm:$0xff] }
 0x537   : > { %16290 = vmatprep.mubr.msk.f32.mxu1 %vm4114_vm3, %v6901_v58 }
 0x53a   : > { %16291 = vmatmul.mubr.msk.f32.gmra.mrb[26].mxu1 %vm4114_vm3, %v6902_v4  ;;  %v22609_v4 = vld [vmem:[#allocation44_spill] sm:$0xff] }
 0x53b   : > { %16293 = vmatprep.mubr.msk.f32.mxu1 %vm4114_vm3, %v6903_v34 }
 0x53e   : > { %16294 = vmatmul.mubr.msk.f32.gmra.mrb[28].mxu1 %vm4114_vm3, %v6904_v60 }
 0x53f   : > { %16296 = vmatprep.mubr.msk.f32.mxu1 %vm4114_vm3, %v6905_v21 }
 0x542   : > { %16297 = vmatmul.mubr.msk.f32.gmra.mrb[30].mxu1 %vm4114_vm3, %v19784_v62  ;;  %v7290_v62 = vld [vmem:[#allocation3 + $0xc1] sm:$0xff] }
 0x543   : > { %16299 = vmatprep.mubr.msk.f32.mxu1 %vm4114_vm3, %v19801_v42  ;;  %v7291_v42 = vld [vmem:[#allocation3 + $0xc9] sm:$0xff] }
 0x546   : > { %16300 = vmatmul.mubr.msk.f32.gmra.mrb[0].mxu1 %vm4114_vm3, %v19805_v48  ;;  %v7292_v48 = vld [vmem:[#allocation3 + $0xd9] sm:$0xff] }
 0x547   : > { %16302 = vmatprep.mubr.msk.f32.mxu1 %vm4114_vm3, %v22518_v6  ;;  %v7294_v6 = vld [vmem:[#allocation3 + $0xf1] sm:$0xff] }
 0x54a   : > { %16303 = vmatmul.mubr.msk.f32.gmra.mrb[2].mxu1 %vm4114_vm3, %v22519_v29  ;;  %v7296_v29 = vld [vmem:[#allocation3 + $0x109] sm:$0xff] }
 0x54b   : > { %16305 = vmatprep.mubr.msk.f32.mxu1 %vm4114_vm3, %v22520_v44  ;;  %v7298_v44 = vld [vmem:[#allocation3 + $0x121] sm:$0xff] }
 0x54e   : > { %16306 = vmatmul.mubr.msk.f32.gmra.mrb[4].mxu1 %vm4114_vm3, %v22521_v46  ;;  %v7299_v46 = vld [vmem:[#allocation3 + $0x129] sm:$0xff] }
 0x54f   : > { %16308 = vmatprep.mubr.msk.f32.mxu1 %vm4114_vm3, %v22522_v56  ;;  %v7300_v56 = vld [vmem:[#allocation3 + $0x139] sm:$0xff] }
 0x552   : > { %16309 = vmatmul.mubr.msk.f32.gmra.mrb[6].mxu1 %vm4114_vm3, %v19865_v54  ;;  %v6922_v54 = vld [vmem:[#allocation3 + $0x1a0] sm:$0xff] }
 0x553   : > { %16311 = vmatprep.mubr.msk.f32.mxu1 %vm4114_vm3, %v19881_v38  ;;  %v8349_v38 = vld [vmem:[%s22093_s7 + $0x8] sm:$0xff] }
 0x554   : > { %16473 = vmatprep.subr.mxu0 %v8349_v38 }
 0x555   : > { %16474 = vmatpush3.msra.mxu0 %v8349_v38 }
 0x556   : > { %16312 = vmatmul.mubr.msk.f32.gmra.mrb[8].mxu1 %vm4114_vm3, %v22523_v15  ;;  %v7301_v15 = vld [vmem:[#allocation3 + $0x141] sm:$0xff] }
 0x557   : > { %16314 = vmatprep.mubr.msk.f32.mxu1 %vm4114_vm3, %v22524_v12  ;;  %v7302_v12 = vld [vmem:[#allocation3 + $0x151] sm:$0xff] }
 0x55a   : > { %16315 = vmatmul.mubr.msk.f32.gmra.mrb[10].mxu1 %vm4114_vm3, %v19902_v32  ;;  %v7293_v32 = vld [vmem:[#allocation3 + $0xe1] sm:$0xff] }
 0x55b   : > { %16317 = vmatprep.mubr.msk.f32.mxu1 %vm4114_vm3, %v20230_v13  ;;  %v7303_v13 = vld [vmem:[#allocation3 + $0x159] sm:$0xff] }
 0x55e   : > { %16318 = vmatmul.mubr.msk.f32.gmra.mrb[12].mxu1 %vm4114_vm3, %v20234_v24  ;;  %v7304_v24 = vld [vmem:[#allocation3 + $0x169] sm:$0xff] }
 0x55f   : > { %16320 = vmatprep.mubr.msk.f32.mxu1 %vm4114_vm3, %v6921_v47 }
 0x562   : > { %16321 = vmatmul.mubr.msk.f32.gmra.mrb[14].mxu1 %vm4114_vm3, %v6922_v54 }
 0x563   : > { %16325 = vmatprep.mubr.msk.f32.mxu1 %vm4114_vm3, %v22525_v39  ;;  %v7305_v39 = vld [vmem:[#allocation3 + $0x171] sm:$0xff] }
 0x566   : > { %16326 = vmatmul.mubr.msk.f32.vlgmr.msra.gmra.mrb[16].mxu1 %vm4114_vm3, %v22526_v30  ;;  %v7308_v30 = vld [vmem:[#allocation3 + $0x199] sm:$0xff] }
 0x567   : > { %16374 = vmatpush3.msra.mxu1 %v13888_v43  ;;  %16328 = vmatprep.mubr.msk.f32.mxu1 %vm4114_vm3, %v22527_v55  ;;  %v7309_v55 = vld [vmem:[#allocation3 + $0x1a1] sm:$0xff] }
 0x568   : > { %v22607_v43 = vld [vmem:[#allocation41_spill] sm:$0xff] }
 0x56a   : > { %16329 = vmatmul.mubr.msk.f32.gmra.mrb[18].mxu1 %vm4114_vm3, %v22528_v61  ;;  %v7665_v61 = vld [vmem:[#allocation3 + $0x32] sm:$0xff] }
 0x56b   : > { %16331 = vmatprep.mubr.msk.f32.mxu1 %vm4114_vm3, %v22529_v17 }
 0x56e   : > { %16332 = vmatmul.mubr.msk.f32.gmra.mrb[20].mxu1 %vm4114_vm3, %v22530_v23 }
 0x56f   : > { %16334 = vmatprep.mubr.msk.f32.mxu1 %vm4114_vm3, %v22531_v53 }
 0x572   : > { %16335 = vmatmul.mubr.msk.f32.gmra.mrb[22].mxu1 %vm4114_vm3, %v22532_v50  ;;  %v20640_v50 = vld [vmem:[%s22097_s11 + $0x8] sm:$0xff] }
 0x573   : > { %16337 = vmatprep.mubr.msk.f32.mxu1 %vm4114_vm3, %v22533_v14  ;;  %v22606_v14 = vld [vmem:[#allocation38_spill] sm:$0xff] }
 0x576   : > { %16338 = vmatmul.mubr.msk.f32.gmra.mrb[24].mxu1 %vm4114_vm3, %v20014_v11  ;;  %v7295_v11 = vld [vmem:[#allocation3 + $0xf9] sm:$0xff] }
 0x577   : > { %16340 = vmatprep.mubr.msk.f32.mxu1 %vm4114_vm3, %v22534_v16 }
 0x57a   : > { %16341 = vmatmul.mubr.msk.f32.gmra.mrb[26].mxu1 %vm4114_vm3, %v20030_v36  ;;  %v7297_v36 = vld [vmem:[#allocation3 + $0x111] sm:$0xff] }
 0x57b   : > { %16343 = vmatprep.mubr.msk.f32.mxu1 %vm4114_vm3, %v7290_v62 }
 0x57e   : > { %16344 = vmatmul.mubr.msk.f32.gmra.mrb[28].mxu1 %vm4114_vm3, %v7291_v42  ;;  %v22610_v42 = vld [vmem:[#allocation46_spill] sm:$0xff] }
 0x57f   : > { %16346 = vmatprep.mubr.msk.f32.mxu1 %vm4114_vm3, %v7292_v48 }
 0x582   : > { %16347 = vmatmul.mubr.msk.f32.gmra.mrb[30].mxu1 %vm4114_vm3, %v7293_v32  ;;  %v22611_v32 = vld [vmem:[#allocation48_spill] sm:$0xff] }
 0x583   : > { %16349 = vmatprep.mubr.msk.f32.mxu1 %vm4114_vm3, %v7294_v6 }
 0x586   : > { %16350 = vmatmul.mubr.msk.f32.gmra.mrb[0].mxu1 %vm4114_vm3, %v7295_v11 }
 0x587   : > { %16352 = vmatprep.mubr.msk.f32.mxu1 %vm4114_vm3, %v7296_v29 }
 0x58a   : > { %16353 = vmatmul.mubr.msk.f32.gmra.mrb[2].mxu1 %vm4114_vm3, %v7297_v36 }
 0x58b   : > { %16355 = vmatprep.mubr.msk.f32.mxu1 %vm4114_vm3, %v7298_v44 }
 0x58e   : > { %16356 = vmatmul.mubr.msk.f32.gmra.mrb[4].mxu1 %vm4114_vm3, %v7299_v46 }
 0x58f   : > { %16358 = vmatprep.mubr.msk.f32.mxu1 %vm4114_vm3, %v7300_v56 }
 0x592   : > { %16359 = vmatmul.mubr.msk.f32.gmra.mrb[6].mxu1 %vm4114_vm3, %v7301_v15  ;;  %v22612_v15 = vld [vmem:[#allocation50_spill] sm:$0xff] }
 0x593   : > { %16361 = vmatprep.mubr.msk.f32.mxu1 %vm4114_vm3, %v7302_v12 }
 0x596   : > { %16362 = vmatmul.mubr.msk.f32.gmra.mrb[8].mxu1 %vm4114_vm3, %v7303_v13  ;;  %v22613_v13 = vld [vmem:[#allocation52_spill] sm:$0xff] }
 0x597   : > { %16364 = vmatprep.mubr.msk.f32.mxu1 %vm4114_vm3, %v7304_v24 }
 0x59a   : > { %16365 = vmatmul.mubr.msk.f32.gmra.mrb[10].mxu1 %vm4114_vm3, %v7305_v39 }
 0x59b   : > { %16367 = vmatprep.mubr.msk.f32.mxu1 %vm4114_vm3, %v20309_v52 }
 0x59e   : > { %16368 = vmatmul.mubr.msk.f32.gmra.mrb[12].mxu1 %vm4114_vm3, %v20315_v37  ;;  %v22605_v37 = vld [vmem:[#allocation36_spill] sm:$0xff] }
 0x59f   : > { %16370 = vmatprep.mubr.msk.f32.mxu1 %vm4114_vm3, %v7308_v30 }
 0x5a2   : > { %16371 = vmatmul.mubr.msk.f32.gmra.mrb[14].mxu1 %vm4114_vm3, %v7309_v55 }
 0x5a3   : > { %16375 = vmatprep.mubr.msk.f32.mxu1 %vm4114_vm3, %v7665_v61 }
 0x5a6   : > { %16376 = vmatmul.mubr.msk.f32.vlgmr.msra.gmra.mrb[16].mxu1 %vm4114_vm3, %v22564_v2 }
 0x5a7   : > { %16378 = vmatprep.mubr.msk.f32.mxu1 %vm4114_vm3, %v22565_v63 }
 0x5aa   : > { %16379 = vmatmul.mubr.msk.f32.gmra.mrb[18].mxu1 %vm4114_vm3, %v22568_v18 }
 0x5ab   : > { %16381 = vmatprep.mubr.msk.f32.mxu1 %vm4114_vm3, %v22569_v1 }
 0x5ae   : > { %16382 = vmatmul.mubr.msk.f32.gmra.mrb[20].mxu1 %vm4114_vm3, %v22572_v19 }
 0x5af   : > { %16384 = vmatprep.mubr.msk.f32.mxu1 %vm4114_vm3, %v22573_v9  ;;  %v22604_v9 = vld [vmem:[#allocation34_spill] sm:$0xff] }
 0x5b2   : > { %16385 = vmatmul.mubr.msk.f32.gmra.mrb[22].mxu1 %vm4114_vm3, %v22576_v57 }
 0x5b3   : > { %16387 = vmatprep.mubr.msk.f32.mxu1 %vm4114_vm3, %v22577_v27 }
 0x5b6   : > { %16388 = vmatmul.mubr.msk.f32.gmra.mrb[24].mxu1 %vm4114_vm3, %v22579_v25 }
 0x5b7   : > { %16390 = vmatprep.mubr.msk.f32.mxu1 %vm4114_vm3, %v22581_v49 }
 0x5ba   : > { %16391 = vmatmul.mubr.msk.f32.gmra.mrb[26].mxu1 %vm4114_vm3, %v20032_v0 }
 0x5bb   : > { %16393 = vmatprep.mubr.msk.f32.mxu1 %vm4114_vm3, %v22584_v59 }
 0x5be   : > { %16394 = vmatmul.mubr.msk.f32.gmra.mrb[28].mxu1 %vm4114_vm3, %v20044_v10 }
 0x5bf   : > { %16396 = vmatprep.mubr.msk.f32.mxu1 %vm4114_vm3, %v20050_v8 }
 0x5c2   : > { %16397 = vmatmul.mubr.msk.f32.gmra.mrb[30].mxu1 %vm4114_vm3, %v20056_v40 }
 0x5c3   : > { %16399 = vmatprep.mubr.msk.f32.mxu1 %vm4114_vm3, %v20062_v20  ;;  %v22599_v20 = vld [vmem:[#allocation84_spill] sm:$0xff] }
 0x5c6   : > { %16400 = vmatmul.mubr.msk.f32.gmra.mrb[0].mxu1 %vm4114_vm3, %v20068_v22  ;;  %v22600_v22 = vld [vmem:[#allocation59_spill] sm:$0xff] }
 0x5c7   : > { %16402 = vmatprep.mubr.msk.f32.mxu1 %vm4114_vm3, %v20074_v26  ;;  %v7695_v26 = vld [vmem:[#allocation3 + $0x19a] sm:$0xff] }
 0x5ca   : > { %16403 = vmatmul.mubr.msk.f32.gmra.mrb[2].mxu1 %vm4114_vm3, %v20080_v31  ;;  %v22601_v31 = vld [vmem:[#allocation60_spill] sm:$0xff] }
 0x5cb   : > { %16405 = vmatprep.mubr.msk.f32.mxu1 %vm4114_vm3, %v20086_v3  ;;  %v7696_v3 = vld [vmem:[#allocation3 + $0x1a2] sm:$0xff] }
 0x5ce   : > { %16406 = vmatmul.mubr.msk.f32.gmra.mrb[4].mxu1 %vm4114_vm3, %v20092_v41  ;;  %v12313_v41 = vld [vmem:[%s22097_s11] sm:$0xff] }
 0x5cf   : > { %16408 = vmatprep.mubr.msk.f32.mxu1 %vm4114_vm3, %v20098_v7  ;;  %16973 = vmatprep.subr.mxu0 %v12313_v41  ;;  %v20614_v7 = vld [vmem:[%s22092_s6] ss:$0 sm:$0xff] }
 0x5d0   : > { %v17161_v27 = vadd.f32 %v22604_v9, %v20614_v7  ;;  %v17163_v10 = vadd.f32 %v20614_v7, %v22605_v37  ;;  %v17165_v16 = vadd.f32 %v22606_v14, %v20614_v7  ;;  %v17167_v52 = vadd.f32 %v20614_v7, %v22607_v43  ;;  %v22616_v9 = vld [vmem:[#allocation56_spill] sm:$0xff]  ;;  %v22617_v37 = vld [vmem:[#allocation58_spill] sm:$0xff] }
 0x5d1   : > { %v17169_v58 = vadd.f32 %v22608_v51, %v20614_v7  ;;  %v17171_v34 = vadd.f32 %v20614_v7, %v22609_v4  ;;  %v17173_v48 = vadd.f32 %v22610_v42, %v20614_v7  ;;  %v17175_v6 = vadd.f32 %v20614_v7, %v22611_v32  ;;  %v22619_v51 = vld [vmem:[#allocation45_spill] sm:$0xff] }
 0x5d2   : > { %16409 = vmatmul.mubr.msk.f32.gmra.mrb[6].mxu1 %vm4114_vm3, %v20104_v5  ;;  %v22602_v5 = vld [vmem:[#allocation81_spill] sm:$0xff]  ;;  %v17177_v12 = vadd.f32 %v22612_v15, %v20614_v7  ;;  %v17179_v24 = vadd.f32 %v20614_v7, %v22613_v13 }
 0x5d3   : > { %16411 = vmatprep.mubr.msk.f32.mxu1 %vm4114_vm3, %v20110_v33  ;;  %v17157_v33 = vadd.f32 %v22602_v5, %v20614_v7 }
 0x5d6   : > { %16412 = vmatmul.mubr.msk.f32.gmra.mrb[8].mxu1 %vm4114_vm3, %v20116_v35  ;;  %v22603_v35 = vld [vmem:[#allocation31_spill] sm:$0xff] }
 0x5d7   : > { %16414 = vmatprep.mubr.msk.f32.mxu1 %vm4114_vm3, %v20122_v45  ;;  %v17159_v45 = vadd.f32 %v20614_v7, %v22603_v35 }
 0x5da   : > { %16415 = vmatmul.mubr.msk.f32.gmra.mrb[10].mxu1 %vm4114_vm3, %v22599_v20 }
 0x5db   : > { %16417 = vmatprep.mubr.msk.f32.mxu1 %vm4114_vm3, %v22600_v22 }
 0x5de   : > { %16418 = vmatmul.mubr.msk.f32.gmra.mrb[12].mxu1 %vm4114_vm3, %v22601_v31 }
 0x5df   : > { %16420 = vmatprep.mubr.msk.f32.mxu1 %vm4114_vm3, %v7695_v26  ;;  %v22614_v26 = vld [vmem:[#allocation53_spill] sm:$0xff] }
 0x5e0   : > { %v17181_v31 = vadd.f32 %v22614_v26, %v20614_v7 }
 0x5e2   : > { %16421 = vmatmul.mubr.msk.f32.gmra.mrb[14].mxu1 %vm4114_vm3, %v7696_v3  ;;  %v22615_v3 = vld [vmem:[#allocation54_spill] sm:$0xff] }
 0x679   : > { %v16377_v57 = vpop.f32.mrb[16].mxu1 }
 0x67a   : > { %v20620_v59 = vadd.f32 %v17157_v33, %v16377_v57  ;;  %v7861_v63 = vpop.f32.mrb[17].mxu1 }
 0x67b   : > { %v20622_v2 = vadd.f32 %v17159_v45, %v7861_v63 }
 0x67c   : > { %v8053_v8 = vmax.f32 %v20620_v59, 0.0  ;;  %v20999_v59 = vld [vmem:[%s22095_s9 + $0x10] sm:$0xff] }
 0x67d   : > { %v8052_v0 = vmax.f32 %v20622_v2, 0.0  ;;  %v16380_v40 = vpop.f32.mrb[18].mxu1 }
 0x67e   : > { %v20630_v17 = vadd.f32 %v17161_v27, %v16380_v40  ;;  %v7871_v23 = vpop.f32.mrb[19].mxu1  ;;  %v17185_v27 = vadd.f32 %v22616_v9, %v20614_v7 }
 0x67f   : > { %v20632_v53 = vadd.f32 %v17163_v10, %v7871_v23  ;;  %16475 = vmatprep.mubr.msk.f32.mxu0 %vm4114_vm3, %v8052_v0  ;;  %v17187_v10 = vadd.f32 %v20614_v7, %v22617_v37 }
 0x680   : > { %16476 = vmatmul.mubr.msk.f32.vlgmr.msra.gmra.mrb[96].mxu0 %vm4114_vm3, %v8053_v8  ;;  %v8055_v18 = vmax.f32 %v20630_v17, 0.0 }
 0x681   : > { %v8054_v49 = vmax.f32 %v20632_v53, 0.0  ;;  %v16383_v19 = vpop.f32.mrb[20].mxu1  ;;  %16974 = vmatpush3.msra.mxu0 %v12313_v41  ;;  %v17183_v41 = vadd.f32 %v20614_v7, %v22615_v3 }
 0x682   : > { %v20651_v1 = vadd.f32 %v17165_v16, %v16383_v19  ;;  %v7881_v25 = vpop.f32.mrb[21].mxu1  ;;  %17023 = vmatprep.subr.mxu0 %v20640_v50  ;;  %v22618_v19 = vld [vmem:[#allocation43_spill] sm:$0xff] }
 0x683   : > { %v20654_v28 = vadd.f32 %v17167_v52, %v7881_v25  ;;  %16478 = vmatprep.mubr.msk.f32.mxu0 %vm4114_vm3, %v8054_v49  ;;  %v4940_v25 = vadd.f32 %v22618_v19, %v20614_v7 }
 0x684   : > { %16479 = vmatmul.mubr.msk.f32.gmra.mrb[98].mxu0 %vm4114_vm3, %v8055_v18  ;;  %v8057_v47 = vmax.f32 %v20651_v1, 0.0 }
 0x685   : > { %v8056_v60 = vmax.f32 %v20654_v28, 0.0  ;;  %v16386_v21 = vpop.f32.mrb[22].mxu1  ;;  %v21056_v28 = vld [vmem:[%s22094_s8] ss:$0 sm:$0xff] }
 0x686   : > { %v20668_v54 = vadd.f32 %v17169_v58, %v16386_v21  ;;  %v7891_v38 = vpop.f32.mrb[23].mxu1  ;;  %v4939_v58 = vadd.f32 %v20614_v7, %v22619_v51  ;;  %v8823_v21 = vld [vmem:[%s22095_s9] sm:$0xff] }
 0x687   : > { %v20670_v62 = vadd.f32 %v17171_v34, %v7891_v38  ;;  %16481 = vmatprep.mubr.msk.f32.mxu0 %vm4114_vm3, %v8056_v60  ;;  %16523 = vmatprep.subr.mxu1 %v8823_v21 }
 0x688   : > { %16482 = vmatmul.mubr.msk.f32.gmra.mrb[100].mxu0 %vm4114_vm3, %v8057_v47  ;;  %v8059_v36 = vmax.f32 %v20668_v54, 0.0  ;;  %16524 = vmatpush3.msra.mxu1 %v8823_v21 }
 0x689   : > { %v8058_v11 = vmax.f32 %v20670_v62, 0.0  ;;  %v16389_v29 = vpop.f32.mrb[24].mxu1 }
 0x68a   : > { %v20684_v44 = vadd.f32 %v17173_v48, %v16389_v29  ;;  %v7901_v46 = vpop.f32.mrb[25].mxu1 }
 0x68b   : > { %v20686_v56 = vadd.f32 %v17175_v6, %v7901_v46  ;;  %16484 = vmatprep.mubr.msk.f32.mxu0 %vm4114_vm3, %v8058_v11  ;;  %v22620_v6 = vld [vmem:[#allocation47_spill] sm:$0xff]  ;;  %v22621_v46 = vld [vmem:[#allocation49_spill] sm:$0xff] }
 0x68c   : > { %16485 = vmatmul.mubr.msk.f32.gmra.mrb[102].mxu0 %vm4114_vm3, %v8059_v36  ;;  %v8061_v55 = vmax.f32 %v20684_v44, 0.0  ;;  %v4942_v29 = vadd.f32 %v22620_v6, %v20614_v7  ;;  %v4941_v15 = vadd.f32 %v20614_v7, %v22621_v46  ;;  %v22626_v46 = vld [vmem:[#allocation64_spill] sm:$0xff] }
 0x68d   : > { %v8060_v39 = vmax.f32 %v20686_v56, 0.0  ;;  %v16392_v30 = vpop.f32.mrb[26].mxu1 }
 0x68e   : > { %v20700_v61 = vadd.f32 %v17177_v12, %v16392_v30  ;;  %v7911_v20 = vpop.f32.mrb[27].mxu1 }
 0x68f   : > { %v20702_v22 = vadd.f32 %v17179_v24, %v7911_v20  ;;  %16487 = vmatprep.mubr.msk.f32.mxu0 %vm4114_vm3, %v8060_v39 }
 0x690   : > { %16488 = vmatmul.mubr.msk.f32.gmra.mrb[104].mxu0 %vm4114_vm3, %v8061_v55  ;;  %v8063_v35 = vmax.f32 %v20700_v61, 0.0 }
 0x691   : > { %v8062_v5 = vmax.f32 %v20702_v22, 0.0  ;;  %v16395_v33 = vpop.f32.mrb[28].mxu1 }
 0x692   : > { %v20716_v45 = vadd.f32 %v17181_v31, %v16395_v33  ;;  %v7921_v57 = vpop.f32.mrb[29].mxu1  ;;  %v22622_v31 = vld [vmem:[#allocation51_spill] sm:$0xff] }
 0x693   : > { %v20718_v63 = vadd.f32 %v17183_v41, %v7921_v57  ;;  %16490 = vmatprep.mubr.msk.f32.mxu0 %vm4114_vm3, %v8062_v5  ;;  %v4944_v3 = vadd.f32 %v22622_v31, %v20614_v7  ;;  %v22623_v41 = vld [vmem:[#allocation55_spill] sm:$0xff] }
 0x694   : > { %16491 = vmatmul.mubr.msk.f32.gmra.mrb[106].mxu0 %vm4114_vm3, %v8063_v35  ;;  %v8065_v14 = vmax.f32 %v20716_v45, 0.0  ;;  %v4943_v33 = vadd.f32 %v20614_v7, %v22623_v41 }
 0x695   : > { %v8064_v40 = vmax.f32 %v20718_v63, 0.0  ;;  %v16398_v23 = vpop.f32.mrb[30].mxu1 }
 0x696   : > { %v20732_v16 = vadd.f32 %v17185_v27, %v16398_v23  ;;  %v7931_v43 = vpop.f32.mrb[31].mxu1 }
 0x697   : > { %v20734_v52 = vadd.f32 %v17187_v10, %v7931_v43  ;;  %16493 = vmatprep.mubr.msk.f32.mxu0 %vm4114_vm3, %v8064_v40  ;;  %v22624_v43 = vld [vmem:[#allocation57_spill] sm:$0xff] }
 0x698   : > { %16494 = vmatmul.mubr.msk.f32.gmra.mrb[108].mxu0 %vm4114_vm3, %v8065_v14  ;;  %v8067_v38 = vmax.f32 %v20732_v16, 0.0  ;;  %v4946_v19 = vadd.f32 %v22624_v43, %v20614_v7  ;;  %v22628_v43 = vld [vmem:[#allocation68_spill] sm:$0xff] }
 0x699   : > { %v8066_v4 = vmax.f32 %v20734_v52, 0.0  ;;  %v16401_v34 = vpop.f32.mrb[0].mxu1 }
 0x69a   : > { %v20751_v42 = vadd.f32 %v16401_v34, %v4940_v25  ;;  %v7941_v48 = vpop.f32.mrb[1].mxu1  ;;  %v22625_v25 = vld [vmem:[#allocation62_spill] sm:$0xff] }
 0x69b   : > { %v20753_v32 = vadd.f32 %v7941_v48, %v4939_v58  ;;  %16496 = vmatprep.mubr.msk.f32.mxu0 %vm4114_vm3, %v8066_v4  ;;  %v4945_v51 = vadd.f32 %v20614_v7, %v22625_v25  ;;  %v22629_v25 = vld [vmem:[#allocation70_spill] sm:$0xff] }
 0x69c   : > { %16497 = vmatmul.mubr.msk.f32.gmra.mrb[110].mxu0 %vm4114_vm3, %v8067_v38  ;;  %v8069_v24 = vmax.f32 %v20751_v42, 0.0 }
 0x69d   : > { %v8068_v12 = vmax.f32 %v20753_v32, 0.0  ;;  %v16404_v13 = vpop.f32.mrb[2].mxu1 }
 0x69e   : > { %v20767_v30 = vadd.f32 %v16404_v13, %v4942_v29  ;;  %v7951_v20 = vpop.f32.mrb[3].mxu1  ;;  %v22627_v13 = vld [vmem:[#allocation66_spill] sm:$0xff] }
 0x69f   : > { %v20769_v26 = vadd.f32 %v7951_v20, %v4941_v15  ;;  %16499 = vmatprep.mubr.msk.f32.mxu0 %vm4114_vm3, %v8068_v12  ;;  %v4948_v15 = vadd.f32 %v22626_v46, %v20614_v7  ;;  %v4947_v20 = vadd.f32 %v20614_v7, %v22627_v13 }
 0x6a0   : > { %16500 = vmatmul.mubr.msk.f32.gmra.mrb[112].mxu0 %vm4114_vm3, %v8069_v24  ;;  %v8071_v27 = vmax.f32 %v20767_v30, 0.0 }
 0x6a1   : > { %v8070_v57 = vmax.f32 %v20769_v26, 0.0  ;;  %v16407_v9 = vpop.f32.mrb[4].mxu1 }
 0x6a2   : > { %v20783_v37 = vadd.f32 %v16407_v9, %v4944_v3  ;;  %v7961_v10 = vpop.f32.mrb[5].mxu1 }
 0x6a3   : > { %v20785_v23 = vadd.f32 %v7961_v10, %v4943_v33  ;;  %16502 = vmatprep.mubr.msk.f32.mxu0 %vm4114_vm3, %v8070_v57 }
 0x6a4   : > { %16503 = vmatmul.mubr.msk.f32.gmra.mrb[114].mxu0 %vm4114_vm3, %v8071_v27  ;;  %v22278_v21 = vmax.f32 %v20783_v37, 0.0 }
 0x6a5   : > { %v22279_v58 = vmax.f32 %v20785_v23, 0.0  ;;  %v16410_v34 = vpop.f32.mrb[6].mxu1  ;;  %v22666_v2 = vmax.f32 %v20785_v23, 0.0 }
 0x6a6   : > { %v20799_v48 = vadd.f32 %v16410_v34, %v4946_v19  ;;  %v7971_v6 = vpop.f32.mrb[7].mxu1  ;;  %v4950_v19 = vadd.f32 %v22628_v43, %v20614_v7  ;;  %v22631_v43 = vld [vmem:[#allocation74_spill] sm:$0xff] }
 0x6a7   : > { %v20801_v29 = vadd.f32 %v7971_v6, %v4945_v51  ;;  %16505 = vmatprep.mubr.msk.f32.mxu0 %vm4114_vm3, %v22279_v58  ;;  %v4949_v51 = vadd.f32 %v20614_v7, %v22629_v25  ;;  %v4951_v25 = vadd.f32 %v20614_v7, %v22631_v43  ;;  %v22633_v43 = vld [vmem:[#allocation78_spill] sm:$0xff] }
 0x6a8   : > { %16506 = vmatmul.mubr.msk.f32.gmra.mrb[116].mxu0 %vm4114_vm3, %v22278_v21  ;;  %v22274_v41 = vmax.f32 %v20799_v48, 0.0  ;;  %v22669_v17 = vmax.f32 %v20799_v48, 0.0 }
 0x6a9   : > { %v22275_v31 = vmax.f32 %v20801_v29, 0.0  ;;  %v16413_v3 = vpop.f32.mrb[8].mxu1 }
 0x6aa   : > { %v20815_v33 = vadd.f32 %v16413_v3, %v4948_v15  ;;  %v7981_v9 = vpop.f32.mrb[9].mxu1  ;;  %v22630_v3 = vld [vmem:[#allocation72_spill] sm:$0xff] }
 0x6ab   : > { %v20817_v10 = vadd.f32 %v7981_v9, %v4947_v20  ;;  %16508 = vmatprep.mubr.msk.f32.mxu0 %vm4114_vm3, %v22275_v31  ;;  %v4952_v9 = vadd.f32 %v22630_v3, %v20614_v7  ;;  %v22632_v3 = vld [vmem:[#allocation76_spill] sm:$0xff] }
 0x6ac   : > { %16509 = vmatmul.mubr.msk.f32.gmra.mrb[118].mxu0 %vm4114_vm3, %v22274_v41  ;;  %v22276_v46 = vmax.f32 %v20815_v33, 0.0 }
 0x6ad   : > { %v22277_v34 = vmax.f32 %v20817_v10, 0.0  ;;  %v16416_v6 = vpop.f32.mrb[10].mxu1  ;;  %v22670_v53 = vmax.f32 %v20817_v10, 0.0 }
 0x6ae   : > { %v20831_v15 = vadd.f32 %v16416_v6, %v4950_v19  ;;  %v7991_v13 = vpop.f32.mrb[11].mxu1 }
 0x6af   : > { %v20833_v20 = vadd.f32 %v7991_v13, %v4949_v51  ;;  %16511 = vmatprep.mubr.msk.f32.mxu0 %vm4114_vm3, %v22277_v34  ;;  %v4953_v34 = vadd.f32 %v20614_v7, %v22633_v43  ;;  %v22637_v43 = vld [vmem:[#allocation30_spill] sm:$0xff] }
 0x6b0   : > { %16512 = vmatmul.mubr.msk.f32.gmra.mrb[120].mxu0 %vm4114_vm3, %v22276_v46  ;;  %v8079_v51 = vmax.f32 %v20831_v15, 0.0  ;;  %v4954_v46 = vadd.f32 %v22632_v3, %v20614_v7 }
 0x6b1   : > { %v8078_v19 = vmax.f32 %v20833_v20, 0.0  ;;  %v16419_v6 = vpop.f32.mrb[12].mxu1 }
 0x6b2   : > { %v20847_v13 = vadd.f32 %v16419_v6, %v4952_v9  ;;  %v8001_v41 = vpop.f32.mrb[13].mxu1 }
 0x6b3   : > { %v20849_v31 = vadd.f32 %v8001_v41, %v4951_v25  ;;  %16514 = vmatprep.mubr.msk.f32.mxu0 %vm4114_vm3, %v8078_v19 }
 0x6b4   : > { %16515 = vmatmul.mubr.msk.f32.gmra.mrb[122].mxu0 %vm4114_vm3, %v8079_v51  ;;  %v8081_v41 = vmax.f32 %v20847_v13, 0.0 }
 0x6b5   : > { %v8080_v9 = vmax.f32 %v20849_v31, 0.0  ;;  %v16422_v6 = vpop.f32.mrb[14].mxu1 }
 0x6b6   : > { %v20863_v25 = vadd.f32 %v16422_v6, %v4954_v46  ;;  %v8011_v21 = vpop.f32.mrb[15].mxu1  ;;  %v22636_v46 = vld [vmem:[#allocation28_spill] sm:$0xff] }
 0x6b7   : > { %v20865_v58 = vadd.f32 %v8011_v21, %v4953_v34  ;;  %16517 = vmatprep.mubr.msk.f32.mxu0 %vm4114_vm3, %v8080_v9  ;;  %v22634_v21 = vld [vmem:[#allocation13_spill] sm:$0xff]  ;;  %v22635_v34 = vld [vmem:[#allocation14_spill] sm:$0xff]  ;;  %v22638_v6 = vld [vmem:[#allocation32_spill] sm:$0xff] }
 0x6b8   : > { %16518 = vmatmul.mubr.msk.f32.gmra.mrb[124].mxu0 %vm4114_vm3, %v8081_v41  ;;  %v22281_v3 = vmax.f32 %v20863_v25, 0.0  ;;  %v22673_v1 = vmax.f32 %v20863_v25, 0.0 }
 0x6b9   : > { %v22280_v7 = vmax.f32 %v20865_v58, 0.0 }
 0x6bb   : > { %16520 = vmatprep.mubr.msk.f32.mxu0 %vm4114_vm3, %v22280_v7  ;;  %v22639_v7 = vld [vmem:[#allocation33_spill] sm:$0xff] }
 0x6bc   : > { %16521 = vmatmul.mubr.msk.f32.gmra.mrb[126].mxu0 %vm4114_vm3, %v22281_v3  ;;  %v22640_v3 = vld [vmem:[#allocation35_spill] sm:$0xff] }
 0x6bd   : > { %16975 = vmatprep.mubr.msk.f32.mxu0 %vm4114_vm3, %v22634_v21  ;;  %v22641_v21 = vld [vmem:[#allocation37_spill] sm:$0xff] }
 0x6c0   : > { %16976 = vmatmul.mubr.msk.f32.vlgmr.msra.gmra.mrb[128].mxu0 %vm4114_vm3, %v22635_v34  ;;  %v22642_v34 = vld [vmem:[#allocation5_spill] sm:$0xff] }
 0x6c1   : > { %16978 = vmatprep.mubr.msk.f32.mxu0 %vm4114_vm3, %v22636_v46  ;;  %17024 = vmatpush3.msra.mxu0 %v20640_v50  ;;  %v22643_v46 = vld [vmem:[#allocation6_spill] sm:$0xff]  ;;  %v22644_v50 = vld [vmem:[#allocation7_spill] sm:$0xff] }
 0x6c4   : > { %16979 = vmatmul.mubr.msk.f32.gmra.mrb[130].mxu0 %vm4114_vm3, %v22637_v43  ;;  %v22645_v43 = vld [vmem:[#allocation8_spill] sm:$0xff] }
 0x6c5   : > { %16981 = vmatprep.mubr.msk.f32.mxu0 %vm4114_vm3, %v22638_v6  ;;  %v22646_v6 = vld [vmem:[#allocation9_spill] sm:$0xff] }
 0x6c8   : > { %16982 = vmatmul.mubr.msk.f32.gmra.mrb[132].mxu0 %vm4114_vm3, %v22639_v7  ;;  %v22647_v7 = vld [vmem:[#allocation10_spill] sm:$0xff] }
 0x6c9   : > { %16984 = vmatprep.mubr.msk.f32.mxu0 %vm4114_vm3, %v22640_v3  ;;  %v22648_v3 = vld [vmem:[#allocation11_spill] sm:$0xff] }
 0x6cc   : > { %16985 = vmatmul.mubr.msk.f32.gmra.mrb[134].mxu0 %vm4114_vm3, %v22641_v21  ;;  %v22649_v21 = vld [vmem:[#allocation12_spill] sm:$0xff] }
 0x6cd   : > { %16987 = vmatprep.mubr.msk.f32.mxu0 %vm4114_vm3, %v22642_v34  ;;  %v8791_v34 = vld [vmem:[#allocation4] sm:$0xff] }
 0x6ce   : > { %16525 = vmatprep.mubr.msk.f32.mxu1 %vm4114_vm3, %v8791_v34  ;;  %v22655_v34 = vld [vmem:[#allocation18_spill] sm:$0xff] }
 0x6d0   : > { %16988 = vmatmul.mubr.msk.f32.gmra.mrb[136].mxu0 %vm4114_vm3, %v22643_v46  ;;  %v22650_v46 = vld [vmem:[#allocation39_spill] sm:$0xff] }
 0x6d1   : > { %16990 = vmatprep.mubr.msk.f32.mxu0 %vm4114_vm3, %v22644_v50  ;;  %v8792_v50 = vld [vmem:[#allocation4 + $0x8] sm:$0xff] }
 0x6d2   : > { %16526 = vmatmul.mubr.msk.f32.vlgmr.msra.gmra.mrb[32].mxu1 %vm4114_vm3, %v8792_v50  ;;  %v22657_v50 = vld [vmem:[#allocation20_spill] sm:$0xff] }
 0x6d4   : > { %16991 = vmatmul.mubr.msk.f32.gmra.mrb[138].mxu0 %vm4114_vm3, %v22645_v43  ;;  %v14019_v43 = vld [vmem:[%s22095_s9 + $0x8] sm:$0xff] }
 0x6d5   : > { %16993 = vmatprep.mubr.msk.f32.mxu0 %vm4114_vm3, %v22646_v6  ;;  %16573 = vmatprep.subr.mxu1 %v14019_v43  ;;  %v22651_v6 = vld [vmem:[#allocation40_spill] sm:$0xff] }
 0x6d6   : > { %16574 = vmatpush3.msra.mxu1 %v14019_v43  ;;  %v22659_v43 = vld [vmem:[#allocation22_spill] sm:$0xff] }
 0x6d7   : > { %16623 = vmatprep.subr.mxu1 %v20999_v59 }
 0x6d8   : > { %16994 = vmatmul.mubr.msk.f32.gmra.mrb[140].mxu0 %vm4114_vm3, %v22647_v7  ;;  %v22652_v7 = vld [vmem:[#allocation15_spill] sm:$0xff] }
 0x6d9   : > { %16996 = vmatprep.mubr.msk.f32.mxu0 %vm4114_vm3, %v22648_v3  ;;  %v22653_v3 = vld [vmem:[#allocation16_spill] sm:$0xff] }
 0x6dc   : > { %16997 = vmatmul.mubr.msk.f32.gmra.mrb[142].mxu0 %vm4114_vm3, %v22649_v21  ;;  %v22654_v21 = vld [vmem:[#allocation17_spill] sm:$0xff] }
 0x6dd   : > { %16999 = vmatprep.mubr.msk.f32.mxu0 %vm4114_vm3, %v22650_v46  ;;  %v22656_v46 = vld [vmem:[#allocation19_spill] sm:$0xff] }
 0x6e0   : > { %17000 = vmatmul.mubr.msk.f32.gmra.mrb[144].mxu0 %vm4114_vm3, %v22651_v6  ;;  %v22658_v6 = vld [vmem:[#allocation21_spill] sm:$0xff] }
 0x6e1   : > { %17002 = vmatprep.mubr.msk.f32.mxu0 %vm4114_vm3, %v22652_v7  ;;  %v22660_v7 = vld [vmem:[#allocation23_spill] sm:$0xff] }
 0x6e4   : > { %17003 = vmatmul.mubr.msk.f32.gmra.mrb[146].mxu0 %vm4114_vm3, %v22653_v3  ;;  %v22661_v3 = vld [vmem:[#allocation24_spill] sm:$0xff] }
 0x6e5   : > { %17005 = vmatprep.mubr.msk.f32.mxu0 %vm4114_vm3, %v22654_v21  ;;  %v22662_v21 = vld [vmem:[#allocation25_spill] sm:$0xff] }
 0x6e8   : > { %17006 = vmatmul.mubr.msk.f32.gmra.mrb[148].mxu0 %vm4114_vm3, %v22655_v34  ;;  %v22663_v34 = vld [vmem:[#allocation26_spill] sm:$0xff] }
 0x6e9   : > { %17008 = vmatprep.mubr.msk.f32.mxu0 %vm4114_vm3, %v22656_v46  ;;  %v22664_v46 = vld [vmem:[#allocation27_spill] sm:$0xff] }
 0x6ec   : > { %17009 = vmatmul.mubr.msk.f32.gmra.mrb[150].mxu0 %vm4114_vm3, %v22657_v50  ;;  %v22665_v50 = vld [vmem:[#allocation29_spill] sm:$0xff] }
 0x6ed   : > { %17011 = vmatprep.mubr.msk.f32.mxu0 %vm4114_vm3, %v22658_v6 }
 0x6f0   : > { %17012 = vmatmul.mubr.msk.f32.gmra.mrb[152].mxu0 %vm4114_vm3, %v22659_v43 }
 0x6f1   : > { %17014 = vmatprep.mubr.msk.f32.mxu0 %vm4114_vm3, %v22660_v7 }
 0x6f4   : > { %17015 = vmatmul.mubr.msk.f32.gmra.mrb[154].mxu0 %vm4114_vm3, %v22661_v3 }
 0x6f5   : > { %17017 = vmatprep.mubr.msk.f32.mxu0 %vm4114_vm3, %v22662_v21 }
 0x6f8   : > { %17018 = vmatmul.mubr.msk.f32.gmra.mrb[156].mxu0 %vm4114_vm3, %v22663_v34 }
 0x6f9   : > { %17020 = vmatprep.mubr.msk.f32.mxu0 %vm4114_vm3, %v22664_v46 }
 0x6fc   : > { %17021 = vmatmul.mubr.msk.f32.gmra.mrb[158].mxu0 %vm4114_vm3, %v22665_v50 }
 0x6fd   : > { %17025 = vmatprep.mubr.msk.f32.mxu0 %vm4114_vm3, %v8052_v0  ;;  %v22667_v0 = vmax.f32 %v20783_v37, 0.0 }
 0x700   : > { %17026 = vmatmul.mubr.msk.f32.vlgmr.msra.gmra.mrb[128].mxu0 %vm4114_vm3, %v8053_v8  ;;  %v22668_v8 = vmax.f32 %v20801_v29, 0.0 }
 0x701   : > { %17028 = vmatprep.mubr.msk.f32.mxu0 %vm4114_vm3, %v8054_v49  ;;  %v22671_v49 = vmax.f32 %v20815_v33, 0.0 }
 0x704   : > { %17029 = vmatmul.mubr.msk.f32.gmra.mrb[130].mxu0 %vm4114_vm3, %v8055_v18  ;;  %v22672_v18 = vmax.f32 %v20865_v58, 0.0 }
 0x705   : > { %17031 = vmatprep.mubr.msk.f32.mxu0 %vm4114_vm3, %v8056_v60 }
 0x708   : > { %17032 = vmatmul.mubr.msk.f32.gmra.mrb[132].mxu0 %vm4114_vm3, %v8057_v47 }
 0x709   : > { %17034 = vmatprep.mubr.msk.f32.mxu0 %vm4114_vm3, %v8058_v11 }
 0x70c   : > { %17035 = vmatmul.mubr.msk.f32.gmra.mrb[134].mxu0 %vm4114_vm3, %v8059_v36 }
 0x70d   : > { %17037 = vmatprep.mubr.msk.f32.mxu0 %vm4114_vm3, %v8060_v39 }
 0x710   : > { %17038 = vmatmul.mubr.msk.f32.gmra.mrb[136].mxu0 %vm4114_vm3, %v8061_v55 }
 0x711   : > { %17040 = vmatprep.mubr.msk.f32.mxu0 %vm4114_vm3, %v8062_v5 }
 0x714   : > { %17041 = vmatmul.mubr.msk.f32.gmra.mrb[138].mxu0 %vm4114_vm3, %v8063_v35 }
 0x715   : > { %17043 = vmatprep.mubr.msk.f32.mxu0 %vm4114_vm3, %v8064_v40 }
 0x718   : > { %17044 = vmatmul.mubr.msk.f32.gmra.mrb[140].mxu0 %vm4114_vm3, %v8065_v14 }
 0x719   : > { %17046 = vmatprep.mubr.msk.f32.mxu0 %vm4114_vm3, %v8066_v4 }
 0x71c   : > { %17047 = vmatmul.mubr.msk.f32.gmra.mrb[142].mxu0 %vm4114_vm3, %v8067_v38 }
 0x71d   : > { %17049 = vmatprep.mubr.msk.f32.mxu0 %vm4114_vm3, %v8068_v12 }
 0x720   : > { %17050 = vmatmul.mubr.msk.f32.gmra.mrb[144].mxu0 %vm4114_vm3, %v8069_v24 }
 0x721   : > { %17052 = vmatprep.mubr.msk.f32.mxu0 %vm4114_vm3, %v8070_v57 }
 0x724   : > { %17053 = vmatmul.mubr.msk.f32.gmra.mrb[146].mxu0 %vm4114_vm3, %v8071_v27 }
 0x725   : > { %17055 = vmatprep.mubr.msk.f32.mxu0 %vm4114_vm3, %v22666_v2 }
 0x728   : > { %17056 = vmatmul.mubr.msk.f32.gmra.mrb[148].mxu0 %vm4114_vm3, %v22667_v0 }
 0x729   : > { %17058 = vmatprep.mubr.msk.f32.mxu0 %vm4114_vm3, %v22668_v8 }
 0x72c   : > { %17059 = vmatmul.mubr.msk.f32.gmra.mrb[150].mxu0 %vm4114_vm3, %v22669_v17 }
 0x72d   : > { %17061 = vmatprep.mubr.msk.f32.mxu0 %vm4114_vm3, %v22670_v53 }
 0x730   : > { %17062 = vmatmul.mubr.msk.f32.gmra.mrb[152].mxu0 %vm4114_vm3, %v22671_v49 }
 0x731   : > { %17064 = vmatprep.mubr.msk.f32.mxu0 %vm4114_vm3, %v8078_v19 }
 0x734   : > { %17065 = vmatmul.mubr.msk.f32.gmra.mrb[154].mxu0 %vm4114_vm3, %v8079_v51 }
 0x735   : > { %17067 = vmatprep.mubr.msk.f32.mxu0 %vm4114_vm3, %v8080_v9 }
 0x738   : > { %17068 = vmatmul.mubr.msk.f32.gmra.mrb[156].mxu0 %vm4114_vm3, %v8081_v41 }
 0x739   : > { %17070 = vmatprep.mubr.msk.f32.mxu0 %vm4114_vm3, %v22672_v18 }
 0x73c   : > { %17071 = vmatmul.mubr.msk.f32.gmra.mrb[158].mxu0 %vm4114_vm3, %v22673_v1 }
 0x753   : > { %v16477_v60 = vpop.f32.mrb[96].mxu0 }
 0x754   : > { %v17221_v47 = vadd.f32 %v16477_v60, %v21056_v28  ;;  %v8512_v54 = vpop.f32.mrb[97].mxu0 }
 0x755   : > { %v17222_v62 = vadd.f32 %v21056_v28, %v8512_v54 }
 0x756   : > { %8759 = vst.msk [vmem:[#allocation4 + $0x21] sm:$0xff] %vm4114_vm3, %v17221_v47 }
 0x757   : > { %8758 = vst.msk [vmem:[#allocation4 + $0x19] sm:$0xff] %vm4114_vm3, %v17222_v62  ;;  %v16480_v11 = vpop.f32.mrb[98].mxu0 }
 0x758   : > { %v17223_v36 = vadd.f32 %v16480_v11, %v21056_v28  ;;  %v8522_v44 = vpop.f32.mrb[99].mxu0 }
 0x759   : > { %v17224_v56 = vadd.f32 %v21056_v28, %v8522_v44 }
 0x75a   : > { %8761 = vst.msk [vmem:[#allocation4 + $0x39] sm:$0xff] %vm4114_vm3, %v17223_v36 }
 0x75b   : > { %8760 = vst.msk [vmem:[#allocation4 + $0x31] sm:$0xff] %vm4114_vm3, %v17224_v56  ;;  %v16483_v39 = vpop.f32.mrb[100].mxu0 }
 0x75c   : > { %v17225_v55 = vadd.f32 %v16483_v39, %v21056_v28  ;;  %v8532_v61 = vpop.f32.mrb[101].mxu0 }
 0x75d   : > { %v17226_v22 = vadd.f32 %v21056_v28, %v8532_v61 }
 0x75e   : > { %8763 = vst.msk [vmem:[#allocation4 + $0x51] sm:$0xff] %vm4114_vm3, %v17225_v55  ;;  %v21069_v5 = vld [vmem:[#allocation4 + $0x18] sm:$0xff]  ;;  %v21071_v35 = vld [vmem:[#allocation4 + $0x20] sm:$0xff] }
 0x75f   : > { %8762 = vst.msk [vmem:[#allocation4 + $0x49] sm:$0xff] %vm4114_vm3, %v17226_v22  ;;  %v16486_v45 = vpop.f32.mrb[102].mxu0  ;;  %16528 = vmatprep.mubr.msk.f32.mxu1 %vm4114_vm3, %v21069_v5 }
 0x760   : > { %v17227_v63 = vadd.f32 %v16486_v45, %v21056_v28  ;;  %v8542_v40 = vpop.f32.mrb[103].mxu0  ;;  %16529 = vmatmul.mubr.msk.f32.gmra.mrb[34].mxu1 %vm4114_vm3, %v21071_v35 }
 0x761   : > { %v17228_v14 = vadd.f32 %v21056_v28, %v8542_v40 }
 0x762   : > { %8765 = vst.msk [vmem:[#allocation4 + $0x69] sm:$0xff] %vm4114_vm3, %v17227_v63  ;;  %v21081_v16 = vld [vmem:[#allocation4 + $0x30] sm:$0xff]  ;;  %v21083_v52 = vld [vmem:[#allocation4 + $0x38] sm:$0xff] }
 0x763   : > { %8764 = vst.msk [vmem:[#allocation4 + $0x61] sm:$0xff] %vm4114_vm3, %v17228_v14  ;;  %v16489_v4 = vpop.f32.mrb[104].mxu0  ;;  %16531 = vmatprep.mubr.msk.f32.mxu1 %vm4114_vm3, %v21081_v16 }
 0x764   : > { %v17229_v38 = vadd.f32 %v16489_v4, %v21056_v28  ;;  %v8552_v42 = vpop.f32.mrb[105].mxu0  ;;  %16532 = vmatmul.mubr.msk.f32.gmra.mrb[36].mxu1 %vm4114_vm3, %v21083_v52 }
 0x765   : > { %v17230_v32 = vadd.f32 %v21056_v28, %v8552_v42 }
 0x766   : > { %8767 = vst.msk [vmem:[#allocation4 + $0x81] sm:$0xff] %vm4114_vm3, %v17229_v38  ;;  %v21093_v12 = vld [vmem:[#allocation4 + $0x48] sm:$0xff]  ;;  %v21095_v24 = vld [vmem:[#allocation4 + $0x50] sm:$0xff] }
 0x767   : > { %8766 = vst.msk [vmem:[#allocation4 + $0x79] sm:$0xff] %vm4114_vm3, %v17230_v32  ;;  %v16492_v30 = vpop.f32.mrb[106].mxu0  ;;  %16534 = vmatprep.mubr.msk.f32.mxu1 %vm4114_vm3, %v21093_v12 }
 0x768   : > { %v17231_v26 = vadd.f32 %v16492_v30, %v21056_v28  ;;  %v8562_v57 = vpop.f32.mrb[107].mxu0  ;;  %16535 = vmatmul.mubr.msk.f32.gmra.mrb[38].mxu1 %vm4114_vm3, %v21095_v24 }
 0x769   : > { %v17232_v27 = vadd.f32 %v21056_v28, %v8562_v57 }
 0x76a   : > { %8769 = vst.msk [vmem:[#allocation4 + $0x99] sm:$0xff] %vm4114_vm3, %v17231_v26  ;;  %v21105_v37 = vld [vmem:[#allocation4 + $0x60] sm:$0xff]  ;;  %v21107_v23 = vld [vmem:[#allocation4 + $0x68] sm:$0xff] }
 0x76b   : > { %8768 = vst.msk [vmem:[#allocation4 + $0x91] sm:$0xff] %vm4114_vm3, %v17232_v27  ;;  %v16495_v58 = vpop.f32.mrb[108].mxu0  ;;  %16537 = vmatprep.mubr.msk.f32.mxu1 %vm4114_vm3, %v21105_v37 }
 0x76c   : > { %v17233_v48 = vadd.f32 %v16495_v58, %v21056_v28  ;;  %v8572_v29 = vpop.f32.mrb[109].mxu0  ;;  %16538 = vmatmul.mubr.msk.f32.gmra.mrb[40].mxu1 %vm4114_vm3, %v21107_v23 }
 0x76d   : > { %v17234_v31 = vadd.f32 %v21056_v28, %v8572_v29 }
 0x76e   : > { %8771 = vst.msk [vmem:[#allocation4 + $0xb1] sm:$0xff] %vm4114_vm3, %v17233_v48  ;;  %v21117_v33 = vld [vmem:[#allocation4 + $0x78] sm:$0xff]  ;;  %v21119_v10 = vld [vmem:[#allocation4 + $0x80] sm:$0xff] }
 0x76f   : > { %8770 = vst.msk [vmem:[#allocation4 + $0xa9] sm:$0xff] %vm4114_vm3, %v17234_v31  ;;  %v16498_v15 = vpop.f32.mrb[110].mxu0  ;;  %16540 = vmatprep.mubr.msk.f32.mxu1 %vm4114_vm3, %v21117_v33 }
 0x770   : > { %v17235_v20 = vadd.f32 %v16498_v15, %v21056_v28  ;;  %v8582_v19 = vpop.f32.mrb[111].mxu0  ;;  %16541 = vmatmul.mubr.msk.f32.gmra.mrb[42].mxu1 %vm4114_vm3, %v21119_v10 }
 0x771   : > { %v17236_v51 = vadd.f32 %v21056_v28, %v8582_v19 }
 0x772   : > { %8773 = vst.msk [vmem:[#allocation4 + $0xc9] sm:$0xff] %vm4114_vm3, %v17235_v20  ;;  %v21129_v13 = vld [vmem:[#allocation4 + $0x90] sm:$0xff]  ;;  %v21131_v9 = vld [vmem:[#allocation4 + $0x98] sm:$0xff] }
 0x773   : > { %8772 = vst.msk [vmem:[#allocation4 + $0xc1] sm:$0xff] %vm4114_vm3, %v17236_v51  ;;  %v16501_v41 = vpop.f32.mrb[112].mxu0  ;;  %16543 = vmatprep.mubr.msk.f32.mxu1 %vm4114_vm3, %v21129_v13 }
 0x774   : > { %v17237_v25 = vadd.f32 %v16501_v41, %v21056_v28  ;;  %v8592_v6 = vpop.f32.mrb[113].mxu0  ;;  %16544 = vmatmul.mubr.msk.f32.gmra.mrb[44].mxu1 %vm4114_vm3, %v21131_v9  ;;  %v9183_v41 = vld [vmem:[#allocation4 + $0x1] sm:$0xff] }
 0x775   : > { %v17238_v43 = vadd.f32 %v21056_v28, %v8592_v6  ;;  %v21249_v6 = vld [vmem:[#allocation4 + $0x19] sm:$0xff] }
 0x776   : > { %8775 = vst.msk [vmem:[#allocation4 + $0xe1] sm:$0xff] %vm4114_vm3, %v17237_v25  ;;  %v21141_v7 = vld [vmem:[#allocation4 + $0xa8] sm:$0xff]  ;;  %v21143_v3 = vld [vmem:[#allocation4 + $0xb0] sm:$0xff]  ;;  %v21246_v25 = vld [vmem:[%s22095_s9 + $0x18] sm:$0xff] }
 0x777   : > { %8774 = vst.msk [vmem:[#allocation4 + $0xd9] sm:$0xff] %vm4114_vm3, %v17238_v43  ;;  %v16504_v21 = vpop.f32.mrb[114].mxu0  ;;  %16546 = vmatprep.mubr.msk.f32.mxu1 %vm4114_vm3, %v21141_v7  ;;  %v21255_v43 = vld [vmem:[#allocation4 + $0x21] sm:$0xff] }
 0x778   : > { %v17239_v34 = vadd.f32 %v16504_v21, %v21056_v28  ;;  %v8602_v46 = vpop.f32.mrb[115].mxu0  ;;  %16547 = vmatmul.mubr.msk.f32.gmra.mrb[46].mxu1 %vm4114_vm3, %v21143_v3  ;;  %v21259_v21 = vld [vmem:[#allocation4 + $0x31] sm:$0xff] }
 0x779   : > { %v17240_v50 = vadd.f32 %v21056_v28, %v8602_v46  ;;  %v21271_v46 = vld [vmem:[#allocation4 + $0x51] sm:$0xff] }
 0x77a   : > { %8777 = vst.msk [vmem:[#allocation4 + $0xf9] sm:$0xff] %vm4114_vm3, %v17239_v34  ;;  %v21153_v2 = vld [vmem:[#allocation4 + $0xc0] sm:$0xff]  ;;  %v21155_v0 = vld [vmem:[#allocation4 + $0xc8] sm:$0xff] }
 0x77b   : > { %8776 = vst.msk [vmem:[#allocation4 + $0xf1] sm:$0xff] %vm4114_vm3, %v17240_v50  ;;  %v16507_v8 = vpop.f32.mrb[116].mxu0  ;;  %16549 = vmatprep.mubr.msk.f32.mxu1 %vm4114_vm3, %v21153_v2  ;;  %v21263_v34 = vld [vmem:[#allocation4 + $0x39] sm:$0xff]  ;;  %v21275_v50 = vld [vmem:[#allocation4 + $0x61] sm:$0xff] }
 0x77c   : > { %v17241_v17 = vadd.f32 %v16507_v8, %v21056_v28  ;;  %v8612_v53 = vpop.f32.mrb[117].mxu0  ;;  %16550 = vmatmul.mubr.msk.f32.gmra.mrb[48].mxu1 %vm4114_vm3, %v21155_v0  ;;  %v21279_v8 = vld [vmem:[#allocation4 + $0x69] sm:$0xff] }
 0x77d   : > { %v17242_v49 = vadd.f32 %v21056_v28, %v8612_v53  ;;  %v21287_v53 = vld [vmem:[#allocation4 + $0x81] sm:$0xff] }
 0x77e   : > { %8779 = vst.msk [vmem:[#allocation4 + $0x111] sm:$0xff] %vm4114_vm3, %v17241_v17  ;;  %v21165_v18 = vld [vmem:[#allocation4 + $0xd8] sm:$0xff]  ;;  %v21167_v1 = vld [vmem:[#allocation4 + $0xe0] sm:$0xff] }
 0x77f   : > { %8778 = vst.msk [vmem:[#allocation4 + $0x109] sm:$0xff] %vm4114_vm3, %v17242_v49  ;;  %v16510_v60 = vpop.f32.mrb[118].mxu0  ;;  %16552 = vmatprep.mubr.msk.f32.mxu1 %vm4114_vm3, %v21165_v18  ;;  %v21283_v17 = vld [vmem:[#allocation4 + $0x79] sm:$0xff]  ;;  %v21291_v49 = vld [vmem:[#allocation4 + $0x91] sm:$0xff] }
 0x780   : > { %v17243_v47 = vadd.f32 %v16510_v60, %v21056_v28  ;;  %v8622_v54 = vpop.f32.mrb[119].mxu0  ;;  %16553 = vmatmul.mubr.msk.f32.gmra.mrb[50].mxu1 %vm4114_vm3, %v21167_v1  ;;  %v21295_v60 = vld [vmem:[#allocation4 + $0x99] sm:$0xff] }
 0x781   : > { %v17244_v62 = vadd.f32 %v21056_v28, %v8622_v54  ;;  %v21303_v54 = vld [vmem:[#allocation4 + $0xb1] sm:$0xff] }
 0x782   : > { %8781 = vst.msk [vmem:[#allocation4 + $0x129] sm:$0xff] %vm4114_vm3, %v17243_v47  ;;  %v21177_v11 = vld [vmem:[#allocation4 + $0xf0] sm:$0xff]  ;;  %v21179_v36 = vld [vmem:[#allocation4 + $0xf8] sm:$0xff] }
 0x783   : > { %8780 = vst.msk [vmem:[#allocation4 + $0x121] sm:$0xff] %vm4114_vm3, %v17244_v62  ;;  %v16513_v44 = vpop.f32.mrb[120].mxu0  ;;  %16555 = vmatprep.mubr.msk.f32.mxu1 %vm4114_vm3, %v21177_v11  ;;  %v21299_v47 = vld [vmem:[#allocation4 + $0xa9] sm:$0xff]  ;;  %v21307_v62 = vld [vmem:[#allocation4 + $0xc1] sm:$0xff] }
 0x784   : > { %v17245_v56 = vadd.f32 %v16513_v44, %v21056_v28  ;;  %v8632_v39 = vpop.f32.mrb[121].mxu0  ;;  %16556 = vmatmul.mubr.msk.f32.gmra.mrb[52].mxu1 %vm4114_vm3, %v21179_v36  ;;  %v21311_v44 = vld [vmem:[#allocation4 + $0xc9] sm:$0xff] }
 0x785   : > { %v17246_v55 = vadd.f32 %v21056_v28, %v8632_v39  ;;  %v21319_v39 = vld [vmem:[#allocation4 + $0xe1] sm:$0xff] }
 0x786   : > { %8783 = vst.msk [vmem:[#allocation4 + $0x141] sm:$0xff] %vm4114_vm3, %v17245_v56  ;;  %v21189_v61 = vld [vmem:[#allocation4 + $0x108] sm:$0xff]  ;;  %v21191_v22 = vld [vmem:[#allocation4 + $0x110] sm:$0xff]  ;;  %v21315_v56 = vld [vmem:[#allocation4 + $0xd9] sm:$0xff] }
 0x787   : > { %8782 = vst.msk [vmem:[#allocation4 + $0x139] sm:$0xff] %vm4114_vm3, %v17246_v55  ;;  %v16516_v45 = vpop.f32.mrb[122].mxu0  ;;  %16558 = vmatprep.mubr.msk.f32.mxu1 %vm4114_vm3, %v21189_v61  ;;  %v21323_v55 = vld [vmem:[#allocation4 + $0xf1] sm:$0xff] }
 0x788   : > { %v17247_v63 = vadd.f32 %v16516_v45, %v21056_v28  ;;  %v8642_v40 = vpop.f32.mrb[123].mxu0  ;;  %16559 = vmatmul.mubr.msk.f32.gmra.mrb[54].mxu1 %vm4114_vm3, %v21191_v22  ;;  %v21327_v45 = vld [vmem:[#allocation4 + $0xf9] sm:$0xff] }
 0x789   : > { %v17248_v14 = vadd.f32 %v21056_v28, %v8642_v40  ;;  %v21335_v40 = vld [vmem:[#allocation4 + $0x111] sm:$0xff] }
 0x78a   : > { %8785 = vst.msk [vmem:[#allocation4 + $0x159] sm:$0xff] %vm4114_vm3, %v17247_v63  ;;  %v21201_v4 = vld [vmem:[#allocation4 + $0x120] sm:$0xff]  ;;  %v21203_v38 = vld [vmem:[#allocation4 + $0x128] sm:$0xff] }
 0x78b   : > { %8784 = vst.msk [vmem:[#allocation4 + $0x151] sm:$0xff] %vm4114_vm3, %v17248_v14  ;;  %v16519_v42 = vpop.f32.mrb[124].mxu0  ;;  %16561 = vmatprep.mubr.msk.f32.mxu1 %vm4114_vm3, %v21201_v4  ;;  %v21331_v63 = vld [vmem:[#allocation4 + $0x109] sm:$0xff]  ;;  %v21339_v14 = vld [vmem:[#allocation4 + $0x121] sm:$0xff] }
 0x78c   : > { %v17249_v32 = vadd.f32 %v16519_v42, %v21056_v28  ;;  %v8652_v30 = vpop.f32.mrb[125].mxu0  ;;  %16562 = vmatmul.mubr.msk.f32.gmra.mrb[56].mxu1 %vm4114_vm3, %v21203_v38  ;;  %v21343_v42 = vld [vmem:[#allocation4 + $0x129] sm:$0xff] }
 0x78d   : > { %v17250_v26 = vadd.f32 %v21056_v28, %v8652_v30  ;;  %22674 = vst [vmem:[#allocation61_spill] sm:$0xff] %v21343_v42  ;;  %v21351_v30 = vld [vmem:[#allocation4 + $0x141] sm:$0xff] }
 0x78e   : > { %8787 = vst.msk [vmem:[#allocation4 + $0x171] sm:$0xff] %vm4114_vm3, %v17249_v32  ;;  %v21213_v57 = vld [vmem:[#allocation4 + $0x138] sm:$0xff]  ;;  %v21215_v27 = vld [vmem:[#allocation4 + $0x140] sm:$0xff]  ;;  %22676 = vst [vmem:[#allocation65_spill] sm:$0xff] %v21351_v30 }
 0x78f   : > { %8786 = vst.msk [vmem:[#allocation4 + $0x169] sm:$0xff] %vm4114_vm3, %v17250_v26  ;;  %v16522_v58 = vpop.f32.mrb[126].mxu0  ;;  %16564 = vmatprep.mubr.msk.f32.mxu1 %vm4114_vm3, %v21213_v57  ;;  %v21347_v32 = vld [vmem:[#allocation4 + $0x139] sm:$0xff] }
 0x790   : > { %v17251_v48 = vadd.f32 %v16522_v58, %v21056_v28  ;;  %v8662_v29 = vpop.f32.mrb[127].mxu0  ;;  %16565 = vmatmul.mubr.msk.f32.gmra.mrb[58].mxu1 %vm4114_vm3, %v21215_v27  ;;  %22675 = vst [vmem:[#allocation63_spill] sm:$0xff] %v21347_v32 }
 0x791   : > { %v17252_v31 = vadd.f32 %v21056_v28, %v8662_v29  ;;  %v9184_v28 = vld [vmem:[#allocation4 + $0x9] sm:$0xff]  ;;  %v21359_v58 = vld [vmem:[#allocation4 + $0x159] sm:$0xff] }
 0x792   : > { %8789 = vst.msk [vmem:[#allocation4 + $0x189] sm:$0xff] %vm4114_vm3, %v17251_v48  ;;  %v21225_v15 = vld [vmem:[#allocation4 + $0x150] sm:$0xff]  ;;  %v21227_v20 = vld [vmem:[#allocation4 + $0x158] sm:$0xff]  ;;  %22678 = vst [vmem:[#allocation69_spill] sm:$0xff] %v21359_v58 }
 0x793   : > { %8788 = vst.msk [vmem:[#allocation4 + $0x181] sm:$0xff] %vm4114_vm3, %v17252_v31  ;;  %16567 = vmatprep.mubr.msk.f32.mxu1 %vm4114_vm3, %v21225_v15  ;;  %v21355_v26 = vld [vmem:[#allocation4 + $0x151] sm:$0xff]  ;;  %v9570_v29 = vld [vmem:[#allocation4 + $0x2] sm:$0xff] }
 0x794   : > { %16568 = vmatmul.mubr.msk.f32.gmra.mrb[60].mxu1 %vm4114_vm3, %v21227_v20  ;;  %22677 = vst [vmem:[#allocation67_spill] sm:$0xff] %v21355_v26 }
 0x795   : > { %v21367_v31 = vld [vmem:[#allocation4 + $0x171] sm:$0xff] }
 0x796   : > { %v21234_v19 = vld [vmem:[#allocation4 + $0x168] sm:$0xff]  ;;  %v21236_v51 = vld [vmem:[#allocation4 + $0x170] sm:$0xff]  ;;  %22680 = vst [vmem:[#allocation73_spill] sm:$0xff] %v21367_v31 }
 0x797   : > { %16570 = vmatprep.mubr.msk.f32.mxu1 %vm4114_vm3, %v21234_v19  ;;  %v21363_v48 = vld [vmem:[#allocation4 + $0x169] sm:$0xff] }
 0x798   : > { %16571 = vmatmul.mubr.msk.f32.gmra.mrb[62].mxu1 %vm4114_vm3, %v21236_v51  ;;  %22679 = vst [vmem:[#allocation71_spill] sm:$0xff] %v21363_v48 }
 0x799   : > { %16575 = vmatprep.mubr.msk.f32.mxu1 %vm4114_vm3, %v9183_v41  ;;  %v9571_v41 = vld [vmem:[#allocation4 + $0xa] sm:$0xff] }
 0x79c   : > { %16576 = vmatmul.mubr.msk.f32.vlgmr.msra.gmra.mrb[32].mxu1 %vm4114_vm3, %v9184_v28  ;;  %v21375_v28 = vld [vmem:[%s22095_s9 + $0x20] sm:$0xff] }
 0x79d   : > { %16624 = vmatpush3.msra.mxu1 %v20999_v59  ;;  %16578 = vmatprep.mubr.msk.f32.mxu1 %vm4114_vm3, %v21249_v6  ;;  %v21267_v59 = vld [vmem:[#allocation4 + $0x49] sm:$0xff] }
 0x79e   : > { %16673 = vmatprep.subr.mxu1 %v21246_v25 }
 0x7a0   : > { %16579 = vmatmul.mubr.msk.f32.gmra.mrb[34].mxu1 %vm4114_vm3, %v21255_v43 }
 0x7a1   : > { %16581 = vmatprep.mubr.msk.f32.mxu1 %vm4114_vm3, %v21259_v21 }
 0x7a4   : > { %16582 = vmatmul.mubr.msk.f32.gmra.mrb[36].mxu1 %vm4114_vm3, %v21263_v34 }
 0x7a5   : > { %16584 = vmatprep.mubr.msk.f32.mxu1 %vm4114_vm3, %v21267_v59 }
 0x7a8   : > { %16585 = vmatmul.mubr.msk.f32.gmra.mrb[38].mxu1 %vm4114_vm3, %v21271_v46 }
 0x7a9   : > { %16587 = vmatprep.mubr.msk.f32.mxu1 %vm4114_vm3, %v21275_v50 }
 0x7ac   : > { %16588 = vmatmul.mubr.msk.f32.gmra.mrb[40].mxu1 %vm4114_vm3, %v21279_v8 }
 0x7ad   : > { %16590 = vmatprep.mubr.msk.f32.mxu1 %vm4114_vm3, %v21283_v17 }
 0x7b0   : > { %16591 = vmatmul.mubr.msk.f32.gmra.mrb[42].mxu1 %vm4114_vm3, %v21287_v53 }
 0x7b1   : > { %16593 = vmatprep.mubr.msk.f32.mxu1 %vm4114_vm3, %v21291_v49 }
 0x7b4   : > { %16594 = vmatmul.mubr.msk.f32.gmra.mrb[44].mxu1 %vm4114_vm3, %v21295_v60 }
 0x7b5   : > { %16596 = vmatprep.mubr.msk.f32.mxu1 %vm4114_vm3, %v21299_v47 }
 0x7b8   : > { %16597 = vmatmul.mubr.msk.f32.gmra.mrb[46].mxu1 %vm4114_vm3, %v21303_v54 }
 0x7b9   : > { %16599 = vmatprep.mubr.msk.f32.mxu1 %vm4114_vm3, %v21307_v62 }
 0x7bc   : > { %16600 = vmatmul.mubr.msk.f32.gmra.mrb[48].mxu1 %vm4114_vm3, %v21311_v44 }
 0x7bd   : > { %16602 = vmatprep.mubr.msk.f32.mxu1 %vm4114_vm3, %v21315_v56 }
 0x7c0   : > { %16603 = vmatmul.mubr.msk.f32.gmra.mrb[50].mxu1 %vm4114_vm3, %v21319_v39 }
 0x7c1   : > { %16605 = vmatprep.mubr.msk.f32.mxu1 %vm4114_vm3, %v21323_v55 }
 0x7c4   : > { %16606 = vmatmul.mubr.msk.f32.gmra.mrb[52].mxu1 %vm4114_vm3, %v21327_v45 }
 0x7c5   : > { %16608 = vmatprep.mubr.msk.f32.mxu1 %vm4114_vm3, %v21331_v63 }
 0x7c8   : > { %16609 = vmatmul.mubr.msk.f32.gmra.mrb[54].mxu1 %vm4114_vm3, %v21335_v40 }
 0x7c9   : > { %16611 = vmatprep.mubr.msk.f32.mxu1 %vm4114_vm3, %v21339_v14 }
 0x7cc   : > { %16612 = vmatmul.mubr.msk.f32.gmra.mrb[56].mxu1 %vm4114_vm3, %v21343_v42 }
 0x7cd   : > { %16614 = vmatprep.mubr.msk.f32.mxu1 %vm4114_vm3, %v21347_v32 }
 0x7d0   : > { %16615 = vmatmul.mubr.msk.f32.gmra.mrb[58].mxu1 %vm4114_vm3, %v21351_v30 }
 0x7d1   : > { %16617 = vmatprep.mubr.msk.f32.mxu1 %vm4114_vm3, %v21355_v26 }
 0x7d4   : > { %16618 = vmatmul.mubr.msk.f32.gmra.mrb[60].mxu1 %vm4114_vm3, %v21359_v58  ;;  %v21378_v58 = vld [vmem:[#allocation4 + $0x1a] sm:$0xff] }
 0x7d5   : > { %16620 = vmatprep.mubr.msk.f32.mxu1 %vm4114_vm3, %v21363_v48  ;;  %22681 = vst [vmem:[#allocation75_spill] sm:$0xff] %v21378_v58 }
 0x7d8   : > { %16621 = vmatmul.mubr.msk.f32.gmra.mrb[62].mxu1 %vm4114_vm3, %v21367_v31  ;;  %v21384_v31 = vld [vmem:[#allocation4 + $0x22] sm:$0xff] }
 0x7d9   : > { %16625 = vmatprep.mubr.msk.f32.mxu1 %vm4114_vm3, %v9570_v29  ;;  %22682 = vst [vmem:[#allocation77_spill] sm:$0xff] %v21384_v31  ;;  %v21388_v29 = vld [vmem:[#allocation4 + $0x32] sm:$0xff] }
 0x7da   : > { %22683 = vst [vmem:[#allocation79_spill] sm:$0xff] %v21388_v29 }
 0x7dc   : > { %16626 = vmatmul.mubr.msk.f32.vlgmr.msra.gmra.mrb[32].mxu1 %vm4114_vm3, %v9571_v41  ;;  %v21392_v41 = vld [vmem:[#allocation4 + $0x3a] sm:$0xff] }
 0x7dd   : > { %16674 = vmatpush3.msra.mxu1 %v21246_v25  ;;  %16628 = vmatprep.mubr.msk.f32.mxu1 %vm4114_vm3, %v21378_v58  ;;  %22684 = vst [vmem:[#allocation80_spill] sm:$0xff] %v21392_v41  ;;  %v21396_v25 = vld [vmem:[#allocation4 + $0x4a] sm:$0xff]  ;;  %v21400_v58 = vld [vmem:[#allocation4 + $0x52] sm:$0xff] }
 0x7de   : > { %16723 = vmatprep.subr.mxu1 %v21375_v28  ;;  %22685 = vst [vmem:[#allocation82_spill] sm:$0xff] %v21396_v25  ;;  %22686 = vst [vmem:[#allocation83_spill] sm:$0xff] %v21400_v58 }
 0x7e0   : > { %16629 = vmatmul.mubr.msk.f32.gmra.mrb[34].mxu1 %vm4114_vm3, %v21384_v31  ;;  %v21404_v31 = vld [vmem:[#allocation4 + $0x62] sm:$0xff] }
 0x7e1   : > { %16631 = vmatprep.mubr.msk.f32.mxu1 %vm4114_vm3, %v21388_v29  ;;  %22687 = vst [vmem:[#allocation84_spill] sm:$0xff] %v21404_v31  ;;  %v21408_v29 = vld [vmem:[#allocation4 + $0x6a] sm:$0xff] }
 0x7e2   : > { %22688 = vst [vmem:[#allocation59_spill] sm:$0xff] %v21408_v29 }
 0x7e4   : > { %16632 = vmatmul.mubr.msk.f32.gmra.mrb[36].mxu1 %vm4114_vm3, %v21392_v41  ;;  %v21412_v41 = vld [vmem:[#allocation4 + $0x7a] sm:$0xff] }
 0x7e5   : > { %16634 = vmatprep.mubr.msk.f32.mxu1 %vm4114_vm3, %v21396_v25  ;;  %22689 = vst [vmem:[#allocation60_spill] sm:$0xff] %v21412_v41  ;;  %v21416_v25 = vld [vmem:[#allocation4 + $0x82] sm:$0xff] }
 0x7e6   : > { %22690 = vst [vmem:[#allocation81_spill] sm:$0xff] %v21416_v25 }
 0x7e8   : > { %16635 = vmatmul.mubr.msk.f32.gmra.mrb[38].mxu1 %vm4114_vm3, %v21400_v58  ;;  %v21420_v58 = vld [vmem:[#allocation4 + $0x92] sm:$0xff] }
 0x7e9   : > { %16637 = vmatprep.mubr.msk.f32.mxu1 %vm4114_vm3, %v21404_v31  ;;  %22691 = vst [vmem:[#allocation31_spill] sm:$0xff] %v21420_v58  ;;  %v21424_v31 = vld [vmem:[#allocation4 + $0x9a] sm:$0xff] }
 0x7ea   : > { %22692 = vst [vmem:[#allocation34_spill] sm:$0xff] %v21424_v31 }
 0x7ec   : > { %16638 = vmatmul.mubr.msk.f32.gmra.mrb[40].mxu1 %vm4114_vm3, %v21408_v29  ;;  %v21428_v29 = vld [vmem:[#allocation4 + $0xaa] sm:$0xff] }
 0x7ed   : > { %16640 = vmatprep.mubr.msk.f32.mxu1 %vm4114_vm3, %v21412_v41  ;;  %22693 = vst [vmem:[#allocation36_spill] sm:$0xff] %v21428_v29  ;;  %v21432_v41 = vld [vmem:[#allocation4 + $0xb2] sm:$0xff] }
 0x7ee   : > { %22694 = vst [vmem:[#allocation38_spill] sm:$0xff] %v21432_v41 }
 0x7f0   : > { %16641 = vmatmul.mubr.msk.f32.gmra.mrb[42].mxu1 %vm4114_vm3, %v21416_v25  ;;  %v21436_v25 = vld [vmem:[#allocation4 + $0xc2] sm:$0xff] }
 0x7f1   : > { %16643 = vmatprep.mubr.msk.f32.mxu1 %vm4114_vm3, %v21420_v58  ;;  %22695 = vst [vmem:[#allocation41_spill] sm:$0xff] %v21436_v25  ;;  %v21440_v58 = vld [vmem:[#allocation4 + $0xca] sm:$0xff] }
 0x7f2   : > { %22696 = vst [vmem:[#allocation42_spill] sm:$0xff] %v21440_v58 }
 0x7f4   : > { %16644 = vmatmul.mubr.msk.f32.gmra.mrb[44].mxu1 %vm4114_vm3, %v21424_v31  ;;  %v21444_v31 = vld [vmem:[#allocation4 + $0xda] sm:$0xff] }
 0x7f5   : > { %16646 = vmatprep.mubr.msk.f32.mxu1 %vm4114_vm3, %v21428_v29  ;;  %22697 = vst [vmem:[#allocation44_spill] sm:$0xff] %v21444_v31  ;;  %v21448_v29 = vld [vmem:[#allocation4 + $0xe2] sm:$0xff] }
 0x7f6   : > { %22698 = vst [vmem:[#allocation46_spill] sm:$0xff] %v21448_v29 }
 0x7f8   : > { %16647 = vmatmul.mubr.msk.f32.gmra.mrb[46].mxu1 %vm4114_vm3, %v21432_v41  ;;  %v21452_v41 = vld [vmem:[#allocation4 + $0xf2] sm:$0xff] }
 0x7f9   : > { %16649 = vmatprep.mubr.msk.f32.mxu1 %vm4114_vm3, %v21436_v25  ;;  %22699 = vst [vmem:[#allocation48_spill] sm:$0xff] %v21452_v41  ;;  %v21456_v25 = vld [vmem:[#allocation4 + $0xfa] sm:$0xff] }
 0x7fa   : > { %22700 = vst [vmem:[#allocation50_spill] sm:$0xff] %v21456_v25 }
 0x7fc   : > { %16650 = vmatmul.mubr.msk.f32.gmra.mrb[48].mxu1 %vm4114_vm3, %v21440_v58  ;;  %v21460_v58 = vld [vmem:[#allocation4 + $0x10a] sm:$0xff] }
 0x7fd   : > { %16652 = vmatprep.mubr.msk.f32.mxu1 %vm4114_vm3, %v21444_v31  ;;  %22701 = vst [vmem:[#allocation52_spill] sm:$0xff] %v21460_v58  ;;  %v21464_v31 = vld [vmem:[#allocation4 + $0x112] sm:$0xff] }
 0x7fe   : > { %22702 = vst [vmem:[#allocation53_spill] sm:$0xff] %v21464_v31 }
 0x800   : > { %16653 = vmatmul.mubr.msk.f32.gmra.mrb[50].mxu1 %vm4114_vm3, %v21448_v29  ;;  %v21468_v29 = vld [vmem:[#allocation4 + $0x122] sm:$0xff] }
 0x801   : > { %16655 = vmatprep.mubr.msk.f32.mxu1 %vm4114_vm3, %v21452_v41  ;;  %22703 = vst [vmem:[#allocation54_spill] sm:$0xff] %v21468_v29  ;;  %v21472_v41 = vld [vmem:[#allocation4 + $0x12a] sm:$0xff] }
 0x802   : > { %22704 = vst [vmem:[#allocation56_spill] sm:$0xff] %v21472_v41 }
 0x804   : > { %16656 = vmatmul.mubr.msk.f32.gmra.mrb[52].mxu1 %vm4114_vm3, %v21456_v25  ;;  %v21476_v25 = vld [vmem:[#allocation4 + $0x13a] sm:$0xff] }
 0x805   : > { %16658 = vmatprep.mubr.msk.f32.mxu1 %vm4114_vm3, %v21460_v58  ;;  %22705 = vst [vmem:[#allocation58_spill] sm:$0xff] %v21476_v25  ;;  %v21480_v58 = vld [vmem:[#allocation4 + $0x142] sm:$0xff] }
 0x808   : > { %16659 = vmatmul.mubr.msk.f32.gmra.mrb[54].mxu1 %vm4114_vm3, %v21464_v31  ;;  %v21484_v31 = vld [vmem:[#allocation4 + $0x152] sm:$0xff] }
 0x809   : > { %16661 = vmatprep.mubr.msk.f32.mxu1 %vm4114_vm3, %v21468_v29  ;;  %22706 = vst [vmem:[#allocation43_spill] sm:$0xff] %v21484_v31  ;;  %v21488_v29 = vld [vmem:[#allocation4 + $0x15a] sm:$0xff] }
 0x80c   : > { %16662 = vmatmul.mubr.msk.f32.gmra.mrb[56].mxu1 %vm4114_vm3, %v21472_v41  ;;  %v21492_v41 = vld [vmem:[#allocation4 + $0x16a] sm:$0xff] }
 0x80d   : > { %16664 = vmatprep.mubr.msk.f32.mxu1 %vm4114_vm3, %v21476_v25  ;;  %22707 = vst [vmem:[#allocation45_spill] sm:$0xff] %v21492_v41  ;;  %v21496_v25 = vld [vmem:[#allocation4 + $0x172] sm:$0xff] }
 0x810   : > { %16665 = vmatmul.mubr.msk.f32.gmra.mrb[58].mxu1 %vm4114_vm3, %v21480_v58 }
 0x811   : > { %16667 = vmatprep.mubr.msk.f32.mxu1 %vm4114_vm3, %v21484_v31  ;;  %v14151_v31 = vld [vmem:[%s22095_s9 + $0x28] sm:$0xff] }
 0x814   : > { %16668 = vmatmul.mubr.msk.f32.gmra.mrb[60].mxu1 %vm4114_vm3, %v21488_v29 }
 0x815   : > { %16670 = vmatprep.mubr.msk.f32.mxu1 %vm4114_vm3, %v21492_v41 }
 0x818   : > { %16671 = vmatmul.mubr.msk.f32.gmra.mrb[62].mxu1 %vm4114_vm3, %v21496_v25 }
 0x819   : > { %16675 = vmatprep.mubr.msk.f32.mxu1 %vm4114_vm3, %v21069_v5  ;;  %v21564_v5 = vld [vmem:[#allocation4 + $0x180] sm:$0xff] }
 0x81c   : > { %16676 = vmatmul.mubr.msk.f32.vlgmr.msra.gmra.mrb[32].mxu1 %vm4114_vm3, %v21071_v35  ;;  %v21568_v35 = vld [vmem:[#allocation4 + $0x188] sm:$0xff] }
 0x81d   : > { %16724 = vmatpush3.msra.mxu1 %v21375_v28  ;;  %16678 = vmatprep.mubr.msk.f32.mxu1 %vm4114_vm3, %v21081_v16  ;;  %v14184_v28 = vld [vmem:[%s22095_s9 + $0x30] sm:$0xff] }
 0x81e   : > { %16773 = vmatprep.subr.mxu1 %v14151_v31 }
 0x820   : > { %16679 = vmatmul.mubr.msk.f32.gmra.mrb[34].mxu1 %vm4114_vm3, %v21083_v52 }
 0x821   : > { %16681 = vmatprep.mubr.msk.f32.mxu1 %vm4114_vm3, %v21093_v12 }
 0x824   : > { %16682 = vmatmul.mubr.msk.f32.gmra.mrb[36].mxu1 %vm4114_vm3, %v21095_v24 }
 0x825   : > { %16684 = vmatprep.mubr.msk.f32.mxu1 %vm4114_vm3, %v21105_v37 }
 0x828   : > { %16685 = vmatmul.mubr.msk.f32.gmra.mrb[38].mxu1 %vm4114_vm3, %v21107_v23 }
 0x829   : > { %16687 = vmatprep.mubr.msk.f32.mxu1 %vm4114_vm3, %v21117_v33 }
 0x82c   : > { %16688 = vmatmul.mubr.msk.f32.gmra.mrb[40].mxu1 %vm4114_vm3, %v21119_v10 }
 0x82d   : > { %16690 = vmatprep.mubr.msk.f32.mxu1 %vm4114_vm3, %v21129_v13 }
 0x830   : > { %16691 = vmatmul.mubr.msk.f32.gmra.mrb[42].mxu1 %vm4114_vm3, %v21131_v9 }
 0x831   : > { %16693 = vmatprep.mubr.msk.f32.mxu1 %vm4114_vm3, %v21141_v7 }
 0x834   : > { %16694 = vmatmul.mubr.msk.f32.gmra.mrb[44].mxu1 %vm4114_vm3, %v21143_v3 }
 0x835   : > { %16696 = vmatprep.mubr.msk.f32.mxu1 %vm4114_vm3, %v21153_v2 }
 0x838   : > { %16697 = vmatmul.mubr.msk.f32.gmra.mrb[46].mxu1 %vm4114_vm3, %v21155_v0 }
 0x839   : > { %16699 = vmatprep.mubr.msk.f32.mxu1 %vm4114_vm3, %v21165_v18 }
 0x83c   : > { %16700 = vmatmul.mubr.msk.f32.gmra.mrb[48].mxu1 %vm4114_vm3, %v21167_v1 }
 0x83d   : > { %16702 = vmatprep.mubr.msk.f32.mxu1 %vm4114_vm3, %v21177_v11 }
 0x840   : > { %16703 = vmatmul.mubr.msk.f32.gmra.mrb[50].mxu1 %vm4114_vm3, %v21179_v36 }
 0x841   : > { %16705 = vmatprep.mubr.msk.f32.mxu1 %vm4114_vm3, %v21189_v61 }
 0x844   : > { %16706 = vmatmul.mubr.msk.f32.gmra.mrb[52].mxu1 %vm4114_vm3, %v21191_v22 }
 0x845   : > { %16708 = vmatprep.mubr.msk.f32.mxu1 %vm4114_vm3, %v21201_v4 }
 0x848   : > { %16709 = vmatmul.mubr.msk.f32.gmra.mrb[54].mxu1 %vm4114_vm3, %v21203_v38 }
 0x849   : > { %16711 = vmatprep.mubr.msk.f32.mxu1 %vm4114_vm3, %v21213_v57 }
 0x84c   : > { %16712 = vmatmul.mubr.msk.f32.gmra.mrb[56].mxu1 %vm4114_vm3, %v21215_v27 }
 0x84d   : > { %16714 = vmatprep.mubr.msk.f32.mxu1 %vm4114_vm3, %v21225_v15 }
 0x850   : > { %16715 = vmatmul.mubr.msk.f32.gmra.mrb[58].mxu1 %vm4114_vm3, %v21227_v20 }
 0x851   : > { %16717 = vmatprep.mubr.msk.f32.mxu1 %vm4114_vm3, %v21234_v19 }
 0x854   : > { %16718 = vmatmul.mubr.msk.f32.gmra.mrb[60].mxu1 %vm4114_vm3, %v21236_v51 }
 0x855   : > { %16720 = vmatprep.mubr.msk.f32.mxu1 %vm4114_vm3, %v21564_v5 }
 0x858   : > { %16721 = vmatmul.mubr.msk.f32.gmra.mrb[62].mxu1 %vm4114_vm3, %v21568_v35 }
 0x859   : > { %16725 = vmatprep.mubr.msk.f32.mxu1 %vm4114_vm3, %v21249_v6  ;;  %v22708_v6 = vld [vmem:[#allocation69_spill] sm:$0xff] }
 0x85c   : > { %16726 = vmatmul.mubr.msk.f32.vlgmr.msra.gmra.mrb[32].mxu1 %vm4114_vm3, %v21255_v43  ;;  %v22709_v43 = vld [vmem:[#allocation73_spill] sm:$0xff] }
 0x85d   : > { %16774 = vmatpush3.msra.mxu1 %v14151_v31  ;;  %16728 = vmatprep.mubr.msk.f32.mxu1 %vm4114_vm3, %v21259_v21  ;;  %v21635_v31 = vld [vmem:[#allocation4 + $0x181] sm:$0xff] }
 0x85e   : > { %16823 = vmatprep.subr.mxu1 %v14184_v28  ;;  %22710 = vst [vmem:[#allocation47_spill] sm:$0xff] %v21635_v31 }
 0x860   : > { %16729 = vmatmul.mubr.msk.f32.gmra.mrb[34].mxu1 %vm4114_vm3, %v21263_v34 }
 0x861   : > { %16731 = vmatprep.mubr.msk.f32.mxu1 %vm4114_vm3, %v21267_v59 }
 0x864   : > { %16732 = vmatmul.mubr.msk.f32.gmra.mrb[36].mxu1 %vm4114_vm3, %v21271_v46 }
 0x865   : > { %16734 = vmatprep.mubr.msk.f32.mxu1 %vm4114_vm3, %v21275_v50 }
 0x868   : > { %16735 = vmatmul.mubr.msk.f32.gmra.mrb[38].mxu1 %vm4114_vm3, %v21279_v8 }
 0x869   : > { %16737 = vmatprep.mubr.msk.f32.mxu1 %vm4114_vm3, %v21283_v17 }
 0x86c   : > { %16738 = vmatmul.mubr.msk.f32.gmra.mrb[40].mxu1 %vm4114_vm3, %v21287_v53 }
 0x86d   : > { %16740 = vmatprep.mubr.msk.f32.mxu1 %vm4114_vm3, %v21291_v49 }
 0x870   : > { %16741 = vmatmul.mubr.msk.f32.gmra.mrb[42].mxu1 %vm4114_vm3, %v21295_v60 }
 0x871   : > { %16743 = vmatprep.mubr.msk.f32.mxu1 %vm4114_vm3, %v21299_v47 }
 0x874   : > { %16744 = vmatmul.mubr.msk.f32.gmra.mrb[44].mxu1 %vm4114_vm3, %v21303_v54 }
 0x875   : > { %16746 = vmatprep.mubr.msk.f32.mxu1 %vm4114_vm3, %v21307_v62 }
 0x878   : > { %16747 = vmatmul.mubr.msk.f32.gmra.mrb[46].mxu1 %vm4114_vm3, %v21311_v44 }
 0x879   : > { %16749 = vmatprep.mubr.msk.f32.mxu1 %vm4114_vm3, %v21315_v56 }
 0x87c   : > { %16750 = vmatmul.mubr.msk.f32.gmra.mrb[48].mxu1 %vm4114_vm3, %v21319_v39 }
 0x87d   : > { %16752 = vmatprep.mubr.msk.f32.mxu1 %vm4114_vm3, %v21323_v55 }
 0x880   : > { %16753 = vmatmul.mubr.msk.f32.gmra.mrb[50].mxu1 %vm4114_vm3, %v21327_v45 }
 0x881   : > { %16755 = vmatprep.mubr.msk.f32.mxu1 %vm4114_vm3, %v21331_v63 }
 0x884   : > { %16756 = vmatmul.mubr.msk.f32.gmra.mrb[52].mxu1 %vm4114_vm3, %v21335_v40 }
 0x885   : > { %16758 = vmatprep.mubr.msk.f32.mxu1 %vm4114_vm3, %v21339_v14 }
 0x888   : > { %16759 = vmatmul.mubr.msk.f32.gmra.mrb[54].mxu1 %vm4114_vm3, %v21343_v42  ;;  %v22719_v42 = vld [vmem:[#allocation59_spill] sm:$0xff] }
 0x889   : > { %16761 = vmatprep.mubr.msk.f32.mxu1 %vm4114_vm3, %v21347_v32  ;;  %v21639_v32 = vld [vmem:[#allocation4 + $0x189] sm:$0xff] }
 0x88a   : > { %22711 = vst [vmem:[#allocation49_spill] sm:$0xff] %v21639_v32 }
 0x88c   : > { %16762 = vmatmul.mubr.msk.f32.gmra.mrb[56].mxu1 %vm4114_vm3, %v21351_v30  ;;  %v22716_v30 = vld [vmem:[#allocation82_spill] sm:$0xff] }
 0x88d   : > { %16764 = vmatprep.mubr.msk.f32.mxu1 %vm4114_vm3, %v21355_v26  ;;  %v22712_v26 = vld [vmem:[#allocation75_spill] sm:$0xff] }
 0x890   : > { %16765 = vmatmul.mubr.msk.f32.gmra.mrb[58].mxu1 %vm4114_vm3, %v22708_v6  ;;  %v22713_v6 = vld [vmem:[#allocation77_spill] sm:$0xff] }
 0x891   : > { %16767 = vmatprep.mubr.msk.f32.mxu1 %vm4114_vm3, %v21363_v48  ;;  %v14217_v48 = vld [vmem:[%s22095_s9 + $0x38] sm:$0xff] }
 0x894   : > { %16768 = vmatmul.mubr.msk.f32.gmra.mrb[60].mxu1 %vm4114_vm3, %v22709_v43  ;;  %v22714_v43 = vld [vmem:[#allocation79_spill] sm:$0xff] }
 0x895   : > { %16770 = vmatprep.mubr.msk.f32.mxu1 %vm4114_vm3, %v21635_v31  ;;  %v22715_v31 = vld [vmem:[#allocation80_spill] sm:$0xff] }
 0x898   : > { %16771 = vmatmul.mubr.msk.f32.gmra.mrb[62].mxu1 %vm4114_vm3, %v21639_v32  ;;  %v22717_v32 = vld [vmem:[#allocation83_spill] sm:$0xff] }
 0x899   : > { %16775 = vmatprep.mubr.msk.f32.mxu1 %vm4114_vm3, %v22712_v26  ;;  %v22718_v26 = vld [vmem:[#allocation84_spill] sm:$0xff] }
 0x89c   : > { %16776 = vmatmul.mubr.msk.f32.vlgmr.msra.gmra.mrb[32].mxu1 %vm4114_vm3, %v22713_v6  ;;  %v22721_v6 = vld [vmem:[#allocation81_spill] sm:$0xff] }
 0x89d   : > { %16824 = vmatpush3.msra.mxu1 %v14184_v28  ;;  %16778 = vmatprep.mubr.msk.f32.mxu1 %vm4114_vm3, %v22714_v43  ;;  %v22720_v28 = vld [vmem:[#allocation60_spill] sm:$0xff]  ;;  %v22722_v43 = vld [vmem:[#allocation31_spill] sm:$0xff] }
 0x89e   : > { %16873 = vmatprep.subr.mxu1 %v14217_v48 }
 0x8a0   : > { %16779 = vmatmul.mubr.msk.f32.gmra.mrb[34].mxu1 %vm4114_vm3, %v22715_v31  ;;  %v22723_v31 = vld [vmem:[#allocation34_spill] sm:$0xff] }
 0x8a1   : > { %16781 = vmatprep.mubr.msk.f32.mxu1 %vm4114_vm3, %v22716_v30  ;;  %v22724_v30 = vld [vmem:[#allocation36_spill] sm:$0xff] }
 0x8a4   : > { %16782 = vmatmul.mubr.msk.f32.gmra.mrb[36].mxu1 %vm4114_vm3, %v22717_v32  ;;  %v22725_v32 = vld [vmem:[#allocation38_spill] sm:$0xff] }
 0x8a5   : > { %16784 = vmatprep.mubr.msk.f32.mxu1 %vm4114_vm3, %v22718_v26  ;;  %v22726_v26 = vld [vmem:[#allocation41_spill] sm:$0xff] }
 0x8a8   : > { %16785 = vmatmul.mubr.msk.f32.gmra.mrb[38].mxu1 %vm4114_vm3, %v22719_v42  ;;  %v22727_v42 = vld [vmem:[#allocation42_spill] sm:$0xff] }
 0x8a9   : > { %16787 = vmatprep.mubr.msk.f32.mxu1 %vm4114_vm3, %v22720_v28  ;;  %v22728_v28 = vld [vmem:[#allocation44_spill] sm:$0xff] }
 0x8ac   : > { %16788 = vmatmul.mubr.msk.f32.gmra.mrb[40].mxu1 %vm4114_vm3, %v22721_v6  ;;  %v22729_v6 = vld [vmem:[#allocation46_spill] sm:$0xff] }
 0x8ad   : > { %16790 = vmatprep.mubr.msk.f32.mxu1 %vm4114_vm3, %v22722_v43  ;;  %v22730_v43 = vld [vmem:[#allocation48_spill] sm:$0xff] }
 0x8b0   : > { %16791 = vmatmul.mubr.msk.f32.gmra.mrb[42].mxu1 %vm4114_vm3, %v22723_v31  ;;  %v22731_v31 = vld [vmem:[#allocation50_spill] sm:$0xff] }
 0x8b1   : > { %16793 = vmatprep.mubr.msk.f32.mxu1 %vm4114_vm3, %v22724_v30  ;;  %v22732_v30 = vld [vmem:[#allocation52_spill] sm:$0xff] }
 0x8b4   : > { %16794 = vmatmul.mubr.msk.f32.gmra.mrb[44].mxu1 %vm4114_vm3, %v22725_v32  ;;  %v22733_v32 = vld [vmem:[#allocation53_spill] sm:$0xff] }
 0x8b5   : > { %16796 = vmatprep.mubr.msk.f32.mxu1 %vm4114_vm3, %v22726_v26  ;;  %v22734_v26 = vld [vmem:[#allocation54_spill] sm:$0xff] }
 0x8b8   : > { %16797 = vmatmul.mubr.msk.f32.gmra.mrb[46].mxu1 %vm4114_vm3, %v22727_v42  ;;  %v22735_v42 = vld [vmem:[#allocation56_spill] sm:$0xff] }
 0x8b9   : > { %16799 = vmatprep.mubr.msk.f32.mxu1 %vm4114_vm3, %v22728_v28  ;;  %v22736_v28 = vld [vmem:[#allocation58_spill] sm:$0xff] }
 0x8bc   : > { %16800 = vmatmul.mubr.msk.f32.gmra.mrb[48].mxu1 %vm4114_vm3, %v22729_v6 }
 0x8bd   : > { %16802 = vmatprep.mubr.msk.f32.mxu1 %vm4114_vm3, %v22730_v43  ;;  %v22737_v43 = vld [vmem:[#allocation43_spill] sm:$0xff] }
 0x8c0   : > { %16803 = vmatmul.mubr.msk.f32.gmra.mrb[50].mxu1 %vm4114_vm3, %v22731_v31 }
 0x8c1   : > { %16805 = vmatprep.mubr.msk.f32.mxu1 %vm4114_vm3, %v22732_v30 }
 0x8c4   : > { %16806 = vmatmul.mubr.msk.f32.gmra.mrb[52].mxu1 %vm4114_vm3, %v22733_v32 }
 0x8c5   : > { %16808 = vmatprep.mubr.msk.f32.mxu1 %vm4114_vm3, %v22734_v26  ;;  %v21706_v26 = vld [vmem:[#allocation4 + $0x182] sm:$0xff] }
 0x8c8   : > { %16809 = vmatmul.mubr.msk.f32.gmra.mrb[54].mxu1 %vm4114_vm3, %v22735_v42 }
 0x8c9   : > { %16811 = vmatprep.mubr.msk.f32.mxu1 %vm4114_vm3, %v22736_v28  ;;  %v21710_v28 = vld [vmem:[#allocation4 + $0x18a] sm:$0xff] }
 0x8cc   : > { %16812 = vmatmul.mubr.msk.f32.gmra.mrb[56].mxu1 %vm4114_vm3, %v21480_v58 }
 0x8cd   : > { %16814 = vmatprep.mubr.msk.f32.mxu1 %vm4114_vm3, %v22737_v43 }
 0x8d0   : > { %16815 = vmatmul.mubr.msk.f32.gmra.mrb[58].mxu1 %vm4114_vm3, %v21488_v29 }
 0x8d1   : > { %16817 = vmatprep.mubr.msk.f32.mxu1 %vm4114_vm3, %v21492_v41  ;;  %v14250_v41 = vld [vmem:[%s22095_s9 + $0x40] sm:$0xff] }
 0x8d4   : > { %16818 = vmatmul.mubr.msk.f32.gmra.mrb[60].mxu1 %vm4114_vm3, %v21496_v25 }
 0x8d5   : > { %16820 = vmatprep.mubr.msk.f32.mxu1 %vm4114_vm3, %v21706_v26 }
 0x8d8   : > { %16821 = vmatmul.mubr.msk.f32.gmra.mrb[62].mxu1 %vm4114_vm3, %v21710_v28 }
 0x8d9   : > { %16825 = vmatprep.mubr.msk.f32.mxu1 %vm4114_vm3, %v21081_v16  ;;  %v11149_v16 = vld [vmem:[#allocation4 + $0x198] sm:$0xff] }
 0x8dc   : > { %16826 = vmatmul.mubr.msk.f32.vlgmr.msra.gmra.mrb[32].mxu1 %vm4114_vm3, %v21083_v52  ;;  %v11150_v52 = vld [vmem:[#allocation4 + $0x1a0] sm:$0xff] }
 0x8dd   : > { %16874 = vmatpush3.msra.mxu1 %v14217_v48  ;;  %16828 = vmatprep.mubr.msk.f32.mxu1 %vm4114_vm3, %v21093_v12  ;;  %v12835_v12 = vld [vmem:[%s22097_s11 + $0x10] sm:$0xff] }
 0x8de   : > { %16923 = vmatprep.subr.mxu1 %v14250_v41  ;;  %17073 = vmatprep.subr.mxu0 %v12835_v12 }
 0x8df   : > { %17074 = vmatpush3.msra.mxu0 %v12835_v12 }
 0x8e0   : > { %16829 = vmatmul.mubr.msk.f32.gmra.mrb[34].mxu1 %vm4114_vm3, %v21095_v24  ;;  %v22738_v24 = vld [vmem:[#allocation61_spill] sm:$0xff] }
 0x8e1   : > { %16831 = vmatprep.mubr.msk.f32.mxu1 %vm4114_vm3, %v21105_v37  ;;  %v22739_v37 = vld [vmem:[#allocation63_spill] sm:$0xff] }
 0x8e4   : > { %16832 = vmatmul.mubr.msk.f32.gmra.mrb[36].mxu1 %vm4114_vm3, %v21107_v23  ;;  %v22740_v23 = vld [vmem:[#allocation65_spill] sm:$0xff] }
 0x8e5   : > { %16834 = vmatprep.mubr.msk.f32.mxu1 %vm4114_vm3, %v21117_v33  ;;  %v22741_v33 = vld [vmem:[#allocation67_spill] sm:$0xff] }
 0x8e8   : > { %16835 = vmatmul.mubr.msk.f32.gmra.mrb[38].mxu1 %vm4114_vm3, %v21119_v10  ;;  %v22742_v10 = vld [vmem:[#allocation69_spill] sm:$0xff] }
 0x8e9   : > { %16837 = vmatprep.mubr.msk.f32.mxu1 %vm4114_vm3, %v21129_v13  ;;  %v22743_v13 = vld [vmem:[#allocation71_spill] sm:$0xff] }
 0x8ec   : > { %16838 = vmatmul.mubr.msk.f32.gmra.mrb[40].mxu1 %vm4114_vm3, %v21131_v9  ;;  %v22744_v9 = vld [vmem:[#allocation73_spill] sm:$0xff] }
 0x8ed   : > { %16840 = vmatprep.mubr.msk.f32.mxu1 %vm4114_vm3, %v21141_v7  ;;  %v22745_v7 = vld [vmem:[#allocation47_spill] sm:$0xff] }
 0x8f0   : > { %16841 = vmatmul.mubr.msk.f32.gmra.mrb[42].mxu1 %vm4114_vm3, %v21143_v3  ;;  %v11536_v3 = vld [vmem:[#allocation4 + $0x199] sm:$0xff] }
 0x8f1   : > { %16843 = vmatprep.mubr.msk.f32.mxu1 %vm4114_vm3, %v21153_v2  ;;  %v22746_v2 = vld [vmem:[#allocation49_spill] sm:$0xff] }
 0x8f4   : > { %16844 = vmatmul.mubr.msk.f32.gmra.mrb[44].mxu1 %vm4114_vm3, %v21155_v0  ;;  %v11537_v0 = vld [vmem:[#allocation4 + $0x1a1] sm:$0xff] }
 0x8f5   : > { %16846 = vmatprep.mubr.msk.f32.mxu1 %vm4114_vm3, %v21165_v18  ;;  %v22747_v18 = vld [vmem:[#allocation79_spill] sm:$0xff] }
 0x8f8   : > { %16847 = vmatmul.mubr.msk.f32.gmra.mrb[46].mxu1 %vm4114_vm3, %v21167_v1  ;;  %v22748_v1 = vld [vmem:[#allocation80_spill] sm:$0xff] }
 0x8f9   : > { %16849 = vmatprep.mubr.msk.f32.mxu1 %vm4114_vm3, %v21177_v11  ;;  %v22749_v11 = vld [vmem:[#allocation82_spill] sm:$0xff] }
 0x8fc   : > { %16850 = vmatmul.mubr.msk.f32.gmra.mrb[48].mxu1 %vm4114_vm3, %v21179_v36  ;;  %v22750_v36 = vld [vmem:[#allocation83_spill] sm:$0xff] }
 0x8fd   : > { %16852 = vmatprep.mubr.msk.f32.mxu1 %vm4114_vm3, %v21189_v61  ;;  %v22751_v61 = vld [vmem:[#allocation84_spill] sm:$0xff] }
 0x900   : > { %16853 = vmatmul.mubr.msk.f32.gmra.mrb[50].mxu1 %vm4114_vm3, %v21191_v22  ;;  %v22752_v22 = vld [vmem:[#allocation59_spill] sm:$0xff] }
 0x901   : > { %16855 = vmatprep.mubr.msk.f32.mxu1 %vm4114_vm3, %v21201_v4  ;;  %v22753_v4 = vld [vmem:[#allocation60_spill] sm:$0xff] }
 0x904   : > { %16856 = vmatmul.mubr.msk.f32.gmra.mrb[52].mxu1 %vm4114_vm3, %v21203_v38  ;;  %v22754_v38 = vld [vmem:[#allocation81_spill] sm:$0xff] }
 0x905   : > { %16858 = vmatprep.mubr.msk.f32.mxu1 %vm4114_vm3, %v21213_v57  ;;  %v22755_v57 = vld [vmem:[#allocation31_spill] sm:$0xff] }
 0x908   : > { %16859 = vmatmul.mubr.msk.f32.gmra.mrb[54].mxu1 %vm4114_vm3, %v21215_v27  ;;  %v22756_v27 = vld [vmem:[#allocation34_spill] sm:$0xff] }
 0x909   : > { %16861 = vmatprep.mubr.msk.f32.mxu1 %vm4114_vm3, %v21225_v15  ;;  %v22757_v15 = vld [vmem:[#allocation36_spill] sm:$0xff] }
 0x90c   : > { %16862 = vmatmul.mubr.msk.f32.gmra.mrb[56].mxu1 %vm4114_vm3, %v21227_v20  ;;  %v22758_v20 = vld [vmem:[#allocation38_spill] sm:$0xff] }
 0x90d   : > { %16864 = vmatprep.mubr.msk.f32.mxu1 %vm4114_vm3, %v21234_v19  ;;  %v22759_v19 = vld [vmem:[#allocation41_spill] sm:$0xff] }
 0x910   : > { %16865 = vmatmul.mubr.msk.f32.gmra.mrb[58].mxu1 %vm4114_vm3, %v21236_v51  ;;  %v22760_v51 = vld [vmem:[#allocation42_spill] sm:$0xff] }
 0x911   : > { %16867 = vmatprep.mubr.msk.f32.mxu1 %vm4114_vm3, %v21564_v5 }
 0x914   : > { %16868 = vmatmul.mubr.msk.f32.gmra.mrb[60].mxu1 %vm4114_vm3, %v21568_v35 }
 0x915   : > { %16870 = vmatprep.mubr.msk.f32.mxu1 %vm4114_vm3, %v11149_v16 }
 0x918   : > { %16871 = vmatmul.mubr.msk.f32.gmra.mrb[62].mxu1 %vm4114_vm3, %v11150_v52 }
 0x919   : > { %16875 = vmatprep.mubr.msk.f32.mxu1 %vm4114_vm3, %v21259_v21  ;;  %v22761_v21 = vld [vmem:[#allocation44_spill] sm:$0xff] }
 0x91c   : > { %16876 = vmatmul.mubr.msk.f32.vlgmr.msra.gmra.mrb[32].mxu1 %vm4114_vm3, %v21263_v34  ;;  %v22762_v34 = vld [vmem:[#allocation48_spill] sm:$0xff] }
 0x91d   : > { %16924 = vmatpush3.msra.mxu1 %v14250_v41  ;;  %16878 = vmatprep.mubr.msk.f32.mxu1 %vm4114_vm3, %v21267_v59  ;;  %v22763_v59 = vld [vmem:[#allocation54_spill] sm:$0xff] }
 0x920   : > { %16879 = vmatmul.mubr.msk.f32.gmra.mrb[34].mxu1 %vm4114_vm3, %v21271_v46  ;;  %v22764_v46 = vld [vmem:[#allocation58_spill] sm:$0xff] }
 0x921   : > { %16881 = vmatprep.mubr.msk.f32.mxu1 %vm4114_vm3, %v21275_v50  ;;  %v22765_v50 = vld [vmem:[#allocation45_spill] sm:$0xff] }
 0x924   : > { %16882 = vmatmul.mubr.msk.f32.gmra.mrb[36].mxu1 %vm4114_vm3, %v21279_v8  ;;  %v11923_v8 = vld [vmem:[#allocation4 + $0x19a] sm:$0xff] }
 0x925   : > { %16884 = vmatprep.mubr.msk.f32.mxu1 %vm4114_vm3, %v21283_v17  ;;  %v11924_v17 = vld [vmem:[#allocation4 + $0x1a2] sm:$0xff] }
 0x928   : > { %16885 = vmatmul.mubr.msk.f32.gmra.mrb[38].mxu1 %vm4114_vm3, %v21287_v53  ;;  %v21909_v53 = vld [vmem:[%s22096_s10] ss:$0 sm:$0xff] }
 0x929   : > { %16887 = vmatprep.mubr.msk.f32.mxu1 %vm4114_vm3, %v21291_v49 }
 0x92c   : > { %16888 = vmatmul.mubr.msk.f32.gmra.mrb[40].mxu1 %vm4114_vm3, %v21295_v60 }
 0x92d   : > { %16890 = vmatprep.mubr.msk.f32.mxu1 %vm4114_vm3, %v21299_v47 }
 0x930   : > { %16891 = vmatmul.mubr.msk.f32.gmra.mrb[42].mxu1 %vm4114_vm3, %v21303_v54 }
 0x931   : > { %16893 = vmatprep.mubr.msk.f32.mxu1 %vm4114_vm3, %v21307_v62 }
 0x934   : > { %16894 = vmatmul.mubr.msk.f32.gmra.mrb[44].mxu1 %vm4114_vm3, %v21311_v44 }
 0x935   : > { %16896 = vmatprep.mubr.msk.f32.mxu1 %vm4114_vm3, %v21315_v56 }
 0x938   : > { %16897 = vmatmul.mubr.msk.f32.gmra.mrb[46].mxu1 %vm4114_vm3, %v21319_v39 }
 0x939   : > { %16899 = vmatprep.mubr.msk.f32.mxu1 %vm4114_vm3, %v21323_v55 }
 0x93c   : > { %16900 = vmatmul.mubr.msk.f32.gmra.mrb[48].mxu1 %vm4114_vm3, %v21327_v45 }
 0x93d   : > { %16902 = vmatprep.mubr.msk.f32.mxu1 %vm4114_vm3, %v21331_v63 }
 0x940   : > { %16903 = vmatmul.mubr.msk.f32.gmra.mrb[50].mxu1 %vm4114_vm3, %v21335_v40 }
 0x941   : > { %16905 = vmatprep.mubr.msk.f32.mxu1 %vm4114_vm3, %v21339_v14 }
 0x944   : > { %16906 = vmatmul.mubr.msk.f32.gmra.mrb[52].mxu1 %vm4114_vm3, %v22738_v24 }
 0x945   : > { %16908 = vmatprep.mubr.msk.f32.mxu1 %vm4114_vm3, %v22739_v37 }
 0x948   : > { %16909 = vmatmul.mubr.msk.f32.gmra.mrb[54].mxu1 %vm4114_vm3, %v22740_v23 }
 0x949   : > { %16911 = vmatprep.mubr.msk.f32.mxu1 %vm4114_vm3, %v22741_v33 }
 0x94c   : > { %16912 = vmatmul.mubr.msk.f32.gmra.mrb[56].mxu1 %vm4114_vm3, %v22742_v10 }
 0x94d   : > { %16914 = vmatprep.mubr.msk.f32.mxu1 %vm4114_vm3, %v22743_v13 }
 0x950   : > { %16915 = vmatmul.mubr.msk.f32.gmra.mrb[58].mxu1 %vm4114_vm3, %v22744_v9 }
 0x951   : > { %16917 = vmatprep.mubr.msk.f32.mxu1 %vm4114_vm3, %v22745_v7 }
 0x954   : > { %16918 = vmatmul.mubr.msk.f32.gmra.mrb[60].mxu1 %vm4114_vm3, %v22746_v2 }
 0x955   : > { %16920 = vmatprep.mubr.msk.f32.mxu1 %vm4114_vm3, %v11536_v3 }
 0x958   : > { %16921 = vmatmul.mubr.msk.f32.gmra.mrb[62].mxu1 %vm4114_vm3, %v11537_v0 }
 0x959   : > { %16925 = vmatprep.mubr.msk.f32.mxu1 %vm4114_vm3, %v22747_v18 }
 0x95c   : > { %16926 = vmatmul.mubr.msk.f32.vlgmr.msra.gmra.mrb[32].mxu1 %vm4114_vm3, %v22748_v1 }
 0x95d   : > { %16928 = vmatprep.mubr.msk.f32.mxu1 %vm4114_vm3, %v22749_v11 }
 0x960   : > { %16929 = vmatmul.mubr.msk.f32.gmra.mrb[34].mxu1 %vm4114_vm3, %v22750_v36 }
 0x961   : > { %16931 = vmatprep.mubr.msk.f32.mxu1 %vm4114_vm3, %v22751_v61 }
 0x964   : > { %16932 = vmatmul.mubr.msk.f32.gmra.mrb[36].mxu1 %vm4114_vm3, %v22752_v22 }
 0x965   : > { %16934 = vmatprep.mubr.msk.f32.mxu1 %vm4114_vm3, %v22753_v4 }
 0x968   : > { %16935 = vmatmul.mubr.msk.f32.gmra.mrb[38].mxu1 %vm4114_vm3, %v22754_v38 }
 0x969   : > { %16937 = vmatprep.mubr.msk.f32.mxu1 %vm4114_vm3, %v22755_v57 }
 0x96c   : > { %16938 = vmatmul.mubr.msk.f32.gmra.mrb[40].mxu1 %vm4114_vm3, %v22756_v27 }
 0x96d   : > { %16940 = vmatprep.mubr.msk.f32.mxu1 %vm4114_vm3, %v22757_v15 }
 0x970   : > { %16941 = vmatmul.mubr.msk.f32.gmra.mrb[42].mxu1 %vm4114_vm3, %v22758_v20 }
 0x971   : > { %16943 = vmatprep.mubr.msk.f32.mxu1 %vm4114_vm3, %v22759_v19 }
 0x974   : > { %16944 = vmatmul.mubr.msk.f32.gmra.mrb[44].mxu1 %vm4114_vm3, %v22760_v51 }
 0x975   : > { %16946 = vmatprep.mubr.msk.f32.mxu1 %vm4114_vm3, %v22761_v21 }
 0x978   : > { %16947 = vmatmul.mubr.msk.f32.gmra.mrb[46].mxu1 %vm4114_vm3, %v22729_v6 }
 0x979   : > { %16949 = vmatprep.mubr.msk.f32.mxu1 %vm4114_vm3, %v22762_v34 }
 0x97c   : > { %16950 = vmatmul.mubr.msk.f32.gmra.mrb[48].mxu1 %vm4114_vm3, %v22731_v31 }
 0x97d   : > { %16952 = vmatprep.mubr.msk.f32.mxu1 %vm4114_vm3, %v22732_v30 }
 0x980   : > { %16953 = vmatmul.mubr.msk.f32.gmra.mrb[50].mxu1 %vm4114_vm3, %v22733_v32 }
 0x981   : > { %16955 = vmatprep.mubr.msk.f32.mxu1 %vm4114_vm3, %v22763_v59 }
 0x984   : > { %16956 = vmatmul.mubr.msk.f32.gmra.mrb[52].mxu1 %vm4114_vm3, %v22735_v42 }
 0x985   : > { %16958 = vmatprep.mubr.msk.f32.mxu1 %vm4114_vm3, %v22764_v46 }
 0x988   : > { %16959 = vmatmul.mubr.msk.f32.gmra.mrb[54].mxu1 %vm4114_vm3, %v21480_v58 }
 0x989   : > { %16961 = vmatprep.mubr.msk.f32.mxu1 %vm4114_vm3, %v22737_v43 }
 0x98c   : > { %16962 = vmatmul.mubr.msk.f32.gmra.mrb[56].mxu1 %vm4114_vm3, %v21488_v29 }
 0x98d   : > { %16964 = vmatprep.mubr.msk.f32.mxu1 %vm4114_vm3, %v22765_v50 }
 0x990   : > { %16965 = vmatmul.mubr.msk.f32.gmra.mrb[58].mxu1 %vm4114_vm3, %v21496_v25 }
 0x991   : > { %16967 = vmatprep.mubr.msk.f32.mxu1 %vm4114_vm3, %v21706_v26 }
 0x994   : > { %16968 = vmatmul.mubr.msk.f32.gmra.mrb[60].mxu1 %vm4114_vm3, %v21710_v28 }
 0x995   : > { %16970 = vmatprep.mubr.msk.f32.mxu1 %vm4114_vm3, %v11923_v8 }
 0x998   : > { %16971 = vmatmul.mubr.msk.f32.gmra.mrb[62].mxu1 %vm4114_vm3, %v11924_v17 }
 0xa2f   : > { %v16927_v49 = vpop.f32.mrb[32].mxu1 }
 0xa30   : > { %v17253_v60 = vadd.f32 %v16927_v49, %v21909_v53  ;;  %v12089_v47 = vpop.f32.mrb[33].mxu1 }
 0xa31   : > { %v17254_v54 = vadd.f32 %v21909_v53, %v12089_v47 }
 0xa32   : > { %v12281_v56 = vmax.f32 %v17253_v60, 0.0 }
 0xa33   : > { %v12280_v62 = vmax.f32 %v17254_v54, 0.0  ;;  %v16930_v44 = vpop.f32.mrb[34].mxu1 }
 0xa34   : > { %v17255_v39 = vadd.f32 %v16930_v44, %v21909_v53  ;;  %v12099_v55 = vpop.f32.mrb[35].mxu1 }
 0xa35   : > { %v17256_v45 = vadd.f32 %v21909_v53, %v12099_v55  ;;  %17075 = vmatprep.mubr.msk.f32.mxu0 %vm4114_vm3, %v12280_v62 }
 0xa36   : > { %17076 = vmatmul.mubr.msk.f32.vlgmr.msra.gmra.mrb[128].mxu0 %vm4114_vm3, %v12281_v56  ;;  %v12283_v14 = vmax.f32 %v17255_v39, 0.0 }
 0xa37   : > { %v12282_v63 = vmax.f32 %v17256_v45, 0.0  ;;  %v16933_v40 = vpop.f32.mrb[36].mxu1 }
 0xa38   : > { %v17257_v42 = vadd.f32 %v16933_v40, %v21909_v53  ;;  %v12109_v32 = vpop.f32.mrb[37].mxu1 }
 0xa39   : > { %v17258_v30 = vadd.f32 %v21909_v53, %v12109_v32  ;;  %17078 = vmatprep.mubr.msk.f32.mxu0 %vm4114_vm3, %v12282_v63 }
 0xa3a   : > { %17079 = vmatmul.mubr.msk.f32.gmra.mrb[130].mxu0 %vm4114_vm3, %v12283_v14  ;;  %v12285_v29 = vmax.f32 %v17257_v42, 0.0 }
 0xa3b   : > { %v12284_v58 = vmax.f32 %v17258_v30, 0.0  ;;  %v16936_v48 = vpop.f32.mrb[38].mxu1 }
 0xa3c   : > { %v17259_v41 = vadd.f32 %v16936_v48, %v21909_v53  ;;  %v12119_v25 = vpop.f32.mrb[39].mxu1 }
 0xa3d   : > { %v17260_v5 = vadd.f32 %v21909_v53, %v12119_v25  ;;  %17081 = vmatprep.mubr.msk.f32.mxu0 %vm4114_vm3, %v12284_v58 }
 0xa3e   : > { %17082 = vmatmul.mubr.msk.f32.gmra.mrb[132].mxu0 %vm4114_vm3, %v12285_v29  ;;  %v12287_v31 = vmax.f32 %v17259_v41, 0.0 }
 0xa3f   : > { %v12286_v35 = vmax.f32 %v17260_v5, 0.0  ;;  %v16939_v43 = vpop.f32.mrb[40].mxu1 }
 0xa40   : > { %v17261_v26 = vadd.f32 %v16939_v43, %v21909_v53  ;;  %v12129_v28 = vpop.f32.mrb[41].mxu1 }
 0xa41   : > { %v17262_v6 = vadd.f32 %v21909_v53, %v12129_v28  ;;  %17084 = vmatprep.mubr.msk.f32.mxu0 %vm4114_vm3, %v12286_v35 }
 0xa42   : > { %17085 = vmatmul.mubr.msk.f32.gmra.mrb[134].mxu0 %vm4114_vm3, %v12287_v31  ;;  %v12289_v12 = vmax.f32 %v17261_v26, 0.0 }
 0xa43   : > { %v12288_v16 = vmax.f32 %v17262_v6, 0.0  ;;  %v16942_v52 = vpop.f32.mrb[42].mxu1 }
 0xa44   : > { %v17263_v24 = vadd.f32 %v16942_v52, %v21909_v53  ;;  %v12139_v37 = vpop.f32.mrb[43].mxu1 }
 0xa45   : > { %v17264_v23 = vadd.f32 %v21909_v53, %v12139_v37  ;;  %17087 = vmatprep.mubr.msk.f32.mxu0 %vm4114_vm3, %v12288_v16 }
 0xa46   : > { %17088 = vmatmul.mubr.msk.f32.gmra.mrb[136].mxu0 %vm4114_vm3, %v12289_v12  ;;  %v12291_v13 = vmax.f32 %v17263_v24, 0.0 }
 0xa47   : > { %v12290_v33 = vmax.f32 %v17264_v23, 0.0  ;;  %v16945_v10 = vpop.f32.mrb[44].mxu1  ;;  %v21978_v23 = vld [vmem:[%s22098_s12] ss:$0 sm:$0xff] }
 0xa48   : > { %v17265_v9 = vadd.f32 %v16945_v10, %v21909_v53  ;;  %v12149_v7 = vpop.f32.mrb[45].mxu1 }
 0xa49   : > { %v17266_v3 = vadd.f32 %v21909_v53, %v12149_v7  ;;  %17090 = vmatprep.mubr.msk.f32.mxu0 %vm4114_vm3, %v12290_v33 }
 0xa4a   : > { %17091 = vmatmul.mubr.msk.f32.gmra.mrb[138].mxu0 %vm4114_vm3, %v12291_v13  ;;  %v12293_v18 = vmax.f32 %v17265_v9, 0.0 }
 0xa4b   : > { %v12292_v2 = vmax.f32 %v17266_v3, 0.0  ;;  %v16948_v0 = vpop.f32.mrb[46].mxu1 }
 0xa4c   : > { %v17267_v1 = vadd.f32 %v16948_v0, %v21909_v53  ;;  %v12159_v11 = vpop.f32.mrb[47].mxu1 }
 0xa4d   : > { %v17268_v36 = vadd.f32 %v21909_v53, %v12159_v11  ;;  %17093 = vmatprep.mubr.msk.f32.mxu0 %vm4114_vm3, %v12292_v2 }
 0xa4e   : > { %17094 = vmatmul.mubr.msk.f32.gmra.mrb[140].mxu0 %vm4114_vm3, %v12293_v18  ;;  %v12295_v4 = vmax.f32 %v17267_v1, 0.0 }
 0xa4f   : > { %v12294_v61 = vmax.f32 %v17268_v36, 0.0  ;;  %v16951_v22 = vpop.f32.mrb[48].mxu1 }
 0xa50   : > { %v17269_v38 = vadd.f32 %v16951_v22, %v21909_v53  ;;  %v12169_v57 = vpop.f32.mrb[49].mxu1 }
 0xa51   : > { %v17270_v27 = vadd.f32 %v21909_v53, %v12169_v57  ;;  %17096 = vmatprep.mubr.msk.f32.mxu0 %vm4114_vm3, %v12294_v61 }
 0xa52   : > { %17097 = vmatmul.mubr.msk.f32.gmra.mrb[142].mxu0 %vm4114_vm3, %v12295_v4  ;;  %v12297_v19 = vmax.f32 %v17269_v38, 0.0 }
 0xa53   : > { %v12296_v15 = vmax.f32 %v17270_v27, 0.0  ;;  %v16954_v20 = vpop.f32.mrb[50].mxu1 }
 0xa54   : > { %v17271_v51 = vadd.f32 %v16954_v20, %v21909_v53  ;;  %v12179_v21 = vpop.f32.mrb[51].mxu1 }
 0xa55   : > { %v17272_v34 = vadd.f32 %v21909_v53, %v12179_v21  ;;  %17099 = vmatprep.mubr.msk.f32.mxu0 %vm4114_vm3, %v12296_v15 }
 0xa56   : > { %17100 = vmatmul.mubr.msk.f32.gmra.mrb[144].mxu0 %vm4114_vm3, %v12297_v19  ;;  %v12299_v50 = vmax.f32 %v17271_v51, 0.0 }
 0xa57   : > { %v12298_v59 = vmax.f32 %v17272_v34, 0.0  ;;  %v16957_v46 = vpop.f32.mrb[52].mxu1 }
 0xa58   : > { %v17273_v8 = vadd.f32 %v16957_v46, %v21909_v53  ;;  %v12189_v17 = vpop.f32.mrb[53].mxu1 }
 0xa59   : > { %v17274_v49 = vadd.f32 %v21909_v53, %v12189_v17  ;;  %17102 = vmatprep.mubr.msk.f32.mxu0 %vm4114_vm3, %v12298_v59 }
 0xa5a   : > { %17103 = vmatmul.mubr.msk.f32.gmra.mrb[146].mxu0 %vm4114_vm3, %v12299_v50  ;;  %v12301_v54 = vmax.f32 %v17273_v8, 0.0 }
 0xa5b   : > { %v12300_v60 = vmax.f32 %v17274_v49, 0.0  ;;  %v16960_v47 = vpop.f32.mrb[54].mxu1 }
 0xa5c   : > { %v17275_v62 = vadd.f32 %v16960_v47, %v21909_v53  ;;  %v12199_v44 = vpop.f32.mrb[55].mxu1 }
 0xa5d   : > { %v17276_v56 = vadd.f32 %v21909_v53, %v12199_v44  ;;  %17105 = vmatprep.mubr.msk.f32.mxu0 %vm4114_vm3, %v12300_v60 }
 0xa5e   : > { %17106 = vmatmul.mubr.msk.f32.gmra.mrb[148].mxu0 %vm4114_vm3, %v12301_v54  ;;  %v12303_v45 = vmax.f32 %v17275_v62, 0.0 }
 0xa5f   : > { %v12302_v39 = vmax.f32 %v17276_v56, 0.0  ;;  %v16963_v55 = vpop.f32.mrb[56].mxu1 }
 0xa60   : > { %v17277_v63 = vadd.f32 %v16963_v55, %v21909_v53  ;;  %v12209_v40 = vpop.f32.mrb[57].mxu1 }
 0xa61   : > { %v17278_v14 = vadd.f32 %v21909_v53, %v12209_v40  ;;  %17108 = vmatprep.mubr.msk.f32.mxu0 %vm4114_vm3, %v12302_v39 }
 0xa62   : > { %17109 = vmatmul.mubr.msk.f32.gmra.mrb[150].mxu0 %vm4114_vm3, %v12303_v45  ;;  %v12305_v30 = vmax.f32 %v17277_v63, 0.0 }
 0xa63   : > { %v12304_v42 = vmax.f32 %v17278_v14, 0.0  ;;  %v16966_v32 = vpop.f32.mrb[58].mxu1 }
 0xa64   : > { %v17279_v58 = vadd.f32 %v16966_v32, %v21909_v53  ;;  %v12219_v48 = vpop.f32.mrb[59].mxu1 }
 0xa65   : > { %v17280_v29 = vadd.f32 %v21909_v53, %v12219_v48  ;;  %17111 = vmatprep.mubr.msk.f32.mxu0 %vm4114_vm3, %v12304_v42 }
 0xa66   : > { %17112 = vmatmul.mubr.msk.f32.gmra.mrb[152].mxu0 %vm4114_vm3, %v12305_v30  ;;  %v12307_v5 = vmax.f32 %v17279_v58, 0.0 }
 0xa67   : > { %v12306_v41 = vmax.f32 %v17280_v29, 0.0  ;;  %v16969_v25 = vpop.f32.mrb[60].mxu1 }
 0xa68   : > { %v17281_v35 = vadd.f32 %v16969_v25, %v21909_v53  ;;  %v12229_v43 = vpop.f32.mrb[61].mxu1 }
 0xa69   : > { %v17282_v31 = vadd.f32 %v21909_v53, %v12229_v43  ;;  %17114 = vmatprep.mubr.msk.f32.mxu0 %vm4114_vm3, %v12306_v41 }
 0xa6a   : > { %17115 = vmatmul.mubr.msk.f32.gmra.mrb[154].mxu0 %vm4114_vm3, %v12307_v5  ;;  %v12309_v6 = vmax.f32 %v17281_v35, 0.0 }
 0xa6b   : > { %v12308_v26 = vmax.f32 %v17282_v31, 0.0  ;;  %v16972_v28 = vpop.f32.mrb[62].mxu1 }
 0xa6c   : > { %v17283_v16 = vadd.f32 %v16972_v28, %v21909_v53  ;;  %v12239_v52 = vpop.f32.mrb[63].mxu1 }
 0xa6d   : > { %v17284_v12 = vadd.f32 %v21909_v53, %v12239_v52  ;;  %17117 = vmatprep.mubr.msk.f32.mxu0 %vm4114_vm3, %v12308_v26 }
 0xa6e   : > { %17118 = vmatmul.mubr.msk.f32.gmra.mrb[156].mxu0 %vm4114_vm3, %v12309_v6  ;;  %v12311_v37 = vmax.f32 %v17283_v16, 0.0 }
 0xa6f   : > { %v12310_v24 = vmax.f32 %v17284_v12, 0.0 }
 0xa71   : > { %17120 = vmatprep.mubr.msk.f32.mxu0 %vm4114_vm3, %v12310_v24 }
 0xa72   : > { %17121 = vmatmul.mubr.msk.f32.gmra.mrb[158].mxu0 %vm4114_vm3, %v12311_v37 }
 0xb09   : > { %v17077_v53 = vpop.f32.mrb[128].mxu0 }
 0xb0a   : > { %v17285_v33 = vadd.f32 %v17077_v53, %v21978_v23  ;;  %v12998_v10 = vpop.f32.mrb[129].mxu0 }
 0xb0b   : > { %v17286_v13 = vadd.f32 %v21978_v23, %v12998_v10 }
 0xb0c   : > { %13190 = vst.msk [vmem:[%s21985_s27 + $0x8] sm:$0xff] %vm473_vm1, %v17285_v33 }
 0xb0d   : > { %13189 = vst.msk [vmem:[%s21985_s27] sm:$0xff] %vm473_vm1, %v17286_v13  ;;  %v17080_v9 = vpop.f32.mrb[130].mxu0 }
 0xb0e   : > { %v17287_v7 = vadd.f32 %v17080_v9, %v21978_v23  ;;  %v13008_v3 = vpop.f32.mrb[131].mxu0 }
 0xb0f   : > { %v17288_v2 = vadd.f32 %v21978_v23, %v13008_v3 }
 0xb10   : > { %13192 = vst.msk [vmem:[%s21985_s27 + $0x18] sm:$0xff] %vm473_vm1, %v17287_v7 }
 0xb11   : > { %13191 = vst.msk [vmem:[%s21985_s27 + $0x10] sm:$0xff] %vm473_vm1, %v17288_v2  ;;  %v17083_v0 = vpop.f32.mrb[132].mxu0 }
 0xb12   : > { %v17289_v18 = vadd.f32 %v17083_v0, %v21978_v23  ;;  %v13018_v1 = vpop.f32.mrb[133].mxu0 }
 0xb13   : > { %v17290_v11 = vadd.f32 %v21978_v23, %v13018_v1 }
 0xb14   : > { %13194 = vst.msk [vmem:[%s21985_s27 + $0x28] sm:$0xff] %vm473_vm1, %v17289_v18 }
 0xb15   : > { %13193 = vst.msk [vmem:[%s21985_s27 + $0x20] sm:$0xff] %vm473_vm1, %v17290_v11  ;;  %v17086_v36 = vpop.f32.mrb[134].mxu0 }
 0xb16   : > { %v17291_v61 = vadd.f32 %v17086_v36, %v21978_v23  ;;  %v13028_v22 = vpop.f32.mrb[135].mxu0 }
 0xb17   : > { %v17292_v4 = vadd.f32 %v21978_v23, %v13028_v22 }
 0xb18   : > { %13196 = vst.msk [vmem:[%s21985_s27 + $0x38] sm:$0xff] %vm473_vm1, %v17291_v61 }
 0xb19   : > { %13195 = vst.msk [vmem:[%s21985_s27 + $0x30] sm:$0xff] %vm473_vm1, %v17292_v4  ;;  %v17089_v38 = vpop.f32.mrb[136].mxu0 }
 0xb1a   : > { %v17293_v57 = vadd.f32 %v17089_v38, %v21978_v23  ;;  %v13038_v27 = vpop.f32.mrb[137].mxu0 }
 0xb1b   : > { %v17294_v15 = vadd.f32 %v21978_v23, %v13038_v27 }
 0xb1c   : > { %13198 = vst.msk [vmem:[%s21985_s27 + $0x48] sm:$0xff] %vm473_vm1, %v17293_v57 }
 0xb1d   : > { %13197 = vst.msk [vmem:[%s21985_s27 + $0x40] sm:$0xff] %vm473_vm1, %v17294_v15  ;;  %v17092_v20 = vpop.f32.mrb[138].mxu0 }
 0xb1e   : > { %v17295_v19 = vadd.f32 %v17092_v20, %v21978_v23  ;;  %v13048_v51 = vpop.f32.mrb[139].mxu0 }
 0xb1f   : > { %v17296_v21 = vadd.f32 %v21978_v23, %v13048_v51 }
 0xb20   : > { %13200 = vst.msk [vmem:[%s21985_s27 + $0x58] sm:$0xff] %vm473_vm1, %v17295_v19 }
 0xb21   : > { %13199 = vst.msk [vmem:[%s21985_s27 + $0x50] sm:$0xff] %vm473_vm1, %v17296_v21  ;;  %v17095_v34 = vpop.f32.mrb[140].mxu0 }
 0xb22   : > { %v17297_v59 = vadd.f32 %v17095_v34, %v21978_v23  ;;  %v13058_v46 = vpop.f32.mrb[141].mxu0 }
 0xb23   : > { %v17298_v50 = vadd.f32 %v21978_v23, %v13058_v46 }
 0xb24   : > { %13202 = vst.msk [vmem:[%s21985_s27 + $0x68] sm:$0xff] %vm473_vm1, %v17297_v59 }
 0xb25   : > { %13201 = vst.msk [vmem:[%s21985_s27 + $0x60] sm:$0xff] %vm473_vm1, %v17298_v50  ;;  %v17098_v8 = vpop.f32.mrb[142].mxu0 }
 0xb26   : > { %v17299_v17 = vadd.f32 %v17098_v8, %v21978_v23  ;;  %v13068_v49 = vpop.f32.mrb[143].mxu0 }
 0xb27   : > { %v17300_v60 = vadd.f32 %v21978_v23, %v13068_v49 }
 0xb28   : > { %13204 = vst.msk [vmem:[%s21985_s27 + $0x78] sm:$0xff] %vm473_vm1, %v17299_v17 }
 0xb29   : > { %13203 = vst.msk [vmem:[%s21985_s27 + $0x70] sm:$0xff] %vm473_vm1, %v17300_v60  ;;  %v17101_v47 = vpop.f32.mrb[144].mxu0 }
 0xb2a   : > { %v17301_v54 = vadd.f32 %v17101_v47, %v21978_v23  ;;  %v13078_v62 = vpop.f32.mrb[145].mxu0 }
 0xb2b   : > { %v17302_v44 = vadd.f32 %v21978_v23, %v13078_v62 }
 0xb2c   : > { %13206 = vst.msk [vmem:[%s21985_s27 + $0x88] sm:$0xff] %vm473_vm1, %v17301_v54 }
 0xb2d   : > { %13205 = vst.msk [vmem:[%s21985_s27 + $0x80] sm:$0xff] %vm473_vm1, %v17302_v44  ;;  %v17104_v56 = vpop.f32.mrb[146].mxu0 }
 0xb2e   : > { %v17303_v39 = vadd.f32 %v17104_v56, %v21978_v23  ;;  %v13088_v55 = vpop.f32.mrb[147].mxu0 }
 0xb2f   : > { %v17304_v45 = vadd.f32 %v21978_v23, %v13088_v55 }
 0xb30   : > { %13208 = vst.msk [vmem:[%s21985_s27 + $0x98] sm:$0xff] %vm473_vm1, %v17303_v39 }
 0xb31   : > { %13207 = vst.msk [vmem:[%s21985_s27 + $0x90] sm:$0xff] %vm473_vm1, %v17304_v45  ;;  %v17107_v63 = vpop.f32.mrb[148].mxu0 }
 0xb32   : > { %v17305_v40 = vadd.f32 %v17107_v63, %v21978_v23  ;;  %v13098_v14 = vpop.f32.mrb[149].mxu0 }
 0xb33   : > { %v17306_v42 = vadd.f32 %v21978_v23, %v13098_v14 }
 0xb34   : > { %13210 = vst.msk [vmem:[%s21985_s27 + $0xa8] sm:$0xff] %vm473_vm1, %v17305_v40 }
 0xb35   : > { %13209 = vst.msk [vmem:[%s21985_s27 + $0xa0] sm:$0xff] %vm473_vm1, %v17306_v42  ;;  %v17110_v32 = vpop.f32.mrb[150].mxu0 }
 0xb36   : > { %v17307_v30 = vadd.f32 %v17110_v32, %v21978_v23  ;;  %v13108_v58 = vpop.f32.mrb[151].mxu0 }
 0xb37   : > { %v17308_v48 = vadd.f32 %v21978_v23, %v13108_v58 }
 0xb38   : > { %13212 = vst.msk [vmem:[%s21985_s27 + $0xb8] sm:$0xff] %vm473_vm1, %v17307_v30 }
 0xb39   : > { %13211 = vst.msk [vmem:[%s21985_s27 + $0xb0] sm:$0xff] %vm473_vm1, %v17308_v48  ;;  %v17113_v29 = vpop.f32.mrb[152].mxu0 }
 0xb3a   : > { %v17309_v41 = vadd.f32 %v17113_v29, %v21978_v23  ;;  %v13118_v25 = vpop.f32.mrb[153].mxu0 }
 0xb3b   : > { %v17310_v5 = vadd.f32 %v21978_v23, %v13118_v25 }
 0xb3c   : > { %13214 = vst.msk [vmem:[%s21985_s27 + $0xc8] sm:$0xff] %vm473_vm1, %v17309_v41 }
 0xb3d   : > { %13213 = vst.msk [vmem:[%s21985_s27 + $0xc0] sm:$0xff] %vm473_vm1, %v17310_v5  ;;  %v17116_v35 = vpop.f32.mrb[154].mxu0 }
 0xb3e   : > { %v17311_v43 = vadd.f32 %v17116_v35, %v21978_v23  ;;  %v13128_v31 = vpop.f32.mrb[155].mxu0 }
 0xb3f   : > { %v17312_v26 = vadd.f32 %v21978_v23, %v13128_v31 }
 0xb40   : > { %13216 = vst.msk [vmem:[%s21985_s27 + $0xd8] sm:$0xff] %vm473_vm1, %v17311_v43 }
 0xb41   : > { %13215 = vst.msk [vmem:[%s21985_s27 + $0xd0] sm:$0xff] %vm473_vm1, %v17312_v26  ;;  %v17119_v28 = vpop.f32.mrb[156].mxu0 }
 0xb42   : > { %v17313_v6 = vadd.f32 %v17119_v28, %v21978_v23  ;;  %v13138_v16 = vpop.f32.mrb[157].mxu0 }
 0xb43   : > { %v17314_v52 = vadd.f32 %v21978_v23, %v13138_v16 }
 0xb44   : > { %13218 = vst.msk [vmem:[%s21985_s27 + $0xe8] sm:$0xff] %vm473_vm1, %v17313_v6 }
 0xb45   : > { %13217 = vst.msk [vmem:[%s21985_s27 + $0xe0] sm:$0xff] %vm473_vm1, %v17314_v52  ;;  %v17122_v12 = vpop.f32.mrb[158].mxu0 }
 0xb46   : > { %v17315_v24 = vadd.f32 %v17122_v12, %v21978_v23  ;;  %v13148_v37 = vpop.f32.mrb[159].mxu0 }
 0xb47   : > { %v17316_v53 = vadd.f32 %v21978_v23, %v13148_v37 }
 0xb48   : > { %13220 = vst.msk [vmem:[%s21985_s27 + $0xf8] sm:$0xff] %vm473_vm1, %v17315_v24 }
 0xb49   : > { %13219 = vst.msk [vmem:[%s21985_s27 + $0xf0] sm:$0xff] %vm473_vm1, %v17316_v53 }
 0xb4a PF: > { %s23_s25 = sadd.s32 1, %s18164_s25  }
 0xb4b   : > { %p20_p4 = scmp.ge.s32.totalorder %s23_s25, 4  }
 0xb4d   :  { %22 = sbr.rel (!%p20_p4) target bundleno = 1 (0x1), region = 132 }

</bundles_post_ra>
